<compile_context>
chip_gen: v7x
topology: tpu7x:2x2x1
jax: 0.10.0
libtpu: 0.0.40
codegen_flags: <defaults>
</compile_context>

<pallas_src>
import functools

import jax
import jax.numpy as jnp
from jax.experimental import pallas as pl
from jax.experimental.pallas import tpu as pltpu

# ---- module configuration (cfg.parts == 'hand' -> MANO) ----
JOINT_NUM = 21                       # mano.joint_num
ORIG_JOINT_NUM = 16                  # mano.orig_joint_num
SHAPE_PARAM_DIM = 10                 # mano.shape_param_dim
IN_CH = 2048
CONV_CH = 512
ROOT_DIM = 6
POSE_DIM = (ORIG_JOINT_NUM - 1) * 6  # 90
RP_DIM = ROOT_DIM + POSE_DIM         # 96
OUT_PAD = 128                        # fused lane-dense output width
SHAPE_OFF = RP_DIM                   # 96  -> shape params live at [96:106]
CAM_OFF = RP_DIM + SHAPE_PARAM_DIM   # 106 -> cam params live at [106:109]
W_ALL_COLS = CONV_CH + OUT_PAD       # 640 (conv | zero | shapew | camw | zero)
BN_EPS = 1e-5
# TODO(synk): BatchNorm is applied in eval mode (running stats folded into the
# 1x1 conv); training-mode batch statistics are not reproduced.


# ----------------------------------------------------------------------------
# Pallas kernel: one grid step == one block of `tb` batch elements.
# ----------------------------------------------------------------------------
def _rotation_net_kernel(x_ref,       # (tb*hw, 2048) bf16   img_feat block (NHWC-flat)
                         s_ref,       # (J*tb, tb*hw) bf16   block-diag sampling matrix
                         bias_ref,    # (tb, 128)     f32    [rp_bias+coord@wc | shape_b | cam_b | 0]
                         wall_ref,    # (2048, 640)   bf16   [conv(BN folded) | 0 | shapew | camw | 0]
                         convb_ref,   # (1, 512)      f32
                         wf_ref,      # (J, 512, 128) bf16   per-joint root/pose feature weights
                         out_ref,     # (tb, 128)     f32    fused [rp | shape | cam | pad]
                         *, tb, hw):
    # fused 1x1-conv + shape/cam heads: one big bf16 matmul
    y = jnp.dot(x_ref[...], wall_ref[...],
                preferred_element_type=jnp.float32)            # (tb*hw, 640)
    feat = jnp.maximum(y[:, :CONV_CH] + convb_ref[...],
                       0.0).astype(jnp.bfloat16)               # (tb*hw, 512) bf16

    # per-element global average pool of the 128-wide tail (mean commutes with
    # the fused shape/cam linears): reshape + sublane mean (XLU, not VPU/MXU).
    pooled = jnp.mean(y[:, CONV_CH:].reshape(tb, hw, OUT_PAD), axis=1)  # (tb,128)

    # sample_joint_features: bilinear grid_sample == sampling-matrix @ feat
    # (joint-major rows: row j*tb + t == joint j of block element t), bf16 MXU.
    jf = jnp.dot(s_ref[...], feat,
                 preferred_element_type=jnp.float32)           # (J*tb, 512) f32
    jf = jf.astype(jnp.bfloat16)

    # root/pose head: accumulate 21 per-joint (tb,512)@(512,128) MXU matmuls
    # (replaces the old flatten-to-(tb, J*512) relayout copies).
    head = pooled + bias_ref[...]                              # (tb, 128) f32
    for j in range(JOINT_NUM):
        head = head + jnp.dot(jf[j * tb:(j + 1) * tb, :], wf_ref[j],
                              preferred_element_type=jnp.float32)
    out_ref[...] = head


# ----------------------------------------------------------------------------
# Glue: bilinear sampling matrix replicating
#   F.grid_sample(mode='bilinear', padding_mode='zeros', align_corners=True)
# as used by sample_joint_features (joint x/y already in pixel coords).
# TODO(synk): at large H*W (or tb >= 32) replace the dense sampling matrix with
# an in-kernel scalar-prefetched 4-tap gather; at 8x8 maps the dense form wins.
# ----------------------------------------------------------------------------
def _bilinear_sampling_matrix(joint_coord_img, H, W):
    B, J, _ = joint_coord_img.shape
    px = joint_coord_img[:, :, 0]
    py = joint_coord_img[:, :, 1]
    x0 = jnp.floor(px)
    y0 = jnp.floor(py)
    x1 = x0 + 1.0
    y1 = y0 + 1.0
    corners = (
        (x0, y0, (x1 - px) * (y1 - py)),
        (x1, y0, (px - x0) * (y1 - py)),
        (x0, y1, (x1 - px) * (py - y0)),
        (x1, y1, (px - x0) * (py - y0)),
    )
    S = jnp.zeros((B, J, H * W), jnp.float32)
    for cx, cy, w in corners:
        valid = ((cx >= 0) & (cx <= W - 1) & (cy >= 0) & (cy <= H - 1))
        xi = jnp.clip(cx, 0, W - 1).astype(jnp.int32)
        yi = jnp.clip(cy, 0, H - 1).astype(jnp.int32)
        idx = yi * W + xi
        S = S + (w * valid.astype(jnp.float32))[:, :, None] * \
            jax.nn.one_hot(idx, H * W, dtype=jnp.float32)
    return S


def _weight_spec(block_shape):
    """Grid-invariant weight BlockSpec (constant index_map, re-fetch skipped).

    Single-buffer it via pipeline_mode=pl.Buffered(1) when this Pallas version
    supports it (saves ~5 MiB of pointless double-buffer VMEM; matters on
    v7x's 64 MiB). Falls back to a plain BlockSpec otherwise.
    """
    index_map = lambda i: (0,) * len(block_shape)
    if hasattr(pl, "Buffered"):
        try:
            return pl.BlockSpec(block_shape, index_map,
                                pipeline_mode=pl.Buffered(1))
        except TypeError:  # older Pallas without pipeline_mode kwarg
            pass
    return pl.BlockSpec(block_shape, index_map)


# ----------------------------------------------------------------------------
# Wrapper: parameter folding / fusing (glue) + pallas_call.
# ----------------------------------------------------------------------------
def rotation_net_forward(img_feat_nchw, joint_coord_img, params,
                         block_batch=16, vmem_limit_bytes=48 * 1024 * 1024):
    # block_batch=16 keeps the v7x VMEM budget ~20-25 MiB; on v5e/v6e
    # (128 MiB VMEM) block_batch=32 with a larger vmem_limit_bytes is also fine.
    B, C, H, W = img_feat_nchw.shape
    HW = H * W
    J = JOINT_NUM
    tb = min(block_batch, B)             # batch elements per grid step (M fill)
    if tb == B and B >= 16:
        tb = -(-B // 2)                  # keep >=2 grid steps for megacore (v7x)
    nb = -(-B // tb)
    Bpad = nb * tb

    # NCHW -> (B, HW, C) in bf16 (cast before the transpose: halves HBM traffic
    # of this out-of-kernel relayout), pad batch to a multiple of tb.
    x = jnp.transpose(img_feat_nchw.astype(jnp.bfloat16),
                      (0, 2, 3, 1)).reshape(B, HW, C)
    jci = joint_coord_img.astype(jnp.float32)
    if Bpad != B:
        x = jnp.concatenate([x, jnp.zeros((Bpad - B, HW, C), jnp.bfloat16)], 0)
        jci = jnp.concatenate([jci, jnp.zeros((Bpad - B, J, 3), jnp.float32)], 0)
    x_flat = x.reshape(Bpad * HW, C)

    # block-diagonal sampling matrix, joint-major rows within each batch block
    S_el = _bilinear_sampling_matrix(jci, H, W)                 # (Bpad, J, HW)
    Sg = S_el.reshape(nb, tb, J, HW)
    S_blocks = jnp.einsum('ntjp,ts->njtsp', Sg,
                          jnp.eye(tb, dtype=jnp.float32))
    S_blocks = S_blocks.reshape(nb, J * tb, tb * HW).astype(jnp.bfloat16)

    # fold eval-mode BN into the 1x1 conv; fuse shape/cam heads into same matmul
    bn_scale = params['bn_gamma'] / jnp.sqrt(params['bn_var'] + BN_EPS)
    convw = (params['conv_w'] * bn_scale[:, None]).T            # (2048, 512)
    convb = ((params['conv_b'] - params['bn_mean']) * bn_scale
             + params['bn_beta'])[None, :]                      # (1, 512)
    w_all = jnp.zeros((C, W_ALL_COLS), jnp.float32)
    w_all = w_all.at[:, :CONV_CH].set(convw)
    w_all = w_all.at[:, CONV_CH + SHAPE_OFF:
                     CONV_CH + SHAPE_OFF + SHAPE_PARAM_DIM].set(params['shape_w'].T)
    w_all = w_all.at[:, CONV_CH + CAM_OFF:
                     CONV_CH + CAM_OFF + 3].set(params['cam_w'].T)
    w_all = w_all.astype(jnp.bfloat16)
    # TODO(synk): on v5e/v6e an int8-quantized main matmul (x_flat / w_all)
    # would be ~2x faster still; not portable to v7x (fp8-only MXU), so skipped.

    # fused root/pose head: feature part -> per-joint (512, 128) bf16 weights;
    # coordinate part + all biases folded into a per-element (1, 128) bias here.
    # (PyTorch weight layout: (out, J*(512+3)), per-joint order = [512 feat, 3 coord])
    w_rp = jnp.concatenate([params['root_w'], params['pose_w']], axis=0)  # (96, J*515)
    w_rp = w_rp.reshape(RP_DIM, J, CONV_CH + 3)
    wf3 = jnp.transpose(w_rp[:, :, :CONV_CH], (1, 2, 0))        # (J, 512, 96)
    wf_pad = jnp.zeros((J, CONV_CH, OUT_PAD), jnp.float32)
    wf_pad = wf_pad.at[:, :, :RP_DIM].set(wf3).astype(jnp.bfloat16)
    wc = jnp.transpose(w_rp[:, :, CONV_CH:], (1, 2, 0)).reshape(J * 3, RP_DIM)
    rp_b = jnp.concatenate([params['root_b'], params['pose_b']], axis=0)

    coord_flat = jci.reshape(Bpad, J * 3)
    rp_bias = coord_flat @ wc + rp_b[None, :]                   # (Bpad, 96)
    bias_full = jnp.zeros((Bpad, OUT_PAD), jnp.float32)
    bias_full = bias_full.at[:, :RP_DIM].set(rp_bias)
    bias_full = bias_full.at[:, SHAPE_OFF:
                             SHAPE_OFF + SHAPE_PARAM_DIM].set(params['shape_b'][None, :])
    bias_full = bias_full.at[:, CAM_OFF:CAM_OFF + 3].set(params['cam_b'][None, :])
    bias_full = bias_full.reshape(nb, tb, OUT_PAD)

    kernel = functools.partial(_rotation_net_kernel, tb=tb, hw=HW)

    out = pl.pallas_call(
        kernel,
        out_shape=jax.ShapeDtypeStruct((nb, tb, OUT_PAD), jnp.float32),
        grid=(nb,),
        in_specs=[
            pl.BlockSpec((tb * HW, C), lambda i: (i, 0)),                # x (bf16)
            pl.BlockSpec((None, J * tb, tb * HW), lambda i: (i, 0, 0)),  # S (bf16)
            pl.BlockSpec((None, tb, OUT_PAD), lambda i: (i, 0, 0)),      # bias
            _weight_spec((C, W_ALL_COLS)),                               # w_all (bf16)
            _weight_spec((1, CONV_CH)),                                  # convb
            _weight_spec((J, CONV_CH, OUT_PAD)),                         # wf (bf16)
        ],
        out_specs=pl.BlockSpec((None, tb, OUT_PAD), lambda i: (i, 0, 0)),
        compiler_params=pltpu.CompilerParams(
            dimension_semantics=("parallel",),
            vmem_limit_bytes=vmem_limit_bytes),
    )(x_flat, S_blocks, bias_full, w_all, convb, wf_pad)

    out = out.reshape(Bpad, OUT_PAD)[:B]
    root_pose = out[:, :ROOT_DIM]
    pose_param = out[:, ROOT_DIM:RP_DIM]
    shape_param = out[:, SHAPE_OFF:SHAPE_OFF + SHAPE_PARAM_DIM]
    cam_param = out[:, CAM_OFF:CAM_OFF + 3]
    return root_pose, pose_param, shape_param, cam_param


# ----------------------------------------------------------------------------
# Pure-JAX reference (independent gather-based grid_sample) for verification.
# ----------------------------------------------------------------------------
def reference_forward(img_feat_nchw, joint_coord_img, params):
    B, C, H, W = img_feat_nchw.shape
    pooled = img_feat_nchw.mean(axis=(2, 3))                    # (B, 2048)
    shape_param = pooled @ params['shape_w'].T + params['shape_b']
    cam_param = pooled @ params['cam_w'].T + params['cam_b']

    bn_scale = params['bn_gamma'] / jnp.sqrt(params['bn_var'] + BN_EPS)
    x = jnp.transpose(img_feat_nchw, (0, 2, 3, 1))              # (B, H, W, C)
    feat = x @ (params['conv_w'] * bn_scale[:, None]).T
    feat = feat + ((params['conv_b'] - params['bn_mean']) * bn_scale
                   + params['bn_beta'])
    feat = jnp.maximum(feat, 0.0)                               # (B, H, W, 512)

    px = joint_coord_img[:, :, 0]
    py = joint_coord_img[:, :, 1]
    x0 = jnp.floor(px); y0 = jnp.floor(py); x1 = x0 + 1.0; y1 = y0 + 1.0
    jf = jnp.zeros((B, JOINT_NUM, CONV_CH), jnp.float32)
    bidx = jnp.arange(B)[:, None]
    for cx, cy, w in ((x0, y0, (x1 - px) * (y1 - py)),
                      (x1, y0, (px - x0) * (y1 - py)),
                      (x0, y1, (x1 - px) * (py - y0)),
                      (x1, y1, (px - x0) * (py - y0))):
        valid = ((cx >= 0) & (cx <= W - 1) & (cy >= 0) & (cy <= H - 1))
        xi = jnp.clip(cx, 0, W - 1).astype(jnp.int32)
        yi = jnp.clip(cy, 0, H - 1).astype(jnp.int32)
        vals = feat[bidx, yi, xi]                               # (B, J, 512)
        jf = jf + (w * valid.astype(jnp.float32))[..., None] * vals

    feat_cat = jnp.concatenate([jf, joint_coord_img], axis=2).reshape(B, -1)
    root_pose = feat_cat @ params['root_w'].T + params['root_b']
    pose_param = feat_cat @ params['pose_w'].T + params['pose_b']
    return root_pose, pose_param, shape_param, cam_param


# ----------------------------------------------------------------------------
# Deterministic synthetic parameter init (shapes from RotationNet.__init__).
# ----------------------------------------------------------------------------
def init_params(key):
    ks = jax.random.split(key, 12)
    in_rp = JOINT_NUM * (CONV_CH + 3)

    def nrm(k, shape, scale):
        return scale * jax.random.normal(k, shape, jnp.float32)

    return dict(
        conv_w=nrm(ks[0], (CONV_CH, IN_CH), 1.0 / float(IN_CH) ** 0.5),  # 1x1 conv (out, in)
        conv_b=nrm(ks[1], (CONV_CH,), 0.01),
        bn_gamma=1.0 + nrm(ks[2], (CONV_CH,), 0.1),
        bn_beta=nrm(ks[3], (CONV_CH,), 0.1),
        bn_mean=nrm(ks[4], (CONV_CH,), 0.1),
        bn_var=1.0 + 0.5 * jax.random.uniform(ks[5], (CONV_CH,), jnp.float32),
        shape_w=nrm(ks[6], (SHAPE_PARAM_DIM, IN_CH), 1.0 / float(IN_CH) ** 0.5),
        shape_b=nrm(ks[7], (SHAPE_PARAM_DIM,), 0.01),
        cam_w=nrm(ks[8], (3, IN_CH), 1.0 / float(IN_CH) ** 0.5),
        cam_b=nrm(ks[9], (3,), 0.01),
        root_w=nrm(ks[10], (ROOT_DIM, in_rp), 1.0 / float(in_rp) ** 0.5),
        root_b=jnp.zeros((ROOT_DIM,), jnp.float32),
        pose_w=nrm(ks[11], (POSE_DIM, in_rp), 1.0 / float(in_rp) ** 0.5),
        pose_b=jnp.zeros((POSE_DIM,), jnp.float32),
    )


if __name__ == "__main__":
    key = jax.random.PRNGKey(0)
    k = jax.random.split(key, 5)
    # Small test shapes: B=6 with block_batch=4 exercises batch padding and a
    # 2-step grid (the production default is block_batch=16).
    B, H, W = 6, 8, 8

    img_feat = jax.random.normal(k[0], (B, IN_CH, H, W), jnp.float32)
    jx = jax.random.uniform(k[1], (B, JOINT_NUM), minval=0.0, maxval=float(W - 1))
    jy = jax.random.uniform(k[2], (B, JOINT_NUM), minval=0.0, maxval=float(H - 1))
    jz = jax.random.uniform(k[3], (B, JOINT_NUM), minval=-1.0, maxval=1.0)
    joint_coord_img = jnp.stack([jx, jy, jz], axis=2).astype(jnp.float32)

    params = init_params(k[4])

    fwd = jax.jit(functools.partial(rotation_net_forward, block_batch=4))
    outs = jax.block_until_ready(fwd(img_feat, joint_coord_img, params))

    # sanity check against a pure-JAX reference (kernel uses bf16 weights/acts)
    with jax.default_matmul_precision("float32"):
        refs = reference_forward(img_feat, joint_coord_img, params)
    for o, r in zip(outs, refs):
        assert o.shape == r.shape, (o.shape, r.shape)
        assert jnp.allclose(o, r, rtol=3e-2, atol=3e-2), \
            float(jnp.max(jnp.abs(o - r)))

    print("KERNEL_OK")
</pallas_src>

<mosaic_0001>
module attributes {stable_mosaic.version = 11 : i64} {
  func.func @_rotation_net_kernel(%arg0: i32, %arg1: memref<256x2048xbf16, #tpu.memory_space<vmem>>, %arg2: memref<1x84x256xbf16, #tpu.memory_space<vmem>>, %arg3: memref<1x4x128xf32, #tpu.memory_space<vmem>>, %arg4: memref<2048x640xbf16, #tpu.memory_space<vmem>>, %arg5: memref<1x512xf32, #tpu.memory_space<vmem>>, %arg6: memref<21x512x128xbf16, #tpu.memory_space<vmem>>, %arg7: memref<1x4x128xf32, #tpu.memory_space<vmem>>) attributes {dimension_semantics = [#tpu.dimension_semantics<parallel>], iteration_bounds = array<i64: 2>, scalar_prefetch = 0 : i64, scratch_operands = 0 : i64, tpu.core_type = #tpu.core_type<tc>, window_params = [{transform_indices = @transform_0, window_bounds = array<i64: 256, 2048>}, {transform_indices = @transform_1, window_bounds = array<i64: 1, 84, 256>}, {transform_indices = @transform_2, window_bounds = array<i64: 1, 4, 128>}, {pipeline_mode = #tpu.pipeline_mode<synchronous>, transform_indices = @transform_3, window_bounds = array<i64: 2048, 640>}, {pipeline_mode = #tpu.pipeline_mode<synchronous>, transform_indices = @transform_4, window_bounds = array<i64: 1, 512>}, {pipeline_mode = #tpu.pipeline_mode<synchronous>, transform_indices = @transform_5, window_bounds = array<i64: 21, 512, 128>}, {transform_indices = @transform_6, window_bounds = array<i64: 1, 4, 128>}]} {
    %c0 = arith.constant 0 : index
    %c0_0 = arith.constant 0 : index
    %0 = vector.load %arg1[%c0, %c0_0] : memref<256x2048xbf16, #tpu.memory_space<vmem>>, vector<256x2048xbf16>
    %c0_1 = arith.constant 0 : index
    %c0_2 = arith.constant 0 : index
    %1 = vector.load %arg4[%c0_1, %c0_2] : memref<2048x640xbf16, #tpu.memory_space<vmem>>, vector<2048x640xbf16>
    %cst = arith.constant dense<0.000000e+00> : vector<256x640xf32>
    %2 = tpu.matmul %0, %1, %cst {dimension_numbers = #tpu.dot_dimension_numbers<[1], [0], [0], [1], [0, 0, 1, 1], [], []>} : vector<256x2048xbf16>, vector<2048x640xbf16>, vector<256x640xf32> -> vector<256x640xf32>
    %3 = vector.extract_strided_slice %2 {offsets = [0, 0], sizes = [256, 512], strides = [1, 1]} : vector<256x640xf32> to vector<256x512xf32>
    %c0_3 = arith.constant 0 : index
    %c0_4 = arith.constant 0 : index
    %4 = vector.load %arg5[%c0_3, %c0_4] : memref<1x512xf32, #tpu.memory_space<vmem>>, vector<1x512xf32>
    %5 = vector.broadcast %4 : vector<1x512xf32> to vector<256x512xf32>
    %6 = arith.addf %3, %5 : vector<256x512xf32>
    %cst_5 = arith.constant 0.000000e+00 : f32
    %7 = vector.broadcast %cst_5 : f32 to vector<256x512xf32>
    %8 = arith.maximumf %6, %7 : vector<256x512xf32>
    %9 = arith.truncf %8 : vector<256x512xf32> to vector<256x512xbf16>
    %10 = vector.extract_strided_slice %2 {offsets = [0, 512], sizes = [256, 128], strides = [1, 1]} : vector<256x640xf32> to vector<256x128xf32>
    %11 = vector.shape_cast %10 : vector<256x128xf32> to vector<4x64x128xf32>
    %cst_6 = arith.constant dense<0.000000e+00> : vector<4x128xf32>
    %12 = vector.multi_reduction <add>, %11, %cst_6 [1] : vector<4x64x128xf32> to vector<4x128xf32>
    %cst_7 = arith.constant 6.400000e+01 : f32
    %13 = vector.broadcast %cst_7 : f32 to vector<4x128xf32>
    %14 = arith.divf %12, %13 : vector<4x128xf32>
    %c0_8 = arith.constant 0 : index
    %c0_9 = arith.constant 0 : index
    %c0_10 = arith.constant 0 : index
    %15 = vector.load %arg2[%c0_8, %c0_9, %c0_10] : memref<1x84x256xbf16, #tpu.memory_space<vmem>>, vector<1x84x256xbf16>
    %16 = vector.shape_cast %15 : vector<1x84x256xbf16> to vector<84x256xbf16>
    %cst_11 = arith.constant dense<0.000000e+00> : vector<84x512xf32>
    %17 = tpu.matmul %16, %9, %cst_11 {dimension_numbers = #tpu.dot_dimension_numbers<[1], [0], [0], [1], [0, 0, 1, 1], [], []>} : vector<84x256xbf16>, vector<256x512xbf16>, vector<84x512xf32> -> vector<84x512xf32>
    %18 = arith.truncf %17 : vector<84x512xf32> to vector<84x512xbf16>
    %c0_12 = arith.constant 0 : index
    %c0_13 = arith.constant 0 : index
    %c0_14 = arith.constant 0 : index
    %19 = vector.load %arg3[%c0_12, %c0_13, %c0_14] : memref<1x4x128xf32, #tpu.memory_space<vmem>>, vector<1x4x128xf32>
    %20 = vector.shape_cast %19 : vector<1x4x128xf32> to vector<4x128xf32>
    %21 = arith.addf %14, %20 : vector<4x128xf32>
    %22 = vector.extract_strided_slice %18 {offsets = [0, 0], sizes = [4, 512], strides = [1, 1]} : vector<84x512xbf16> to vector<4x512xbf16>
    %c0_15 = arith.constant 0 : index
    %c0_16 = arith.constant 0 : index
    %c0_17 = arith.constant 0 : index
    %23 = vector.load %arg6[%c0_15, %c0_16, %c0_17] : memref<21x512x128xbf16, #tpu.memory_space<vmem>>, vector<1x512x128xbf16>
    %24 = vector.shape_cast %23 : vector<1x512x128xbf16> to vector<512x128xbf16>
    %cst_18 = arith.constant dense<0.000000e+00> : vector<4x128xf32>
    %25 = tpu.matmul %22, %24, %cst_18 {dimension_numbers = #tpu.dot_dimension_numbers<[1], [0], [0], [1], [0, 0, 1, 1], [], []>} : vector<4x512xbf16>, vector<512x128xbf16>, vector<4x128xf32> -> vector<4x128xf32>
    %26 = arith.addf %21, %25 : vector<4x128xf32>
    %27 = vector.extract_strided_slice %18 {offsets = [4, 0], sizes = [4, 512], strides = [1, 1]} : vector<84x512xbf16> to vector<4x512xbf16>
    %c1 = arith.constant 1 : index
    %c0_19 = arith.constant 0 : index
    %c0_20 = arith.constant 0 : index
    %28 = vector.load %arg6[%c1, %c0_19, %c0_20] : memref<21x512x128xbf16, #tpu.memory_space<vmem>>, vector<1x512x128xbf16>
    %29 = vector.shape_cast %28 : vector<1x512x128xbf16> to vector<512x128xbf16>
    %cst_21 = arith.constant dense<0.000000e+00> : vector<4x128xf32>
    %30 = tpu.matmul %27, %29, %cst_21 {dimension_numbers = #tpu.dot_dimension_numbers<[1], [0], [0], [1], [0, 0, 1, 1], [], []>} : vector<4x512xbf16>, vector<512x128xbf16>, vector<4x128xf32> -> vector<4x128xf32>
    %31 = arith.addf %26, %30 : vector<4x128xf32>
    %32 = vector.extract_strided_slice %18 {offsets = [8, 0], sizes = [4, 512], strides = [1, 1]} : vector<84x512xbf16> to vector<4x512xbf16>
    %c2 = arith.constant 2 : index
    %c0_22 = arith.constant 0 : index
    %c0_23 = arith.constant 0 : index
    %33 = vector.load %arg6[%c2, %c0_22, %c0_23] : memref<21x512x128xbf16, #tpu.memory_space<vmem>>, vector<1x512x128xbf16>
    %34 = vector.shape_cast %33 : vector<1x512x128xbf16> to vector<512x128xbf16>
    %cst_24 = arith.constant dense<0.000000e+00> : vector<4x128xf32>
    %35 = tpu.matmul %32, %34, %cst_24 {dimension_numbers = #tpu.dot_dimension_numbers<[1], [0], [0], [1], [0, 0, 1, 1], [], []>} : vector<4x512xbf16>, vector<512x128xbf16>, vector<4x128xf32> -> vector<4x128xf32>
    %36 = arith.addf %31, %35 : vector<4x128xf32>
    %37 = vector.extract_strided_slice %18 {offsets = [12, 0], sizes = [4, 512], strides = [1, 1]} : vector<84x512xbf16> to vector<4x512xbf16>
    %c3 = arith.constant 3 : index
    %c0_25 = arith.constant 0 : index
    %c0_26 = arith.constant 0 : index
    %38 = vector.load %arg6[%c3, %c0_25, %c0_26] : memref<21x512x128xbf16, #tpu.memory_space<vmem>>, vector<1x512x128xbf16>
    %39 = vector.shape_cast %38 : vector<1x512x128xbf16> to vector<512x128xbf16>
    %cst_27 = arith.constant dense<0.000000e+00> : vector<4x128xf32>
    %40 = tpu.matmul %37, %39, %cst_27 {dimension_numbers = #tpu.dot_dimension_numbers<[1], [0], [0], [1], [0, 0, 1, 1], [], []>} : vector<4x512xbf16>, vector<512x128xbf16>, vector<4x128xf32> -> vector<4x128xf32>
    %41 = arith.addf %36, %40 : vector<4x128xf32>
    %42 = vector.extract_strided_slice %18 {offsets = [16, 0], sizes = [4, 512], strides = [1, 1]} : vector<84x512xbf16> to vector<4x512xbf16>
    %c4 = arith.constant 4 : index
    %c0_28 = arith.constant 0 : index
    %c0_29 = arith.constant 0 : index
    %43 = vector.load %arg6[%c4, %c0_28, %c0_29] : memref<21x512x128xbf16, #tpu.memory_space<vmem>>, vector<1x512x128xbf16>
    %44 = vector.shape_cast %43 : vector<1x512x128xbf16> to vector<512x128xbf16>
    %cst_30 = arith.constant dense<0.000000e+00> : vector<4x128xf32>
    %45 = tpu.matmul %42, %44, %cst_30 {dimension_numbers = #tpu.dot_dimension_numbers<[1], [0], [0], [1], [0, 0, 1, 1], [], []>} : vector<4x512xbf16>, vector<512x128xbf16>, vector<4x128xf32> -> vector<4x128xf32>
    %46 = arith.addf %41, %45 : vector<4x128xf32>
    %47 = vector.extract_strided_slice %18 {offsets = [20, 0], sizes = [4, 512], strides = [1, 1]} : vector<84x512xbf16> to vector<4x512xbf16>
    %c5 = arith.constant 5 : index
    %c0_31 = arith.constant 0 : index
    %c0_32 = arith.constant 0 : index
    %48 = vector.load %arg6[%c5, %c0_31, %c0_32] : memref<21x512x128xbf16, #tpu.memory_space<vmem>>, vector<1x512x128xbf16>
    %49 = vector.shape_cast %48 : vector<1x512x128xbf16> to vector<512x128xbf16>
    %cst_33 = arith.constant dense<0.000000e+00> : vector<4x128xf32>
    %50 = tpu.matmul %47, %49, %cst_33 {dimension_numbers = #tpu.dot_dimension_numbers<[1], [0], [0], [1], [0, 0, 1, 1], [], []>} : vector<4x512xbf16>, vector<512x128xbf16>, vector<4x128xf32> -> vector<4x128xf32>
    %51 = arith.addf %46, %50 : vector<4x128xf32>
    %52 = vector.extract_strided_slice %18 {offsets = [24, 0], sizes = [4, 512], strides = [1, 1]} : vector<84x512xbf16> to vector<4x512xbf16>
    %c6 = arith.constant 6 : index
    %c0_34 = arith.constant 0 : index
    %c0_35 = arith.constant 0 : index
    %53 = vector.load %arg6[%c6, %c0_34, %c0_35] : memref<21x512x128xbf16, #tpu.memory_space<vmem>>, vector<1x512x128xbf16>
    %54 = vector.shape_cast %53 : vector<1x512x128xbf16> to vector<512x128xbf16>
    %cst_36 = arith.constant dense<0.000000e+00> : vector<4x128xf32>
    %55 = tpu.matmul %52, %54, %cst_36 {dimension_numbers = #tpu.dot_dimension_numbers<[1], [0], [0], [1], [0, 0, 1, 1], [], []>} : vector<4x512xbf16>, vector<512x128xbf16>, vector<4x128xf32> -> vector<4x128xf32>
    %56 = arith.addf %51, %55 : vector<4x128xf32>
    %57 = vector.extract_strided_slice %18 {offsets = [28, 0], sizes = [4, 512], strides = [1, 1]} : vector<84x512xbf16> to vector<4x512xbf16>
    %c7 = arith.constant 7 : index
    %c0_37 = arith.constant 0 : index
    %c0_38 = arith.constant 0 : index
    %58 = vector.load %arg6[%c7, %c0_37, %c0_38] : memref<21x512x128xbf16, #tpu.memory_space<vmem>>, vector<1x512x128xbf16>
    %59 = vector.shape_cast %58 : vector<1x512x128xbf16> to vector<512x128xbf16>
    %cst_39 = arith.constant dense<0.000000e+00> : vector<4x128xf32>
    %60 = tpu.matmul %57, %59, %cst_39 {dimension_numbers = #tpu.dot_dimension_numbers<[1], [0], [0], [1], [0, 0, 1, 1], [], []>} : vector<4x512xbf16>, vector<512x128xbf16>, vector<4x128xf32> -> vector<4x128xf32>
    %61 = arith.addf %56, %60 : vector<4x128xf32>
    %62 = vector.extract_strided_slice %18 {offsets = [32, 0], sizes = [4, 512], strides = [1, 1]} : vector<84x512xbf16> to vector<4x512xbf16>
    %c8 = arith.constant 8 : index
    %c0_40 = arith.constant 0 : index
    %c0_41 = arith.constant 0 : index
    %63 = vector.load %arg6[%c8, %c0_40, %c0_41] : memref<21x512x128xbf16, #tpu.memory_space<vmem>>, vector<1x512x128xbf16>
    %64 = vector.shape_cast %63 : vector<1x512x128xbf16> to vector<512x128xbf16>
    %cst_42 = arith.constant dense<0.000000e+00> : vector<4x128xf32>
    %65 = tpu.matmul %62, %64, %cst_42 {dimension_numbers = #tpu.dot_dimension_numbers<[1], [0], [0], [1], [0, 0, 1, 1], [], []>} : vector<4x512xbf16>, vector<512x128xbf16>, vector<4x128xf32> -> vector<4x128xf32>
    %66 = arith.addf %61, %65 : vector<4x128xf32>
    %67 = vector.extract_strided_slice %18 {offsets = [36, 0], sizes = [4, 512], strides = [1, 1]} : vector<84x512xbf16> to vector<4x512xbf16>
    %c9 = arith.constant 9 : index
    %c0_43 = arith.constant 0 : index
    %c0_44 = arith.constant 0 : index
    %68 = vector.load %arg6[%c9, %c0_43, %c0_44] : memref<21x512x128xbf16, #tpu.memory_space<vmem>>, vector<1x512x128xbf16>
    %69 = vector.shape_cast %68 : vector<1x512x128xbf16> to vector<512x128xbf16>
    %cst_45 = arith.constant dense<0.000000e+00> : vector<4x128xf32>
    %70 = tpu.matmul %67, %69, %cst_45 {dimension_numbers = #tpu.dot_dimension_numbers<[1], [0], [0], [1], [0, 0, 1, 1], [], []>} : vector<4x512xbf16>, vector<512x128xbf16>, vector<4x128xf32> -> vector<4x128xf32>
    %71 = arith.addf %66, %70 : vector<4x128xf32>
    %72 = vector.extract_strided_slice %18 {offsets = [40, 0], sizes = [4, 512], strides = [1, 1]} : vector<84x512xbf16> to vector<4x512xbf16>
    %c10 = arith.constant 10 : index
    %c0_46 = arith.constant 0 : index
    %c0_47 = arith.constant 0 : index
    %73 = vector.load %arg6[%c10, %c0_46, %c0_47] : memref<21x512x128xbf16, #tpu.memory_space<vmem>>, vector<1x512x128xbf16>
    %74 = vector.shape_cast %73 : vector<1x512x128xbf16> to vector<512x128xbf16>
    %cst_48 = arith.constant dense<0.000000e+00> : vector<4x128xf32>
    %75 = tpu.matmul %72, %74, %cst_48 {dimension_numbers = #tpu.dot_dimension_numbers<[1], [0], [0], [1], [0, 0, 1, 1], [], []>} : vector<4x512xbf16>, vector<512x128xbf16>, vector<4x128xf32> -> vector<4x128xf32>
    %76 = arith.addf %71, %75 : vector<4x128xf32>
    %77 = vector.extract_strided_slice %18 {offsets = [44, 0], sizes = [4, 512], strides = [1, 1]} : vector<84x512xbf16> to vector<4x512xbf16>
    %c11 = arith.constant 11 : index
    %c0_49 = arith.constant 0 : index
    %c0_50 = arith.constant 0 : index
    %78 = vector.load %arg6[%c11, %c0_49, %c0_50] : memref<21x512x128xbf16, #tpu.memory_space<vmem>>, vector<1x512x128xbf16>
    %79 = vector.shape_cast %78 : vector<1x512x128xbf16> to vector<512x128xbf16>
    %cst_51 = arith.constant dense<0.000000e+00> : vector<4x128xf32>
    %80 = tpu.matmul %77, %79, %cst_51 {dimension_numbers = #tpu.dot_dimension_numbers<[1], [0], [0], [1], [0, 0, 1, 1], [], []>} : vector<4x512xbf16>, vector<512x128xbf16>, vector<4x128xf32> -> vector<4x128xf32>
    %81 = arith.addf %76, %80 : vector<4x128xf32>
    %82 = vector.extract_strided_slice %18 {offsets = [48, 0], sizes = [4, 512], strides = [1, 1]} : vector<84x512xbf16> to vector<4x512xbf16>
    %c12 = arith.constant 12 : index
    %c0_52 = arith.constant 0 : index
    %c0_53 = arith.constant 0 : index
    %83 = vector.load %arg6[%c12, %c0_52, %c0_53] : memref<21x512x128xbf16, #tpu.memory_space<vmem>>, vector<1x512x128xbf16>
    %84 = vector.shape_cast %83 : vector<1x512x128xbf16> to vector<512x128xbf16>
    %cst_54 = arith.constant dense<0.000000e+00> : vector<4x128xf32>
    %85 = tpu.matmul %82, %84, %cst_54 {dimension_numbers = #tpu.dot_dimension_numbers<[1], [0], [0], [1], [0, 0, 1, 1], [], []>} : vector<4x512xbf16>, vector<512x128xbf16>, vector<4x128xf32> -> vector<4x128xf32>
    %86 = arith.addf %81, %85 : vector<4x128xf32>
    %87 = vector.extract_strided_slice %18 {offsets = [52, 0], sizes = [4, 512], strides = [1, 1]} : vector<84x512xbf16> to vector<4x512xbf16>
    %c13 = arith.constant 13 : index
    %c0_55 = arith.constant 0 : index
    %c0_56 = arith.constant 0 : index
    %88 = vector.load %arg6[%c13, %c0_55, %c0_56] : memref<21x512x128xbf16, #tpu.memory_space<vmem>>, vector<1x512x128xbf16>
    %89 = vector.shape_cast %88 : vector<1x512x128xbf16> to vector<512x128xbf16>
    %cst_57 = arith.constant dense<0.000000e+00> : vector<4x128xf32>
    %90 = tpu.matmul %87, %89, %cst_57 {dimension_numbers = #tpu.dot_dimension_numbers<[1], [0], [0], [1], [0, 0, 1, 1], [], []>} : vector<4x512xbf16>, vector<512x128xbf16>, vector<4x128xf32> -> vector<4x128xf32>
    %91 = arith.addf %86, %90 : vector<4x128xf32>
    %92 = vector.extract_strided_slice %18 {offsets = [56, 0], sizes = [4, 512], strides = [1, 1]} : vector<84x512xbf16> to vector<4x512xbf16>
    %c14 = arith.constant 14 : index
    %c0_58 = arith.constant 0 : index
    %c0_59 = arith.constant 0 : index
    %93 = vector.load %arg6[%c14, %c0_58, %c0_59] : memref<21x512x128xbf16, #tpu.memory_space<vmem>>, vector<1x512x128xbf16>
    %94 = vector.shape_cast %93 : vector<1x512x128xbf16> to vector<512x128xbf16>
    %cst_60 = arith.constant dense<0.000000e+00> : vector<4x128xf32>
    %95 = tpu.matmul %92, %94, %cst_60 {dimension_numbers = #tpu.dot_dimension_numbers<[1], [0], [0], [1], [0, 0, 1, 1], [], []>} : vector<4x512xbf16>, vector<512x128xbf16>, vector<4x128xf32> -> vector<4x128xf32>
    %96 = arith.addf %91, %95 : vector<4x128xf32>
    %97 = vector.extract_strided_slice %18 {offsets = [60, 0], sizes = [4, 512], strides = [1, 1]} : vector<84x512xbf16> to vector<4x512xbf16>
    %c15 = arith.constant 15 : index
    %c0_61 = arith.constant 0 : index
    %c0_62 = arith.constant 0 : index
    %98 = vector.load %arg6[%c15, %c0_61, %c0_62] : memref<21x512x128xbf16, #tpu.memory_space<vmem>>, vector<1x512x128xbf16>
    %99 = vector.shape_cast %98 : vector<1x512x128xbf16> to vector<512x128xbf16>
    %cst_63 = arith.constant dense<0.000000e+00> : vector<4x128xf32>
    %100 = tpu.matmul %97, %99, %cst_63 {dimension_numbers = #tpu.dot_dimension_numbers<[1], [0], [0], [1], [0, 0, 1, 1], [], []>} : vector<4x512xbf16>, vector<512x128xbf16>, vector<4x128xf32> -> vector<4x128xf32>
    %101 = arith.addf %96, %100 : vector<4x128xf32>
    %102 = vector.extract_strided_slice %18 {offsets = [64, 0], sizes = [4, 512], strides = [1, 1]} : vector<84x512xbf16> to vector<4x512xbf16>
    %c16 = arith.constant 16 : index
    %c0_64 = arith.constant 0 : index
    %c0_65 = arith.constant 0 : index
    %103 = vector.load %arg6[%c16, %c0_64, %c0_65] : memref<21x512x128xbf16, #tpu.memory_space<vmem>>, vector<1x512x128xbf16>
    %104 = vector.shape_cast %103 : vector<1x512x128xbf16> to vector<512x128xbf16>
    %cst_66 = arith.constant dense<0.000000e+00> : vector<4x128xf32>
    %105 = tpu.matmul %102, %104, %cst_66 {dimension_numbers = #tpu.dot_dimension_numbers<[1], [0], [0], [1], [0, 0, 1, 1], [], []>} : vector<4x512xbf16>, vector<512x128xbf16>, vector<4x128xf32> -> vector<4x128xf32>
    %106 = arith.addf %101, %105 : vector<4x128xf32>
    %107 = vector.extract_strided_slice %18 {offsets = [68, 0], sizes = [4, 512], strides = [1, 1]} : vector<84x512xbf16> to vector<4x512xbf16>
    %c17 = arith.constant 17 : index
    %c0_67 = arith.constant 0 : index
    %c0_68 = arith.constant 0 : index
    %108 = vector.load %arg6[%c17, %c0_67, %c0_68] : memref<21x512x128xbf16, #tpu.memory_space<vmem>>, vector<1x512x128xbf16>
    %109 = vector.shape_cast %108 : vector<1x512x128xbf16> to vector<512x128xbf16>
    %cst_69 = arith.constant dense<0.000000e+00> : vector<4x128xf32>
    %110 = tpu.matmul %107, %109, %cst_69 {dimension_numbers = #tpu.dot_dimension_numbers<[1], [0], [0], [1], [0, 0, 1, 1], [], []>} : vector<4x512xbf16>, vector<512x128xbf16>, vector<4x128xf32> -> vector<4x128xf32>
    %111 = arith.addf %106, %110 : vector<4x128xf32>
    %112 = vector.extract_strided_slice %18 {offsets = [72, 0], sizes = [4, 512], strides = [1, 1]} : vector<84x512xbf16> to vector<4x512xbf16>
    %c18 = arith.constant 18 : index
    %c0_70 = arith.constant 0 : index
    %c0_71 = arith.constant 0 : index
    %113 = vector.load %arg6[%c18, %c0_70, %c0_71] : memref<21x512x128xbf16, #tpu.memory_space<vmem>>, vector<1x512x128xbf16>
    %114 = vector.shape_cast %113 : vector<1x512x128xbf16> to vector<512x128xbf16>
    %cst_72 = arith.constant dense<0.000000e+00> : vector<4x128xf32>
    %115 = tpu.matmul %112, %114, %cst_72 {dimension_numbers = #tpu.dot_dimension_numbers<[1], [0], [0], [1], [0, 0, 1, 1], [], []>} : vector<4x512xbf16>, vector<512x128xbf16>, vector<4x128xf32> -> vector<4x128xf32>
    %116 = arith.addf %111, %115 : vector<4x128xf32>
    %117 = vector.extract_strided_slice %18 {offsets = [76, 0], sizes = [4, 512], strides = [1, 1]} : vector<84x512xbf16> to vector<4x512xbf16>
    %c19 = arith.constant 19 : index
    %c0_73 = arith.constant 0 : index
    %c0_74 = arith.constant 0 : index
    %118 = vector.load %arg6[%c19, %c0_73, %c0_74] : memref<21x512x128xbf16, #tpu.memory_space<vmem>>, vector<1x512x128xbf16>
    %119 = vector.shape_cast %118 : vector<1x512x128xbf16> to vector<512x128xbf16>
    %cst_75 = arith.constant dense<0.000000e+00> : vector<4x128xf32>
    %120 = tpu.matmul %117, %119, %cst_75 {dimension_numbers = #tpu.dot_dimension_numbers<[1], [0], [0], [1], [0, 0, 1, 1], [], []>} : vector<4x512xbf16>, vector<512x128xbf16>, vector<4x128xf32> -> vector<4x128xf32>
    %121 = arith.addf %116, %120 : vector<4x128xf32>
    %122 = vector.extract_strided_slice %18 {offsets = [80, 0], sizes = [4, 512], strides = [1, 1]} : vector<84x512xbf16> to vector<4x512xbf16>
    %c20 = arith.constant 20 : index
    %c0_76 = arith.constant 0 : index
    %c0_77 = arith.constant 0 : index
    %123 = vector.load %arg6[%c20, %c0_76, %c0_77] : memref<21x512x128xbf16, #tpu.memory_space<vmem>>, vector<1x512x128xbf16>
    %124 = vector.shape_cast %123 : vector<1x512x128xbf16> to vector<512x128xbf16>
    %cst_78 = arith.constant dense<0.000000e+00> : vector<4x128xf32>
    %125 = tpu.matmul %122, %124, %cst_78 {dimension_numbers = #tpu.dot_dimension_numbers<[1], [0], [0], [1], [0, 0, 1, 1], [], []>} : vector<4x512xbf16>, vector<512x128xbf16>, vector<4x128xf32> -> vector<4x128xf32>
    %126 = arith.addf %121, %125 : vector<4x128xf32>
    %c0_79 = arith.constant 0 : index
    %c0_80 = arith.constant 0 : index
    %c0_81 = arith.constant 0 : index
    %127 = vector.load %arg7[%c0_79, %c0_80, %c0_81] : memref<1x4x128xf32, #tpu.memory_space<vmem>>, vector<1x4x128xf32>
    %128 = vector.shape_cast %127 : vector<1x4x128xf32> to vector<4x128xf32>
    %129 = vector.shape_cast %126 : vector<4x128xf32> to vector<1x4x128xf32>
    tpu.vector_store %arg7[%c0_79, %c0_80, %c0_81], %129 {strides = array<i32>} : memref<1x4x128xf32, #tpu.memory_space<vmem>>, vector<1x4x128xf32>,
    return
  }
  func.func @transform_0(%arg0: i32) -> (i32, i32) {
    %c0_i32 = arith.constant 0 : i32
    %c0_i32_0 = arith.constant 0 : i32
    return %arg0, %c0_i32 : i32, i32
  }
  func.func @transform_1(%arg0: i32) -> (i32, i32, i32) {
    %c0_i32 = arith.constant 0 : i32
    %c0_i32_0 = arith.constant 0 : i32
    %c0_i32_1 = arith.constant 0 : i32
    return %arg0, %c0_i32, %c0_i32_0 : i32, i32, i32
  }
  func.func @transform_2(%arg0: i32) -> (i32, i32, i32) {
    %c0_i32 = arith.constant 0 : i32
    %c0_i32_0 = arith.constant 0 : i32
    %c0_i32_1 = arith.constant 0 : i32
    return %arg0, %c0_i32, %c0_i32_0 : i32, i32, i32
  }
  func.func @transform_3(%arg0: i32) -> (i32, i32) {
    %c0_i32 = arith.constant 0 : i32
    %c0_i32_0 = arith.constant 0 : i32
    %c0_i32_1 = arith.constant 0 : i32
    return %c0_i32, %c0_i32_0 : i32, i32
  }
  func.func @transform_4(%arg0: i32) -> (i32, i32) {
    %c0_i32 = arith.constant 0 : i32
    %c0_i32_0 = arith.constant 0 : i32
    %c0_i32_1 = arith.constant 0 : i32
    return %c0_i32, %c0_i32_0 : i32, i32
  }
  func.func @transform_5(%arg0: i32) -> (i32, i32, i32) {
    %c0_i32 = arith.constant 0 : i32
    %c0_i32_0 = arith.constant 0 : i32
    %c0_i32_1 = arith.constant 0 : i32
    %c0_i32_2 = arith.constant 0 : i32
    return %c0_i32, %c0_i32_0, %c0_i32_1 : i32, i32, i32
  }
  func.func @transform_6(%arg0: i32) -> (i32, i32, i32) {
    %c0_i32 = arith.constant 0 : i32
    %c0_i32_0 = arith.constant 0 : i32
    %c0_i32_1 = arith.constant 0 : i32
    return %arg0, %c0_i32, %c0_i32_0 : i32, i32, i32
  }
}

</mosaic_0001>

<bundles_post_ra>
// kernel: rotation_net_forward.1
= control target key start
LH: loop header
LB: loop body
LE: loop exit
PB: predicated region body
PF: predicated region fallthrough
CT: control target
= control target key end

     0   :  { %s25774_s21 = smov 0   ;;  %s32236_s0 = inlined_call_operand.vmem [shape: bf16[512,2048], index: 0, kind: input, shape index: {}]   ;;  %s32237_s1 = inlined_call_operand.vmem [shape: bf16[2,84,256], index: 1, kind: input, shape index: {}]   ;;  %s32238_s2 = inlined_call_operand.vmem [shape: f32[2,4,128], index: 2, kind: input, shape index: {}]   ;;  %s32239_s3 = inlined_call_operand.vmem [shape: bf16[2048,640], index: 3, kind: input, shape index: {}]   ;;  %s32240_s4 = inlined_call_operand.vmem [shape: f32[1,512], index: 4, kind: input, shape index: {}]   ;;  %s32241_s5 = inlined_call_operand.vmem [shape: bf16[21,512,128], index: 5, kind: input, shape index: {}]   ;;  %s32242_s6 = inlined_call_operand.vmem [shape: f32[2,4,128], index: 6, kind: output, shape index: {}]  }
   0x1 LB: > { %s25780_s22 = sadd.s32 4294967295, %s25737_s21   ;;  %p18551_p0 = scmp.ge.s32.totalorder %s25737_s21, 1  ;;  %s25737_s21 = sphi %s25774_s21, %s16_s21  }
   0x2   : > { %p233_p1 = scmp.lt.s32.totalorder %s25737_s21, 3 }
   0x4   : > { %p234_p2 = pnand %p18551_p0, %p233_p1 }
   0x6   : > { %237 = sbr.rel (%p234_p2) target bundleno = 2700 (0xa8c), region = 44 }
   0xd   : > { %v24146_v0 = vld [vmem:[%s32239_s3 + $0x4] ss:$20 sps:$4 sm:$0xff]   ;;  %v24148_v1 = vld [vmem:[%s32239_s3 + $0xc] ss:$20 sps:$4 sm:$0xff]   ;;  %v24151_v3 = vld [vmem:[%s32239_s3 + $0x8] ss:$20 sps:$4 sm:$0xff]  }
   0xe   : > { %5925 = vmatprep.subr.bf16.mxu0 %v24146_v0  ;;  %v24150_v2 = vld [vmem:[%s32239_s3] ss:$20 sps:$4 sm:$0xff]   ;;  %7469 = vmatprep.subr.bf16.mxu1 %v24148_v1  ;;  %v24156_v6 = vld [vmem:[%s32239_s3 + $0x28] ss:$20 sps:$4 sm:$0xff]   ;;  %v24157_v7 = vld [vmem:[%s32239_s3 + $0x30] ss:$20 sps:$4 sm:$0xff]  }
   0xf   : > { %v24152_v4 = vld [vmem:[%s32239_s3 + $0x2c] ss:$20 sps:$4 sm:$0xff]   ;;  %5926 = vmatpush1.bf16.msra.mxu0 %v24150_v2  ;;  %7470 = vmatpush1.bf16.msra.mxu1 %v24151_v3  ;;  %v24154_v5 = vld [vmem:[%s32239_s3 + $0x34] ss:$20 sps:$4 sm:$0xff]   ;;  %v24160_v9 = vld [vmem:[%s32239_s3 + $0x5c] ss:$20 sps:$4 sm:$0xff]  }
  0x10   : > { %5927 = vmatprep.subr.bf16.mxu0 %v24152_v4  ;;  %7471 = vmatprep.subr.bf16.mxu1 %v24154_v5  ;;  %v24158_v8 = vld [vmem:[%s32239_s3 + $0x54] ss:$20 sps:$4 sm:$0xff]   ;;  %v24162_v10 = vld [vmem:[%s32239_s3 + $0x50] ss:$20 sps:$4 sm:$0xff]   ;;  %v24163_v11 = vld [vmem:[%s32239_s3 + $0x58] ss:$20 sps:$4 sm:$0xff]  }
  0x11   : > { %v24164_v12 = vld [vmem:[%s32239_s3 + $0x7c] ss:$20 sps:$4 sm:$0xff]   ;;  %v24166_v13 = vld [vmem:[%s32239_s3 + $0x84] ss:$20 sps:$4 sm:$0xff]   ;;  %v24169_v15 = vld [vmem:[%s32239_s3 + $0x80] ss:$20 sps:$4 sm:$0xff]  }
  0x12   : > { %v24168_v14 = vld [vmem:[%s32239_s3 + $0x78] ss:$20 sps:$4 sm:$0xff]   ;;  %v24174_v18 = vld [vmem:[%s32239_s3 + $0xa0] ss:$20 sps:$4 sm:$0xff]   ;;  %v24175_v19 = vld [vmem:[%s32239_s3 + $0xa8] ss:$20 sps:$4 sm:$0xff]  }
  0x13   : > { %5928 = vmatpush1.bf16.msra.mxu0 %v24156_v6  ;;  %7472 = vmatpush1.bf16.msra.mxu1 %v24157_v7  ;;  %v24170_v16 = vld [vmem:[%s32239_s3 + $0xa4] ss:$20 sps:$4 sm:$0xff]   ;;  %v24172_v17 = vld [vmem:[%s32239_s3 + $0xac] ss:$20 sps:$4 sm:$0xff]   ;;  %v24178_v21 = vld [vmem:[%s32239_s3 + $0xd4] ss:$20 sps:$4 sm:$0xff]  }
  0x14   : > { %5929 = vmatprep.subr.bf16.mxu0 %v24158_v8  ;;  %7473 = vmatprep.subr.bf16.mxu1 %v24160_v9  ;;  %v24176_v20 = vld [vmem:[%s32239_s3 + $0xcc] ss:$20 sps:$4 sm:$0xff]   ;;  %v24180_v22 = vld [vmem:[%s32239_s3 + $0xc8] ss:$20 sps:$4 sm:$0xff]   ;;  %v24181_v23 = vld [vmem:[%s32239_s3 + $0xd0] ss:$20 sps:$4 sm:$0xff]  }
  0x15   : > { %v24182_v24 = vld [vmem:[%s32239_s3 + $0xf4] ss:$20 sps:$4 sm:$0xff]   ;;  %v24184_v25 = vld [vmem:[%s32239_s3 + $0xfc] ss:$20 sps:$4 sm:$0xff]   ;;  %v24187_v27 = vld [vmem:[%s32239_s3 + $0xf8] ss:$20 sps:$4 sm:$0xff]  }
  0x16   : > { %v24186_v26 = vld [vmem:[%s32239_s3 + $0xf0] ss:$20 sps:$4 sm:$0xff]   ;;  %s18552_s15 = sshll.u32 %s25780_s22, 5  ;;  %v24192_v30 = vld [vmem:[%s32239_s3 + $0x118] ss:$20 sps:$4 sm:$0xff]   ;;  %p279_p4 = scmp.lt.s32.totalorder %s25780_s22, 1 }
  0x17   : > { %5930 = vmatpush1.bf16.msra.mxu0 %v24162_v10  ;;  %7474 = vmatpush1.bf16.msra.mxu1 %v24163_v11  ;;  %v24188_v28 = vld [vmem:[%s32239_s3 + $0x11c] ss:$20 sps:$4 sm:$0xff]   ;;  %v24190_v29 = vld [vmem:[%s32239_s3 + $0x124] ss:$20 sps:$4 sm:$0xff]   ;;  %v24193_v31 = vld [vmem:[%s32239_s3 + $0x120] ss:$20 sps:$4 sm:$0xff]  }
  0x18   : > { %5931 = vmatprep.subr.bf16.mxu0 %v24164_v12  ;;  %7475 = vmatprep.subr.bf16.mxu1 %v24166_v13  ;;  %v24194_v32 = vld [vmem:[%s32239_s3 + $0x144] ss:$20 sps:$4 sm:$0xff]   ;;  %p273_p3 = scmp.lt.s32.totalorder %s18552_s15, 63  ;;  %v24196_v33 = vld [vmem:[%s32239_s3 + $0x14c] ss:$20 sps:$4 sm:$0xff]   ;;  %s32967_s22 = smov (!%p279_p4, %s25780_s22), 1 }
  0x19   : > { %v24198_v34 = vld [vmem:[%s32239_s3 + $0x140] ss:$20 sps:$4 sm:$0xff]   ;;  %v24199_v35 = vld [vmem:[%s32239_s3 + $0x148] ss:$20 sps:$4 sm:$0xff]   ;;  %v24205_v39 = vld [vmem:[%s32239_s3 + $0x170] ss:$20 sps:$4 sm:$0xff]  }
  0x1a   : > { %v24200_v36 = vld [vmem:[%s32239_s3 + $0x16c] ss:$20 sps:$4 sm:$0xff]   ;;  %s32965_s15 = smov (!%p273_p3, %s18552_s15), 63  ;;  %v24202_v37 = vld [vmem:[%s32239_s3 + $0x174] ss:$20 sps:$4 sm:$0xff]   ;;  %s24137_s13 = smul.u32 88, %s32967_s22 }
  0x1b   : > { %5932 = vmatpush1.bf16.msra.mxu0 %v24168_v14  ;;  %7476 = vmatpush1.bf16.msra.mxu1 %v24169_v15  ;;  %v24204_v38 = vld [vmem:[%s32239_s3 + $0x168] ss:$20 sps:$4 sm:$0xff]   ;;  %s21420_s17 = sshll.u32 %s32965_s15, 6  ;;  %v24210_v42 = vld [vmem:[%s32239_s3 + $0x190] ss:$20 sps:$4 sm:$0xff]   ;;  %s18556_s20 = sshll.u32 %s32967_s22, 2 }
  0x1c   : > { %5933 = vmatprep.subr.bf16.mxu0 %v24170_v16  ;;  %7477 = vmatprep.subr.bf16.mxu1 %v24172_v17  ;;  %v24206_v40 = vld [vmem:[%s32239_s3 + $0x194] ss:$20 sps:$4 sm:$0xff]   ;;  %v24208_v41 = vld [vmem:[%s32239_s3 + $0x19c] ss:$20 sps:$4 sm:$0xff]   ;;  %v24211_v43 = vld [vmem:[%s32239_s3 + $0x198] ss:$20 sps:$4 sm:$0xff]   ;;  %s25920_s28 = scalar_lea.vmem %s32236_s0, %s21420_s17  ;;  %s29567_s17 = scalar_lea.vmem %s32237_s1, %s24137_s13 }
  0x1d   : > { %v24212_v44 = vld [vmem:[%s32239_s3 + $0x1bc] ss:$20 sps:$4 sm:$0xff]   ;;  %v24214_v45 = vld [vmem:[%s32239_s3 + $0x1c4] ss:$20 sps:$4 sm:$0xff]   ;;  %v24217_v49 = vld [vmem:[%s32239_s3 + $0x1c0] ss:$20 sps:$4 sm:$0xff]   ;;  %s287_s29 = scalar_lea.vmem %s32238_s2, %s18556_s20 }
  0x1e   : > { %v293_v46 = vld [vmem:[%s25920_s28] sm:$0xff]  ;;  %v24216_v48 = vld [vmem:[%s32239_s3 + $0x1b8] ss:$20 sps:$4 sm:$0xff]   ;;  %v24223_v54 = vld [vmem:[%s32239_s3 + $0x1e8] ss:$20 sps:$4 sm:$0xff]   ;;  %vm18460_vm0 = vcmask 1041409  }
  0x1f   : > { %5934 = vmatpush1.bf16.msra.mxu0 %v24174_v18  ;;  %7478 = vmatpush1.bf16.msra.mxu1 %v24175_v19  ;;  %v301_v47 = vld [vmem:[%s25920_s28 + $0x40] sm:$0xff]  ;;  %v24226_v56 = vld [vmem:[%s32239_s3 + $0x214] ss:$20 sps:$4 sm:$0xff]   ;;  %v24232_v60 = vld [vmem:[%s32239_s3 + $0x23c] ss:$20 sps:$4 sm:$0xff]   ;;  %vm18463_vm1 = vcmask 1042434  }
  0x20   : > { %5935 = vmatprep.subr.bf16.mxu0 %v24176_v20  ;;  %7479 = vmatprep.subr.bf16.mxu1 %v24178_v21  ;;  %v25936_v50 = vcombine.high %v293_v46, %v301_v47  ;;  %v24218_v51 = vld [vmem:[%s32239_s3 + $0x1e4] ss:$20 sps:$4 sm:$0xff]   ;;  %v24220_v52 = vld [vmem:[%s32239_s3 + $0x1ec] ss:$20 sps:$4 sm:$0xff]   ;;  %v24228_v57 = vld [vmem:[%s32239_s3 + $0x208] ss:$20 sps:$4 sm:$0xff]   ;;  %v25996_v7 = vcombine.low %v293_v46, %v301_v47 }
  0x21   : > { %v24222_v53 = vld [vmem:[%s32239_s3 + $0x1e0] ss:$20 sps:$4 sm:$0xff]   ;;  %v24229_v58 = vld [vmem:[%s32239_s3 + $0x210] ss:$20 sps:$4 sm:$0xff]   ;;  %v24235_v62 = vld [vmem:[%s32239_s3 + $0x238] ss:$20 sps:$4 sm:$0xff]  }
  0x22   : > { %5957 = vmatprep.mubr.bf16.mxu0 %v25936_v50  ;;  %7501 = vmatprep.mubr.bf16.mxu1 %v25936_v50  ;;  %v24224_v55 = vld [vmem:[%s32239_s3 + $0x20c] ss:$20 sps:$4 sm:$0xff]   ;;  %v24230_v59 = vld [vmem:[%s32239_s3 + $0x234] ss:$20 sps:$4 sm:$0xff]   ;;  %v24234_v61 = vld [vmem:[%s32239_s3 + $0x230] ss:$20 sps:$4 sm:$0xff]  }
  0x23   : > { %5936 = vmatpush1.bf16.msra.mxu0 %v24180_v22  ;;  %7480 = vmatpush1.bf16.msra.mxu1 %v24181_v23  ;;  %v24236_v63 = vld [vmem:[%s32239_s3 + $0x25c] ss:$20 sps:$4 sm:$0xff]   ;;  %v24238_v0 = vld [vmem:[%s32239_s3 + $0x264] ss:$20 sps:$4 sm:$0xff]   ;;  %v24241_v2 = vld [vmem:[%s32239_s3 + $0x260] ss:$20 sps:$4 sm:$0xff]  }
  0x24   : > { %5937 = vmatprep.subr.bf16.mxu0 %v24182_v24  ;;  %7481 = vmatprep.subr.bf16.mxu1 %v24184_v25  ;;  %v24240_v1 = vld [vmem:[%s32239_s3 + $0x258] ss:$20 sps:$4 sm:$0xff]   ;;  %v309_v5 = vld [vmem:[%s25920_s28 + $0x80] sm:$0xff]  ;;  %v24245_v9 = vld [vmem:[%s32239_s3 + $0x288] ss:$20 sps:$4 sm:$0xff]   ;;  %vm18466_vm2 = vcmask 1043459  }
  0x25   : > { %v24244_v3 = vld [vmem:[%s32239_s3 + $0x284] ss:$20 sps:$4 sm:$0xff]   ;;  %v24247_v4 = vld [vmem:[%s32239_s3 + $0x28c] ss:$20 sps:$4 sm:$0xff]   ;;  %v24253_v12 = vld [vmem:[%s32239_s3 + $0x2b4] ss:$20 sps:$4 sm:$0xff]  }
  0x26   : > { %v317_v6 = vld [vmem:[%s25920_s28 + $0xc0] sm:$0xff]  ;;  %v24248_v13 = vld [vmem:[%s32239_s3 + $0x2a8] ss:$20 sps:$4 sm:$0xff]   ;;  %v24257_v22 = vld [vmem:[%s32239_s3 + $0x2d8] ss:$20 sps:$4 sm:$0xff]  }
  0x27   : > { %5938 = vmatpush1.bf16.msra.mxu0 %v24186_v26  ;;  %7482 = vmatpush1.bf16.msra.mxu1 %v24187_v27  ;;  %v24242_v8 = vld [vmem:[%s32239_s3 + $0x280] ss:$20 sps:$4 sm:$0xff]   ;;  %v26004_v10 = vcombine.high %v309_v5, %v317_v6  ;;  %v24251_v14 = vld [vmem:[%s32239_s3 + $0x2b0] ss:$20 sps:$4 sm:$0xff]   ;;  %v26030_v19 = vcombine.low %v309_v5, %v317_v6  ;;  %v24260_v27 = vld [vmem:[%s32239_s3 + $0x2f8] ss:$20 sps:$4 sm:$0xff]  }
  0x28   : > { %5939 = vmatprep.subr.bf16.mxu0 %v24188_v28  ;;  %7483 = vmatprep.subr.bf16.mxu1 %v24190_v29  ;;  %v24250_v11 = vld [vmem:[%s32239_s3 + $0x2ac] ss:$20 sps:$4 sm:$0xff]   ;;  %v24256_v17 = vld [vmem:[%s32239_s3 + $0x2d4] ss:$20 sps:$4 sm:$0xff]   ;;  %v24259_v18 = vld [vmem:[%s32239_s3 + $0x2dc] ss:$20 sps:$4 sm:$0xff]  }
  0x29   : > { %v325_v15 = vld [vmem:[%s25920_s28 + $0x100] sm:$0xff]  ;;  %v24262_v23 = vld [vmem:[%s32239_s3 + $0x2fc] ss:$20 sps:$4 sm:$0xff]   ;;  %v24281_v46 = vld [vmem:[%s32239_s3 + $0x378] ss:$20 sps:$4 sm:$0xff]  }
  0x2a   : > { %v333_v16 = vld [vmem:[%s25920_s28 + $0x140] sm:$0xff]  ;;  %v24286_v47 = vld [vmem:[%s32239_s3 + $0x39c] ss:$20 sps:$4 sm:$0xff]  }
  0x2b   : > { %5940 = vmatpush1.bf16.msra.mxu0 %v24192_v30  ;;  %7484 = vmatpush1.bf16.msra.mxu1 %v24193_v31  ;;  %v26032_v20 = vcombine.high %v325_v15, %v333_v16  ;;  %v24254_v21 = vld [vmem:[%s32239_s3 + $0x2d0] ss:$20 sps:$4 sm:$0xff]   ;;  %v24263_v28 = vld [vmem:[%s32239_s3 + $0x300] ss:$20 sps:$4 sm:$0xff]   ;;  %v26064_v31 = vcombine.low %v325_v15, %v333_v16 }
  0x2c   : > { %5941 = vmatprep.subr.bf16.mxu0 %v24194_v32  ;;  %7485 = vmatprep.subr.bf16.mxu1 %v24196_v33  ;;  %v24265_v24 = vld [vmem:[%s32239_s3 + $0x304] ss:$20 sps:$4 sm:$0xff]   ;;  %v24271_v30 = vld [vmem:[%s32239_s3 + $0x32c] ss:$20 sps:$4 sm:$0xff]  }
  0x2d   : > { %v341_v25 = vld [vmem:[%s25920_s28 + $0x180] sm:$0xff] }
  0x2e   : > { %v349_v26 = vld [vmem:[%s25920_s28 + $0x1c0] sm:$0xff] }
  0x2f   : > { %5942 = vmatpush1.bf16.msra.mxu0 %v24198_v34  ;;  %7486 = vmatpush1.bf16.msra.mxu1 %v24199_v35  ;;  %v24268_v29 = vld [vmem:[%s32239_s3 + $0x324] ss:$20 sps:$4 sm:$0xff]   ;;  %v26066_v32 = vcombine.high %v341_v25, %v349_v26  ;;  %v24266_v33 = vld [vmem:[%s32239_s3 + $0x320] ss:$20 sps:$4 sm:$0xff]   ;;  %v24269_v34 = vld [vmem:[%s32239_s3 + $0x328] ss:$20 sps:$4 sm:$0xff]  }
  0x30   : > { %5943 = vmatprep.subr.bf16.mxu0 %v24200_v36  ;;  %7487 = vmatprep.subr.bf16.mxu1 %v24202_v37  ;;  %v24274_v35 = vld [vmem:[%s32239_s3 + $0x34c] ss:$20 sps:$4 sm:$0xff]   ;;  %v24277_v36 = vld [vmem:[%s32239_s3 + $0x354] ss:$20 sps:$4 sm:$0xff]   ;;  %v24302_v6 = vld [vmem:[%s32239_s3 + $0x410] ss:$20 sps:$4 sm:$0xff]  }
  0x31   : > { %v357_v37 = vld [vmem:[%s25920_s28 + $0x200] sm:$0xff] }
  0x32   : > { %v24311_v15 = vld [vmem:[%s32239_s3 + $0x440] ss:$20 sps:$4 sm:$0xff]   ;;  %v24316_v16 = vld [vmem:[%s32239_s3 + $0x464] ss:$20 sps:$4 sm:$0xff]  }
  0x33   : > { %5944 = vmatpush1.bf16.msra.mxu0 %v24204_v38  ;;  %7488 = vmatpush1.bf16.msra.mxu1 %v24205_v39  ;;  %v365_v38 = vld [vmem:[%s25920_s28 + $0x240] sm:$0xff]  ;;  %v24272_v39 = vld [vmem:[%s32239_s3 + $0x348] ss:$20 sps:$4 sm:$0xff]  }
  0x34   : > { %5945 = vmatprep.subr.bf16.mxu0 %v24206_v40  ;;  %7489 = vmatprep.subr.bf16.mxu1 %v24208_v41  ;;  %v24275_v40 = vld [vmem:[%s32239_s3 + $0x350] ss:$20 sps:$4 sm:$0xff]   ;;  %v24280_v41 = vld [vmem:[%s32239_s3 + $0x374] ss:$20 sps:$4 sm:$0xff]  }
  0x37   : > { %5946 = vmatpush1.bf16.msra.mxu0 %v24210_v42  ;;  %7490 = vmatpush1.bf16.msra.mxu1 %v24211_v43  ;;  %v24283_v42 = vld [vmem:[%s32239_s3 + $0x37c] ss:$20 sps:$4 sm:$0xff]   ;;  %v26098_v43 = vcombine.low %v341_v25, %v349_v26  ;;  %v24325_v25 = vld [vmem:[%s32239_s3 + $0x494] ss:$20 sps:$4 sm:$0xff]   ;;  %v421_v26 = vld [vmem:[%s25920_s28 + $0x400] sm:$0xff] }
  0x38   : > { %5947 = vmatprep.subr.bf16.mxu0 %v24212_v44  ;;  %7491 = vmatprep.subr.bf16.mxu1 %v24214_v45  ;;  %v26100_v44 = vcombine.high %v357_v37, %v365_v38  ;;  %v24278_v45 = vld [vmem:[%s32239_s3 + $0x370] ss:$20 sps:$4 sm:$0xff]  }
  0x3b   : > { %5948 = vmatpush1.bf16.msra.mxu0 %v24216_v48  ;;  %7492 = vmatpush1.bf16.msra.mxu1 %v24217_v49  ;;  %v24289_v48 = vld [vmem:[%s32239_s3 + $0x3a4] ss:$20 sps:$4 sm:$0xff]  }
  0x3c   : > { %5949 = vmatprep.subr.bf16.mxu0 %v24218_v51  ;;  %7493 = vmatprep.subr.bf16.mxu1 %v24220_v52  ;;  %v373_v49 = vld [vmem:[%s25920_s28 + $0x280] sm:$0xff]  ;;  %v24284_v52 = vld [vmem:[%s32239_s3 + $0x398] ss:$20 sps:$4 sm:$0xff]  }
  0x3d   : > { %v381_v51 = vld [vmem:[%s25920_s28 + $0x2c0] sm:$0xff] }
  0x3f   : > { %5950 = vmatpush1.bf16.msra.mxu0 %v24222_v53  ;;  %7494 = vmatpush1.bf16.msra.mxu1 %v24223_v54  ;;  %v24287_v53 = vld [vmem:[%s32239_s3 + $0x3a0] ss:$20 sps:$4 sm:$0xff]   ;;  %v24292_v54 = vld [vmem:[%s32239_s3 + $0x3c4] ss:$20 sps:$4 sm:$0xff]  }
  0x40   : > { %5951 = vmatprep.subr.bf16.mxu0 %v24224_v55  ;;  %7495 = vmatprep.subr.bf16.mxu1 %v24226_v56  ;;  %v24295_v55 = vld [vmem:[%s32239_s3 + $0x3cc] ss:$20 sps:$4 sm:$0xff]   ;;  %v26132_v56 = vcombine.low %v357_v37, %v365_v38  ;;  %v24334_v38 = vld [vmem:[%s32239_s3 + $0x4dc] ss:$20 sps:$4 sm:$0xff]  }
  0x43   : > { %5952 = vmatpush1.bf16.msra.mxu0 %v24228_v57  ;;  %7496 = vmatpush1.bf16.msra.mxu1 %v24229_v58  ;;  %v26134_v57 = vcombine.high %v373_v49, %v381_v51  ;;  %v24290_v58 = vld [vmem:[%s32239_s3 + $0x3c0] ss:$20 sps:$4 sm:$0xff]  }
  0x44   : > { %5953 = vmatprep.subr.bf16.mxu0 %v24230_v59  ;;  %7497 = vmatprep.subr.bf16.mxu1 %v24232_v60  ;;  %v24293_v59 = vld [vmem:[%s32239_s3 + $0x3c8] ss:$20 sps:$4 sm:$0xff]   ;;  %v24298_v60 = vld [vmem:[%s32239_s3 + $0x3ec] ss:$20 sps:$4 sm:$0xff]  }
  0x47   : > { %5954 = vmatpush1.bf16.msra.mxu0 %v24234_v61  ;;  %7498 = vmatpush1.bf16.msra.mxu1 %v24235_v62  ;;  %v24301_v61 = vld [vmem:[%s32239_s3 + $0x3f4] ss:$20 sps:$4 sm:$0xff]   ;;  %v389_v62 = vld [vmem:[%s25920_s28 + $0x300] sm:$0xff] }
  0x48   : > { %5955 = vmatprep.subr.bf16.mxu0 %v24236_v63  ;;  %7499 = vmatprep.subr.bf16.mxu1 %v24238_v0  ;;  %v397_v63 = vld [vmem:[%s25920_s28 + $0x340] sm:$0xff]  ;;  %v24296_v0 = vld [vmem:[%s32239_s3 + $0x3e8] ss:$20 sps:$4 sm:$0xff]  }
  0x49   : > { %v26168_v5 = vcombine.high %v389_v62, %v397_v63 }
  0x4b   : > { %5956 = vmatpush1.bf16.msra.mxu0 %v24240_v1  ;;  %7500 = vmatpush1.bf16.msra.mxu1 %v24241_v2  ;;  %v24299_v1 = vld [vmem:[%s32239_s3 + $0x3f0] ss:$20 sps:$4 sm:$0xff]   ;;  %v24304_v2 = vld [vmem:[%s32239_s3 + $0x414] ss:$20 sps:$4 sm:$0xff]  }
  0x4c   : > { %6118 = vmatprep.subr.bf16.mxu0 %v24244_v3  ;;  %7662 = vmatprep.subr.bf16.mxu1 %v24247_v4  ;;  %v24307_v3 = vld [vmem:[%s32239_s3 + $0x41c] ss:$20 sps:$4 sm:$0xff]   ;;  %v26166_v4 = vcombine.low %v373_v49, %v381_v51  ;;  %v453_v51 = vld [vmem:[%s25920_s28 + $0x500] sm:$0xff] }
  0x4e   : > { %5958 = vmatmul.mubr.bf16.vlgmr.msra.gmra.mrb[0].mxu0 %v25996_v7  ;;  %7502 = vmatmul.mubr.bf16.vlgmr.msra.gmra.mrb[0].mxu1 %v25996_v7 }
  0x4f   : > { %6119 = vmatpush1.bf16.msra.mxu0 %v24242_v8  ;;  %7663 = vmatpush1.bf16.msra.mxu1 %v24245_v9  ;;  %v24305_v8 = vld [vmem:[%s32239_s3 + $0x418] ss:$20 sps:$4 sm:$0xff]   ;;  %v24310_v9 = vld [vmem:[%s32239_s3 + $0x43c] ss:$20 sps:$4 sm:$0xff]  }
  0x50   : > { %5967 = vmatprep.mubr.bf16.mxu0 %v26004_v10  ;;  %7511 = vmatprep.mubr.bf16.mxu1 %v26004_v10 }
  0x51   : > { %6120 = vmatprep.subr.bf16.mxu0 %v24250_v11  ;;  %7664 = vmatprep.subr.bf16.mxu1 %v24253_v12  ;;  %v24313_v11 = vld [vmem:[%s32239_s3 + $0x444] ss:$20 sps:$4 sm:$0xff]  }
  0x52   : > { %v405_v12 = vld [vmem:[%s25920_s28 + $0x380] sm:$0xff] }
  0x53   : > { %6121 = vmatpush1.bf16.msra.mxu0 %v24248_v13  ;;  %7665 = vmatpush1.bf16.msra.mxu1 %v24251_v14  ;;  %v413_v13 = vld [vmem:[%s25920_s28 + $0x3c0] sm:$0xff]  ;;  %v24308_v14 = vld [vmem:[%s32239_s3 + $0x438] ss:$20 sps:$4 sm:$0xff]  }
  0x54   : > { %6122 = vmatprep.subr.bf16.mxu0 %v24256_v17  ;;  %7666 = vmatprep.subr.bf16.mxu1 %v24259_v18  ;;  %v24319_v17 = vld [vmem:[%s32239_s3 + $0x46c] ss:$20 sps:$4 sm:$0xff]   ;;  %v26200_v18 = vcombine.low %v389_v62, %v397_v63 }
  0x55   : > { %v493_v62 = vld [vmem:[%s25920_s28 + $0x640] sm:$0xff] }
  0x56   : > { %5968 = vmatmul.mubr.bf16.gmra.mrb[4].mxu0 %v26030_v19  ;;  %7512 = vmatmul.mubr.bf16.gmra.mrb[4].mxu1 %v26030_v19 }
  0x57   : > { %5977 = vmatprep.mubr.bf16.mxu0 %v26032_v20  ;;  %7521 = vmatprep.mubr.bf16.mxu1 %v26032_v20 }
  0x58   : > { %6123 = vmatpush1.bf16.msra.mxu0 %v24254_v21  ;;  %7667 = vmatpush1.bf16.msra.mxu1 %v24257_v22  ;;  %v26202_v21 = vcombine.high %v405_v12, %v413_v13  ;;  %v24314_v22 = vld [vmem:[%s32239_s3 + $0x460] ss:$20 sps:$4 sm:$0xff]  }
  0x59   : > { %6124 = vmatprep.subr.bf16.mxu0 %v24262_v23  ;;  %7668 = vmatprep.subr.bf16.mxu1 %v24265_v24  ;;  %v24317_v23 = vld [vmem:[%s32239_s3 + $0x468] ss:$20 sps:$4 sm:$0xff]   ;;  %v24322_v24 = vld [vmem:[%s32239_s3 + $0x48c] ss:$20 sps:$4 sm:$0xff]  }
  0x5c   : > { %6125 = vmatpush1.bf16.msra.mxu0 %v24260_v27  ;;  %7669 = vmatpush1.bf16.msra.mxu1 %v24263_v28  ;;  %v429_v27 = vld [vmem:[%s25920_s28 + $0x440] sm:$0xff]  ;;  %v24320_v28 = vld [vmem:[%s32239_s3 + $0x488] ss:$20 sps:$4 sm:$0xff]  }
  0x5d   : > { %6126 = vmatprep.subr.bf16.mxu0 %v24268_v29  ;;  %7670 = vmatprep.subr.bf16.mxu1 %v24271_v30  ;;  %v24323_v29 = vld [vmem:[%s32239_s3 + $0x490] ss:$20 sps:$4 sm:$0xff]   ;;  %v24328_v30 = vld [vmem:[%s32239_s3 + $0x4b4] ss:$20 sps:$4 sm:$0xff]   ;;  %v26242_v37 = vcombine.high %v421_v26, %v429_v27 }
  0x5e   : > { %5978 = vmatmul.mubr.bf16.gmra.mrb[8].mxu0 %v26064_v31  ;;  %7522 = vmatmul.mubr.bf16.gmra.mrb[8].mxu1 %v26064_v31 }
  0x5f   : > { %5987 = vmatprep.mubr.bf16.mxu0 %v26066_v32  ;;  %7531 = vmatprep.mubr.bf16.mxu1 %v26066_v32 }
  0x60   : > { %6127 = vmatpush1.bf16.msra.mxu0 %v24266_v33  ;;  %7671 = vmatpush1.bf16.msra.mxu1 %v24269_v34  ;;  %v24331_v33 = vld [vmem:[%s32239_s3 + $0x4bc] ss:$20 sps:$4 sm:$0xff]   ;;  %v26234_v34 = vcombine.low %v405_v12, %v413_v13  ;;  %v533_v13 = vld [vmem:[%s25920_s28 + $0x780] sm:$0xff] }
  0x61   : > { %6128 = vmatprep.subr.bf16.mxu0 %v24274_v35  ;;  %7672 = vmatprep.subr.bf16.mxu1 %v24277_v36  ;;  %v24326_v35 = vld [vmem:[%s32239_s3 + $0x4b0] ss:$20 sps:$4 sm:$0xff]   ;;  %v24329_v36 = vld [vmem:[%s32239_s3 + $0x4b8] ss:$20 sps:$4 sm:$0xff]  }
  0x64   : > { %6129 = vmatpush1.bf16.msra.mxu0 %v24272_v39  ;;  %7673 = vmatpush1.bf16.msra.mxu1 %v24275_v40  ;;  %v24337_v39 = vld [vmem:[%s32239_s3 + $0x4e4] ss:$20 sps:$4 sm:$0xff]  }
  0x65   : > { %6130 = vmatprep.subr.bf16.mxu0 %v24280_v41  ;;  %7674 = vmatprep.subr.bf16.mxu1 %v24283_v42  ;;  %v437_v40 = vld [vmem:[%s25920_s28 + $0x480] sm:$0xff]  ;;  %v24332_v42 = vld [vmem:[%s32239_s3 + $0x4d8] ss:$20 sps:$4 sm:$0xff]  }
  0x66   : > { %5988 = vmatmul.mubr.bf16.gmra.mrb[12].mxu0 %v26098_v43  ;;  %7532 = vmatmul.mubr.bf16.gmra.mrb[12].mxu1 %v26098_v43  ;;  %v445_v41 = vld [vmem:[%s25920_s28 + $0x4c0] sm:$0xff] }
  0x67   : > { %5997 = vmatprep.mubr.bf16.mxu0 %v26100_v44  ;;  %7541 = vmatprep.mubr.bf16.mxu1 %v26100_v44  ;;  %v26270_v49 = vcombine.high %v437_v40, %v445_v41 }
  0x68   : > { %6131 = vmatpush1.bf16.msra.mxu0 %v24278_v45  ;;  %7675 = vmatpush1.bf16.msra.mxu1 %v24281_v46  ;;  %v24335_v45 = vld [vmem:[%s32239_s3 + $0x4e0] ss:$20 sps:$4 sm:$0xff]   ;;  %v24340_v46 = vld [vmem:[%s32239_s3 + $0x504] ss:$20 sps:$4 sm:$0xff]  }
  0x69   : > { %6132 = vmatprep.subr.bf16.mxu0 %v24286_v47  ;;  %7676 = vmatprep.subr.bf16.mxu1 %v24289_v48  ;;  %v24343_v47 = vld [vmem:[%s32239_s3 + $0x50c] ss:$20 sps:$4 sm:$0xff]   ;;  %v26268_v48 = vcombine.low %v421_v26, %v429_v27 }
  0x6a   : > { %v318_v26 = vld [vmem:[%s25920_s28 + $0xc8] sm:$0xff]  ;;  %v24338_v27 = vld [vmem:[%s32239_s3 + $0x500] ss:$20 sps:$4 sm:$0xff]  }
  0x6c   : > { %6133 = vmatpush1.bf16.msra.mxu0 %v24284_v52  ;;  %7677 = vmatpush1.bf16.msra.mxu1 %v24287_v53  ;;  %v461_v52 = vld [vmem:[%s25920_s28 + $0x540] sm:$0xff]  ;;  %v26278_v53 = vcombine.low %v437_v40, %v445_v41  ;;  %v334_v40 = vld [vmem:[%s25920_s28 + $0x148] sm:$0xff] }
  0x6d   : > { %6134 = vmatprep.subr.bf16.mxu0 %v24292_v54  ;;  %7678 = vmatprep.subr.bf16.mxu1 %v24295_v55  ;;  %v26280_v54 = vcombine.high %v453_v51, %v461_v52  ;;  %v469_v55 = vld [vmem:[%s25920_s28 + $0x580] sm:$0xff]  ;;  %v24352_v41 = vld [vmem:[%s32239_s3 + $0x554] ss:$20 sps:$4 sm:$0xff]  }
  0x6e   : > { %5998 = vmatmul.mubr.bf16.gmra.mrb[16].mxu0 %v26132_v56  ;;  %7542 = vmatmul.mubr.bf16.gmra.mrb[16].mxu1 %v26132_v56 }
  0x6f   : > { %6007 = vmatprep.mubr.bf16.mxu0 %v26134_v57  ;;  %7551 = vmatprep.mubr.bf16.mxu1 %v26134_v57 }
  0x70   : > { %6135 = vmatpush1.bf16.msra.mxu0 %v24290_v58  ;;  %7679 = vmatpush1.bf16.msra.mxu1 %v24293_v59  ;;  %v477_v58 = vld [vmem:[%s25920_s28 + $0x5c0] sm:$0xff]  ;;  %v26288_v59 = vcombine.low %v453_v51, %v461_v52  ;;  %v24358_v52 = vld [vmem:[%s32239_s3 + $0x57c] ss:$20 sps:$4 sm:$0xff]  }
  0x71   : > { %6136 = vmatprep.subr.bf16.mxu0 %v24298_v60  ;;  %7680 = vmatprep.subr.bf16.mxu1 %v24301_v61  ;;  %v26290_v60 = vcombine.high %v469_v55, %v477_v58  ;;  %v485_v61 = vld [vmem:[%s25920_s28 + $0x600] sm:$0xff]  ;;  %v26298_v63 = vcombine.low %v469_v55, %v477_v58  ;;  %v342_v58 = vld [vmem:[%s25920_s28 + $0x188] sm:$0xff] }
  0x72   : > { %v24361_v55 = vld [vmem:[%s32239_s3 + $0x584] ss:$20 sps:$4 sm:$0xff]  }
  0x74   : > { %6137 = vmatpush1.bf16.msra.mxu0 %v24296_v0  ;;  %7681 = vmatpush1.bf16.msra.mxu1 %v24299_v1  ;;  %v26300_v0 = vcombine.high %v485_v61, %v493_v62  ;;  %v501_v1 = vld [vmem:[%s25920_s28 + $0x680] sm:$0xff] }
  0x75   : > { %6138 = vmatprep.subr.bf16.mxu0 %v24304_v2  ;;  %7682 = vmatprep.subr.bf16.mxu1 %v24307_v3  ;;  %v509_v2 = vld [vmem:[%s25920_s28 + $0x6c0] sm:$0xff]  ;;  %v26308_v3 = vcombine.low %v485_v61, %v493_v62  ;;  %v350_v61 = vld [vmem:[%s25920_s28 + $0x1c8] sm:$0xff] }
  0x76   : > { %6008 = vmatmul.mubr.bf16.gmra.mrb[20].mxu0 %v26166_v4  ;;  %7552 = vmatmul.mubr.bf16.gmra.mrb[20].mxu1 %v26166_v4  ;;  %32450 = vst [vmem:[#allocation2_spill] sm:$0xff] %v26300_v0  ;;  %v24356_v62 = vld [vmem:[%s32239_s3 + $0x578] ss:$20 sps:$4 sm:$0xff]  }
  0x77   : > { %6017 = vmatprep.mubr.bf16.mxu0 %v26168_v5  ;;  %7561 = vmatprep.mubr.bf16.mxu1 %v26168_v5  ;;  %32451 = vst [vmem:[#allocation3_spill] sm:$0xff] %v26308_v3 }
  0x78   : > { %6139 = vmatpush1.bf16.msra.mxu0 %v24302_v6  ;;  %7683 = vmatpush1.bf16.msra.mxu1 %v24305_v8  ;;  %v26310_v6 = vcombine.high %v501_v1, %v509_v2  ;;  %v517_v8 = vld [vmem:[%s25920_s28 + $0x700] sm:$0xff] }
  0x79   : > { %6140 = vmatprep.subr.bf16.mxu0 %v24310_v9  ;;  %7684 = vmatprep.subr.bf16.mxu1 %v24313_v11  ;;  %v525_v9 = vld [vmem:[%s25920_s28 + $0x740] sm:$0xff]  ;;  %v26318_v11 = vcombine.low %v501_v1, %v509_v2 }
  0x7a   : > { %32452 = vst [vmem:[#allocation4_spill] sm:$0xff] %v26310_v6  ;;  %v26320_v12 = vcombine.high %v517_v8, %v525_v9  ;;  %v24359_v1 = vld [vmem:[%s32239_s3 + $0x580] ss:$20 sps:$4 sm:$0xff]   ;;  %v24364_v2 = vld [vmem:[%s32239_s3 + $0x5a4] ss:$20 sps:$4 sm:$0xff]  }
  0x7b   : > { %32453 = vst [vmem:[#allocation5_spill] sm:$0xff] %v26318_v11 }
  0x7c   : > { %6141 = vmatpush1.bf16.msra.mxu0 %v24308_v14  ;;  %7685 = vmatpush1.bf16.msra.mxu1 %v24311_v15  ;;  %32454 = vst [vmem:[#allocation6_spill] sm:$0xff] %v26320_v12  ;;  %v541_v14 = vld [vmem:[%s25920_s28 + $0x7c0] sm:$0xff]  ;;  %v26328_v15 = vcombine.low %v517_v8, %v525_v9 }
  0x7d   : > { %6142 = vmatprep.subr.bf16.mxu0 %v24316_v16  ;;  %7686 = vmatprep.subr.bf16.mxu1 %v24319_v17  ;;  %v26330_v16 = vcombine.high %v533_v13, %v541_v14  ;;  %v294_v17 = vld [vmem:[%s25920_s28 + $0x8] sm:$0xff] }
  0x7e   : > { %6018 = vmatmul.mubr.bf16.gmra.mrb[24].mxu0 %v26200_v18  ;;  %7562 = vmatmul.mubr.bf16.gmra.mrb[24].mxu1 %v26200_v18  ;;  %32455 = vst [vmem:[#allocation7_spill] sm:$0xff] %v26328_v15  ;;  %v24367_v8 = vld [vmem:[%s32239_s3 + $0x5ac] ss:$20 sps:$4 sm:$0xff]  }
  0x7f   : > { %6027 = vmatprep.mubr.bf16.mxu0 %v26202_v21  ;;  %7571 = vmatprep.mubr.bf16.mxu1 %v26202_v21  ;;  %32456 = vst [vmem:[#allocation8_spill] sm:$0xff] %v26330_v16 }
  0x80   : > { %6143 = vmatpush1.bf16.msra.mxu0 %v24314_v22  ;;  %7687 = vmatpush1.bf16.msra.mxu1 %v24317_v23  ;;  %v302_v22 = vld [vmem:[%s25920_s28 + $0x48] sm:$0xff]  ;;  %v26338_v23 = vcombine.low %v533_v13, %v541_v14  ;;  %v24362_v13 = vld [vmem:[%s32239_s3 + $0x5a0] ss:$20 sps:$4 sm:$0xff]  }
  0x81   : > { %6144 = vmatprep.subr.bf16.mxu0 %v24322_v24  ;;  %7688 = vmatprep.subr.bf16.mxu1 %v24325_v25  ;;  %v26340_v24 = vcombine.high %v294_v17, %v302_v22  ;;  %v310_v25 = vld [vmem:[%s25920_s28 + $0x88] sm:$0xff] }
  0x82   : > { %32457 = vst [vmem:[#allocation9_spill] sm:$0xff] %v26338_v23  ;;  %v24365_v14 = vld [vmem:[%s32239_s3 + $0x5a8] ss:$20 sps:$4 sm:$0xff]  }
  0x84   : > { %6145 = vmatpush1.bf16.msra.mxu0 %v24320_v28  ;;  %7689 = vmatpush1.bf16.msra.mxu1 %v24323_v29  ;;  %v24341_v28 = vld [vmem:[%s32239_s3 + $0x508] ss:$20 sps:$4 sm:$0xff]   ;;  %v26354_v29 = vcombine.low %v294_v17, %v302_v22  ;;  %v26424_v17 = vcombine.high %v342_v58, %v350_v61  ;;  %v24370_v22 = vld [vmem:[%s32239_s3 + $0x5cc] ss:$20 sps:$4 sm:$0xff]  }
  0x85   : > { %6146 = vmatprep.subr.bf16.mxu0 %v24328_v30  ;;  %7690 = vmatprep.subr.bf16.mxu1 %v24331_v33  ;;  %v24346_v30 = vld [vmem:[%s32239_s3 + $0x52c] ss:$20 sps:$4 sm:$0xff]   ;;  %v24349_v33 = vld [vmem:[%s32239_s3 + $0x534] ss:$20 sps:$4 sm:$0xff]  }
  0x86   : > { %6028 = vmatmul.mubr.bf16.gmra.mrb[28].mxu0 %v26234_v34  ;;  %7572 = vmatmul.mubr.bf16.gmra.mrb[28].mxu1 %v26234_v34 }
  0x87   : > { %6037 = vmatprep.mubr.bf16.mxu0 %v26242_v37  ;;  %7581 = vmatprep.mubr.bf16.mxu1 %v26242_v37 }
  0x88   : > { %6147 = vmatpush1.bf16.msra.mxu0 %v24326_v35  ;;  %7691 = vmatpush1.bf16.msra.mxu1 %v24329_v36  ;;  %v26362_v35 = vcombine.high %v310_v25, %v318_v26  ;;  %v24344_v36 = vld [vmem:[%s32239_s3 + $0x528] ss:$20 sps:$4 sm:$0xff]  }
  0x89   : > { %6148 = vmatprep.subr.bf16.mxu0 %v24334_v38  ;;  %7692 = vmatprep.subr.bf16.mxu1 %v24337_v39  ;;  %v24347_v38 = vld [vmem:[%s32239_s3 + $0x530] ss:$20 sps:$4 sm:$0xff]   ;;  %v326_v39 = vld [vmem:[%s25920_s28 + $0x108] sm:$0xff] }
  0x8a   : > { %v26390_v51 = vcombine.high %v326_v39, %v334_v40  ;;  %v26416_v9 = vcombine.low %v326_v39, %v334_v40  ;;  %v24374_v39 = vld [vmem:[%s32239_s3 + $0x5f0] ss:$20 sps:$4 sm:$0xff]   ;;  %v24377_v40 = vld [vmem:[%s32239_s3 + $0x5f8] ss:$20 sps:$4 sm:$0xff]  }
  0x8c   : > { %6149 = vmatpush1.bf16.msra.mxu0 %v24332_v42  ;;  %7693 = vmatpush1.bf16.msra.mxu1 %v24335_v45  ;;  %v24355_v42 = vld [vmem:[%s32239_s3 + $0x55c] ss:$20 sps:$4 sm:$0xff]   ;;  %v26382_v45 = vcombine.low %v310_v25, %v318_v26  ;;  %v24373_v25 = vld [vmem:[%s32239_s3 + $0x5d4] ss:$20 sps:$4 sm:$0xff]  }
  0x8d   : > { %6311 = vmatprep.subr.bf16.mxu0 %v24340_v46  ;;  %7855 = vmatprep.subr.bf16.mxu1 %v24343_v47  ;;  %v24350_v46 = vld [vmem:[%s32239_s3 + $0x550] ss:$20 sps:$4 sm:$0xff]   ;;  %v24353_v47 = vld [vmem:[%s32239_s3 + $0x558] ss:$20 sps:$4 sm:$0xff]  }
  0x8e   : > { %6038 = vmatmul.mubr.bf16.gmra.mrb[32].mxu0 %v26268_v48  ;;  %7582 = vmatmul.mubr.bf16.gmra.mrb[32].mxu1 %v26268_v48  ;;  %v358_v26 = vld [vmem:[%s25920_s28 + $0x208] sm:$0xff] }
  0x8f   : > { %6047 = vmatprep.mubr.bf16.mxu0 %v26270_v49  ;;  %7591 = vmatprep.mubr.bf16.mxu1 %v26270_v49 }
  0x96   : > { %6048 = vmatmul.mubr.bf16.gmra.mrb[36].mxu0 %v26278_v53  ;;  %7592 = vmatmul.mubr.bf16.gmra.mrb[36].mxu1 %v26278_v53 }
  0x97   : > { %6057 = vmatprep.mubr.bf16.mxu0 %v26280_v54  ;;  %7601 = vmatprep.mubr.bf16.mxu1 %v26280_v54 }
  0x9e   : > { %6058 = vmatmul.mubr.bf16.gmra.mrb[40].mxu0 %v26288_v59  ;;  %7602 = vmatmul.mubr.bf16.gmra.mrb[40].mxu1 %v26288_v59 }
  0x9f   : > { %6067 = vmatprep.mubr.bf16.mxu0 %v26290_v60  ;;  %7611 = vmatprep.mubr.bf16.mxu1 %v26290_v60 }
  0xa6   : > { %6068 = vmatmul.mubr.bf16.gmra.mrb[44].mxu0 %v26298_v63  ;;  %7612 = vmatmul.mubr.bf16.gmra.mrb[44].mxu1 %v26298_v63 }
  0xa7   : > { %6077 = vmatprep.mubr.bf16.mxu0 %v26300_v0  ;;  %7621 = vmatprep.mubr.bf16.mxu1 %v26300_v0 }
  0xae   : > { %6078 = vmatmul.mubr.bf16.gmra.mrb[48].mxu0 %v26308_v3  ;;  %7622 = vmatmul.mubr.bf16.gmra.mrb[48].mxu1 %v26308_v3 }
  0xaf   : > { %6087 = vmatprep.mubr.bf16.mxu0 %v26310_v6  ;;  %7631 = vmatprep.mubr.bf16.mxu1 %v26310_v6  ;;  %v335_v6 = vld [vmem:[%s25920_s28 + $0x150] sm:$0xff] }
  0xb6   : > { %6088 = vmatmul.mubr.bf16.gmra.mrb[52].mxu0 %v26318_v11  ;;  %7632 = vmatmul.mubr.bf16.gmra.mrb[52].mxu1 %v26318_v11 }
  0xb7   : > { %6097 = vmatprep.mubr.bf16.mxu0 %v26320_v12  ;;  %7641 = vmatprep.mubr.bf16.mxu1 %v26320_v12 }
  0xbe   : > { %6098 = vmatmul.mubr.bf16.gmra.mrb[56].mxu0 %v26328_v15  ;;  %7642 = vmatmul.mubr.bf16.gmra.mrb[56].mxu1 %v26328_v15 }
  0xbf   : > { %6107 = vmatprep.mubr.bf16.mxu0 %v26330_v16  ;;  %7651 = vmatprep.mubr.bf16.mxu1 %v26330_v16 }
  0xc6   : > { %6108 = vmatmul.mubr.bf16.gmra.mrb[60].mxu0 %v26338_v23  ;;  %7652 = vmatmul.mubr.bf16.gmra.mrb[60].mxu1 %v26338_v23 }
  0xc7   : > { %6150 = vmatprep.mubr.bf16.mxu0 %v26340_v24  ;;  %7694 = vmatprep.mubr.bf16.mxu1 %v26340_v24 }
  0xce   : > { %6151 = vmatmul.mubr.bf16.vlgmr.msra.gmra.mrb[0].mxu0 %v26354_v29  ;;  %7695 = vmatmul.mubr.bf16.vlgmr.msra.gmra.mrb[0].mxu1 %v26354_v29 }
  0xcf   : > { %6312 = vmatpush1.bf16.msra.mxu0 %v24338_v27  ;;  %7856 = vmatpush1.bf16.msra.mxu1 %v24341_v28  ;;  %v366_v27 = vld [vmem:[%s25920_s28 + $0x248] sm:$0xff] }
  0xd0   : > { %6160 = vmatprep.mubr.bf16.mxu0 %v26362_v35  ;;  %7704 = vmatprep.mubr.bf16.mxu1 %v26362_v35  ;;  %v24368_v28 = vld [vmem:[%s32239_s3 + $0x5c8] ss:$20 sps:$4 sm:$0xff]  }
  0xd1   : > { %6313 = vmatprep.subr.bf16.mxu0 %v24346_v30  ;;  %7857 = vmatprep.subr.bf16.mxu1 %v24349_v33  ;;  %v24371_v30 = vld [vmem:[%s32239_s3 + $0x5d0] ss:$20 sps:$4 sm:$0xff]   ;;  %v24376_v33 = vld [vmem:[%s32239_s3 + $0x5f4] ss:$20 sps:$4 sm:$0xff]  }
  0xd3   : > { %6314 = vmatpush1.bf16.msra.mxu0 %v24344_v36  ;;  %7858 = vmatpush1.bf16.msra.mxu1 %v24347_v38  ;;  %v24379_v36 = vld [vmem:[%s32239_s3 + $0x5fc] ss:$20 sps:$4 sm:$0xff]   ;;  %v26450_v38 = vcombine.low %v342_v58, %v350_v61  ;;  %v24383_v58 = vld [vmem:[%s32239_s3 + $0x620] ss:$20 sps:$4 sm:$0xff]   ;;  %v24388_v61 = vld [vmem:[%s32239_s3 + $0x644] ss:$20 sps:$4 sm:$0xff]  }
  0xd4   : > { %6315 = vmatprep.subr.bf16.mxu0 %v24352_v41  ;;  %7859 = vmatprep.subr.bf16.mxu1 %v24355_v42  ;;  %v26458_v41 = vcombine.high %v358_v26, %v366_v27  ;;  %v24382_v42 = vld [vmem:[%s32239_s3 + $0x61c] ss:$20 sps:$4 sm:$0xff]  }
  0xd6   : > { %6161 = vmatmul.mubr.bf16.gmra.mrb[4].mxu0 %v26382_v45  ;;  %7705 = vmatmul.mubr.bf16.gmra.mrb[4].mxu1 %v26382_v45 }
  0xd7   : > { %6170 = vmatprep.mubr.bf16.mxu0 %v26390_v51  ;;  %7714 = vmatprep.mubr.bf16.mxu1 %v26390_v51 }
  0xd8   : > { %6316 = vmatpush1.bf16.msra.mxu0 %v24350_v46  ;;  %7860 = vmatpush1.bf16.msra.mxu1 %v24353_v47  ;;  %v24385_v46 = vld [vmem:[%s32239_s3 + $0x624] ss:$20 sps:$4 sm:$0xff]   ;;  %v374_v47 = vld [vmem:[%s25920_s28 + $0x288] sm:$0xff] }
  0xd9   : > { %6317 = vmatprep.subr.bf16.mxu0 %v24358_v52  ;;  %7861 = vmatprep.subr.bf16.mxu1 %v24361_v55  ;;  %v382_v52 = vld [vmem:[%s25920_s28 + $0x2c8] sm:$0xff] }
  0xda   : > { %v24380_v55 = vld [vmem:[%s32239_s3 + $0x618] ss:$20 sps:$4 sm:$0xff]  }
  0xdc   : > { %6318 = vmatpush1.bf16.msra.mxu0 %v24356_v62  ;;  %7862 = vmatpush1.bf16.msra.mxu1 %v24359_v1  ;;  %v24391_v62 = vld [vmem:[%s32239_s3 + $0x64c] ss:$20 sps:$4 sm:$0xff]   ;;  %v26484_v1 = vcombine.low %v358_v26, %v366_v27  ;;  %v24392_v27 = vld [vmem:[%s32239_s3 + $0x668] ss:$20 sps:$4 sm:$0xff]  }
  0xdd   : > { %6319 = vmatprep.subr.bf16.mxu0 %v24364_v2  ;;  %7863 = vmatprep.subr.bf16.mxu1 %v24367_v8  ;;  %v24386_v2 = vld [vmem:[%s32239_s3 + $0x640] ss:$20 sps:$4 sm:$0xff]   ;;  %v24389_v8 = vld [vmem:[%s32239_s3 + $0x648] ss:$20 sps:$4 sm:$0xff]  }
  0xde   : > { %6171 = vmatmul.mubr.bf16.gmra.mrb[8].mxu0 %v26416_v9  ;;  %7715 = vmatmul.mubr.bf16.gmra.mrb[8].mxu1 %v26416_v9  ;;  %v398_v26 = vld [vmem:[%s25920_s28 + $0x348] sm:$0xff] }
  0xdf   : > { %6180 = vmatprep.mubr.bf16.mxu0 %v26424_v17  ;;  %7724 = vmatprep.mubr.bf16.mxu1 %v26424_v17 }
  0xe0   : > { %6320 = vmatpush1.bf16.msra.mxu0 %v24362_v13  ;;  %7864 = vmatpush1.bf16.msra.mxu1 %v24365_v14  ;;  %v26492_v13 = vcombine.high %v374_v47, %v382_v52  ;;  %v24394_v14 = vld [vmem:[%s32239_s3 + $0x66c] ss:$20 sps:$4 sm:$0xff]  }
  0xe1   : > { %6321 = vmatprep.subr.bf16.mxu0 %v24370_v22  ;;  %7865 = vmatprep.subr.bf16.mxu1 %v24373_v25  ;;  %v24397_v22 = vld [vmem:[%s32239_s3 + $0x674] ss:$20 sps:$4 sm:$0xff]  }
  0xe2   : > { %v390_v25 = vld [vmem:[%s25920_s28 + $0x308] sm:$0xff] }
  0xe4   : > { %6322 = vmatpush1.bf16.msra.mxu0 %v24368_v28  ;;  %7866 = vmatpush1.bf16.msra.mxu1 %v24371_v30  ;;  %v24395_v28 = vld [vmem:[%s32239_s3 + $0x670] ss:$20 sps:$4 sm:$0xff]   ;;  %v24400_v30 = vld [vmem:[%s32239_s3 + $0x694] ss:$20 sps:$4 sm:$0xff]  }
  0xe5   : > { %6323 = vmatprep.subr.bf16.mxu0 %v24376_v33  ;;  %7867 = vmatprep.subr.bf16.mxu1 %v24379_v36  ;;  %v24403_v33 = vld [vmem:[%s32239_s3 + $0x69c] ss:$20 sps:$4 sm:$0xff]   ;;  %v26518_v36 = vcombine.low %v374_v47, %v382_v52  ;;  %v406_v47 = vld [vmem:[%s25920_s28 + $0x388] sm:$0xff] }
  0xe6   : > { %6181 = vmatmul.mubr.bf16.gmra.mrb[12].mxu0 %v26450_v38  ;;  %7725 = vmatmul.mubr.bf16.gmra.mrb[12].mxu1 %v26450_v38  ;;  %v414_v52 = vld [vmem:[%s25920_s28 + $0x3c8] sm:$0xff] }
  0xe7   : > { %6190 = vmatprep.mubr.bf16.mxu0 %v26458_v41  ;;  %7734 = vmatprep.mubr.bf16.mxu1 %v26458_v41 }
  0xe8   : > { %6324 = vmatpush1.bf16.msra.mxu0 %v24374_v39  ;;  %7868 = vmatpush1.bf16.msra.mxu1 %v24377_v40  ;;  %v24398_v39 = vld [vmem:[%s32239_s3 + $0x690] ss:$20 sps:$4 sm:$0xff]   ;;  %v24401_v40 = vld [vmem:[%s32239_s3 + $0x698] ss:$20 sps:$4 sm:$0xff]  }
  0xe9   : > { %6325 = vmatprep.subr.bf16.mxu0 %v24382_v42  ;;  %7869 = vmatprep.subr.bf16.mxu1 %v24385_v46  ;;  %v26526_v42 = vcombine.high %v390_v25, %v398_v26  ;;  %v24406_v46 = vld [vmem:[%s32239_s3 + $0x6bc] ss:$20 sps:$4 sm:$0xff]  }
  0xec   : > { %6326 = vmatpush1.bf16.msra.mxu0 %v24380_v55  ;;  %7870 = vmatpush1.bf16.msra.mxu1 %v24383_v58  ;;  %v24409_v55 = vld [vmem:[%s32239_s3 + $0x6c4] ss:$20 sps:$4 sm:$0xff]  }
  0xed   : > { %6327 = vmatprep.subr.bf16.mxu0 %v24388_v61  ;;  %7871 = vmatprep.subr.bf16.mxu1 %v24391_v62  ;;  %v24404_v58 = vld [vmem:[%s32239_s3 + $0x6b8] ss:$20 sps:$4 sm:$0xff]   ;;  %v24407_v61 = vld [vmem:[%s32239_s3 + $0x6c0] ss:$20 sps:$4 sm:$0xff]  }
  0xee   : > { %6191 = vmatmul.mubr.bf16.gmra.mrb[16].mxu0 %v26484_v1  ;;  %7735 = vmatmul.mubr.bf16.gmra.mrb[16].mxu1 %v26484_v1  ;;  %v24412_v62 = vld [vmem:[%s32239_s3 + $0x6e4] ss:$20 sps:$4 sm:$0xff]  }
  0xef   : > { %6200 = vmatprep.mubr.bf16.mxu0 %v26492_v13  ;;  %7744 = vmatprep.mubr.bf16.mxu1 %v26492_v13 }
  0xf0   : > { %6328 = vmatpush1.bf16.msra.mxu0 %v24386_v2  ;;  %7872 = vmatpush1.bf16.msra.mxu1 %v24389_v8  ;;  %v24415_v2 = vld [vmem:[%s32239_s3 + $0x6ec] ss:$20 sps:$4 sm:$0xff]   ;;  %v26552_v8 = vcombine.low %v390_v25, %v398_v26 }
  0xf1   : > { %6329 = vmatprep.subr.bf16.mxu0 %v24394_v14  ;;  %7873 = vmatprep.subr.bf16.mxu1 %v24397_v22  ;;  %v24410_v14 = vld [vmem:[%s32239_s3 + $0x6e0] ss:$20 sps:$4 sm:$0xff]   ;;  %v24413_v22 = vld [vmem:[%s32239_s3 + $0x6e8] ss:$20 sps:$4 sm:$0xff]  }
  0xf2   : > { %v422_v25 = vld [vmem:[%s25920_s28 + $0x408] sm:$0xff] }
  0xf3   : > { %v430_v26 = vld [vmem:[%s25920_s28 + $0x448] sm:$0xff] }
  0xf4   : > { %6330 = vmatpush1.bf16.msra.mxu0 %v24392_v27  ;;  %7874 = vmatpush1.bf16.msra.mxu1 %v24395_v28  ;;  %v26560_v27 = vcombine.high %v406_v47, %v414_v52  ;;  %v24418_v28 = vld [vmem:[%s32239_s3 + $0x70c] ss:$20 sps:$4 sm:$0xff]  }
  0xf5   : > { %6331 = vmatprep.subr.bf16.mxu0 %v24400_v30  ;;  %7875 = vmatprep.subr.bf16.mxu1 %v24403_v33  ;;  %v24421_v30 = vld [vmem:[%s32239_s3 + $0x714] ss:$20 sps:$4 sm:$0xff]  }
  0xf6   : > { %6201 = vmatmul.mubr.bf16.gmra.mrb[20].mxu0 %v26518_v36  ;;  %7745 = vmatmul.mubr.bf16.gmra.mrb[20].mxu1 %v26518_v36  ;;  %v24416_v33 = vld [vmem:[%s32239_s3 + $0x708] ss:$20 sps:$4 sm:$0xff]  }
  0xf7   : > { %6210 = vmatprep.mubr.bf16.mxu0 %v26526_v42  ;;  %7754 = vmatprep.mubr.bf16.mxu1 %v26526_v42 }
  0xf8   : > { %6332 = vmatpush1.bf16.msra.mxu0 %v24398_v39  ;;  %7876 = vmatpush1.bf16.msra.mxu1 %v24401_v40  ;;  %v24419_v39 = vld [vmem:[%s32239_s3 + $0x710] ss:$20 sps:$4 sm:$0xff]   ;;  %v24424_v40 = vld [vmem:[%s32239_s3 + $0x734] ss:$20 sps:$4 sm:$0xff]  }
  0xf9   : > { %6333 = vmatprep.subr.bf16.mxu0 %v24406_v46  ;;  %7877 = vmatprep.subr.bf16.mxu1 %v24409_v55  ;;  %v24427_v46 = vld [vmem:[%s32239_s3 + $0x73c] ss:$20 sps:$4 sm:$0xff]   ;;  %v26586_v55 = vcombine.low %v406_v47, %v414_v52  ;;  %v438_v47 = vld [vmem:[%s25920_s28 + $0x488] sm:$0xff] }
  0xfa   : > { %v446_v52 = vld [vmem:[%s25920_s28 + $0x4c8] sm:$0xff] }
  0xfc   : > { %6334 = vmatpush1.bf16.msra.mxu0 %v24404_v58  ;;  %7878 = vmatpush1.bf16.msra.mxu1 %v24407_v61  ;;  %v24422_v58 = vld [vmem:[%s32239_s3 + $0x730] ss:$20 sps:$4 sm:$0xff]   ;;  %v24425_v61 = vld [vmem:[%s32239_s3 + $0x738] ss:$20 sps:$4 sm:$0xff]  }
  0xfd   : > { %6335 = vmatprep.subr.bf16.mxu0 %v24412_v62  ;;  %7879 = vmatprep.subr.bf16.mxu1 %v24415_v2  ;;  %v26594_v62 = vcombine.high %v422_v25, %v430_v26  ;;  %v24430_v2 = vld [vmem:[%s32239_s3 + $0x75c] ss:$20 sps:$4 sm:$0xff]  }
  0xfe   : > { %6211 = vmatmul.mubr.bf16.gmra.mrb[24].mxu0 %v26552_v8  ;;  %7755 = vmatmul.mubr.bf16.gmra.mrb[24].mxu1 %v26552_v8 }
  0xff   : > { %6220 = vmatprep.mubr.bf16.mxu0 %v26560_v27  ;;  %7764 = vmatprep.mubr.bf16.mxu1 %v26560_v27 }
 0x100   : > { %6336 = vmatpush1.bf16.msra.mxu0 %v24410_v14  ;;  %7880 = vmatpush1.bf16.msra.mxu1 %v24413_v22  ;;  %v24433_v14 = vld [vmem:[%s32239_s3 + $0x764] ss:$20 sps:$4 sm:$0xff]  }
 0x101   : > { %6337 = vmatprep.subr.bf16.mxu0 %v24418_v28  ;;  %7881 = vmatprep.subr.bf16.mxu1 %v24421_v30  ;;  %v24428_v22 = vld [vmem:[%s32239_s3 + $0x758] ss:$20 sps:$4 sm:$0xff]   ;;  %v24431_v28 = vld [vmem:[%s32239_s3 + $0x760] ss:$20 sps:$4 sm:$0xff]  }
 0x102   : > { %v24436_v30 = vld [vmem:[%s32239_s3 + $0x784] ss:$20 sps:$4 sm:$0xff]  }
 0x104   : > { %6338 = vmatpush1.bf16.msra.mxu0 %v24416_v33  ;;  %7882 = vmatpush1.bf16.msra.mxu1 %v24419_v39  ;;  %v24439_v33 = vld [vmem:[%s32239_s3 + $0x78c] ss:$20 sps:$4 sm:$0xff]   ;;  %v26620_v39 = vcombine.low %v422_v25, %v430_v26  ;;  %v26630_v26 = vcombine.low %v438_v47, %v446_v52 }
 0x105   : > { %6339 = vmatprep.subr.bf16.mxu0 %v24424_v40  ;;  %7883 = vmatprep.subr.bf16.mxu1 %v24427_v46  ;;  %v26622_v40 = vcombine.high %v438_v47, %v446_v52  ;;  %v454_v46 = vld [vmem:[%s25920_s28 + $0x508] sm:$0xff] }
 0x106   : > { %6221 = vmatmul.mubr.bf16.gmra.mrb[28].mxu0 %v26586_v55  ;;  %7765 = vmatmul.mubr.bf16.gmra.mrb[28].mxu1 %v26586_v55  ;;  %v462_v25 = vld [vmem:[%s25920_s28 + $0x548] sm:$0xff] }
 0x107   : > { %6230 = vmatprep.mubr.bf16.mxu0 %v26594_v62  ;;  %7774 = vmatprep.mubr.bf16.mxu1 %v26594_v62  ;;  %v486_v47 = vld [vmem:[%s25920_s28 + $0x608] sm:$0xff] }
 0x108   : > { %6340 = vmatpush1.bf16.msra.mxu0 %v24422_v58  ;;  %7884 = vmatpush1.bf16.msra.mxu1 %v24425_v61  ;;  %v26632_v58 = vcombine.high %v454_v46, %v462_v25  ;;  %v470_v61 = vld [vmem:[%s25920_s28 + $0x588] sm:$0xff] }
 0x109   : > { %6341 = vmatprep.subr.bf16.mxu0 %v24430_v2  ;;  %7885 = vmatprep.subr.bf16.mxu1 %v24433_v14  ;;  %v478_v2 = vld [vmem:[%s25920_s28 + $0x5c8] sm:$0xff]  ;;  %v26640_v14 = vcombine.low %v454_v46, %v462_v25 }
 0x10a   : > { %v494_v52 = vld [vmem:[%s25920_s28 + $0x648] sm:$0xff] }
 0x10b   : > { %v510_v46 = vld [vmem:[%s25920_s28 + $0x6c8] sm:$0xff]  ;;  %v26660_v25 = vcombine.low %v486_v47, %v494_v52 }
 0x10c   : > { %6342 = vmatpush1.bf16.msra.mxu0 %v24428_v22  ;;  %7886 = vmatpush1.bf16.msra.mxu1 %v24431_v28  ;;  %v26642_v22 = vcombine.high %v470_v61, %v478_v2  ;;  %v26650_v28 = vcombine.low %v470_v61, %v478_v2  ;;  %v518_v61 = vld [vmem:[%s25920_s28 + $0x708] sm:$0xff] }
 0x10d   : > { %6504 = vmatprep.subr.bf16.mxu0 %v24436_v30  ;;  %8048 = vmatprep.subr.bf16.mxu1 %v24439_v33  ;;  %v26652_v30 = vcombine.high %v486_v47, %v494_v52  ;;  %v502_v33 = vld [vmem:[%s25920_s28 + $0x688] sm:$0xff]  ;;  %32459 = vst [vmem:[#allocation11_spill] sm:$0xff] %v26660_v25 }
 0x10e   : > { %6231 = vmatmul.mubr.bf16.gmra.mrb[32].mxu0 %v26620_v39  ;;  %7775 = vmatmul.mubr.bf16.gmra.mrb[32].mxu1 %v26620_v39  ;;  %v26662_v23 = vcombine.high %v502_v33, %v510_v46  ;;  %v526_v2 = vld [vmem:[%s25920_s28 + $0x748] sm:$0xff]  ;;  %v26670_v16 = vcombine.low %v502_v33, %v510_v46  ;;  %v295_v33 = vld [vmem:[%s25920_s28 + $0x10] sm:$0xff] }
 0x10f   : > { %6240 = vmatprep.mubr.bf16.mxu0 %v26622_v40  ;;  %7784 = vmatprep.mubr.bf16.mxu1 %v26622_v40  ;;  %32458 = vst [vmem:[#allocation10_spill] sm:$0xff] %v26652_v30  ;;  %v26672_v15 = vcombine.high %v518_v61, %v526_v2  ;;  %v534_v47 = vld [vmem:[%s25920_s28 + $0x788] sm:$0xff]  ;;  %v26680_v12 = vcombine.low %v518_v61, %v526_v2  ;;  %v303_v46 = vld [vmem:[%s25920_s28 + $0x50] sm:$0xff] }
 0x110   : > { %32460 = vst [vmem:[#allocation12_spill] sm:$0xff] %v26662_v23  ;;  %32461 = vst [vmem:[#allocation13_spill] sm:$0xff] %v26670_v16  ;;  %v542_v52 = vld [vmem:[%s25920_s28 + $0x7c8] sm:$0xff]  ;;  %v311_v61 = vld [vmem:[%s25920_s28 + $0x90] sm:$0xff] }
 0x111   : > { %32462 = vst [vmem:[#allocation14_spill] sm:$0xff] %v26672_v15  ;;  %32463 = vst [vmem:[#allocation15_spill] sm:$0xff] %v26680_v12  ;;  %v26682_v11 = vcombine.high %v534_v47, %v542_v52  ;;  %v319_v2 = vld [vmem:[%s25920_s28 + $0xd0] sm:$0xff] }
 0x112   : > { %v26734_v3 = vcombine.low %v311_v61, %v319_v2 }
 0x113   : > { %32464 = vst [vmem:[#allocation16_spill] sm:$0xff] %v26682_v11 }
 0x114   : > { %32469 = vst [vmem:[#allocation21_spill] sm:$0xff] %v26734_v3 }
 0x116   : > { %6241 = vmatmul.mubr.bf16.gmra.mrb[36].mxu0 %v26630_v26  ;;  %7785 = vmatmul.mubr.bf16.gmra.mrb[36].mxu1 %v26630_v26 }
 0x117   : > { %6250 = vmatprep.mubr.bf16.mxu0 %v26632_v58  ;;  %7794 = vmatprep.mubr.bf16.mxu1 %v26632_v58 }
 0x11e   : > { %6251 = vmatmul.mubr.bf16.gmra.mrb[40].mxu0 %v26640_v14  ;;  %7795 = vmatmul.mubr.bf16.gmra.mrb[40].mxu1 %v26640_v14 }
 0x11f   : > { %6260 = vmatprep.mubr.bf16.mxu0 %v26642_v22  ;;  %7804 = vmatprep.mubr.bf16.mxu1 %v26642_v22 }
 0x126   : > { %6261 = vmatmul.mubr.bf16.gmra.mrb[44].mxu0 %v26650_v28  ;;  %7805 = vmatmul.mubr.bf16.gmra.mrb[44].mxu1 %v26650_v28 }
 0x127   : > { %6270 = vmatprep.mubr.bf16.mxu0 %v26652_v30  ;;  %7814 = vmatprep.mubr.bf16.mxu1 %v26652_v30 }
 0x12e   : > { %6271 = vmatmul.mubr.bf16.gmra.mrb[48].mxu0 %v26660_v25  ;;  %7815 = vmatmul.mubr.bf16.gmra.mrb[48].mxu1 %v26660_v25  ;;  %v24448_v25 = vld [vmem:[%s32239_s3 + $0x7d4] ss:$20 sps:$4 sm:$0xff]  }
 0x12f   : > { %6280 = vmatprep.mubr.bf16.mxu0 %v26662_v23  ;;  %7824 = vmatprep.mubr.bf16.mxu1 %v26662_v23  ;;  %v24440_v23 = vld [vmem:[%s32239_s3 + $0x7a8] ss:$20 sps:$4 sm:$0xff]  }
 0x136   : > { %6281 = vmatmul.mubr.bf16.gmra.mrb[52].mxu0 %v26670_v16  ;;  %7825 = vmatmul.mubr.bf16.gmra.mrb[52].mxu1 %v26670_v16  ;;  %v26690_v16 = vcombine.low %v534_v47, %v542_v52  ;;  %v24437_v47 = vld [vmem:[%s32239_s3 + $0x788] ss:$20 sps:$4 sm:$0xff]   ;;  %v26706_v52 = vcombine.low %v295_v33, %v303_v46 }
 0x137   : > { %6290 = vmatprep.mubr.bf16.mxu0 %v26672_v15  ;;  %7834 = vmatprep.mubr.bf16.mxu1 %v26672_v15  ;;  %v26692_v15 = vcombine.high %v295_v33, %v303_v46  ;;  %v24443_v33 = vld [vmem:[%s32239_s3 + $0x7b0] ss:$20 sps:$4 sm:$0xff]  }
 0x138   : > { %32465 = vst [vmem:[#allocation17_spill] sm:$0xff] %v26690_v16  ;;  %32467 = vst [vmem:[#allocation19_spill] sm:$0xff] %v26706_v52  ;;  %v327_v46 = vld [vmem:[%s25920_s28 + $0x110] sm:$0xff] }
 0x139   : > { %32466 = vst [vmem:[#allocation18_spill] sm:$0xff] %v26692_v15  ;;  %v26742_v30 = vcombine.high %v327_v46, %v335_v6 }
 0x13b   : > { %32470 = vst [vmem:[#allocation22_spill] sm:$0xff] %v26742_v30 }
 0x13e   : > { %6291 = vmatmul.mubr.bf16.gmra.mrb[56].mxu0 %v26680_v12  ;;  %7835 = vmatmul.mubr.bf16.gmra.mrb[56].mxu1 %v26680_v12  ;;  %v26714_v12 = vcombine.high %v311_v61, %v319_v2  ;;  %v351_v61 = vld [vmem:[%s25920_s28 + $0x1d0] sm:$0xff] }
 0x13f   : > { %6300 = vmatprep.mubr.bf16.mxu0 %v26682_v11  ;;  %7844 = vmatprep.mubr.bf16.mxu1 %v26682_v11  ;;  %v24434_v11 = vld [vmem:[%s32239_s3 + $0x780] ss:$20 sps:$4 sm:$0xff]  }
 0x140   : > { %32468 = vst [vmem:[#allocation20_spill] sm:$0xff] %v26714_v12  ;;  %v24455_v2 = vld [vmem:[%s32239_s3 + $0x800] ss:$20 sps:$4 sm:$0xff]  }
 0x146   : > { %6301 = vmatmul.mubr.bf16.gmra.mrb[60].mxu0 %v26690_v16  ;;  %7845 = vmatmul.mubr.bf16.gmra.mrb[60].mxu1 %v26690_v16  ;;  %v24442_v16 = vld [vmem:[%s32239_s3 + $0x7ac] ss:$20 sps:$4 sm:$0xff]  }
 0x147   : > { %6343 = vmatprep.mubr.bf16.mxu0 %v26692_v15  ;;  %7887 = vmatprep.mubr.bf16.mxu1 %v26692_v15  ;;  %v24445_v15 = vld [vmem:[%s32239_s3 + $0x7b4] ss:$20 sps:$4 sm:$0xff]  }
 0x14e   : > { %6344 = vmatmul.mubr.bf16.vlgmr.msra.gmra.mrb[0].mxu0 %v26706_v52  ;;  %7888 = vmatmul.mubr.bf16.vlgmr.msra.gmra.mrb[0].mxu1 %v26706_v52  ;;  %v24451_v52 = vld [vmem:[%s32239_s3 + $0x7dc] ss:$20 sps:$4 sm:$0xff]  }
 0x14f   : > { %6505 = vmatpush1.bf16.msra.mxu0 %v24434_v11  ;;  %8049 = vmatpush1.bf16.msra.mxu1 %v24437_v47  ;;  %v24446_v11 = vld [vmem:[%s32239_s3 + $0x7d0] ss:$20 sps:$4 sm:$0xff]   ;;  %v24449_v47 = vld [vmem:[%s32239_s3 + $0x7d8] ss:$20 sps:$4 sm:$0xff]  }
 0x150   : > { %6353 = vmatprep.mubr.bf16.mxu0 %v26714_v12  ;;  %7897 = vmatprep.mubr.bf16.mxu1 %v26714_v12  ;;  %v24454_v12 = vld [vmem:[%s32239_s3 + $0x7fc] ss:$20 sps:$4 sm:$0xff]  }
 0x151   : > { %6506 = vmatprep.subr.bf16.mxu0 %v24442_v16  ;;  %8050 = vmatprep.subr.bf16.mxu1 %v24445_v15  ;;  %v24457_v15 = vld [vmem:[%s32239_s3 + $0x804] ss:$20 sps:$4 sm:$0xff]   ;;  %v343_v16 = vld [vmem:[%s25920_s28 + $0x190] sm:$0xff] }
 0x152   : > { %v26776_v0 = vcombine.high %v343_v16, %v351_v61 }
 0x153   : > { %6507 = vmatpush1.bf16.msra.mxu0 %v24440_v23  ;;  %8051 = vmatpush1.bf16.msra.mxu1 %v24443_v33  ;;  %v24452_v23 = vld [vmem:[%s32239_s3 + $0x7f8] ss:$20 sps:$4 sm:$0xff]   ;;  %v26768_v33 = vcombine.low %v327_v46, %v335_v6  ;;  %v359_v6 = vld [vmem:[%s25920_s28 + $0x210] sm:$0xff] }
 0x154   : > { %6508 = vmatprep.subr.bf16.mxu0 %v24448_v25  ;;  %8052 = vmatprep.subr.bf16.mxu1 %v24451_v52  ;;  %v24460_v25 = vld [vmem:[%s32239_s3 + $0x824] ss:$20 sps:$4 sm:$0xff]   ;;  %v24463_v52 = vld [vmem:[%s32239_s3 + $0x82c] ss:$20 sps:$4 sm:$0xff]   ;;  %32472 = vst [vmem:[#allocation24_spill] sm:$0xff] %v26776_v0  ;;  %v367_v46 = vld [vmem:[%s25920_s28 + $0x250] sm:$0xff] }
 0x155   : > { %32471 = vst [vmem:[#allocation23_spill] sm:$0xff] %v26768_v33 }
 0x156   : > { %6354 = vmatmul.mubr.bf16.gmra.mrb[4].mxu0 %v26734_v3  ;;  %7898 = vmatmul.mubr.bf16.gmra.mrb[4].mxu1 %v26734_v3  ;;  %v24461_v3 = vld [vmem:[%s32239_s3 + $0x828] ss:$20 sps:$4 sm:$0xff]  }
 0x157   : > { %6363 = vmatprep.mubr.bf16.mxu0 %v26742_v30  ;;  %7907 = vmatprep.mubr.bf16.mxu1 %v26742_v30  ;;  %v24458_v30 = vld [vmem:[%s32239_s3 + $0x820] ss:$20 sps:$4 sm:$0xff]  }
 0x158   : > { %6509 = vmatpush1.bf16.msra.mxu0 %v24446_v11  ;;  %8053 = vmatpush1.bf16.msra.mxu1 %v24449_v47  ;;  %v24466_v11 = vld [vmem:[%s32239_s3 + $0x84c] ss:$20 sps:$4 sm:$0xff]   ;;  %v24464_v47 = vld [vmem:[%s32239_s3 + $0x848] ss:$20 sps:$4 sm:$0xff]  }
 0x159   : > { %6510 = vmatprep.subr.bf16.mxu0 %v24454_v12  ;;  %8054 = vmatprep.subr.bf16.mxu1 %v24457_v15  ;;  %v24469_v12 = vld [vmem:[%s32239_s3 + $0x854] ss:$20 sps:$4 sm:$0xff]   ;;  %v24467_v15 = vld [vmem:[%s32239_s3 + $0x850] ss:$20 sps:$4 sm:$0xff]  }
 0x15c   : > { %6511 = vmatpush1.bf16.msra.mxu0 %v24452_v23  ;;  %8055 = vmatpush1.bf16.msra.mxu1 %v24455_v2  ;;  %v24472_v23 = vld [vmem:[%s32239_s3 + $0x874] ss:$20 sps:$4 sm:$0xff]   ;;  %v24475_v2 = vld [vmem:[%s32239_s3 + $0x87c] ss:$20 sps:$4 sm:$0xff]  }
 0x15d   : > { %6512 = vmatprep.subr.bf16.mxu0 %v24460_v25  ;;  %8056 = vmatprep.subr.bf16.mxu1 %v24463_v52  ;;  %v26802_v25 = vcombine.low %v343_v16, %v351_v61  ;;  %v24470_v52 = vld [vmem:[%s32239_s3 + $0x870] ss:$20 sps:$4 sm:$0xff]  }
 0x15e   : > { %6364 = vmatmul.mubr.bf16.gmra.mrb[8].mxu0 %v26768_v33  ;;  %7908 = vmatmul.mubr.bf16.gmra.mrb[8].mxu1 %v26768_v33  ;;  %v26810_v33 = vcombine.high %v359_v6, %v367_v46  ;;  %v375_v16 = vld [vmem:[%s25920_s28 + $0x290] sm:$0xff] }
 0x15f   : > { %6373 = vmatprep.mubr.bf16.mxu0 %v26776_v0  ;;  %7917 = vmatprep.mubr.bf16.mxu1 %v26776_v0  ;;  %32473 = vst [vmem:[#allocation25_spill] sm:$0xff] %v26802_v25  ;;  %v24473_v0 = vld [vmem:[%s32239_s3 + $0x878] ss:$20 sps:$4 sm:$0xff]   ;;  %v383_v61 = vld [vmem:[%s25920_s28 + $0x2d0] sm:$0xff] }
 0x160   : > { %6513 = vmatpush1.bf16.msra.mxu0 %v24458_v30  ;;  %8057 = vmatpush1.bf16.msra.mxu1 %v24461_v3  ;;  %32474 = vst [vmem:[#allocation26_spill] sm:$0xff] %v26810_v33  ;;  %v24478_v30 = vld [vmem:[%s32239_s3 + $0x89c] ss:$20 sps:$4 sm:$0xff]   ;;  %v24481_v3 = vld [vmem:[%s32239_s3 + $0x8a4] ss:$20 sps:$4 sm:$0xff]  }
 0x161   : > { %6514 = vmatprep.subr.bf16.mxu0 %v24466_v11  ;;  %8058 = vmatprep.subr.bf16.mxu1 %v24469_v12  ;;  %v24476_v11 = vld [vmem:[%s32239_s3 + $0x898] ss:$20 sps:$4 sm:$0xff]   ;;  %v24479_v12 = vld [vmem:[%s32239_s3 + $0x8a0] ss:$20 sps:$4 sm:$0xff]  }
 0x164   : > { %6515 = vmatpush1.bf16.msra.mxu0 %v24464_v47  ;;  %8059 = vmatpush1.bf16.msra.mxu1 %v24467_v15  ;;  %v24484_v47 = vld [vmem:[%s32239_s3 + $0x8c4] ss:$20 sps:$4 sm:$0xff]   ;;  %v24487_v15 = vld [vmem:[%s32239_s3 + $0x8cc] ss:$20 sps:$4 sm:$0xff]  }
 0x165   : > { %6516 = vmatprep.subr.bf16.mxu0 %v24472_v23  ;;  %8060 = vmatprep.subr.bf16.mxu1 %v24475_v2  ;;  %v26836_v23 = vcombine.low %v359_v6, %v367_v46  ;;  %v24482_v2 = vld [vmem:[%s32239_s3 + $0x8c0] ss:$20 sps:$4 sm:$0xff]  }
 0x166   : > { %6374 = vmatmul.mubr.bf16.gmra.mrb[12].mxu0 %v26802_v25  ;;  %7918 = vmatmul.mubr.bf16.gmra.mrb[12].mxu1 %v26802_v25  ;;  %v26844_v25 = vcombine.high %v375_v16, %v383_v61  ;;  %v391_v6 = vld [vmem:[%s25920_s28 + $0x310] sm:$0xff] }
 0x167   : > { %6383 = vmatprep.mubr.bf16.mxu0 %v26810_v33  ;;  %7927 = vmatprep.mubr.bf16.mxu1 %v26810_v33  ;;  %32475 = vst [vmem:[#allocation27_spill] sm:$0xff] %v26836_v23  ;;  %v24485_v33 = vld [vmem:[%s32239_s3 + $0x8c8] ss:$20 sps:$4 sm:$0xff]   ;;  %v399_v46 = vld [vmem:[%s25920_s28 + $0x350] sm:$0xff] }
 0x168   : > { %6517 = vmatpush1.bf16.msra.mxu0 %v24470_v52  ;;  %8061 = vmatpush1.bf16.msra.mxu1 %v24473_v0  ;;  %32476 = vst [vmem:[#allocation28_spill] sm:$0xff] %v26844_v25  ;;  %v24490_v52 = vld [vmem:[%s32239_s3 + $0x8ec] ss:$20 sps:$4 sm:$0xff]   ;;  %v24493_v0 = vld [vmem:[%s32239_s3 + $0x8f4] ss:$20 sps:$4 sm:$0xff]  }
 0x169   : > { %6518 = vmatprep.subr.bf16.mxu0 %v24478_v30  ;;  %8062 = vmatprep.subr.bf16.mxu1 %v24481_v3  ;;  %v24488_v30 = vld [vmem:[%s32239_s3 + $0x8e8] ss:$20 sps:$4 sm:$0xff]   ;;  %v24491_v3 = vld [vmem:[%s32239_s3 + $0x8f0] ss:$20 sps:$4 sm:$0xff]  }
 0x16c   : > { %6519 = vmatpush1.bf16.msra.mxu0 %v24476_v11  ;;  %8063 = vmatpush1.bf16.msra.mxu1 %v24479_v12  ;;  %v24496_v11 = vld [vmem:[%s32239_s3 + $0x914] ss:$20 sps:$4 sm:$0xff]   ;;  %v24499_v12 = vld [vmem:[%s32239_s3 + $0x91c] ss:$20 sps:$4 sm:$0xff]  }
 0x16d   : > { %6520 = vmatprep.subr.bf16.mxu0 %v24484_v47  ;;  %8064 = vmatprep.subr.bf16.mxu1 %v24487_v15  ;;  %v26870_v47 = vcombine.low %v375_v16, %v383_v61  ;;  %v24494_v15 = vld [vmem:[%s32239_s3 + $0x910] ss:$20 sps:$4 sm:$0xff]  }
 0x16e   : > { %6384 = vmatmul.mubr.bf16.gmra.mrb[16].mxu0 %v26836_v23  ;;  %7928 = vmatmul.mubr.bf16.gmra.mrb[16].mxu1 %v26836_v23  ;;  %v26878_v23 = vcombine.high %v391_v6, %v399_v46  ;;  %v407_v16 = vld [vmem:[%s25920_s28 + $0x390] sm:$0xff] }
 0x16f   : > { %6393 = vmatprep.mubr.bf16.mxu0 %v26844_v25  ;;  %7937 = vmatprep.mubr.bf16.mxu1 %v26844_v25  ;;  %32477 = vst [vmem:[#allocation29_spill] sm:$0xff] %v26870_v47  ;;  %v24497_v25 = vld [vmem:[%s32239_s3 + $0x918] ss:$20 sps:$4 sm:$0xff]   ;;  %v415_v61 = vld [vmem:[%s25920_s28 + $0x3d0] sm:$0xff] }
 0x170   : > { %6521 = vmatpush1.bf16.msra.mxu0 %v24482_v2  ;;  %8065 = vmatpush1.bf16.msra.mxu1 %v24485_v33  ;;  %32478 = vst [vmem:[#allocation30_spill] sm:$0xff] %v26878_v23  ;;  %v24502_v2 = vld [vmem:[%s32239_s3 + $0x93c] ss:$20 sps:$4 sm:$0xff]   ;;  %v24505_v33 = vld [vmem:[%s32239_s3 + $0x944] ss:$20 sps:$4 sm:$0xff]  }
 0x171   : > { %6522 = vmatprep.subr.bf16.mxu0 %v24490_v52  ;;  %8066 = vmatprep.subr.bf16.mxu1 %v24493_v0  ;;  %v24500_v52 = vld [vmem:[%s32239_s3 + $0x938] ss:$20 sps:$4 sm:$0xff]   ;;  %v24503_v0 = vld [vmem:[%s32239_s3 + $0x940] ss:$20 sps:$4 sm:$0xff]  }
 0x174   : > { %6523 = vmatpush1.bf16.msra.mxu0 %v24488_v30  ;;  %8067 = vmatpush1.bf16.msra.mxu1 %v24491_v3  ;;  %v24508_v30 = vld [vmem:[%s32239_s3 + $0x964] ss:$20 sps:$4 sm:$0xff]   ;;  %v24511_v3 = vld [vmem:[%s32239_s3 + $0x96c] ss:$20 sps:$4 sm:$0xff]  }
 0x175   : > { %6524 = vmatprep.subr.bf16.mxu0 %v24496_v11  ;;  %8068 = vmatprep.subr.bf16.mxu1 %v24499_v12  ;;  %v26904_v11 = vcombine.low %v391_v6, %v399_v46  ;;  %v24506_v12 = vld [vmem:[%s32239_s3 + $0x960] ss:$20 sps:$4 sm:$0xff]  }
 0x176   : > { %6394 = vmatmul.mubr.bf16.gmra.mrb[20].mxu0 %v26870_v47  ;;  %7938 = vmatmul.mubr.bf16.gmra.mrb[20].mxu1 %v26870_v47  ;;  %v26912_v47 = vcombine.high %v407_v16, %v415_v61  ;;  %v423_v6 = vld [vmem:[%s25920_s28 + $0x410] sm:$0xff] }
 0x177   : > { %6403 = vmatprep.mubr.bf16.mxu0 %v26878_v23  ;;  %7947 = vmatprep.mubr.bf16.mxu1 %v26878_v23  ;;  %32479 = vst [vmem:[#allocation31_spill] sm:$0xff] %v26904_v11  ;;  %v24509_v23 = vld [vmem:[%s32239_s3 + $0x968] ss:$20 sps:$4 sm:$0xff]   ;;  %v431_v46 = vld [vmem:[%s25920_s28 + $0x450] sm:$0xff] }
 0x178   : > { %6525 = vmatpush1.bf16.msra.mxu0 %v24494_v15  ;;  %8069 = vmatpush1.bf16.msra.mxu1 %v24497_v25  ;;  %32480 = vst [vmem:[#allocation32_spill] sm:$0xff] %v26912_v47  ;;  %v24514_v15 = vld [vmem:[%s32239_s3 + $0x98c] ss:$20 sps:$4 sm:$0xff]   ;;  %v24517_v25 = vld [vmem:[%s32239_s3 + $0x994] ss:$20 sps:$4 sm:$0xff]  }
 0x179   : > { %6526 = vmatprep.subr.bf16.mxu0 %v24502_v2  ;;  %8070 = vmatprep.subr.bf16.mxu1 %v24505_v33  ;;  %v24512_v2 = vld [vmem:[%s32239_s3 + $0x988] ss:$20 sps:$4 sm:$0xff]   ;;  %v24515_v33 = vld [vmem:[%s32239_s3 + $0x990] ss:$20 sps:$4 sm:$0xff]  }
 0x17c   : > { %6527 = vmatpush1.bf16.msra.mxu0 %v24500_v52  ;;  %8071 = vmatpush1.bf16.msra.mxu1 %v24503_v0  ;;  %v24520_v52 = vld [vmem:[%s32239_s3 + $0x9b4] ss:$20 sps:$4 sm:$0xff]   ;;  %v24523_v0 = vld [vmem:[%s32239_s3 + $0x9bc] ss:$20 sps:$4 sm:$0xff]  }
 0x17d   : > { %6528 = vmatprep.subr.bf16.mxu0 %v24508_v30  ;;  %8072 = vmatprep.subr.bf16.mxu1 %v24511_v3  ;;  %v26938_v30 = vcombine.low %v407_v16, %v415_v61  ;;  %v24518_v3 = vld [vmem:[%s32239_s3 + $0x9b0] ss:$20 sps:$4 sm:$0xff]  }
 0x17e   : > { %6404 = vmatmul.mubr.bf16.gmra.mrb[24].mxu0 %v26904_v11  ;;  %7948 = vmatmul.mubr.bf16.gmra.mrb[24].mxu1 %v26904_v11  ;;  %v26946_v11 = vcombine.high %v423_v6, %v431_v46  ;;  %v439_v16 = vld [vmem:[%s25920_s28 + $0x490] sm:$0xff] }
 0x17f   : > { %6413 = vmatprep.mubr.bf16.mxu0 %v26912_v47  ;;  %7957 = vmatprep.mubr.bf16.mxu1 %v26912_v47  ;;  %32481 = vst [vmem:[#allocation33_spill] sm:$0xff] %v26938_v30  ;;  %v24521_v47 = vld [vmem:[%s32239_s3 + $0x9b8] ss:$20 sps:$4 sm:$0xff]   ;;  %v447_v61 = vld [vmem:[%s25920_s28 + $0x4d0] sm:$0xff] }
 0x180   : > { %6529 = vmatpush1.bf16.msra.mxu0 %v24506_v12  ;;  %8073 = vmatpush1.bf16.msra.mxu1 %v24509_v23  ;;  %32482 = vst [vmem:[#allocation34_spill] sm:$0xff] %v26946_v11  ;;  %v24526_v12 = vld [vmem:[%s32239_s3 + $0x9dc] ss:$20 sps:$4 sm:$0xff]   ;;  %v24529_v23 = vld [vmem:[%s32239_s3 + $0x9e4] ss:$20 sps:$4 sm:$0xff]  }
 0x181   : > { %6530 = vmatprep.subr.bf16.mxu0 %v24514_v15  ;;  %8074 = vmatprep.subr.bf16.mxu1 %v24517_v25  ;;  %v24524_v15 = vld [vmem:[%s32239_s3 + $0x9d8] ss:$20 sps:$4 sm:$0xff]   ;;  %v24527_v25 = vld [vmem:[%s32239_s3 + $0x9e0] ss:$20 sps:$4 sm:$0xff]  }
 0x184   : > { %6531 = vmatpush1.bf16.msra.mxu0 %v24512_v2  ;;  %8075 = vmatpush1.bf16.msra.mxu1 %v24515_v33  ;;  %v24532_v2 = vld [vmem:[%s32239_s3 + $0xa04] ss:$20 sps:$4 sm:$0xff]   ;;  %v24535_v33 = vld [vmem:[%s32239_s3 + $0xa0c] ss:$20 sps:$4 sm:$0xff]  }
 0x185   : > { %6532 = vmatprep.subr.bf16.mxu0 %v24520_v52  ;;  %8076 = vmatprep.subr.bf16.mxu1 %v24523_v0  ;;  %v26972_v52 = vcombine.low %v423_v6, %v431_v46  ;;  %v26974_v0 = vcombine.high %v439_v16, %v447_v61  ;;  %v463_v6 = vld [vmem:[%s25920_s28 + $0x550] sm:$0xff]  ;;  %v26982_v46 = vcombine.low %v439_v16, %v447_v61 }
 0x186   : > { %6414 = vmatmul.mubr.bf16.gmra.mrb[28].mxu0 %v26938_v30  ;;  %7958 = vmatmul.mubr.bf16.gmra.mrb[28].mxu1 %v26938_v30  ;;  %v487_v16 = vld [vmem:[%s25920_s28 + $0x610] sm:$0xff] }
 0x187   : > { %6423 = vmatprep.mubr.bf16.mxu0 %v26946_v11  ;;  %7967 = vmatprep.mubr.bf16.mxu1 %v26946_v11  ;;  %32483 = vst [vmem:[#allocation35_spill] sm:$0xff] %v26972_v52  ;;  %32484 = vst [vmem:[#allocation36_spill] sm:$0xff] %v26974_v0  ;;  %v495_v61 = vld [vmem:[%s25920_s28 + $0x650] sm:$0xff] }
 0x188   : > { %6533 = vmatpush1.bf16.msra.mxu0 %v24518_v3  ;;  %8077 = vmatpush1.bf16.msra.mxu1 %v24521_v47  ;;  %v455_v47 = vld [vmem:[%s25920_s28 + $0x510] sm:$0xff]  ;;  %32485 = vst [vmem:[#allocation37_spill] sm:$0xff] %v26982_v46 }
 0x189   : > { %6534 = vmatprep.subr.bf16.mxu0 %v24526_v12  ;;  %8078 = vmatprep.subr.bf16.mxu1 %v24529_v23  ;;  %v26984_v3 = vcombine.high %v455_v47, %v463_v6  ;;  %v471_v12 = vld [vmem:[%s25920_s28 + $0x590] sm:$0xff] }
 0x18a   : > { %v479_v23 = vld [vmem:[%s25920_s28 + $0x5d0] sm:$0xff] }
 0x18b   : > { %32486 = vst [vmem:[#allocation38_spill] sm:$0xff] %v26984_v3  ;;  %v24547_v11 = vld [vmem:[%s32239_s3 + $0xa5c] ss:$20 sps:$4 sm:$0xff]  }
 0x18c   : > { %6535 = vmatpush1.bf16.msra.mxu0 %v24524_v15  ;;  %8079 = vmatpush1.bf16.msra.mxu1 %v24527_v25  ;;  %v26992_v15 = vcombine.low %v455_v47, %v463_v6  ;;  %v26994_v25 = vcombine.high %v471_v12, %v479_v23  ;;  %v503_v47 = vld [vmem:[%s25920_s28 + $0x690] sm:$0xff] }
 0x18d   : > { %6697 = vmatprep.subr.bf16.mxu0 %v24532_v2  ;;  %8241 = vmatprep.subr.bf16.mxu1 %v24535_v33  ;;  %v27002_v2 = vcombine.low %v471_v12, %v479_v23  ;;  %v27004_v33 = vcombine.high %v487_v16, %v495_v61  ;;  %v511_v6 = vld [vmem:[%s25920_s28 + $0x6d0] sm:$0xff] }
 0x18e   : > { %6424 = vmatmul.mubr.bf16.gmra.mrb[32].mxu0 %v26972_v52  ;;  %7968 = vmatmul.mubr.bf16.gmra.mrb[32].mxu1 %v26972_v52  ;;  %32487 = vst [vmem:[#allocation39_spill] sm:$0xff] %v26992_v15  ;;  %32488 = vst [vmem:[#allocation40_spill] sm:$0xff] %v26994_v25  ;;  %v519_v12 = vld [vmem:[%s25920_s28 + $0x710] sm:$0xff] }
 0x18f   : > { %6433 = vmatprep.mubr.bf16.mxu0 %v26974_v0  ;;  %7977 = vmatprep.mubr.bf16.mxu1 %v26974_v0  ;;  %32489 = vst [vmem:[#allocation41_spill] sm:$0xff] %v27002_v2  ;;  %32490 = vst [vmem:[#allocation42_spill] sm:$0xff] %v27004_v33  ;;  %v527_v23 = vld [vmem:[%s25920_s28 + $0x750] sm:$0xff]  ;;  %v336_v0 = vld [vmem:[%s25920_s28 + $0x158] sm:$0xff] }
 0x190   : > { %v24544_v52 = vld [vmem:[%s32239_s3 + $0xa54] ss:$20 sps:$4 sm:$0xff]  }
 0x196   : > { %6434 = vmatmul.mubr.bf16.gmra.mrb[36].mxu0 %v26982_v46  ;;  %7978 = vmatmul.mubr.bf16.gmra.mrb[36].mxu1 %v26982_v46  ;;  %v24536_v46 = vld [vmem:[%s32239_s3 + $0xa28] ss:$20 sps:$4 sm:$0xff]  }
 0x197   : > { %6443 = vmatprep.mubr.bf16.mxu0 %v26984_v3  ;;  %7987 = vmatprep.mubr.bf16.mxu1 %v26984_v3 }
 0x19e   : > { %6444 = vmatmul.mubr.bf16.gmra.mrb[40].mxu0 %v26992_v15  ;;  %7988 = vmatmul.mubr.bf16.gmra.mrb[40].mxu1 %v26992_v15  ;;  %v27014_v15 = vcombine.high %v503_v47, %v511_v6 }
 0x19f   : > { %6453 = vmatprep.mubr.bf16.mxu0 %v26994_v25  ;;  %7997 = vmatprep.mubr.bf16.mxu1 %v26994_v25  ;;  %v27012_v25 = vcombine.low %v487_v16, %v495_v61  ;;  %v535_v16 = vld [vmem:[%s25920_s28 + $0x790] sm:$0xff] }
 0x1a0   : > { %32492 = vst [vmem:[#allocation44_spill] sm:$0xff] %v27014_v15  ;;  %v543_v61 = vld [vmem:[%s25920_s28 + $0x7d0] sm:$0xff] }
 0x1a1   : > { %32491 = vst [vmem:[#allocation43_spill] sm:$0xff] %v27012_v25 }
 0x1a6   : > { %6454 = vmatmul.mubr.bf16.gmra.mrb[44].mxu0 %v27002_v2  ;;  %7998 = vmatmul.mubr.bf16.gmra.mrb[44].mxu1 %v27002_v2  ;;  %v27024_v2 = vcombine.high %v519_v12, %v527_v23 }
 0x1a7   : > { %6463 = vmatprep.mubr.bf16.mxu0 %v27004_v33  ;;  %8007 = vmatprep.mubr.bf16.mxu1 %v27004_v33  ;;  %v27022_v33 = vcombine.low %v503_v47, %v511_v6  ;;  %v296_v47 = vld [vmem:[%s25920_s28 + $0x18] sm:$0xff] }
 0x1a8   : > { %32494 = vst [vmem:[#allocation46_spill] sm:$0xff] %v27024_v2  ;;  %v304_v6 = vld [vmem:[%s25920_s28 + $0x58] sm:$0xff] }
 0x1a9   : > { %32493 = vst [vmem:[#allocation45_spill] sm:$0xff] %v27022_v33 }
 0x1ae   : > { %6464 = vmatmul.mubr.bf16.gmra.mrb[48].mxu0 %v27012_v25  ;;  %8008 = vmatmul.mubr.bf16.gmra.mrb[48].mxu1 %v27012_v25  ;;  %v27034_v25 = vcombine.high %v535_v16, %v543_v61 }
 0x1af   : > { %6473 = vmatprep.mubr.bf16.mxu0 %v27014_v15  ;;  %8017 = vmatprep.mubr.bf16.mxu1 %v27014_v15  ;;  %v27032_v15 = vcombine.low %v519_v12, %v527_v23  ;;  %v312_v12 = vld [vmem:[%s25920_s28 + $0x98] sm:$0xff] }
 0x1b0   : > { %32496 = vst [vmem:[#allocation48_spill] sm:$0xff] %v27034_v25  ;;  %v320_v23 = vld [vmem:[%s25920_s28 + $0xd8] sm:$0xff] }
 0x1b1   : > { %32495 = vst [vmem:[#allocation47_spill] sm:$0xff] %v27032_v15  ;;  %v27066_v3 = vcombine.high %v312_v12, %v320_v23  ;;  %v27086_v30 = vcombine.low %v312_v12, %v320_v23  ;;  %v352_v12 = vld [vmem:[%s25920_s28 + $0x1d8] sm:$0xff]  ;;  %v24551_v23 = vld [vmem:[%s32239_s3 + $0xa80] ss:$20 sps:$4 sm:$0xff]  }
 0x1b3   : > { %32500 = vst [vmem:[#allocation52_spill] sm:$0xff] %v27066_v3  ;;  %32501 = vst [vmem:[#allocation53_spill] sm:$0xff] %v27086_v30 }
 0x1b6   : > { %6474 = vmatmul.mubr.bf16.gmra.mrb[52].mxu0 %v27022_v33  ;;  %8018 = vmatmul.mubr.bf16.gmra.mrb[52].mxu1 %v27022_v33  ;;  %v27042_v33 = vcombine.low %v535_v16, %v543_v61  ;;  %v24533_v16 = vld [vmem:[%s32239_s3 + $0xa08] ss:$20 sps:$4 sm:$0xff]   ;;  %v27058_v61 = vcombine.low %v296_v47, %v304_v6 }
 0x1b7   : > { %6483 = vmatprep.mubr.bf16.mxu0 %v27024_v2  ;;  %8027 = vmatprep.mubr.bf16.mxu1 %v27024_v2  ;;  %v27044_v2 = vcombine.high %v296_v47, %v304_v6  ;;  %v24539_v47 = vld [vmem:[%s32239_s3 + $0xa30] ss:$20 sps:$4 sm:$0xff]   ;;  %v328_v6 = vld [vmem:[%s25920_s28 + $0x118] sm:$0xff] }
 0x1b8   : > { %32497 = vst [vmem:[#allocation49_spill] sm:$0xff] %v27042_v33  ;;  %32499 = vst [vmem:[#allocation51_spill] sm:$0xff] %v27058_v61 }
 0x1b9   : > { %32498 = vst [vmem:[#allocation50_spill] sm:$0xff] %v27044_v2 }
 0x1be   : > { %6484 = vmatmul.mubr.bf16.gmra.mrb[56].mxu0 %v27032_v15  ;;  %8028 = vmatmul.mubr.bf16.gmra.mrb[56].mxu1 %v27032_v15  ;;  %v24541_v15 = vld [vmem:[%s32239_s3 + $0xa34] ss:$20 sps:$4 sm:$0xff]  }
 0x1bf   : > { %6493 = vmatprep.mubr.bf16.mxu0 %v27034_v25  ;;  %8037 = vmatprep.mubr.bf16.mxu1 %v27034_v25  ;;  %v24530_v25 = vld [vmem:[%s32239_s3 + $0xa00] ss:$20 sps:$4 sm:$0xff]  }
 0x1c6   : > { %6494 = vmatmul.mubr.bf16.gmra.mrb[60].mxu0 %v27042_v33  ;;  %8038 = vmatmul.mubr.bf16.gmra.mrb[60].mxu1 %v27042_v33  ;;  %v24538_v33 = vld [vmem:[%s32239_s3 + $0xa2c] ss:$20 sps:$4 sm:$0xff]  }
 0x1c7   : > { %6536 = vmatprep.mubr.bf16.mxu0 %v27044_v2  ;;  %8080 = vmatprep.mubr.bf16.mxu1 %v27044_v2 }
 0x1ce   : > { %6537 = vmatmul.mubr.bf16.vlgmr.msra.gmra.mrb[0].mxu0 %v27058_v61  ;;  %8081 = vmatmul.mubr.bf16.vlgmr.msra.gmra.mrb[0].mxu1 %v27058_v61  ;;  %v27094_v61 = vcombine.high %v328_v6, %v336_v0 }
 0x1cf   : > { %6698 = vmatpush1.bf16.msra.mxu0 %v24530_v25  ;;  %8242 = vmatpush1.bf16.msra.mxu1 %v24533_v16  ;;  %v24542_v25 = vld [vmem:[%s32239_s3 + $0xa50] ss:$20 sps:$4 sm:$0xff]   ;;  %v24545_v16 = vld [vmem:[%s32239_s3 + $0xa58] ss:$20 sps:$4 sm:$0xff]  }
 0x1d0   : > { %6546 = vmatprep.mubr.bf16.mxu0 %v27066_v3  ;;  %8090 = vmatprep.mubr.bf16.mxu1 %v27066_v3  ;;  %32502 = vst [vmem:[#allocation54_spill] sm:$0xff] %v27094_v61  ;;  %v24550_v3 = vld [vmem:[%s32239_s3 + $0xa7c] ss:$20 sps:$4 sm:$0xff]  }
 0x1d1   : > { %6699 = vmatprep.subr.bf16.mxu0 %v24538_v33  ;;  %8243 = vmatprep.subr.bf16.mxu1 %v24541_v15  ;;  %v24553_v15 = vld [vmem:[%s32239_s3 + $0xa84] ss:$20 sps:$4 sm:$0xff]  }
 0x1d2   : > { %v344_v33 = vld [vmem:[%s25920_s28 + $0x198] sm:$0xff] }
 0x1d3   : > { %6700 = vmatpush1.bf16.msra.mxu0 %v24536_v46  ;;  %8244 = vmatpush1.bf16.msra.mxu1 %v24539_v47  ;;  %v24548_v46 = vld [vmem:[%s32239_s3 + $0xa78] ss:$20 sps:$4 sm:$0xff]   ;;  %v27120_v47 = vcombine.low %v328_v6, %v336_v0  ;;  %v27128_v2 = vcombine.high %v344_v33, %v352_v12 }
 0x1d4   : > { %6701 = vmatprep.subr.bf16.mxu0 %v24544_v52  ;;  %8245 = vmatprep.subr.bf16.mxu1 %v24547_v11  ;;  %v24556_v11 = vld [vmem:[%s32239_s3 + $0xaa4] ss:$20 sps:$4 sm:$0xff]   ;;  %v24559_v52 = vld [vmem:[%s32239_s3 + $0xaac] ss:$20 sps:$4 sm:$0xff]  }
 0x1d5   : > { %32503 = vst [vmem:[#allocation55_spill] sm:$0xff] %v27120_v47  ;;  %32504 = vst [vmem:[#allocation56_spill] sm:$0xff] %v27128_v2  ;;  %v360_v0 = vld [vmem:[%s25920_s28 + $0x218] sm:$0xff] }
 0x1d6   : > { %6547 = vmatmul.mubr.bf16.gmra.mrb[4].mxu0 %v27086_v30  ;;  %8091 = vmatmul.mubr.bf16.gmra.mrb[4].mxu1 %v27086_v30  ;;  %v24557_v30 = vld [vmem:[%s32239_s3 + $0xaa8] ss:$20 sps:$4 sm:$0xff]  }
 0x1d7   : > { %6556 = vmatprep.mubr.bf16.mxu0 %v27094_v61  ;;  %8100 = vmatprep.mubr.bf16.mxu1 %v27094_v61  ;;  %v24554_v61 = vld [vmem:[%s32239_s3 + $0xaa0] ss:$20 sps:$4 sm:$0xff]   ;;  %v368_v6 = vld [vmem:[%s25920_s28 + $0x258] sm:$0xff] }
 0x1d8   : > { %6702 = vmatpush1.bf16.msra.mxu0 %v24542_v25  ;;  %8246 = vmatpush1.bf16.msra.mxu1 %v24545_v16  ;;  %v24562_v25 = vld [vmem:[%s32239_s3 + $0xacc] ss:$20 sps:$4 sm:$0xff]   ;;  %v24560_v16 = vld [vmem:[%s32239_s3 + $0xac8] ss:$20 sps:$4 sm:$0xff]  }
 0x1d9   : > { %6703 = vmatprep.subr.bf16.mxu0 %v24550_v3  ;;  %8247 = vmatprep.subr.bf16.mxu1 %v24553_v15  ;;  %v24565_v3 = vld [vmem:[%s32239_s3 + $0xad4] ss:$20 sps:$4 sm:$0xff]   ;;  %v24563_v15 = vld [vmem:[%s32239_s3 + $0xad0] ss:$20 sps:$4 sm:$0xff]  }
 0x1dc   : > { %6704 = vmatpush1.bf16.msra.mxu0 %v24548_v46  ;;  %8248 = vmatpush1.bf16.msra.mxu1 %v24551_v23  ;;  %v24568_v46 = vld [vmem:[%s32239_s3 + $0xaf4] ss:$20 sps:$4 sm:$0xff]   ;;  %v24571_v23 = vld [vmem:[%s32239_s3 + $0xafc] ss:$20 sps:$4 sm:$0xff]  }
 0x1dd   : > { %6705 = vmatprep.subr.bf16.mxu0 %v24556_v11  ;;  %8249 = vmatprep.subr.bf16.mxu1 %v24559_v52  ;;  %v27154_v11 = vcombine.low %v344_v33, %v352_v12  ;;  %v24566_v52 = vld [vmem:[%s32239_s3 + $0xaf0] ss:$20 sps:$4 sm:$0xff]   ;;  %v376_v33 = vld [vmem:[%s25920_s28 + $0x298] sm:$0xff] }
 0x1de   : > { %6557 = vmatmul.mubr.bf16.gmra.mrb[8].mxu0 %v27120_v47  ;;  %8101 = vmatmul.mubr.bf16.gmra.mrb[8].mxu1 %v27120_v47  ;;  %v27162_v47 = vcombine.high %v360_v0, %v368_v6  ;;  %v384_v12 = vld [vmem:[%s25920_s28 + $0x2d8] sm:$0xff] }
 0x1df   : > { %6566 = vmatprep.mubr.bf16.mxu0 %v27128_v2  ;;  %8110 = vmatprep.mubr.bf16.mxu1 %v27128_v2  ;;  %32505 = vst [vmem:[#allocation57_spill] sm:$0xff] %v27154_v11  ;;  %v24569_v2 = vld [vmem:[%s32239_s3 + $0xaf8] ss:$20 sps:$4 sm:$0xff]  }
 0x1e0   : > { %6706 = vmatpush1.bf16.msra.mxu0 %v24554_v61  ;;  %8250 = vmatpush1.bf16.msra.mxu1 %v24557_v30  ;;  %32506 = vst [vmem:[#allocation58_spill] sm:$0xff] %v27162_v47  ;;  %v24574_v61 = vld [vmem:[%s32239_s3 + $0xb1c] ss:$20 sps:$4 sm:$0xff]   ;;  %v24577_v30 = vld [vmem:[%s32239_s3 + $0xb24] ss:$20 sps:$4 sm:$0xff]  }
 0x1e1   : > { %6707 = vmatprep.subr.bf16.mxu0 %v24562_v25  ;;  %8251 = vmatprep.subr.bf16.mxu1 %v24565_v3  ;;  %v24572_v25 = vld [vmem:[%s32239_s3 + $0xb18] ss:$20 sps:$4 sm:$0xff]   ;;  %v24575_v3 = vld [vmem:[%s32239_s3 + $0xb20] ss:$20 sps:$4 sm:$0xff]  }
 0x1e4   : > { %6708 = vmatpush1.bf16.msra.mxu0 %v24560_v16  ;;  %8252 = vmatpush1.bf16.msra.mxu1 %v24563_v15  ;;  %v24580_v16 = vld [vmem:[%s32239_s3 + $0xb44] ss:$20 sps:$4 sm:$0xff]   ;;  %v24583_v15 = vld [vmem:[%s32239_s3 + $0xb4c] ss:$20 sps:$4 sm:$0xff]  }
 0x1e5   : > { %6709 = vmatprep.subr.bf16.mxu0 %v24568_v46  ;;  %8253 = vmatprep.subr.bf16.mxu1 %v24571_v23  ;;  %v27188_v46 = vcombine.low %v360_v0, %v368_v6  ;;  %v24578_v23 = vld [vmem:[%s32239_s3 + $0xb40] ss:$20 sps:$4 sm:$0xff]   ;;  %v392_v0 = vld [vmem:[%s25920_s28 + $0x318] sm:$0xff] }
 0x1e6   : > { %6567 = vmatmul.mubr.bf16.gmra.mrb[12].mxu0 %v27154_v11  ;;  %8111 = vmatmul.mubr.bf16.gmra.mrb[12].mxu1 %v27154_v11  ;;  %v27196_v11 = vcombine.high %v376_v33, %v384_v12  ;;  %v400_v6 = vld [vmem:[%s25920_s28 + $0x358] sm:$0xff] }
 0x1e7   : > { %6576 = vmatprep.mubr.bf16.mxu0 %v27162_v47  ;;  %8120 = vmatprep.mubr.bf16.mxu1 %v27162_v47  ;;  %32507 = vst [vmem:[#allocation59_spill] sm:$0xff] %v27188_v46  ;;  %v24581_v47 = vld [vmem:[%s32239_s3 + $0xb48] ss:$20 sps:$4 sm:$0xff]  }
 0x1e8   : > { %6710 = vmatpush1.bf16.msra.mxu0 %v24566_v52  ;;  %8254 = vmatpush1.bf16.msra.mxu1 %v24569_v2  ;;  %32508 = vst [vmem:[#allocation60_spill] sm:$0xff] %v27196_v11  ;;  %v24586_v52 = vld [vmem:[%s32239_s3 + $0xb6c] ss:$20 sps:$4 sm:$0xff]   ;;  %v24589_v2 = vld [vmem:[%s32239_s3 + $0xb74] ss:$20 sps:$4 sm:$0xff]  }
 0x1e9   : > { %6711 = vmatprep.subr.bf16.mxu0 %v24574_v61  ;;  %8255 = vmatprep.subr.bf16.mxu1 %v24577_v30  ;;  %v24584_v61 = vld [vmem:[%s32239_s3 + $0xb68] ss:$20 sps:$4 sm:$0xff]   ;;  %v24587_v30 = vld [vmem:[%s32239_s3 + $0xb70] ss:$20 sps:$4 sm:$0xff]  }
 0x1ec   : > { %6712 = vmatpush1.bf16.msra.mxu0 %v24572_v25  ;;  %8256 = vmatpush1.bf16.msra.mxu1 %v24575_v3  ;;  %v24592_v25 = vld [vmem:[%s32239_s3 + $0xb94] ss:$20 sps:$4 sm:$0xff]   ;;  %v24595_v3 = vld [vmem:[%s32239_s3 + $0xb9c] ss:$20 sps:$4 sm:$0xff]  }
 0x1ed   : > { %6713 = vmatprep.subr.bf16.mxu0 %v24580_v16  ;;  %8257 = vmatprep.subr.bf16.mxu1 %v24583_v15  ;;  %v27222_v16 = vcombine.low %v376_v33, %v384_v12  ;;  %v24590_v15 = vld [vmem:[%s32239_s3 + $0xb90] ss:$20 sps:$4 sm:$0xff]   ;;  %v408_v33 = vld [vmem:[%s25920_s28 + $0x398] sm:$0xff] }
 0x1ee   : > { %6577 = vmatmul.mubr.bf16.gmra.mrb[16].mxu0 %v27188_v46  ;;  %8121 = vmatmul.mubr.bf16.gmra.mrb[16].mxu1 %v27188_v46  ;;  %v27230_v46 = vcombine.high %v392_v0, %v400_v6  ;;  %v416_v12 = vld [vmem:[%s25920_s28 + $0x3d8] sm:$0xff] }
 0x1ef   : > { %6586 = vmatprep.mubr.bf16.mxu0 %v27196_v11  ;;  %8130 = vmatprep.mubr.bf16.mxu1 %v27196_v11  ;;  %32509 = vst [vmem:[#allocation61_spill] sm:$0xff] %v27222_v16  ;;  %v24593_v11 = vld [vmem:[%s32239_s3 + $0xb98] ss:$20 sps:$4 sm:$0xff]  }
 0x1f0   : > { %6714 = vmatpush1.bf16.msra.mxu0 %v24578_v23  ;;  %8258 = vmatpush1.bf16.msra.mxu1 %v24581_v47  ;;  %32510 = vst [vmem:[#allocation62_spill] sm:$0xff] %v27230_v46  ;;  %v24598_v23 = vld [vmem:[%s32239_s3 + $0xbbc] ss:$20 sps:$4 sm:$0xff]   ;;  %v24601_v47 = vld [vmem:[%s32239_s3 + $0xbc4] ss:$20 sps:$4 sm:$0xff]  }
 0x1f1   : > { %6715 = vmatprep.subr.bf16.mxu0 %v24586_v52  ;;  %8259 = vmatprep.subr.bf16.mxu1 %v24589_v2  ;;  %v24596_v52 = vld [vmem:[%s32239_s3 + $0xbb8] ss:$20 sps:$4 sm:$0xff]   ;;  %v24599_v2 = vld [vmem:[%s32239_s3 + $0xbc0] ss:$20 sps:$4 sm:$0xff]  }
 0x1f4   : > { %6716 = vmatpush1.bf16.msra.mxu0 %v24584_v61  ;;  %8260 = vmatpush1.bf16.msra.mxu1 %v24587_v30  ;;  %v24604_v61 = vld [vmem:[%s32239_s3 + $0xbe4] ss:$20 sps:$4 sm:$0xff]   ;;  %v24607_v30 = vld [vmem:[%s32239_s3 + $0xbec] ss:$20 sps:$4 sm:$0xff]  }
 0x1f5   : > { %6717 = vmatprep.subr.bf16.mxu0 %v24592_v25  ;;  %8261 = vmatprep.subr.bf16.mxu1 %v24595_v3  ;;  %v27256_v25 = vcombine.low %v392_v0, %v400_v6  ;;  %v24602_v3 = vld [vmem:[%s32239_s3 + $0xbe0] ss:$20 sps:$4 sm:$0xff]   ;;  %v424_v0 = vld [vmem:[%s25920_s28 + $0x418] sm:$0xff] }
 0x1f6   : > { %6587 = vmatmul.mubr.bf16.gmra.mrb[20].mxu0 %v27222_v16  ;;  %8131 = vmatmul.mubr.bf16.gmra.mrb[20].mxu1 %v27222_v16  ;;  %v27264_v16 = vcombine.high %v408_v33, %v416_v12  ;;  %v432_v6 = vld [vmem:[%s25920_s28 + $0x458] sm:$0xff] }
 0x1f7   : > { %6596 = vmatprep.mubr.bf16.mxu0 %v27230_v46  ;;  %8140 = vmatprep.mubr.bf16.mxu1 %v27230_v46  ;;  %32511 = vst [vmem:[#allocation63_spill] sm:$0xff] %v27256_v25  ;;  %v24605_v46 = vld [vmem:[%s32239_s3 + $0xbe8] ss:$20 sps:$4 sm:$0xff]  }
 0x1f8   : > { %6718 = vmatpush1.bf16.msra.mxu0 %v24590_v15  ;;  %8262 = vmatpush1.bf16.msra.mxu1 %v24593_v11  ;;  %32512 = vst [vmem:[#allocation64_spill] sm:$0xff] %v27264_v16  ;;  %v24610_v15 = vld [vmem:[%s32239_s3 + $0xc0c] ss:$20 sps:$4 sm:$0xff]   ;;  %v24613_v11 = vld [vmem:[%s32239_s3 + $0xc14] ss:$20 sps:$4 sm:$0xff]  }
 0x1f9   : > { %6719 = vmatprep.subr.bf16.mxu0 %v24598_v23  ;;  %8263 = vmatprep.subr.bf16.mxu1 %v24601_v47  ;;  %v24608_v23 = vld [vmem:[%s32239_s3 + $0xc08] ss:$20 sps:$4 sm:$0xff]   ;;  %v24611_v47 = vld [vmem:[%s32239_s3 + $0xc10] ss:$20 sps:$4 sm:$0xff]  }
 0x1fc   : > { %6720 = vmatpush1.bf16.msra.mxu0 %v24596_v52  ;;  %8264 = vmatpush1.bf16.msra.mxu1 %v24599_v2  ;;  %v24616_v52 = vld [vmem:[%s32239_s3 + $0xc34] ss:$20 sps:$4 sm:$0xff]   ;;  %v24619_v2 = vld [vmem:[%s32239_s3 + $0xc3c] ss:$20 sps:$4 sm:$0xff]  }
 0x1fd   : > { %6721 = vmatprep.subr.bf16.mxu0 %v24604_v61  ;;  %8265 = vmatprep.subr.bf16.mxu1 %v24607_v30  ;;  %v27290_v61 = vcombine.low %v408_v33, %v416_v12  ;;  %v24614_v30 = vld [vmem:[%s32239_s3 + $0xc30] ss:$20 sps:$4 sm:$0xff]   ;;  %v440_v33 = vld [vmem:[%s25920_s28 + $0x498] sm:$0xff] }
 0x1fe   : > { %6597 = vmatmul.mubr.bf16.gmra.mrb[24].mxu0 %v27256_v25  ;;  %8141 = vmatmul.mubr.bf16.gmra.mrb[24].mxu1 %v27256_v25  ;;  %v27298_v25 = vcombine.high %v424_v0, %v432_v6  ;;  %v448_v12 = vld [vmem:[%s25920_s28 + $0x4d8] sm:$0xff] }
 0x1ff   : > { %6606 = vmatprep.mubr.bf16.mxu0 %v27264_v16  ;;  %8150 = vmatprep.mubr.bf16.mxu1 %v27264_v16  ;;  %32513 = vst [vmem:[#allocation65_spill] sm:$0xff] %v27290_v61  ;;  %v24617_v16 = vld [vmem:[%s32239_s3 + $0xc38] ss:$20 sps:$4 sm:$0xff]  }
 0x200   : > { %6722 = vmatpush1.bf16.msra.mxu0 %v24602_v3  ;;  %8266 = vmatpush1.bf16.msra.mxu1 %v24605_v46  ;;  %32514 = vst [vmem:[#allocation66_spill] sm:$0xff] %v27298_v25  ;;  %v24622_v3 = vld [vmem:[%s32239_s3 + $0xc5c] ss:$20 sps:$4 sm:$0xff]   ;;  %v24625_v46 = vld [vmem:[%s32239_s3 + $0xc64] ss:$20 sps:$4 sm:$0xff]  }
 0x201   : > { %6723 = vmatprep.subr.bf16.mxu0 %v24610_v15  ;;  %8267 = vmatprep.subr.bf16.mxu1 %v24613_v11  ;;  %v24620_v15 = vld [vmem:[%s32239_s3 + $0xc58] ss:$20 sps:$4 sm:$0xff]   ;;  %v24623_v11 = vld [vmem:[%s32239_s3 + $0xc60] ss:$20 sps:$4 sm:$0xff]  }
 0x204   : > { %6724 = vmatpush1.bf16.msra.mxu0 %v24608_v23  ;;  %8268 = vmatpush1.bf16.msra.mxu1 %v24611_v47  ;;  %v24628_v23 = vld [vmem:[%s32239_s3 + $0xc84] ss:$20 sps:$4 sm:$0xff]   ;;  %v24631_v47 = vld [vmem:[%s32239_s3 + $0xc8c] ss:$20 sps:$4 sm:$0xff]  }
 0x205   : > { %6725 = vmatprep.subr.bf16.mxu0 %v24616_v52  ;;  %8269 = vmatprep.subr.bf16.mxu1 %v24619_v2  ;;  %v27324_v52 = vcombine.low %v424_v0, %v432_v6  ;;  %v27326_v2 = vcombine.high %v440_v33, %v448_v12  ;;  %v464_v0 = vld [vmem:[%s25920_s28 + $0x558] sm:$0xff]  ;;  %v27334_v6 = vcombine.low %v440_v33, %v448_v12 }
 0x206   : > { %6607 = vmatmul.mubr.bf16.gmra.mrb[28].mxu0 %v27290_v61  ;;  %8151 = vmatmul.mubr.bf16.gmra.mrb[28].mxu1 %v27290_v61  ;;  %v488_v33 = vld [vmem:[%s25920_s28 + $0x618] sm:$0xff] }
 0x207   : > { %6616 = vmatprep.mubr.bf16.mxu0 %v27298_v25  ;;  %8160 = vmatprep.mubr.bf16.mxu1 %v27298_v25  ;;  %32515 = vst [vmem:[#allocation67_spill] sm:$0xff] %v27324_v52  ;;  %32516 = vst [vmem:[#allocation68_spill] sm:$0xff] %v27326_v2  ;;  %v496_v12 = vld [vmem:[%s25920_s28 + $0x658] sm:$0xff] }
 0x208   : > { %6726 = vmatpush1.bf16.msra.mxu0 %v24614_v30  ;;  %8270 = vmatpush1.bf16.msra.mxu1 %v24617_v16  ;;  %v456_v16 = vld [vmem:[%s25920_s28 + $0x518] sm:$0xff]  ;;  %32517 = vst [vmem:[#allocation69_spill] sm:$0xff] %v27334_v6 }
 0x209   : > { %6727 = vmatprep.subr.bf16.mxu0 %v24622_v3  ;;  %8271 = vmatprep.subr.bf16.mxu1 %v24625_v46  ;;  %v27336_v30 = vcombine.high %v456_v16, %v464_v0  ;;  %v472_v3 = vld [vmem:[%s25920_s28 + $0x598] sm:$0xff] }
 0x20a   : > { %v480_v46 = vld [vmem:[%s25920_s28 + $0x5d8] sm:$0xff] }
 0x20b   : > { %32518 = vst [vmem:[#allocation70_spill] sm:$0xff] %v27336_v30 }
 0x20c   : > { %6728 = vmatpush1.bf16.msra.mxu0 %v24620_v15  ;;  %8272 = vmatpush1.bf16.msra.mxu1 %v24623_v11  ;;  %v27344_v15 = vcombine.low %v456_v16, %v464_v0  ;;  %v27346_v11 = vcombine.high %v472_v3, %v480_v46  ;;  %v504_v16 = vld [vmem:[%s25920_s28 + $0x698] sm:$0xff] }
 0x20d   : > { %6890 = vmatprep.subr.bf16.mxu0 %v24628_v23  ;;  %8434 = vmatprep.subr.bf16.mxu1 %v24631_v47  ;;  %v27354_v23 = vcombine.low %v472_v3, %v480_v46  ;;  %v27356_v47 = vcombine.high %v488_v33, %v496_v12  ;;  %v512_v0 = vld [vmem:[%s25920_s28 + $0x6d8] sm:$0xff] }
 0x20e   : > { %6617 = vmatmul.mubr.bf16.gmra.mrb[32].mxu0 %v27324_v52  ;;  %8161 = vmatmul.mubr.bf16.gmra.mrb[32].mxu1 %v27324_v52  ;;  %32519 = vst [vmem:[#allocation71_spill] sm:$0xff] %v27344_v15  ;;  %32520 = vst [vmem:[#allocation72_spill] sm:$0xff] %v27346_v11  ;;  %v520_v3 = vld [vmem:[%s25920_s28 + $0x718] sm:$0xff] }
 0x20f   : > { %6626 = vmatprep.mubr.bf16.mxu0 %v27326_v2  ;;  %8170 = vmatprep.mubr.bf16.mxu1 %v27326_v2  ;;  %32521 = vst [vmem:[#allocation73_spill] sm:$0xff] %v27354_v23  ;;  %32522 = vst [vmem:[#allocation74_spill] sm:$0xff] %v27356_v47  ;;  %v528_v46 = vld [vmem:[%s25920_s28 + $0x758] sm:$0xff]  ;;  %v24640_v2 = vld [vmem:[%s32239_s3 + $0xcd4] ss:$20 sps:$4 sm:$0xff]  }
 0x216   : > { %6627 = vmatmul.mubr.bf16.gmra.mrb[36].mxu0 %v27334_v6  ;;  %8171 = vmatmul.mubr.bf16.gmra.mrb[36].mxu1 %v27334_v6  ;;  %v337_v6 = vld [vmem:[%s25920_s28 + $0x160] sm:$0xff] }
 0x217   : > { %6636 = vmatprep.mubr.bf16.mxu0 %v27336_v30  ;;  %8180 = vmatprep.mubr.bf16.mxu1 %v27336_v30  ;;  %v24632_v30 = vld [vmem:[%s32239_s3 + $0xca8] ss:$20 sps:$4 sm:$0xff]  }
 0x21e   : > { %6637 = vmatmul.mubr.bf16.gmra.mrb[40].mxu0 %v27344_v15  ;;  %8181 = vmatmul.mubr.bf16.gmra.mrb[40].mxu1 %v27344_v15  ;;  %v27366_v15 = vcombine.high %v504_v16, %v512_v0 }
 0x21f   : > { %6646 = vmatprep.mubr.bf16.mxu0 %v27346_v11  ;;  %8190 = vmatprep.mubr.bf16.mxu1 %v27346_v11  ;;  %v27364_v11 = vcombine.low %v488_v33, %v496_v12  ;;  %v536_v33 = vld [vmem:[%s25920_s28 + $0x798] sm:$0xff] }
 0x220   : > { %32524 = vst [vmem:[#allocation76_spill] sm:$0xff] %v27366_v15  ;;  %v544_v12 = vld [vmem:[%s25920_s28 + $0x7d8] sm:$0xff] }
 0x221   : > { %32523 = vst [vmem:[#allocation75_spill] sm:$0xff] %v27364_v11 }
 0x226   : > { %6647 = vmatmul.mubr.bf16.gmra.mrb[44].mxu0 %v27354_v23  ;;  %8191 = vmatmul.mubr.bf16.gmra.mrb[44].mxu1 %v27354_v23  ;;  %v27376_v23 = vcombine.high %v520_v3, %v528_v46 }
 0x227   : > { %6656 = vmatprep.mubr.bf16.mxu0 %v27356_v47  ;;  %8200 = vmatprep.mubr.bf16.mxu1 %v27356_v47  ;;  %v27374_v47 = vcombine.low %v504_v16, %v512_v0  ;;  %v297_v16 = vld [vmem:[%s25920_s28 + $0x20] sm:$0xff] }
 0x228   : > { %32526 = vst [vmem:[#allocation78_spill] sm:$0xff] %v27376_v23  ;;  %v305_v0 = vld [vmem:[%s25920_s28 + $0x60] sm:$0xff] }
 0x229   : > { %32525 = vst [vmem:[#allocation77_spill] sm:$0xff] %v27374_v47 }
 0x22e   : > { %6657 = vmatmul.mubr.bf16.gmra.mrb[48].mxu0 %v27364_v11  ;;  %8201 = vmatmul.mubr.bf16.gmra.mrb[48].mxu1 %v27364_v11  ;;  %v27386_v11 = vcombine.high %v536_v33, %v544_v12 }
 0x22f   : > { %6666 = vmatprep.mubr.bf16.mxu0 %v27366_v15  ;;  %8210 = vmatprep.mubr.bf16.mxu1 %v27366_v15  ;;  %v27384_v15 = vcombine.low %v520_v3, %v528_v46  ;;  %v313_v3 = vld [vmem:[%s25920_s28 + $0xa0] sm:$0xff] }
 0x230   : > { %32528 = vst [vmem:[#allocation80_spill] sm:$0xff] %v27386_v11  ;;  %v321_v46 = vld [vmem:[%s25920_s28 + $0xe0] sm:$0xff] }
 0x231   : > { %32527 = vst [vmem:[#allocation79_spill] sm:$0xff] %v27384_v15  ;;  %v27438_v52 = vcombine.low %v313_v3, %v321_v46 }
 0x233   : > { %32533 = vst [vmem:[#allocation85_spill] sm:$0xff] %v27438_v52 }
 0x236   : > { %6667 = vmatmul.mubr.bf16.gmra.mrb[52].mxu0 %v27374_v47  ;;  %8211 = vmatmul.mubr.bf16.gmra.mrb[52].mxu1 %v27374_v47  ;;  %v27394_v47 = vcombine.low %v536_v33, %v544_v12  ;;  %v24629_v33 = vld [vmem:[%s32239_s3 + $0xc88] ss:$20 sps:$4 sm:$0xff]   ;;  %v27410_v12 = vcombine.low %v297_v16, %v305_v0 }
 0x237   : > { %6676 = vmatprep.mubr.bf16.mxu0 %v27376_v23  ;;  %8220 = vmatprep.mubr.bf16.mxu1 %v27376_v23  ;;  %v27396_v23 = vcombine.high %v297_v16, %v305_v0  ;;  %v24635_v16 = vld [vmem:[%s32239_s3 + $0xcb0] ss:$20 sps:$4 sm:$0xff]  }
 0x238   : > { %32529 = vst [vmem:[#allocation81_spill] sm:$0xff] %v27394_v47  ;;  %32531 = vst [vmem:[#allocation83_spill] sm:$0xff] %v27410_v12  ;;  %v329_v0 = vld [vmem:[%s25920_s28 + $0x120] sm:$0xff] }
 0x239   : > { %32530 = vst [vmem:[#allocation82_spill] sm:$0xff] %v27396_v23  ;;  %v27446_v25 = vcombine.high %v329_v0, %v337_v6 }
 0x23b   : > { %32534 = vst [vmem:[#allocation86_spill] sm:$0xff] %v27446_v25 }
 0x23e   : > { %6677 = vmatmul.mubr.bf16.gmra.mrb[56].mxu0 %v27384_v15  ;;  %8221 = vmatmul.mubr.bf16.gmra.mrb[56].mxu1 %v27384_v15  ;;  %v27418_v15 = vcombine.high %v313_v3, %v321_v46  ;;  %v353_v3 = vld [vmem:[%s25920_s28 + $0x1e0] sm:$0xff] }
 0x23f   : > { %6686 = vmatprep.mubr.bf16.mxu0 %v27386_v11  ;;  %8230 = vmatprep.mubr.bf16.mxu1 %v27386_v11  ;;  %v24626_v11 = vld [vmem:[%s32239_s3 + $0xc80] ss:$20 sps:$4 sm:$0xff]  }
 0x240   : > { %32532 = vst [vmem:[#allocation84_spill] sm:$0xff] %v27418_v15  ;;  %v24647_v46 = vld [vmem:[%s32239_s3 + $0xd00] ss:$20 sps:$4 sm:$0xff]  }
 0x246   : > { %6687 = vmatmul.mubr.bf16.gmra.mrb[60].mxu0 %v27394_v47  ;;  %8231 = vmatmul.mubr.bf16.gmra.mrb[60].mxu1 %v27394_v47  ;;  %v24634_v47 = vld [vmem:[%s32239_s3 + $0xcac] ss:$20 sps:$4 sm:$0xff]  }
 0x247   : > { %6729 = vmatprep.mubr.bf16.mxu0 %v27396_v23  ;;  %8273 = vmatprep.mubr.bf16.mxu1 %v27396_v23  ;;  %v24637_v23 = vld [vmem:[%s32239_s3 + $0xcb4] ss:$20 sps:$4 sm:$0xff]  }
 0x24e   : > { %6730 = vmatmul.mubr.bf16.vlgmr.msra.gmra.mrb[0].mxu0 %v27410_v12  ;;  %8274 = vmatmul.mubr.bf16.vlgmr.msra.gmra.mrb[0].mxu1 %v27410_v12  ;;  %v24643_v12 = vld [vmem:[%s32239_s3 + $0xcdc] ss:$20 sps:$4 sm:$0xff]  }
 0x24f   : > { %6891 = vmatpush1.bf16.msra.mxu0 %v24626_v11  ;;  %8435 = vmatpush1.bf16.msra.mxu1 %v24629_v33  ;;  %v24638_v11 = vld [vmem:[%s32239_s3 + $0xcd0] ss:$20 sps:$4 sm:$0xff]   ;;  %v24641_v33 = vld [vmem:[%s32239_s3 + $0xcd8] ss:$20 sps:$4 sm:$0xff]  }
 0x250   : > { %6739 = vmatprep.mubr.bf16.mxu0 %v27418_v15  ;;  %8283 = vmatprep.mubr.bf16.mxu1 %v27418_v15  ;;  %v24646_v15 = vld [vmem:[%s32239_s3 + $0xcfc] ss:$20 sps:$4 sm:$0xff]  }
 0x251   : > { %6892 = vmatprep.subr.bf16.mxu0 %v24634_v47  ;;  %8436 = vmatprep.subr.bf16.mxu1 %v24637_v23  ;;  %v24649_v23 = vld [vmem:[%s32239_s3 + $0xd04] ss:$20 sps:$4 sm:$0xff]  }
 0x252   : > { %v345_v47 = vld [vmem:[%s25920_s28 + $0x1a0] sm:$0xff] }
 0x253   : > { %6893 = vmatpush1.bf16.msra.mxu0 %v24632_v30  ;;  %8437 = vmatpush1.bf16.msra.mxu1 %v24635_v16  ;;  %v24644_v30 = vld [vmem:[%s32239_s3 + $0xcf8] ss:$20 sps:$4 sm:$0xff]   ;;  %v27472_v16 = vcombine.low %v329_v0, %v337_v6  ;;  %v27480_v61 = vcombine.high %v345_v47, %v353_v3  ;;  %v361_v6 = vld [vmem:[%s25920_s28 + $0x220] sm:$0xff] }
 0x254   : > { %6894 = vmatprep.subr.bf16.mxu0 %v24640_v2  ;;  %8438 = vmatprep.subr.bf16.mxu1 %v24643_v12  ;;  %v24652_v2 = vld [vmem:[%s32239_s3 + $0xd24] ss:$20 sps:$4 sm:$0xff]   ;;  %v24655_v12 = vld [vmem:[%s32239_s3 + $0xd2c] ss:$20 sps:$4 sm:$0xff]  }
 0x255   : > { %32535 = vst [vmem:[#allocation87_spill] sm:$0xff] %v27472_v16  ;;  %32536 = vst [vmem:[#allocation88_spill] sm:$0xff] %v27480_v61  ;;  %v369_v0 = vld [vmem:[%s25920_s28 + $0x260] sm:$0xff] }
 0x256   : > { %6740 = vmatmul.mubr.bf16.gmra.mrb[4].mxu0 %v27438_v52  ;;  %8284 = vmatmul.mubr.bf16.gmra.mrb[4].mxu1 %v27438_v52  ;;  %v24653_v52 = vld [vmem:[%s32239_s3 + $0xd28] ss:$20 sps:$4 sm:$0xff]  }
 0x257   : > { %6749 = vmatprep.mubr.bf16.mxu0 %v27446_v25  ;;  %8293 = vmatprep.mubr.bf16.mxu1 %v27446_v25  ;;  %v24650_v25 = vld [vmem:[%s32239_s3 + $0xd20] ss:$20 sps:$4 sm:$0xff]  }
 0x258   : > { %6895 = vmatpush1.bf16.msra.mxu0 %v24638_v11  ;;  %8439 = vmatpush1.bf16.msra.mxu1 %v24641_v33  ;;  %v24658_v11 = vld [vmem:[%s32239_s3 + $0xd4c] ss:$20 sps:$4 sm:$0xff]   ;;  %v24656_v33 = vld [vmem:[%s32239_s3 + $0xd48] ss:$20 sps:$4 sm:$0xff]  }
 0x259   : > { %6896 = vmatprep.subr.bf16.mxu0 %v24646_v15  ;;  %8440 = vmatprep.subr.bf16.mxu1 %v24649_v23  ;;  %v24661_v15 = vld [vmem:[%s32239_s3 + $0xd54] ss:$20 sps:$4 sm:$0xff]   ;;  %v24659_v23 = vld [vmem:[%s32239_s3 + $0xd50] ss:$20 sps:$4 sm:$0xff]  }
 0x25c   : > { %6897 = vmatpush1.bf16.msra.mxu0 %v24644_v30  ;;  %8441 = vmatpush1.bf16.msra.mxu1 %v24647_v46  ;;  %v24664_v30 = vld [vmem:[%s32239_s3 + $0xd74] ss:$20 sps:$4 sm:$0xff]   ;;  %v24667_v46 = vld [vmem:[%s32239_s3 + $0xd7c] ss:$20 sps:$4 sm:$0xff]  }
 0x25d   : > { %6898 = vmatprep.subr.bf16.mxu0 %v24652_v2  ;;  %8442 = vmatprep.subr.bf16.mxu1 %v24655_v12  ;;  %v27506_v2 = vcombine.low %v345_v47, %v353_v3  ;;  %v24662_v12 = vld [vmem:[%s32239_s3 + $0xd70] ss:$20 sps:$4 sm:$0xff]  }
 0x25e   : > { %6750 = vmatmul.mubr.bf16.gmra.mrb[8].mxu0 %v27472_v16  ;;  %8294 = vmatmul.mubr.bf16.gmra.mrb[8].mxu1 %v27472_v16  ;;  %v27514_v16 = vcombine.high %v361_v6, %v369_v0  ;;  %v377_v47 = vld [vmem:[%s25920_s28 + $0x2a0] sm:$0xff] }
 0x25f   : > { %6759 = vmatprep.mubr.bf16.mxu0 %v27480_v61  ;;  %8303 = vmatprep.mubr.bf16.mxu1 %v27480_v61  ;;  %32537 = vst [vmem:[#allocation89_spill] sm:$0xff] %v27506_v2  ;;  %v24665_v61 = vld [vmem:[%s32239_s3 + $0xd78] ss:$20 sps:$4 sm:$0xff]   ;;  %v385_v3 = vld [vmem:[%s25920_s28 + $0x2e0] sm:$0xff] }
 0x260   : > { %6899 = vmatpush1.bf16.msra.mxu0 %v24650_v25  ;;  %8443 = vmatpush1.bf16.msra.mxu1 %v24653_v52  ;;  %32538 = vst [vmem:[#allocation90_spill] sm:$0xff] %v27514_v16  ;;  %v24670_v25 = vld [vmem:[%s32239_s3 + $0xd9c] ss:$20 sps:$4 sm:$0xff]   ;;  %v24673_v52 = vld [vmem:[%s32239_s3 + $0xda4] ss:$20 sps:$4 sm:$0xff]  }
 0x261   : > { %6900 = vmatprep.subr.bf16.mxu0 %v24658_v11  ;;  %8444 = vmatprep.subr.bf16.mxu1 %v24661_v15  ;;  %v24668_v11 = vld [vmem:[%s32239_s3 + $0xd98] ss:$20 sps:$4 sm:$0xff]   ;;  %v24671_v15 = vld [vmem:[%s32239_s3 + $0xda0] ss:$20 sps:$4 sm:$0xff]  }
 0x264   : > { %6901 = vmatpush1.bf16.msra.mxu0 %v24656_v33  ;;  %8445 = vmatpush1.bf16.msra.mxu1 %v24659_v23  ;;  %v24676_v33 = vld [vmem:[%s32239_s3 + $0xdc4] ss:$20 sps:$4 sm:$0xff]   ;;  %v24679_v23 = vld [vmem:[%s32239_s3 + $0xdcc] ss:$20 sps:$4 sm:$0xff]  }
 0x265   : > { %6902 = vmatprep.subr.bf16.mxu0 %v24664_v30  ;;  %8446 = vmatprep.subr.bf16.mxu1 %v24667_v46  ;;  %v27540_v30 = vcombine.low %v361_v6, %v369_v0  ;;  %v24674_v46 = vld [vmem:[%s32239_s3 + $0xdc0] ss:$20 sps:$4 sm:$0xff]  }
 0x266   : > { %6760 = vmatmul.mubr.bf16.gmra.mrb[12].mxu0 %v27506_v2  ;;  %8304 = vmatmul.mubr.bf16.gmra.mrb[12].mxu1 %v27506_v2  ;;  %v27548_v2 = vcombine.high %v377_v47, %v385_v3  ;;  %v393_v6 = vld [vmem:[%s25920_s28 + $0x320] sm:$0xff] }
 0x267   : > { %6769 = vmatprep.mubr.bf16.mxu0 %v27514_v16  ;;  %8313 = vmatprep.mubr.bf16.mxu1 %v27514_v16  ;;  %32539 = vst [vmem:[#allocation91_spill] sm:$0xff] %v27540_v30  ;;  %v24677_v16 = vld [vmem:[%s32239_s3 + $0xdc8] ss:$20 sps:$4 sm:$0xff]   ;;  %v401_v0 = vld [vmem:[%s25920_s28 + $0x360] sm:$0xff] }
 0x268   : > { %6903 = vmatpush1.bf16.msra.mxu0 %v24662_v12  ;;  %8447 = vmatpush1.bf16.msra.mxu1 %v24665_v61  ;;  %32540 = vst [vmem:[#allocation92_spill] sm:$0xff] %v27548_v2  ;;  %v24682_v12 = vld [vmem:[%s32239_s3 + $0xdec] ss:$20 sps:$4 sm:$0xff]   ;;  %v24685_v61 = vld [vmem:[%s32239_s3 + $0xdf4] ss:$20 sps:$4 sm:$0xff]  }
 0x269   : > { %6904 = vmatprep.subr.bf16.mxu0 %v24670_v25  ;;  %8448 = vmatprep.subr.bf16.mxu1 %v24673_v52  ;;  %v24680_v25 = vld [vmem:[%s32239_s3 + $0xde8] ss:$20 sps:$4 sm:$0xff]   ;;  %v24683_v52 = vld [vmem:[%s32239_s3 + $0xdf0] ss:$20 sps:$4 sm:$0xff]  }
 0x26c   : > { %6905 = vmatpush1.bf16.msra.mxu0 %v24668_v11  ;;  %8449 = vmatpush1.bf16.msra.mxu1 %v24671_v15  ;;  %v24688_v11 = vld [vmem:[%s32239_s3 + $0xe14] ss:$20 sps:$4 sm:$0xff]   ;;  %v24691_v15 = vld [vmem:[%s32239_s3 + $0xe1c] ss:$20 sps:$4 sm:$0xff]  }
 0x26d   : > { %6906 = vmatprep.subr.bf16.mxu0 %v24676_v33  ;;  %8450 = vmatprep.subr.bf16.mxu1 %v24679_v23  ;;  %v27574_v33 = vcombine.low %v377_v47, %v385_v3  ;;  %v24686_v23 = vld [vmem:[%s32239_s3 + $0xe10] ss:$20 sps:$4 sm:$0xff]  }
 0x26e   : > { %6770 = vmatmul.mubr.bf16.gmra.mrb[16].mxu0 %v27540_v30  ;;  %8314 = vmatmul.mubr.bf16.gmra.mrb[16].mxu1 %v27540_v30  ;;  %v27582_v30 = vcombine.high %v393_v6, %v401_v0  ;;  %v409_v47 = vld [vmem:[%s25920_s28 + $0x3a0] sm:$0xff] }
 0x26f   : > { %6779 = vmatprep.mubr.bf16.mxu0 %v27548_v2  ;;  %8323 = vmatprep.mubr.bf16.mxu1 %v27548_v2  ;;  %32541 = vst [vmem:[#allocation93_spill] sm:$0xff] %v27574_v33  ;;  %v24689_v2 = vld [vmem:[%s32239_s3 + $0xe18] ss:$20 sps:$4 sm:$0xff]   ;;  %v417_v3 = vld [vmem:[%s25920_s28 + $0x3e0] sm:$0xff] }
 0x270   : > { %6907 = vmatpush1.bf16.msra.mxu0 %v24674_v46  ;;  %8451 = vmatpush1.bf16.msra.mxu1 %v24677_v16  ;;  %32542 = vst [vmem:[#allocation94_spill] sm:$0xff] %v27582_v30  ;;  %v24694_v46 = vld [vmem:[%s32239_s3 + $0xe3c] ss:$20 sps:$4 sm:$0xff]   ;;  %v24697_v16 = vld [vmem:[%s32239_s3 + $0xe44] ss:$20 sps:$4 sm:$0xff]  }
 0x271   : > { %6908 = vmatprep.subr.bf16.mxu0 %v24682_v12  ;;  %8452 = vmatprep.subr.bf16.mxu1 %v24685_v61  ;;  %v24692_v12 = vld [vmem:[%s32239_s3 + $0xe38] ss:$20 sps:$4 sm:$0xff]   ;;  %v24695_v61 = vld [vmem:[%s32239_s3 + $0xe40] ss:$20 sps:$4 sm:$0xff]  }
 0x274   : > { %6909 = vmatpush1.bf16.msra.mxu0 %v24680_v25  ;;  %8453 = vmatpush1.bf16.msra.mxu1 %v24683_v52  ;;  %v24700_v25 = vld [vmem:[%s32239_s3 + $0xe64] ss:$20 sps:$4 sm:$0xff]   ;;  %v24703_v52 = vld [vmem:[%s32239_s3 + $0xe6c] ss:$20 sps:$4 sm:$0xff]  }
 0x275   : > { %6910 = vmatprep.subr.bf16.mxu0 %v24688_v11  ;;  %8454 = vmatprep.subr.bf16.mxu1 %v24691_v15  ;;  %v27608_v11 = vcombine.low %v393_v6, %v401_v0  ;;  %v24698_v15 = vld [vmem:[%s32239_s3 + $0xe60] ss:$20 sps:$4 sm:$0xff]  }
 0x276   : > { %6780 = vmatmul.mubr.bf16.gmra.mrb[20].mxu0 %v27574_v33  ;;  %8324 = vmatmul.mubr.bf16.gmra.mrb[20].mxu1 %v27574_v33  ;;  %v27616_v33 = vcombine.high %v409_v47, %v417_v3  ;;  %v425_v6 = vld [vmem:[%s25920_s28 + $0x420] sm:$0xff] }
 0x277   : > { %6789 = vmatprep.mubr.bf16.mxu0 %v27582_v30  ;;  %8333 = vmatprep.mubr.bf16.mxu1 %v27582_v30  ;;  %32543 = vst [vmem:[#allocation95_spill] sm:$0xff] %v27608_v11  ;;  %v24701_v30 = vld [vmem:[%s32239_s3 + $0xe68] ss:$20 sps:$4 sm:$0xff]   ;;  %v433_v0 = vld [vmem:[%s25920_s28 + $0x460] sm:$0xff] }
 0x278   : > { %6911 = vmatpush1.bf16.msra.mxu0 %v24686_v23  ;;  %8455 = vmatpush1.bf16.msra.mxu1 %v24689_v2  ;;  %32544 = vst [vmem:[#allocation96_spill] sm:$0xff] %v27616_v33  ;;  %v24706_v23 = vld [vmem:[%s32239_s3 + $0xe8c] ss:$20 sps:$4 sm:$0xff]   ;;  %v24709_v2 = vld [vmem:[%s32239_s3 + $0xe94] ss:$20 sps:$4 sm:$0xff]  }
 0x279   : > { %6912 = vmatprep.subr.bf16.mxu0 %v24694_v46  ;;  %8456 = vmatprep.subr.bf16.mxu1 %v24697_v16  ;;  %v24704_v46 = vld [vmem:[%s32239_s3 + $0xe88] ss:$20 sps:$4 sm:$0xff]   ;;  %v24707_v16 = vld [vmem:[%s32239_s3 + $0xe90] ss:$20 sps:$4 sm:$0xff]  }
 0x27c   : > { %6913 = vmatpush1.bf16.msra.mxu0 %v24692_v12  ;;  %8457 = vmatpush1.bf16.msra.mxu1 %v24695_v61  ;;  %v24712_v12 = vld [vmem:[%s32239_s3 + $0xeb4] ss:$20 sps:$4 sm:$0xff]   ;;  %v24715_v61 = vld [vmem:[%s32239_s3 + $0xebc] ss:$20 sps:$4 sm:$0xff]  }
 0x27d   : > { %6914 = vmatprep.subr.bf16.mxu0 %v24700_v25  ;;  %8458 = vmatprep.subr.bf16.mxu1 %v24703_v52  ;;  %v27642_v25 = vcombine.low %v409_v47, %v417_v3  ;;  %v24710_v52 = vld [vmem:[%s32239_s3 + $0xeb0] ss:$20 sps:$4 sm:$0xff]  }
 0x27e   : > { %6790 = vmatmul.mubr.bf16.gmra.mrb[24].mxu0 %v27608_v11  ;;  %8334 = vmatmul.mubr.bf16.gmra.mrb[24].mxu1 %v27608_v11  ;;  %v27650_v11 = vcombine.high %v425_v6, %v433_v0  ;;  %v441_v47 = vld [vmem:[%s25920_s28 + $0x4a0] sm:$0xff] }
 0x27f   : > { %6799 = vmatprep.mubr.bf16.mxu0 %v27616_v33  ;;  %8343 = vmatprep.mubr.bf16.mxu1 %v27616_v33  ;;  %32545 = vst [vmem:[#allocation97_spill] sm:$0xff] %v27642_v25  ;;  %v24713_v33 = vld [vmem:[%s32239_s3 + $0xeb8] ss:$20 sps:$4 sm:$0xff]   ;;  %v449_v3 = vld [vmem:[%s25920_s28 + $0x4e0] sm:$0xff] }
 0x280   : > { %6915 = vmatpush1.bf16.msra.mxu0 %v24698_v15  ;;  %8459 = vmatpush1.bf16.msra.mxu1 %v24701_v30  ;;  %32546 = vst [vmem:[#allocation98_spill] sm:$0xff] %v27650_v11  ;;  %v24718_v15 = vld [vmem:[%s32239_s3 + $0xedc] ss:$20 sps:$4 sm:$0xff]   ;;  %v24721_v30 = vld [vmem:[%s32239_s3 + $0xee4] ss:$20 sps:$4 sm:$0xff]  }
 0x281   : > { %6916 = vmatprep.subr.bf16.mxu0 %v24706_v23  ;;  %8460 = vmatprep.subr.bf16.mxu1 %v24709_v2  ;;  %v24716_v23 = vld [vmem:[%s32239_s3 + $0xed8] ss:$20 sps:$4 sm:$0xff]   ;;  %v24719_v2 = vld [vmem:[%s32239_s3 + $0xee0] ss:$20 sps:$4 sm:$0xff]  }
 0x284   : > { %6917 = vmatpush1.bf16.msra.mxu0 %v24704_v46  ;;  %8461 = vmatpush1.bf16.msra.mxu1 %v24707_v16  ;;  %v24724_v46 = vld [vmem:[%s32239_s3 + $0xf04] ss:$20 sps:$4 sm:$0xff]   ;;  %v24727_v16 = vld [vmem:[%s32239_s3 + $0xf0c] ss:$20 sps:$4 sm:$0xff]  }
 0x285   : > { %6918 = vmatprep.subr.bf16.mxu0 %v24712_v12  ;;  %8462 = vmatprep.subr.bf16.mxu1 %v24715_v61  ;;  %v27676_v12 = vcombine.low %v425_v6, %v433_v0  ;;  %v27678_v61 = vcombine.high %v441_v47, %v449_v3  ;;  %v465_v6 = vld [vmem:[%s25920_s28 + $0x560] sm:$0xff]  ;;  %v27686_v0 = vcombine.low %v441_v47, %v449_v3 }
 0x286   : > { %6800 = vmatmul.mubr.bf16.gmra.mrb[28].mxu0 %v27642_v25  ;;  %8344 = vmatmul.mubr.bf16.gmra.mrb[28].mxu1 %v27642_v25  ;;  %v489_v47 = vld [vmem:[%s25920_s28 + $0x620] sm:$0xff] }
 0x287   : > { %6809 = vmatprep.mubr.bf16.mxu0 %v27650_v11  ;;  %8353 = vmatprep.mubr.bf16.mxu1 %v27650_v11  ;;  %32547 = vst [vmem:[#allocation99_spill] sm:$0xff] %v27676_v12  ;;  %32548 = vst [vmem:[#allocation100_spill] sm:$0xff] %v27678_v61  ;;  %v497_v3 = vld [vmem:[%s25920_s28 + $0x660] sm:$0xff]  ;;  %v24739_v11 = vld [vmem:[%s32239_s3 + $0xf5c] ss:$20 sps:$4 sm:$0xff]  }
 0x288   : > { %6919 = vmatpush1.bf16.msra.mxu0 %v24710_v52  ;;  %8463 = vmatpush1.bf16.msra.mxu1 %v24713_v33  ;;  %v457_v33 = vld [vmem:[%s25920_s28 + $0x520] sm:$0xff]  ;;  %32549 = vst [vmem:[#allocation101_spill] sm:$0xff] %v27686_v0 }
 0x289   : > { %6920 = vmatprep.subr.bf16.mxu0 %v24718_v15  ;;  %8464 = vmatprep.subr.bf16.mxu1 %v24721_v30  ;;  %v27688_v52 = vcombine.high %v457_v33, %v465_v6  ;;  %v473_v15 = vld [vmem:[%s25920_s28 + $0x5a0] sm:$0xff] }
 0x28a   : > { %v481_v30 = vld [vmem:[%s25920_s28 + $0x5e0] sm:$0xff] }
 0x28b   : > { %32550 = vst [vmem:[#allocation102_spill] sm:$0xff] %v27688_v52 }
 0x28c   : > { %6921 = vmatpush1.bf16.msra.mxu0 %v24716_v23  ;;  %8465 = vmatpush1.bf16.msra.mxu1 %v24719_v2  ;;  %v27696_v23 = vcombine.low %v457_v33, %v465_v6  ;;  %v27698_v2 = vcombine.high %v473_v15, %v481_v30  ;;  %v505_v33 = vld [vmem:[%s25920_s28 + $0x6a0] sm:$0xff] }
 0x28d   : > { %7083 = vmatprep.subr.bf16.mxu0 %v24724_v46  ;;  %8627 = vmatprep.subr.bf16.mxu1 %v24727_v16  ;;  %v27706_v46 = vcombine.low %v473_v15, %v481_v30  ;;  %v27708_v16 = vcombine.high %v489_v47, %v497_v3  ;;  %v513_v6 = vld [vmem:[%s25920_s28 + $0x6e0] sm:$0xff] }
 0x28e   : > { %6810 = vmatmul.mubr.bf16.gmra.mrb[32].mxu0 %v27676_v12  ;;  %8354 = vmatmul.mubr.bf16.gmra.mrb[32].mxu1 %v27676_v12  ;;  %32551 = vst [vmem:[#allocation103_spill] sm:$0xff] %v27696_v23  ;;  %32552 = vst [vmem:[#allocation104_spill] sm:$0xff] %v27698_v2  ;;  %v521_v15 = vld [vmem:[%s25920_s28 + $0x720] sm:$0xff]  ;;  %v24736_v12 = vld [vmem:[%s32239_s3 + $0xf54] ss:$20 sps:$4 sm:$0xff]  }
 0x28f   : > { %6819 = vmatprep.mubr.bf16.mxu0 %v27678_v61  ;;  %8363 = vmatprep.mubr.bf16.mxu1 %v27678_v61  ;;  %32553 = vst [vmem:[#allocation105_spill] sm:$0xff] %v27706_v46  ;;  %32554 = vst [vmem:[#allocation106_spill] sm:$0xff] %v27708_v16  ;;  %v529_v30 = vld [vmem:[%s25920_s28 + $0x760] sm:$0xff]  ;;  %v338_v61 = vld [vmem:[%s25920_s28 + $0x168] sm:$0xff] }
 0x296   : > { %6820 = vmatmul.mubr.bf16.gmra.mrb[36].mxu0 %v27686_v0  ;;  %8364 = vmatmul.mubr.bf16.gmra.mrb[36].mxu1 %v27686_v0  ;;  %v24728_v0 = vld [vmem:[%s32239_s3 + $0xf28] ss:$20 sps:$4 sm:$0xff]  }
 0x297   : > { %6829 = vmatprep.mubr.bf16.mxu0 %v27688_v52  ;;  %8373 = vmatprep.mubr.bf16.mxu1 %v27688_v52 }
 0x29e   : > { %6830 = vmatmul.mubr.bf16.gmra.mrb[40].mxu0 %v27696_v23  ;;  %8374 = vmatmul.mubr.bf16.gmra.mrb[40].mxu1 %v27696_v23  ;;  %v27718_v23 = vcombine.high %v505_v33, %v513_v6 }
 0x29f   : > { %6839 = vmatprep.mubr.bf16.mxu0 %v27698_v2  ;;  %8383 = vmatprep.mubr.bf16.mxu1 %v27698_v2  ;;  %v27716_v2 = vcombine.low %v489_v47, %v497_v3  ;;  %v537_v47 = vld [vmem:[%s25920_s28 + $0x7a0] sm:$0xff] }
 0x2a0   : > { %32556 = vst [vmem:[#allocation108_spill] sm:$0xff] %v27718_v23  ;;  %v545_v3 = vld [vmem:[%s25920_s28 + $0x7e0] sm:$0xff] }
 0x2a1   : > { %32555 = vst [vmem:[#allocation107_spill] sm:$0xff] %v27716_v2 }
 0x2a6   : > { %6840 = vmatmul.mubr.bf16.gmra.mrb[44].mxu0 %v27706_v46  ;;  %8384 = vmatmul.mubr.bf16.gmra.mrb[44].mxu1 %v27706_v46  ;;  %v27728_v46 = vcombine.high %v521_v15, %v529_v30 }
 0x2a7   : > { %6849 = vmatprep.mubr.bf16.mxu0 %v27708_v16  ;;  %8393 = vmatprep.mubr.bf16.mxu1 %v27708_v16  ;;  %v27726_v16 = vcombine.low %v505_v33, %v513_v6  ;;  %v298_v33 = vld [vmem:[%s25920_s28 + $0x28] sm:$0xff] }
 0x2a8   : > { %32558 = vst [vmem:[#allocation110_spill] sm:$0xff] %v27728_v46  ;;  %v306_v6 = vld [vmem:[%s25920_s28 + $0x68] sm:$0xff] }
 0x2a9   : > { %32557 = vst [vmem:[#allocation109_spill] sm:$0xff] %v27726_v16 }
 0x2ae   : > { %6850 = vmatmul.mubr.bf16.gmra.mrb[48].mxu0 %v27716_v2  ;;  %8394 = vmatmul.mubr.bf16.gmra.mrb[48].mxu1 %v27716_v2  ;;  %v27738_v2 = vcombine.high %v537_v47, %v545_v3 }
 0x2af   : > { %6859 = vmatprep.mubr.bf16.mxu0 %v27718_v23  ;;  %8403 = vmatprep.mubr.bf16.mxu1 %v27718_v23  ;;  %v27736_v23 = vcombine.low %v521_v15, %v529_v30  ;;  %v314_v15 = vld [vmem:[%s25920_s28 + $0xa8] sm:$0xff] }
 0x2b0   : > { %32560 = vst [vmem:[#allocation112_spill] sm:$0xff] %v27738_v2  ;;  %v322_v30 = vld [vmem:[%s25920_s28 + $0xe8] sm:$0xff] }
 0x2b1   : > { %32559 = vst [vmem:[#allocation111_spill] sm:$0xff] %v27736_v23  ;;  %v27770_v52 = vcombine.high %v314_v15, %v322_v30  ;;  %v27790_v25 = vcombine.low %v314_v15, %v322_v30  ;;  %v354_v15 = vld [vmem:[%s25920_s28 + $0x1e8] sm:$0xff]  ;;  %v24743_v30 = vld [vmem:[%s32239_s3 + $0xf80] ss:$20 sps:$4 sm:$0xff]  }
 0x2b3   : > { %32564 = vst [vmem:[#allocation116_spill] sm:$0xff] %v27770_v52  ;;  %32565 = vst [vmem:[#allocation117_spill] sm:$0xff] %v27790_v25 }
 0x2b6   : > { %6860 = vmatmul.mubr.bf16.gmra.mrb[52].mxu0 %v27726_v16  ;;  %8404 = vmatmul.mubr.bf16.gmra.mrb[52].mxu1 %v27726_v16  ;;  %v27746_v16 = vcombine.low %v537_v47, %v545_v3  ;;  %v24725_v47 = vld [vmem:[%s32239_s3 + $0xf08] ss:$20 sps:$4 sm:$0xff]   ;;  %v27762_v3 = vcombine.low %v298_v33, %v306_v6 }
 0x2b7   : > { %6869 = vmatprep.mubr.bf16.mxu0 %v27728_v46  ;;  %8413 = vmatprep.mubr.bf16.mxu1 %v27728_v46  ;;  %v27748_v46 = vcombine.high %v298_v33, %v306_v6  ;;  %v24731_v33 = vld [vmem:[%s32239_s3 + $0xf30] ss:$20 sps:$4 sm:$0xff]   ;;  %v330_v6 = vld [vmem:[%s25920_s28 + $0x128] sm:$0xff] }
 0x2b8   : > { %32561 = vst [vmem:[#allocation113_spill] sm:$0xff] %v27746_v16  ;;  %32563 = vst [vmem:[#allocation115_spill] sm:$0xff] %v27762_v3 }
 0x2b9   : > { %32562 = vst [vmem:[#allocation114_spill] sm:$0xff] %v27748_v46 }
 0x2be   : > { %6870 = vmatmul.mubr.bf16.gmra.mrb[56].mxu0 %v27736_v23  ;;  %8414 = vmatmul.mubr.bf16.gmra.mrb[56].mxu1 %v27736_v23  ;;  %v24733_v23 = vld [vmem:[%s32239_s3 + $0xf34] ss:$20 sps:$4 sm:$0xff]  }
 0x2bf   : > { %6879 = vmatprep.mubr.bf16.mxu0 %v27738_v2  ;;  %8423 = vmatprep.mubr.bf16.mxu1 %v27738_v2  ;;  %v24722_v2 = vld [vmem:[%s32239_s3 + $0xf00] ss:$20 sps:$4 sm:$0xff]  }
 0x2c6   : > { %6880 = vmatmul.mubr.bf16.gmra.mrb[60].mxu0 %v27746_v16  ;;  %8424 = vmatmul.mubr.bf16.gmra.mrb[60].mxu1 %v27746_v16  ;;  %v24730_v16 = vld [vmem:[%s32239_s3 + $0xf2c] ss:$20 sps:$4 sm:$0xff]  }
 0x2c7   : > { %6922 = vmatprep.mubr.bf16.mxu0 %v27748_v46  ;;  %8466 = vmatprep.mubr.bf16.mxu1 %v27748_v46 }
 0x2ce   : > { %6923 = vmatmul.mubr.bf16.vlgmr.msra.gmra.mrb[0].mxu0 %v27762_v3  ;;  %8467 = vmatmul.mubr.bf16.vlgmr.msra.gmra.mrb[0].mxu1 %v27762_v3  ;;  %v27798_v3 = vcombine.high %v330_v6, %v338_v61 }
 0x2cf   : > { %7084 = vmatpush1.bf16.msra.mxu0 %v24722_v2  ;;  %8628 = vmatpush1.bf16.msra.mxu1 %v24725_v47  ;;  %v24734_v2 = vld [vmem:[%s32239_s3 + $0xf50] ss:$20 sps:$4 sm:$0xff]   ;;  %v24737_v47 = vld [vmem:[%s32239_s3 + $0xf58] ss:$20 sps:$4 sm:$0xff]  }
 0x2d0   : > { %6932 = vmatprep.mubr.bf16.mxu0 %v27770_v52  ;;  %8476 = vmatprep.mubr.bf16.mxu1 %v27770_v52  ;;  %32566 = vst [vmem:[#allocation118_spill] sm:$0xff] %v27798_v3  ;;  %v24742_v52 = vld [vmem:[%s32239_s3 + $0xf7c] ss:$20 sps:$4 sm:$0xff]  }
 0x2d1   : > { %7085 = vmatprep.subr.bf16.mxu0 %v24730_v16  ;;  %8629 = vmatprep.subr.bf16.mxu1 %v24733_v23  ;;  %v24745_v23 = vld [vmem:[%s32239_s3 + $0xf84] ss:$20 sps:$4 sm:$0xff]   ;;  %v346_v16 = vld [vmem:[%s25920_s28 + $0x1a8] sm:$0xff] }
 0x2d2   : > { %v27832_v46 = vcombine.high %v346_v16, %v354_v15 }
 0x2d3   : > { %7086 = vmatpush1.bf16.msra.mxu0 %v24728_v0  ;;  %8630 = vmatpush1.bf16.msra.mxu1 %v24731_v33  ;;  %v24740_v0 = vld [vmem:[%s32239_s3 + $0xf78] ss:$20 sps:$4 sm:$0xff]   ;;  %v27824_v33 = vcombine.low %v330_v6, %v338_v61 }
 0x2d4   : > { %7087 = vmatprep.subr.bf16.mxu0 %v24736_v12  ;;  %8631 = vmatprep.subr.bf16.mxu1 %v24739_v11  ;;  %v24748_v11 = vld [vmem:[%s32239_s3 + $0xfa4] ss:$20 sps:$4 sm:$0xff]   ;;  %v24751_v12 = vld [vmem:[%s32239_s3 + $0xfac] ss:$20 sps:$4 sm:$0xff]   ;;  %32568 = vst [vmem:[#allocation120_spill] sm:$0xff] %v27832_v46 }
 0x2d5   : > { %32567 = vst [vmem:[#allocation119_spill] sm:$0xff] %v27824_v33  ;;  %v362_v61 = vld [vmem:[%s25920_s28 + $0x228] sm:$0xff] }
 0x2d6   : > { %6933 = vmatmul.mubr.bf16.gmra.mrb[4].mxu0 %v27790_v25  ;;  %8477 = vmatmul.mubr.bf16.gmra.mrb[4].mxu1 %v27790_v25  ;;  %v24749_v25 = vld [vmem:[%s32239_s3 + $0xfa8] ss:$20 sps:$4 sm:$0xff]  }
 0x2d7   : > { %6942 = vmatprep.mubr.bf16.mxu0 %v27798_v3  ;;  %8486 = vmatprep.mubr.bf16.mxu1 %v27798_v3  ;;  %v24746_v3 = vld [vmem:[%s32239_s3 + $0xfa0] ss:$20 sps:$4 sm:$0xff]   ;;  %v370_v6 = vld [vmem:[%s25920_s28 + $0x268] sm:$0xff] }
 0x2d8   : > { %7088 = vmatpush1.bf16.msra.mxu0 %v24734_v2  ;;  %8632 = vmatpush1.bf16.msra.mxu1 %v24737_v47  ;;  %v24754_v2 = vld [vmem:[%s32239_s3 + $0xfcc] ss:$20 sps:$4 sm:$0xff]   ;;  %v24752_v47 = vld [vmem:[%s32239_s3 + $0xfc8] ss:$20 sps:$4 sm:$0xff]  }
 0x2d9   : > { %7089 = vmatprep.subr.bf16.mxu0 %v24742_v52  ;;  %8633 = vmatprep.subr.bf16.mxu1 %v24745_v23  ;;  %v24757_v52 = vld [vmem:[%s32239_s3 + $0xfd4] ss:$20 sps:$4 sm:$0xff]   ;;  %v24755_v23 = vld [vmem:[%s32239_s3 + $0xfd0] ss:$20 sps:$4 sm:$0xff]  }
 0x2dc   : > { %7090 = vmatpush1.bf16.msra.mxu0 %v24740_v0  ;;  %8634 = vmatpush1.bf16.msra.mxu1 %v24743_v30  ;;  %v24760_v0 = vld [vmem:[%s32239_s3 + $0xff4] ss:$20 sps:$4 sm:$0xff]   ;;  %v24763_v30 = vld [vmem:[%s32239_s3 + $0xffc] ss:$20 sps:$4 sm:$0xff]  }
 0x2dd   : > { %7091 = vmatprep.subr.bf16.mxu0 %v24748_v11  ;;  %8635 = vmatprep.subr.bf16.mxu1 %v24751_v12  ;;  %v27858_v11 = vcombine.low %v346_v16, %v354_v15  ;;  %v24758_v12 = vld [vmem:[%s32239_s3 + $0xff0] ss:$20 sps:$4 sm:$0xff]   ;;  %v378_v16 = vld [vmem:[%s25920_s28 + $0x2a8] sm:$0xff] }
 0x2de   : > { %6943 = vmatmul.mubr.bf16.gmra.mrb[8].mxu0 %v27824_v33  ;;  %8487 = vmatmul.mubr.bf16.gmra.mrb[8].mxu1 %v27824_v33  ;;  %v27866_v33 = vcombine.high %v362_v61, %v370_v6  ;;  %v386_v15 = vld [vmem:[%s25920_s28 + $0x2e8] sm:$0xff] }
 0x2df   : > { %6952 = vmatprep.mubr.bf16.mxu0 %v27832_v46  ;;  %8496 = vmatprep.mubr.bf16.mxu1 %v27832_v46  ;;  %32569 = vst [vmem:[#allocation121_spill] sm:$0xff] %v27858_v11  ;;  %v24761_v46 = vld [vmem:[%s32239_s3 + $0xff8] ss:$20 sps:$4 sm:$0xff]  }
 0x2e0   : > { %7092 = vmatpush1.bf16.msra.mxu0 %v24746_v3  ;;  %8636 = vmatpush1.bf16.msra.mxu1 %v24749_v25  ;;  %32570 = vst [vmem:[#allocation122_spill] sm:$0xff] %v27866_v33  ;;  %v24766_v3 = vld [vmem:[%s32239_s3 + $0x101c] ss:$20 sps:$4 sm:$0xff]   ;;  %v24769_v25 = vld [vmem:[%s32239_s3 + $0x1024] ss:$20 sps:$4 sm:$0xff]  }
 0x2e1   : > { %7093 = vmatprep.subr.bf16.mxu0 %v24754_v2  ;;  %8637 = vmatprep.subr.bf16.mxu1 %v24757_v52  ;;  %v24764_v2 = vld [vmem:[%s32239_s3 + $0x1018] ss:$20 sps:$4 sm:$0xff]   ;;  %v24767_v52 = vld [vmem:[%s32239_s3 + $0x1020] ss:$20 sps:$4 sm:$0xff]  }
 0x2e4   : > { %7094 = vmatpush1.bf16.msra.mxu0 %v24752_v47  ;;  %8638 = vmatpush1.bf16.msra.mxu1 %v24755_v23  ;;  %v24772_v47 = vld [vmem:[%s32239_s3 + $0x1044] ss:$20 sps:$4 sm:$0xff]   ;;  %v24775_v23 = vld [vmem:[%s32239_s3 + $0x104c] ss:$20 sps:$4 sm:$0xff]  }
 0x2e5   : > { %7095 = vmatprep.subr.bf16.mxu0 %v24760_v0  ;;  %8639 = vmatprep.subr.bf16.mxu1 %v24763_v30  ;;  %v27892_v0 = vcombine.low %v362_v61, %v370_v6  ;;  %v24770_v30 = vld [vmem:[%s32239_s3 + $0x1040] ss:$20 sps:$4 sm:$0xff]   ;;  %v394_v61 = vld [vmem:[%s25920_s28 + $0x328] sm:$0xff] }
 0x2e6   : > { %6953 = vmatmul.mubr.bf16.gmra.mrb[12].mxu0 %v27858_v11  ;;  %8497 = vmatmul.mubr.bf16.gmra.mrb[12].mxu1 %v27858_v11  ;;  %v27900_v11 = vcombine.high %v378_v16, %v386_v15  ;;  %v402_v6 = vld [vmem:[%s25920_s28 + $0x368] sm:$0xff] }
 0x2e7   : > { %6962 = vmatprep.mubr.bf16.mxu0 %v27866_v33  ;;  %8506 = vmatprep.mubr.bf16.mxu1 %v27866_v33  ;;  %32571 = vst [vmem:[#allocation123_spill] sm:$0xff] %v27892_v0  ;;  %v24773_v33 = vld [vmem:[%s32239_s3 + $0x1048] ss:$20 sps:$4 sm:$0xff]  }
 0x2e8   : > { %7096 = vmatpush1.bf16.msra.mxu0 %v24758_v12  ;;  %8640 = vmatpush1.bf16.msra.mxu1 %v24761_v46  ;;  %32572 = vst [vmem:[#allocation124_spill] sm:$0xff] %v27900_v11  ;;  %v24778_v12 = vld [vmem:[%s32239_s3 + $0x106c] ss:$20 sps:$4 sm:$0xff]   ;;  %v24781_v46 = vld [vmem:[%s32239_s3 + $0x1074] ss:$20 sps:$4 sm:$0xff]  }
 0x2e9   : > { %7097 = vmatprep.subr.bf16.mxu0 %v24766_v3  ;;  %8641 = vmatprep.subr.bf16.mxu1 %v24769_v25  ;;  %v24776_v3 = vld [vmem:[%s32239_s3 + $0x1068] ss:$20 sps:$4 sm:$0xff]   ;;  %v24779_v25 = vld [vmem:[%s32239_s3 + $0x1070] ss:$20 sps:$4 sm:$0xff]  }
 0x2ec   : > { %7098 = vmatpush1.bf16.msra.mxu0 %v24764_v2  ;;  %8642 = vmatpush1.bf16.msra.mxu1 %v24767_v52  ;;  %v24784_v2 = vld [vmem:[%s32239_s3 + $0x1094] ss:$20 sps:$4 sm:$0xff]   ;;  %v24787_v52 = vld [vmem:[%s32239_s3 + $0x109c] ss:$20 sps:$4 sm:$0xff]  }
 0x2ed   : > { %7099 = vmatprep.subr.bf16.mxu0 %v24772_v47  ;;  %8643 = vmatprep.subr.bf16.mxu1 %v24775_v23  ;;  %v27926_v47 = vcombine.low %v378_v16, %v386_v15  ;;  %v24782_v23 = vld [vmem:[%s32239_s3 + $0x1090] ss:$20 sps:$4 sm:$0xff]   ;;  %v410_v16 = vld [vmem:[%s25920_s28 + $0x3a8] sm:$0xff] }
 0x2ee   : > { %6963 = vmatmul.mubr.bf16.gmra.mrb[16].mxu0 %v27892_v0  ;;  %8507 = vmatmul.mubr.bf16.gmra.mrb[16].mxu1 %v27892_v0  ;;  %v27934_v0 = vcombine.high %v394_v61, %v402_v6  ;;  %v418_v15 = vld [vmem:[%s25920_s28 + $0x3e8] sm:$0xff] }
 0x2ef   : > { %6972 = vmatprep.mubr.bf16.mxu0 %v27900_v11  ;;  %8516 = vmatprep.mubr.bf16.mxu1 %v27900_v11  ;;  %32573 = vst [vmem:[#allocation125_spill] sm:$0xff] %v27926_v47  ;;  %v24785_v11 = vld [vmem:[%s32239_s3 + $0x1098] ss:$20 sps:$4 sm:$0xff]  }
 0x2f0   : > { %7100 = vmatpush1.bf16.msra.mxu0 %v24770_v30  ;;  %8644 = vmatpush1.bf16.msra.mxu1 %v24773_v33  ;;  %32574 = vst [vmem:[#allocation126_spill] sm:$0xff] %v27934_v0  ;;  %v24790_v30 = vld [vmem:[%s32239_s3 + $0x10bc] ss:$20 sps:$4 sm:$0xff]   ;;  %v24793_v33 = vld [vmem:[%s32239_s3 + $0x10c4] ss:$20 sps:$4 sm:$0xff]  }
 0x2f1   : > { %7101 = vmatprep.subr.bf16.mxu0 %v24778_v12  ;;  %8645 = vmatprep.subr.bf16.mxu1 %v24781_v46  ;;  %v24788_v12 = vld [vmem:[%s32239_s3 + $0x10b8] ss:$20 sps:$4 sm:$0xff]   ;;  %v24791_v46 = vld [vmem:[%s32239_s3 + $0x10c0] ss:$20 sps:$4 sm:$0xff]  }
 0x2f4   : > { %7102 = vmatpush1.bf16.msra.mxu0 %v24776_v3  ;;  %8646 = vmatpush1.bf16.msra.mxu1 %v24779_v25  ;;  %v24796_v3 = vld [vmem:[%s32239_s3 + $0x10e4] ss:$20 sps:$4 sm:$0xff]   ;;  %v24799_v25 = vld [vmem:[%s32239_s3 + $0x10ec] ss:$20 sps:$4 sm:$0xff]  }
 0x2f5   : > { %7103 = vmatprep.subr.bf16.mxu0 %v24784_v2  ;;  %8647 = vmatprep.subr.bf16.mxu1 %v24787_v52  ;;  %v27960_v2 = vcombine.low %v394_v61, %v402_v6  ;;  %v24794_v52 = vld [vmem:[%s32239_s3 + $0x10e0] ss:$20 sps:$4 sm:$0xff]   ;;  %v426_v61 = vld [vmem:[%s25920_s28 + $0x428] sm:$0xff] }
 0x2f6   : > { %6973 = vmatmul.mubr.bf16.gmra.mrb[20].mxu0 %v27926_v47  ;;  %8517 = vmatmul.mubr.bf16.gmra.mrb[20].mxu1 %v27926_v47  ;;  %v27968_v47 = vcombine.high %v410_v16, %v418_v15  ;;  %v434_v6 = vld [vmem:[%s25920_s28 + $0x468] sm:$0xff] }
 0x2f7   : > { %6982 = vmatprep.mubr.bf16.mxu0 %v27934_v0  ;;  %8526 = vmatprep.mubr.bf16.mxu1 %v27934_v0  ;;  %32575 = vst [vmem:[#allocation127_spill] sm:$0xff] %v27960_v2  ;;  %v24797_v0 = vld [vmem:[%s32239_s3 + $0x10e8] ss:$20 sps:$4 sm:$0xff]  }
 0x2f8   : > { %7104 = vmatpush1.bf16.msra.mxu0 %v24782_v23  ;;  %8648 = vmatpush1.bf16.msra.mxu1 %v24785_v11  ;;  %32576 = vst [vmem:[#allocation128_spill] sm:$0xff] %v27968_v47  ;;  %v24802_v23 = vld [vmem:[%s32239_s3 + $0x110c] ss:$20 sps:$4 sm:$0xff]   ;;  %v24805_v11 = vld [vmem:[%s32239_s3 + $0x1114] ss:$20 sps:$4 sm:$0xff]  }
 0x2f9   : > { %7105 = vmatprep.subr.bf16.mxu0 %v24790_v30  ;;  %8649 = vmatprep.subr.bf16.mxu1 %v24793_v33  ;;  %v24800_v30 = vld [vmem:[%s32239_s3 + $0x1108] ss:$20 sps:$4 sm:$0xff]   ;;  %v24803_v33 = vld [vmem:[%s32239_s3 + $0x1110] ss:$20 sps:$4 sm:$0xff]  }
 0x2fc   : > { %7106 = vmatpush1.bf16.msra.mxu0 %v24788_v12  ;;  %8650 = vmatpush1.bf16.msra.mxu1 %v24791_v46  ;;  %v24808_v12 = vld [vmem:[%s32239_s3 + $0x1134] ss:$20 sps:$4 sm:$0xff]   ;;  %v24811_v46 = vld [vmem:[%s32239_s3 + $0x113c] ss:$20 sps:$4 sm:$0xff]  }
 0x2fd   : > { %7107 = vmatprep.subr.bf16.mxu0 %v24796_v3  ;;  %8651 = vmatprep.subr.bf16.mxu1 %v24799_v25  ;;  %v27994_v3 = vcombine.low %v410_v16, %v418_v15  ;;  %v24806_v25 = vld [vmem:[%s32239_s3 + $0x1130] ss:$20 sps:$4 sm:$0xff]   ;;  %v442_v16 = vld [vmem:[%s25920_s28 + $0x4a8] sm:$0xff] }
 0x2fe   : > { %6983 = vmatmul.mubr.bf16.gmra.mrb[24].mxu0 %v27960_v2  ;;  %8527 = vmatmul.mubr.bf16.gmra.mrb[24].mxu1 %v27960_v2  ;;  %v28002_v2 = vcombine.high %v426_v61, %v434_v6  ;;  %v450_v15 = vld [vmem:[%s25920_s28 + $0x4e8] sm:$0xff] }
 0x2ff   : > { %6992 = vmatprep.mubr.bf16.mxu0 %v27968_v47  ;;  %8536 = vmatprep.mubr.bf16.mxu1 %v27968_v47  ;;  %32577 = vst [vmem:[#allocation129_spill] sm:$0xff] %v27994_v3  ;;  %v24809_v47 = vld [vmem:[%s32239_s3 + $0x1138] ss:$20 sps:$4 sm:$0xff]  }
 0x300   : > { %7108 = vmatpush1.bf16.msra.mxu0 %v24794_v52  ;;  %8652 = vmatpush1.bf16.msra.mxu1 %v24797_v0  ;;  %32578 = vst [vmem:[#allocation130_spill] sm:$0xff] %v28002_v2  ;;  %v24814_v52 = vld [vmem:[%s32239_s3 + $0x115c] ss:$20 sps:$4 sm:$0xff]   ;;  %v24817_v0 = vld [vmem:[%s32239_s3 + $0x1164] ss:$20 sps:$4 sm:$0xff]  }
 0x301   : > { %7109 = vmatprep.subr.bf16.mxu0 %v24802_v23  ;;  %8653 = vmatprep.subr.bf16.mxu1 %v24805_v11  ;;  %v24812_v23 = vld [vmem:[%s32239_s3 + $0x1158] ss:$20 sps:$4 sm:$0xff]   ;;  %v24815_v11 = vld [vmem:[%s32239_s3 + $0x1160] ss:$20 sps:$4 sm:$0xff]  }
 0x304   : > { %7110 = vmatpush1.bf16.msra.mxu0 %v24800_v30  ;;  %8654 = vmatpush1.bf16.msra.mxu1 %v24803_v33  ;;  %v24820_v30 = vld [vmem:[%s32239_s3 + $0x1184] ss:$20 sps:$4 sm:$0xff]   ;;  %v24823_v33 = vld [vmem:[%s32239_s3 + $0x118c] ss:$20 sps:$4 sm:$0xff]  }
 0x305   : > { %7111 = vmatprep.subr.bf16.mxu0 %v24808_v12  ;;  %8655 = vmatprep.subr.bf16.mxu1 %v24811_v46  ;;  %v28028_v12 = vcombine.low %v426_v61, %v434_v6  ;;  %v28030_v46 = vcombine.high %v442_v16, %v450_v15  ;;  %v466_v61 = vld [vmem:[%s25920_s28 + $0x568] sm:$0xff]  ;;  %v28038_v6 = vcombine.low %v442_v16, %v450_v15 }
 0x306   : > { %6993 = vmatmul.mubr.bf16.gmra.mrb[28].mxu0 %v27994_v3  ;;  %8537 = vmatmul.mubr.bf16.gmra.mrb[28].mxu1 %v27994_v3  ;;  %v490_v16 = vld [vmem:[%s25920_s28 + $0x628] sm:$0xff] }
 0x307   : > { %7002 = vmatprep.mubr.bf16.mxu0 %v28002_v2  ;;  %8546 = vmatprep.mubr.bf16.mxu1 %v28002_v2  ;;  %32579 = vst [vmem:[#allocation131_spill] sm:$0xff] %v28028_v12  ;;  %32580 = vst [vmem:[#allocation132_spill] sm:$0xff] %v28030_v46  ;;  %v498_v15 = vld [vmem:[%s25920_s28 + $0x668] sm:$0xff] }
 0x308   : > { %7112 = vmatpush1.bf16.msra.mxu0 %v24806_v25  ;;  %8656 = vmatpush1.bf16.msra.mxu1 %v24809_v47  ;;  %v458_v47 = vld [vmem:[%s25920_s28 + $0x528] sm:$0xff]  ;;  %32581 = vst [vmem:[#allocation133_spill] sm:$0xff] %v28038_v6 }
 0x309   : > { %7113 = vmatprep.subr.bf16.mxu0 %v24814_v52  ;;  %8657 = vmatprep.subr.bf16.mxu1 %v24817_v0  ;;  %v28040_v25 = vcombine.high %v458_v47, %v466_v61  ;;  %v474_v52 = vld [vmem:[%s25920_s28 + $0x5a8] sm:$0xff] }
 0x30a   : > { %v482_v0 = vld [vmem:[%s25920_s28 + $0x5e8] sm:$0xff] }
 0x30b   : > { %32582 = vst [vmem:[#allocation134_spill] sm:$0xff] %v28040_v25 }
 0x30c   : > { %7114 = vmatpush1.bf16.msra.mxu0 %v24812_v23  ;;  %8658 = vmatpush1.bf16.msra.mxu1 %v24815_v11  ;;  %v28048_v23 = vcombine.low %v458_v47, %v466_v61  ;;  %v28050_v11 = vcombine.high %v474_v52, %v482_v0  ;;  %v506_v47 = vld [vmem:[%s25920_s28 + $0x6a8] sm:$0xff] }
 0x30d   : > { %7276 = vmatprep.subr.bf16.mxu0 %v24820_v30  ;;  %8820 = vmatprep.subr.bf16.mxu1 %v24823_v33  ;;  %v28058_v30 = vcombine.low %v474_v52, %v482_v0  ;;  %v28060_v33 = vcombine.high %v490_v16, %v498_v15  ;;  %v514_v61 = vld [vmem:[%s25920_s28 + $0x6e8] sm:$0xff] }
 0x30e   : > { %7003 = vmatmul.mubr.bf16.gmra.mrb[32].mxu0 %v28028_v12  ;;  %8547 = vmatmul.mubr.bf16.gmra.mrb[32].mxu1 %v28028_v12  ;;  %32583 = vst [vmem:[#allocation135_spill] sm:$0xff] %v28048_v23  ;;  %32584 = vst [vmem:[#allocation136_spill] sm:$0xff] %v28050_v11  ;;  %v522_v52 = vld [vmem:[%s25920_s28 + $0x728] sm:$0xff] }
 0x30f   : > { %7012 = vmatprep.mubr.bf16.mxu0 %v28030_v46  ;;  %8556 = vmatprep.mubr.bf16.mxu1 %v28030_v46  ;;  %32585 = vst [vmem:[#allocation137_spill] sm:$0xff] %v28058_v30  ;;  %32586 = vst [vmem:[#allocation138_spill] sm:$0xff] %v28060_v33  ;;  %v530_v0 = vld [vmem:[%s25920_s28 + $0x768] sm:$0xff] }
 0x310   : > { %v24832_v46 = vld [vmem:[%s32239_s3 + $0x11d4] ss:$20 sps:$4 sm:$0xff]  }
 0x316   : > { %7013 = vmatmul.mubr.bf16.gmra.mrb[36].mxu0 %v28038_v6  ;;  %8557 = vmatmul.mubr.bf16.gmra.mrb[36].mxu1 %v28038_v6  ;;  %v339_v6 = vld [vmem:[%s25920_s28 + $0x170] sm:$0xff] }
 0x317   : > { %7022 = vmatprep.mubr.bf16.mxu0 %v28040_v25  ;;  %8566 = vmatprep.mubr.bf16.mxu1 %v28040_v25  ;;  %v24824_v25 = vld [vmem:[%s32239_s3 + $0x11a8] ss:$20 sps:$4 sm:$0xff]  }
 0x31e   : > { %7023 = vmatmul.mubr.bf16.gmra.mrb[40].mxu0 %v28048_v23  ;;  %8567 = vmatmul.mubr.bf16.gmra.mrb[40].mxu1 %v28048_v23  ;;  %v28070_v23 = vcombine.high %v506_v47, %v514_v61 }
 0x31f   : > { %7032 = vmatprep.mubr.bf16.mxu0 %v28050_v11  ;;  %8576 = vmatprep.mubr.bf16.mxu1 %v28050_v11  ;;  %v28068_v11 = vcombine.low %v490_v16, %v498_v15  ;;  %v538_v16 = vld [vmem:[%s25920_s28 + $0x7a8] sm:$0xff] }
 0x320   : > { %32588 = vst [vmem:[#allocation140_spill] sm:$0xff] %v28070_v23  ;;  %v546_v15 = vld [vmem:[%s25920_s28 + $0x7e8] sm:$0xff] }
 0x321   : > { %32587 = vst [vmem:[#allocation139_spill] sm:$0xff] %v28068_v11 }
 0x326   : > { %7033 = vmatmul.mubr.bf16.gmra.mrb[44].mxu0 %v28058_v30  ;;  %8577 = vmatmul.mubr.bf16.gmra.mrb[44].mxu1 %v28058_v30  ;;  %v28080_v30 = vcombine.high %v522_v52, %v530_v0 }
 0x327   : > { %7042 = vmatprep.mubr.bf16.mxu0 %v28060_v33  ;;  %8586 = vmatprep.mubr.bf16.mxu1 %v28060_v33  ;;  %v28078_v33 = vcombine.low %v506_v47, %v514_v61  ;;  %v299_v47 = vld [vmem:[%s25920_s28 + $0x30] sm:$0xff] }
 0x328   : > { %32590 = vst [vmem:[#allocation142_spill] sm:$0xff] %v28080_v30  ;;  %v307_v61 = vld [vmem:[%s25920_s28 + $0x70] sm:$0xff] }
 0x329   : > { %32589 = vst [vmem:[#allocation141_spill] sm:$0xff] %v28078_v33 }
 0x32e   : > { %7043 = vmatmul.mubr.bf16.gmra.mrb[48].mxu0 %v28068_v11  ;;  %8587 = vmatmul.mubr.bf16.gmra.mrb[48].mxu1 %v28068_v11  ;;  %v28090_v11 = vcombine.high %v538_v16, %v546_v15 }
 0x32f   : > { %7052 = vmatprep.mubr.bf16.mxu0 %v28070_v23  ;;  %8596 = vmatprep.mubr.bf16.mxu1 %v28070_v23  ;;  %v28088_v23 = vcombine.low %v522_v52, %v530_v0  ;;  %v315_v52 = vld [vmem:[%s25920_s28 + $0xb0] sm:$0xff] }
 0x330   : > { %32592 = vst [vmem:[#allocation144_spill] sm:$0xff] %v28090_v11  ;;  %v323_v0 = vld [vmem:[%s25920_s28 + $0xf0] sm:$0xff] }
 0x331   : > { %32591 = vst [vmem:[#allocation143_spill] sm:$0xff] %v28088_v23  ;;  %v28142_v12 = vcombine.low %v315_v52, %v323_v0 }
 0x333   : > { %32597 = vst [vmem:[#allocation149_spill] sm:$0xff] %v28142_v12 }
 0x336   : > { %7053 = vmatmul.mubr.bf16.gmra.mrb[52].mxu0 %v28078_v33  ;;  %8597 = vmatmul.mubr.bf16.gmra.mrb[52].mxu1 %v28078_v33  ;;  %v28098_v33 = vcombine.low %v538_v16, %v546_v15  ;;  %v24821_v16 = vld [vmem:[%s32239_s3 + $0x1188] ss:$20 sps:$4 sm:$0xff]   ;;  %v28114_v15 = vcombine.low %v299_v47, %v307_v61 }
 0x337   : > { %7062 = vmatprep.mubr.bf16.mxu0 %v28080_v30  ;;  %8606 = vmatprep.mubr.bf16.mxu1 %v28080_v30  ;;  %v28100_v30 = vcombine.high %v299_v47, %v307_v61  ;;  %v24827_v47 = vld [vmem:[%s32239_s3 + $0x11b0] ss:$20 sps:$4 sm:$0xff]  }
 0x338   : > { %32593 = vst [vmem:[#allocation145_spill] sm:$0xff] %v28098_v33  ;;  %32595 = vst [vmem:[#allocation147_spill] sm:$0xff] %v28114_v15  ;;  %v331_v61 = vld [vmem:[%s25920_s28 + $0x130] sm:$0xff] }
 0x339   : > { %32594 = vst [vmem:[#allocation146_spill] sm:$0xff] %v28100_v30  ;;  %v28150_v2 = vcombine.high %v331_v61, %v339_v6 }
 0x33b   : > { %32598 = vst [vmem:[#allocation150_spill] sm:$0xff] %v28150_v2 }
 0x33e   : > { %7063 = vmatmul.mubr.bf16.gmra.mrb[56].mxu0 %v28088_v23  ;;  %8607 = vmatmul.mubr.bf16.gmra.mrb[56].mxu1 %v28088_v23  ;;  %v28122_v23 = vcombine.high %v315_v52, %v323_v0  ;;  %v355_v52 = vld [vmem:[%s25920_s28 + $0x1f0] sm:$0xff] }
 0x33f   : > { %7072 = vmatprep.mubr.bf16.mxu0 %v28090_v11  ;;  %8616 = vmatprep.mubr.bf16.mxu1 %v28090_v11  ;;  %v24818_v11 = vld [vmem:[%s32239_s3 + $0x1180] ss:$20 sps:$4 sm:$0xff]  }
 0x340   : > { %32596 = vst [vmem:[#allocation148_spill] sm:$0xff] %v28122_v23  ;;  %v24839_v0 = vld [vmem:[%s32239_s3 + $0x1200] ss:$20 sps:$4 sm:$0xff]  }
 0x346   : > { %7073 = vmatmul.mubr.bf16.gmra.mrb[60].mxu0 %v28098_v33  ;;  %8617 = vmatmul.mubr.bf16.gmra.mrb[60].mxu1 %v28098_v33  ;;  %v24826_v33 = vld [vmem:[%s32239_s3 + $0x11ac] ss:$20 sps:$4 sm:$0xff]  }
 0x347   : > { %7115 = vmatprep.mubr.bf16.mxu0 %v28100_v30  ;;  %8659 = vmatprep.mubr.bf16.mxu1 %v28100_v30  ;;  %v24829_v30 = vld [vmem:[%s32239_s3 + $0x11b4] ss:$20 sps:$4 sm:$0xff]  }
 0x34e   : > { %7116 = vmatmul.mubr.bf16.vlgmr.msra.gmra.mrb[0].mxu0 %v28114_v15  ;;  %8660 = vmatmul.mubr.bf16.vlgmr.msra.gmra.mrb[0].mxu1 %v28114_v15  ;;  %v24835_v15 = vld [vmem:[%s32239_s3 + $0x11dc] ss:$20 sps:$4 sm:$0xff]  }
 0x34f   : > { %7277 = vmatpush1.bf16.msra.mxu0 %v24818_v11  ;;  %8821 = vmatpush1.bf16.msra.mxu1 %v24821_v16  ;;  %v24830_v11 = vld [vmem:[%s32239_s3 + $0x11d0] ss:$20 sps:$4 sm:$0xff]   ;;  %v24833_v16 = vld [vmem:[%s32239_s3 + $0x11d8] ss:$20 sps:$4 sm:$0xff]  }
 0x350   : > { %7125 = vmatprep.mubr.bf16.mxu0 %v28122_v23  ;;  %8669 = vmatprep.mubr.bf16.mxu1 %v28122_v23  ;;  %v24838_v23 = vld [vmem:[%s32239_s3 + $0x11fc] ss:$20 sps:$4 sm:$0xff]  }
 0x351   : > { %7278 = vmatprep.subr.bf16.mxu0 %v24826_v33  ;;  %8822 = vmatprep.subr.bf16.mxu1 %v24829_v30  ;;  %v24841_v30 = vld [vmem:[%s32239_s3 + $0x1204] ss:$20 sps:$4 sm:$0xff]   ;;  %v347_v33 = vld [vmem:[%s25920_s28 + $0x1b0] sm:$0xff] }
 0x352   : > { %v28184_v3 = vcombine.high %v347_v33, %v355_v52 }
 0x353   : > { %7279 = vmatpush1.bf16.msra.mxu0 %v24824_v25  ;;  %8823 = vmatpush1.bf16.msra.mxu1 %v24827_v47  ;;  %v24836_v25 = vld [vmem:[%s32239_s3 + $0x11f8] ss:$20 sps:$4 sm:$0xff]   ;;  %v28176_v47 = vcombine.low %v331_v61, %v339_v6  ;;  %v363_v6 = vld [vmem:[%s25920_s28 + $0x230] sm:$0xff] }
 0x354   : > { %7280 = vmatprep.subr.bf16.mxu0 %v24832_v46  ;;  %8824 = vmatprep.subr.bf16.mxu1 %v24835_v15  ;;  %v24844_v46 = vld [vmem:[%s32239_s3 + $0x1224] ss:$20 sps:$4 sm:$0xff]   ;;  %v24847_v15 = vld [vmem:[%s32239_s3 + $0x122c] ss:$20 sps:$4 sm:$0xff]   ;;  %32600 = vst [vmem:[#allocation152_spill] sm:$0xff] %v28184_v3  ;;  %v371_v61 = vld [vmem:[%s25920_s28 + $0x270] sm:$0xff] }
 0x355   : > { %32599 = vst [vmem:[#allocation151_spill] sm:$0xff] %v28176_v47 }
 0x356   : > { %7126 = vmatmul.mubr.bf16.gmra.mrb[4].mxu0 %v28142_v12  ;;  %8670 = vmatmul.mubr.bf16.gmra.mrb[4].mxu1 %v28142_v12  ;;  %v24845_v12 = vld [vmem:[%s32239_s3 + $0x1228] ss:$20 sps:$4 sm:$0xff]  }
 0x357   : > { %7135 = vmatprep.mubr.bf16.mxu0 %v28150_v2  ;;  %8679 = vmatprep.mubr.bf16.mxu1 %v28150_v2  ;;  %v24842_v2 = vld [vmem:[%s32239_s3 + $0x1220] ss:$20 sps:$4 sm:$0xff]  }
 0x358   : > { %7281 = vmatpush1.bf16.msra.mxu0 %v24830_v11  ;;  %8825 = vmatpush1.bf16.msra.mxu1 %v24833_v16  ;;  %v24850_v11 = vld [vmem:[%s32239_s3 + $0x124c] ss:$20 sps:$4 sm:$0xff]   ;;  %v24848_v16 = vld [vmem:[%s32239_s3 + $0x1248] ss:$20 sps:$4 sm:$0xff]  }
 0x359   : > { %7282 = vmatprep.subr.bf16.mxu0 %v24838_v23  ;;  %8826 = vmatprep.subr.bf16.mxu1 %v24841_v30  ;;  %v24853_v23 = vld [vmem:[%s32239_s3 + $0x1254] ss:$20 sps:$4 sm:$0xff]   ;;  %v24851_v30 = vld [vmem:[%s32239_s3 + $0x1250] ss:$20 sps:$4 sm:$0xff]  }
 0x35c   : > { %7283 = vmatpush1.bf16.msra.mxu0 %v24836_v25  ;;  %8827 = vmatpush1.bf16.msra.mxu1 %v24839_v0  ;;  %v24856_v25 = vld [vmem:[%s32239_s3 + $0x1274] ss:$20 sps:$4 sm:$0xff]   ;;  %v24859_v0 = vld [vmem:[%s32239_s3 + $0x127c] ss:$20 sps:$4 sm:$0xff]  }
 0x35d   : > { %7284 = vmatprep.subr.bf16.mxu0 %v24844_v46  ;;  %8828 = vmatprep.subr.bf16.mxu1 %v24847_v15  ;;  %v28210_v46 = vcombine.low %v347_v33, %v355_v52  ;;  %v24854_v15 = vld [vmem:[%s32239_s3 + $0x1270] ss:$20 sps:$4 sm:$0xff]  }
 0x35e   : > { %7136 = vmatmul.mubr.bf16.gmra.mrb[8].mxu0 %v28176_v47  ;;  %8680 = vmatmul.mubr.bf16.gmra.mrb[8].mxu1 %v28176_v47  ;;  %v28218_v47 = vcombine.high %v363_v6, %v371_v61  ;;  %v379_v33 = vld [vmem:[%s25920_s28 + $0x2b0] sm:$0xff] }
 0x35f   : > { %7145 = vmatprep.mubr.bf16.mxu0 %v28184_v3  ;;  %8689 = vmatprep.mubr.bf16.mxu1 %v28184_v3  ;;  %32601 = vst [vmem:[#allocation153_spill] sm:$0xff] %v28210_v46  ;;  %v24857_v3 = vld [vmem:[%s32239_s3 + $0x1278] ss:$20 sps:$4 sm:$0xff]   ;;  %v387_v52 = vld [vmem:[%s25920_s28 + $0x2f0] sm:$0xff] }
 0x360   : > { %7285 = vmatpush1.bf16.msra.mxu0 %v24842_v2  ;;  %8829 = vmatpush1.bf16.msra.mxu1 %v24845_v12  ;;  %32602 = vst [vmem:[#allocation154_spill] sm:$0xff] %v28218_v47  ;;  %v24862_v2 = vld [vmem:[%s32239_s3 + $0x129c] ss:$20 sps:$4 sm:$0xff]   ;;  %v24865_v12 = vld [vmem:[%s32239_s3 + $0x12a4] ss:$20 sps:$4 sm:$0xff]  }
 0x361   : > { %7286 = vmatprep.subr.bf16.mxu0 %v24850_v11  ;;  %8830 = vmatprep.subr.bf16.mxu1 %v24853_v23  ;;  %v24860_v11 = vld [vmem:[%s32239_s3 + $0x1298] ss:$20 sps:$4 sm:$0xff]   ;;  %v24863_v23 = vld [vmem:[%s32239_s3 + $0x12a0] ss:$20 sps:$4 sm:$0xff]  }
 0x364   : > { %7287 = vmatpush1.bf16.msra.mxu0 %v24848_v16  ;;  %8831 = vmatpush1.bf16.msra.mxu1 %v24851_v30  ;;  %v24868_v16 = vld [vmem:[%s32239_s3 + $0x12c4] ss:$20 sps:$4 sm:$0xff]   ;;  %v24871_v30 = vld [vmem:[%s32239_s3 + $0x12cc] ss:$20 sps:$4 sm:$0xff]  }
 0x365   : > { %7288 = vmatprep.subr.bf16.mxu0 %v24856_v25  ;;  %8832 = vmatprep.subr.bf16.mxu1 %v24859_v0  ;;  %v28244_v25 = vcombine.low %v363_v6, %v371_v61  ;;  %v24866_v0 = vld [vmem:[%s32239_s3 + $0x12c0] ss:$20 sps:$4 sm:$0xff]  }
 0x366   : > { %7146 = vmatmul.mubr.bf16.gmra.mrb[12].mxu0 %v28210_v46  ;;  %8690 = vmatmul.mubr.bf16.gmra.mrb[12].mxu1 %v28210_v46  ;;  %v28252_v46 = vcombine.high %v379_v33, %v387_v52  ;;  %v395_v6 = vld [vmem:[%s25920_s28 + $0x330] sm:$0xff] }
 0x367   : > { %7155 = vmatprep.mubr.bf16.mxu0 %v28218_v47  ;;  %8699 = vmatprep.mubr.bf16.mxu1 %v28218_v47  ;;  %32603 = vst [vmem:[#allocation155_spill] sm:$0xff] %v28244_v25  ;;  %v24869_v47 = vld [vmem:[%s32239_s3 + $0x12c8] ss:$20 sps:$4 sm:$0xff]   ;;  %v403_v61 = vld [vmem:[%s25920_s28 + $0x370] sm:$0xff] }
 0x368   : > { %7289 = vmatpush1.bf16.msra.mxu0 %v24854_v15  ;;  %8833 = vmatpush1.bf16.msra.mxu1 %v24857_v3  ;;  %32604 = vst [vmem:[#allocation156_spill] sm:$0xff] %v28252_v46  ;;  %v24874_v15 = vld [vmem:[%s32239_s3 + $0x12ec] ss:$20 sps:$4 sm:$0xff]   ;;  %v24877_v3 = vld [vmem:[%s32239_s3 + $0x12f4] ss:$20 sps:$4 sm:$0xff]  }
 0x369   : > { %7290 = vmatprep.subr.bf16.mxu0 %v24862_v2  ;;  %8834 = vmatprep.subr.bf16.mxu1 %v24865_v12  ;;  %v24872_v2 = vld [vmem:[%s32239_s3 + $0x12e8] ss:$20 sps:$4 sm:$0xff]   ;;  %v24875_v12 = vld [vmem:[%s32239_s3 + $0x12f0] ss:$20 sps:$4 sm:$0xff]  }
 0x36c   : > { %7291 = vmatpush1.bf16.msra.mxu0 %v24860_v11  ;;  %8835 = vmatpush1.bf16.msra.mxu1 %v24863_v23  ;;  %v24880_v11 = vld [vmem:[%s32239_s3 + $0x1314] ss:$20 sps:$4 sm:$0xff]   ;;  %v24883_v23 = vld [vmem:[%s32239_s3 + $0x131c] ss:$20 sps:$4 sm:$0xff]  }
 0x36d   : > { %7292 = vmatprep.subr.bf16.mxu0 %v24868_v16  ;;  %8836 = vmatprep.subr.bf16.mxu1 %v24871_v30  ;;  %v28278_v16 = vcombine.low %v379_v33, %v387_v52  ;;  %v24878_v30 = vld [vmem:[%s32239_s3 + $0x1310] ss:$20 sps:$4 sm:$0xff]  }
 0x36e   : > { %7156 = vmatmul.mubr.bf16.gmra.mrb[16].mxu0 %v28244_v25  ;;  %8700 = vmatmul.mubr.bf16.gmra.mrb[16].mxu1 %v28244_v25  ;;  %v28286_v25 = vcombine.high %v395_v6, %v403_v61  ;;  %v411_v33 = vld [vmem:[%s25920_s28 + $0x3b0] sm:$0xff] }
 0x36f   : > { %7165 = vmatprep.mubr.bf16.mxu0 %v28252_v46  ;;  %8709 = vmatprep.mubr.bf16.mxu1 %v28252_v46  ;;  %32605 = vst [vmem:[#allocation157_spill] sm:$0xff] %v28278_v16  ;;  %v24881_v46 = vld [vmem:[%s32239_s3 + $0x1318] ss:$20 sps:$4 sm:$0xff]   ;;  %v419_v52 = vld [vmem:[%s25920_s28 + $0x3f0] sm:$0xff] }
 0x370   : > { %7293 = vmatpush1.bf16.msra.mxu0 %v24866_v0  ;;  %8837 = vmatpush1.bf16.msra.mxu1 %v24869_v47  ;;  %32606 = vst [vmem:[#allocation158_spill] sm:$0xff] %v28286_v25  ;;  %v24886_v0 = vld [vmem:[%s32239_s3 + $0x133c] ss:$20 sps:$4 sm:$0xff]   ;;  %v24889_v47 = vld [vmem:[%s32239_s3 + $0x1344] ss:$20 sps:$4 sm:$0xff]  }
 0x371   : > { %7294 = vmatprep.subr.bf16.mxu0 %v24874_v15  ;;  %8838 = vmatprep.subr.bf16.mxu1 %v24877_v3  ;;  %v24884_v15 = vld [vmem:[%s32239_s3 + $0x1338] ss:$20 sps:$4 sm:$0xff]   ;;  %v24887_v3 = vld [vmem:[%s32239_s3 + $0x1340] ss:$20 sps:$4 sm:$0xff]  }
 0x374   : > { %7295 = vmatpush1.bf16.msra.mxu0 %v24872_v2  ;;  %8839 = vmatpush1.bf16.msra.mxu1 %v24875_v12  ;;  %v24892_v2 = vld [vmem:[%s32239_s3 + $0x1364] ss:$20 sps:$4 sm:$0xff]   ;;  %v24895_v12 = vld [vmem:[%s32239_s3 + $0x136c] ss:$20 sps:$4 sm:$0xff]  }
 0x375   : > { %7296 = vmatprep.subr.bf16.mxu0 %v24880_v11  ;;  %8840 = vmatprep.subr.bf16.mxu1 %v24883_v23  ;;  %v28312_v11 = vcombine.low %v395_v6, %v403_v61  ;;  %v24890_v23 = vld [vmem:[%s32239_s3 + $0x1360] ss:$20 sps:$4 sm:$0xff]  }
 0x376   : > { %7166 = vmatmul.mubr.bf16.gmra.mrb[20].mxu0 %v28278_v16  ;;  %8710 = vmatmul.mubr.bf16.gmra.mrb[20].mxu1 %v28278_v16  ;;  %v28320_v16 = vcombine.high %v411_v33, %v419_v52  ;;  %v427_v6 = vld [vmem:[%s25920_s28 + $0x430] sm:$0xff] }
 0x377   : > { %7175 = vmatprep.mubr.bf16.mxu0 %v28286_v25  ;;  %8719 = vmatprep.mubr.bf16.mxu1 %v28286_v25  ;;  %32607 = vst [vmem:[#allocation159_spill] sm:$0xff] %v28312_v11  ;;  %v24893_v25 = vld [vmem:[%s32239_s3 + $0x1368] ss:$20 sps:$4 sm:$0xff]   ;;  %v435_v61 = vld [vmem:[%s25920_s28 + $0x470] sm:$0xff] }
 0x378   : > { %7297 = vmatpush1.bf16.msra.mxu0 %v24878_v30  ;;  %8841 = vmatpush1.bf16.msra.mxu1 %v24881_v46  ;;  %32608 = vst [vmem:[#allocation160_spill] sm:$0xff] %v28320_v16  ;;  %v24898_v30 = vld [vmem:[%s32239_s3 + $0x138c] ss:$20 sps:$4 sm:$0xff]   ;;  %v24901_v46 = vld [vmem:[%s32239_s3 + $0x1394] ss:$20 sps:$4 sm:$0xff]  }
 0x379   : > { %7298 = vmatprep.subr.bf16.mxu0 %v24886_v0  ;;  %8842 = vmatprep.subr.bf16.mxu1 %v24889_v47  ;;  %v24896_v0 = vld [vmem:[%s32239_s3 + $0x1388] ss:$20 sps:$4 sm:$0xff]   ;;  %v24899_v47 = vld [vmem:[%s32239_s3 + $0x1390] ss:$20 sps:$4 sm:$0xff]  }
 0x37c   : > { %7299 = vmatpush1.bf16.msra.mxu0 %v24884_v15  ;;  %8843 = vmatpush1.bf16.msra.mxu1 %v24887_v3  ;;  %v24904_v15 = vld [vmem:[%s32239_s3 + $0x13b4] ss:$20 sps:$4 sm:$0xff]   ;;  %v24907_v3 = vld [vmem:[%s32239_s3 + $0x13bc] ss:$20 sps:$4 sm:$0xff]  }
 0x37d   : > { %7300 = vmatprep.subr.bf16.mxu0 %v24892_v2  ;;  %8844 = vmatprep.subr.bf16.mxu1 %v24895_v12  ;;  %v28346_v2 = vcombine.low %v411_v33, %v419_v52  ;;  %v24902_v12 = vld [vmem:[%s32239_s3 + $0x13b0] ss:$20 sps:$4 sm:$0xff]  }
 0x37e   : > { %7176 = vmatmul.mubr.bf16.gmra.mrb[24].mxu0 %v28312_v11  ;;  %8720 = vmatmul.mubr.bf16.gmra.mrb[24].mxu1 %v28312_v11  ;;  %v28354_v11 = vcombine.high %v427_v6, %v435_v61  ;;  %v443_v33 = vld [vmem:[%s25920_s28 + $0x4b0] sm:$0xff] }
 0x37f   : > { %7185 = vmatprep.mubr.bf16.mxu0 %v28320_v16  ;;  %8729 = vmatprep.mubr.bf16.mxu1 %v28320_v16  ;;  %32609 = vst [vmem:[#allocation161_spill] sm:$0xff] %v28346_v2  ;;  %v24905_v16 = vld [vmem:[%s32239_s3 + $0x13b8] ss:$20 sps:$4 sm:$0xff]   ;;  %v451_v52 = vld [vmem:[%s25920_s28 + $0x4f0] sm:$0xff] }
 0x380   : > { %7301 = vmatpush1.bf16.msra.mxu0 %v24890_v23  ;;  %8845 = vmatpush1.bf16.msra.mxu1 %v24893_v25  ;;  %32610 = vst [vmem:[#allocation162_spill] sm:$0xff] %v28354_v11  ;;  %v24910_v23 = vld [vmem:[%s32239_s3 + $0x13dc] ss:$20 sps:$4 sm:$0xff]   ;;  %v24913_v25 = vld [vmem:[%s32239_s3 + $0x13e4] ss:$20 sps:$4 sm:$0xff]  }
 0x381   : > { %7302 = vmatprep.subr.bf16.mxu0 %v24898_v30  ;;  %8846 = vmatprep.subr.bf16.mxu1 %v24901_v46  ;;  %v24908_v30 = vld [vmem:[%s32239_s3 + $0x13d8] ss:$20 sps:$4 sm:$0xff]   ;;  %v24911_v46 = vld [vmem:[%s32239_s3 + $0x13e0] ss:$20 sps:$4 sm:$0xff]  }
 0x384   : > { %7303 = vmatpush1.bf16.msra.mxu0 %v24896_v0  ;;  %8847 = vmatpush1.bf16.msra.mxu1 %v24899_v47  ;;  %v24914_v0 = vld [vmem:[%s32239_s3 + $0x150] ss:$20 sps:$4 sm:$0xff]  }
 0x385   : > { %7304 = vmatprep.subr.bf16.mxu0 %v24904_v15  ;;  %8848 = vmatprep.subr.bf16.mxu1 %v24907_v3  ;;  %v24915_v47 = vld [vmem:[%s32239_s3 + $0x3d0] ss:$20 sps:$4 sm:$0xff]   ;;  %v28380_v15 = vcombine.low %v427_v6, %v435_v61  ;;  %v28382_v3 = vcombine.high %v443_v33, %v451_v52  ;;  %v28390_v61 = vcombine.low %v443_v33, %v451_v52 }
 0x386   : > { %7186 = vmatmul.mubr.bf16.gmra.mrb[28].mxu0 %v28346_v2  ;;  %8730 = vmatmul.mubr.bf16.gmra.mrb[28].mxu1 %v28346_v2  ;;  %v467_v6 = vld [vmem:[%s25920_s28 + $0x570] sm:$0xff] }
 0x387   : > { %7195 = vmatprep.mubr.bf16.mxu0 %v28354_v11  ;;  %8739 = vmatprep.mubr.bf16.mxu1 %v28354_v11  ;;  %32611 = vst [vmem:[#allocation163_spill] sm:$0xff] %v28380_v15  ;;  %32612 = vst [vmem:[#allocation164_spill] sm:$0xff] %v28382_v3  ;;  %v491_v33 = vld [vmem:[%s25920_s28 + $0x630] sm:$0xff] }
 0x388   : > { %7305 = vmatpush1.bf16.msra.mxu0 %v24902_v12  ;;  %8849 = vmatpush1.bf16.msra.mxu1 %v24905_v16  ;;  %v459_v16 = vld [vmem:[%s25920_s28 + $0x530] sm:$0xff]  ;;  %32613 = vst [vmem:[#allocation165_spill] sm:$0xff] %v28390_v61 }
 0x389   : > { %7306 = vmatprep.subr.bf16.mxu0 %v24910_v23  ;;  %8850 = vmatprep.subr.bf16.mxu1 %v24913_v25  ;;  %v28392_v12 = vcombine.high %v459_v16, %v467_v6  ;;  %v475_v23 = vld [vmem:[%s25920_s28 + $0x5b0] sm:$0xff] }
 0x38a   : > { %v483_v25 = vld [vmem:[%s25920_s28 + $0x5f0] sm:$0xff] }
 0x38b   : > { %32614 = vst [vmem:[#allocation166_spill] sm:$0xff] %v28392_v12  ;;  %v499_v52 = vld [vmem:[%s25920_s28 + $0x670] sm:$0xff] }
 0x38c   : > { %7307 = vmatpush1.bf16.msra.mxu0 %v24908_v30  ;;  %8851 = vmatpush1.bf16.msra.mxu1 %v24911_v46  ;;  %v28400_v30 = vcombine.low %v459_v16, %v467_v6  ;;  %v28402_v46 = vcombine.high %v475_v23, %v483_v25  ;;  %v507_v16 = vld [vmem:[%s25920_s28 + $0x6b0] sm:$0xff] }
 0x38d   : > { %21421 = vmatprep.subr.bf16.mxu0 %v24914_v0  ;;  %21533 = vmatprep.subr.bf16.mxu1 %v24915_v47  ;;  %v28410_v0 = vcombine.low %v475_v23, %v483_v25  ;;  %v28412_v47 = vcombine.high %v491_v33, %v499_v52  ;;  %v515_v6 = vld [vmem:[%s25920_s28 + $0x6f0] sm:$0xff] }
 0x38e   : > { %7196 = vmatmul.mubr.bf16.gmra.mrb[32].mxu0 %v28380_v15  ;;  %8740 = vmatmul.mubr.bf16.gmra.mrb[32].mxu1 %v28380_v15  ;;  %32615 = vst [vmem:[#allocation167_spill] sm:$0xff] %v28400_v30  ;;  %32616 = vst [vmem:[#allocation168_spill] sm:$0xff] %v28402_v46  ;;  %v523_v23 = vld [vmem:[%s25920_s28 + $0x730] sm:$0xff] }
 0x38f   : > { %7205 = vmatprep.mubr.bf16.mxu0 %v28382_v3  ;;  %8749 = vmatprep.mubr.bf16.mxu1 %v28382_v3  ;;  %32617 = vst [vmem:[#allocation169_spill] sm:$0xff] %v28410_v0  ;;  %32618 = vst [vmem:[#allocation170_spill] sm:$0xff] %v28412_v47  ;;  %v531_v25 = vld [vmem:[%s25920_s28 + $0x770] sm:$0xff]  ;;  %v340_v3 = vld [vmem:[%s25920_s28 + $0x178] sm:$0xff] }
 0x390   : > { %v24922_v15 = vld [vmem:[%s32239_s3 + $0x1a0] ss:$20 sps:$4 sm:$0xff]  }
 0x391   : > { %v24923_v11 = vld [vmem:[%s32239_s3 + $0x420] ss:$20 sps:$4 sm:$0xff]  }
 0x396   : > { %7206 = vmatmul.mubr.bf16.gmra.mrb[36].mxu0 %v28390_v61  ;;  %8750 = vmatmul.mubr.bf16.gmra.mrb[36].mxu1 %v28390_v61  ;;  %v332_v61 = vld [vmem:[%s25920_s28 + $0x138] sm:$0xff] }
 0x397   : > { %7215 = vmatprep.mubr.bf16.mxu0 %v28392_v12  ;;  %8759 = vmatprep.mubr.bf16.mxu1 %v28392_v12  ;;  %v28432_v12 = vcombine.high %v523_v23, %v531_v25 }
 0x399   : > { %32622 = vst [vmem:[#allocation174_spill] sm:$0xff] %v28432_v12 }
 0x39e   : > { %7216 = vmatmul.mubr.bf16.gmra.mrb[40].mxu0 %v28400_v30  ;;  %8760 = vmatmul.mubr.bf16.gmra.mrb[40].mxu1 %v28400_v30  ;;  %v28422_v30 = vcombine.high %v507_v16, %v515_v6 }
 0x39f   : > { %7225 = vmatprep.mubr.bf16.mxu0 %v28402_v46  ;;  %8769 = vmatprep.mubr.bf16.mxu1 %v28402_v46  ;;  %v28420_v46 = vcombine.low %v491_v33, %v499_v52  ;;  %v539_v33 = vld [vmem:[%s25920_s28 + $0x7b0] sm:$0xff] }
 0x3a0   : > { %32620 = vst [vmem:[#allocation172_spill] sm:$0xff] %v28422_v30  ;;  %v547_v52 = vld [vmem:[%s25920_s28 + $0x7f0] sm:$0xff] }
 0x3a1   : > { %32619 = vst [vmem:[#allocation171_spill] sm:$0xff] %v28420_v46 }
 0x3a6   : > { %7226 = vmatmul.mubr.bf16.gmra.mrb[44].mxu0 %v28410_v0  ;;  %8770 = vmatmul.mubr.bf16.gmra.mrb[44].mxu1 %v28410_v0  ;;  %v28430_v0 = vcombine.low %v507_v16, %v515_v6  ;;  %v300_v16 = vld [vmem:[%s25920_s28 + $0x38] sm:$0xff] }
 0x3a7   : > { %7235 = vmatprep.mubr.bf16.mxu0 %v28412_v47  ;;  %8779 = vmatprep.mubr.bf16.mxu1 %v28412_v47  ;;  %v308_v6 = vld [vmem:[%s25920_s28 + $0x78] sm:$0xff] }
 0x3a8   : > { %32621 = vst [vmem:[#allocation173_spill] sm:$0xff] %v28430_v0  ;;  %v28452_v47 = vcombine.high %v300_v16, %v308_v6 }
 0x3ae   : > { %7236 = vmatmul.mubr.bf16.gmra.mrb[48].mxu0 %v28420_v46  ;;  %8780 = vmatmul.mubr.bf16.gmra.mrb[48].mxu1 %v28420_v46  ;;  %v28442_v46 = vcombine.high %v539_v33, %v547_v52 }
 0x3af   : > { %7245 = vmatprep.mubr.bf16.mxu0 %v28422_v30  ;;  %8789 = vmatprep.mubr.bf16.mxu1 %v28422_v30  ;;  %v28440_v30 = vcombine.low %v523_v23, %v531_v25  ;;  %v316_v23 = vld [vmem:[%s25920_s28 + $0xb8] sm:$0xff] }
 0x3b0   : > { %32624 = vst [vmem:[#allocation176_spill] sm:$0xff] %v28442_v46  ;;  %v324_v25 = vld [vmem:[%s25920_s28 + $0xf8] sm:$0xff] }
 0x3b1   : > { %32623 = vst [vmem:[#allocation175_spill] sm:$0xff] %v28440_v30  ;;  %v28494_v2 = vcombine.low %v316_v23, %v324_v25 }
 0x3b3   : > { %32628 = vst [vmem:[#allocation180_spill] sm:$0xff] %v28494_v2 }
 0x3b6   : > { %7246 = vmatmul.mubr.bf16.gmra.mrb[52].mxu0 %v28430_v0  ;;  %8790 = vmatmul.mubr.bf16.gmra.mrb[52].mxu1 %v28430_v0  ;;  %v28450_v0 = vcombine.low %v539_v33, %v547_v52  ;;  %v24917_v33 = vld [vmem:[%s32239_s3 + $0x290] ss:$20 sps:$4 sm:$0xff]   ;;  %v28466_v52 = vcombine.low %v300_v16, %v308_v6  ;;  %v24920_v16 = vld [vmem:[%s32239_s3 + $0x38] ss:$20 sps:$4 sm:$0xff]  }
 0x3b7   : > { %7255 = vmatprep.mubr.bf16.mxu0 %v28432_v12  ;;  %8799 = vmatprep.mubr.bf16.mxu1 %v28432_v12  ;;  %v28474_v12 = vcombine.high %v316_v23, %v324_v25  ;;  %v24921_v6 = vld [vmem:[%s32239_s3 + $0x2b8] ss:$20 sps:$4 sm:$0xff]  }
 0x3b8   : > { %32625 = vst [vmem:[#allocation177_spill] sm:$0xff] %v28450_v0  ;;  %32626 = vst [vmem:[#allocation178_spill] sm:$0xff] %v28466_v52  ;;  %v348_v23 = vld [vmem:[%s25920_s28 + $0x1b8] sm:$0xff] }
 0x3b9   : > { %32627 = vst [vmem:[#allocation179_spill] sm:$0xff] %v28474_v12  ;;  %v356_v25 = vld [vmem:[%s25920_s28 + $0x1f8] sm:$0xff] }
 0x3be   : > { %7256 = vmatmul.mubr.bf16.gmra.mrb[56].mxu0 %v28440_v30  ;;  %8800 = vmatmul.mubr.bf16.gmra.mrb[56].mxu1 %v28440_v30  ;;  %v24919_v30 = vld [vmem:[%s32239_s3 + $0x3f8] ss:$20 sps:$4 sm:$0xff]  }
 0x3bf   : > { %7265 = vmatprep.mubr.bf16.mxu0 %v28442_v46  ;;  %8809 = vmatprep.mubr.bf16.mxu1 %v28442_v46  ;;  %v24916_v46 = vld [vmem:[%s32239_s3 + $0x10] ss:$20 sps:$4 sm:$0xff]  }
 0x3c6   : > { %7266 = vmatmul.mubr.bf16.gmra.mrb[60].mxu0 %v28450_v0  ;;  %8810 = vmatmul.mubr.bf16.gmra.mrb[60].mxu1 %v28450_v0  ;;  %v24918_v0 = vld [vmem:[%s32239_s3 + $0x178] ss:$20 sps:$4 sm:$0xff]  }
 0x3c7   : > { %7308 = vmatprep.mubr.bf16.mxu0 %v28452_v47  ;;  %8852 = vmatprep.mubr.bf16.mxu1 %v28452_v47 }
 0x3ce   : > { %7309 = vmatmul.mubr.bf16.vlgmr.msra.gmra.mrb[0].mxu0 %v28466_v52  ;;  %8853 = vmatmul.mubr.bf16.vlgmr.msra.gmra.mrb[0].mxu1 %v28466_v52  ;;  %v24924_v52 = vld [vmem:[%s32239_s3 + $0x60] ss:$20 sps:$4 sm:$0xff]  }
 0x3cf   : > { %21422 = vmatpush3.bf16.msra.mxu0 %v24916_v46  ;;  %21534 = vmatpush3.bf16.msra.mxu1 %v24917_v33  ;;  %v24925_v46 = vld [vmem:[%s32239_s3 + $0x2e0] ss:$20 sps:$4 sm:$0xff]   ;;  %v28502_v33 = vcombine.high %v332_v61, %v340_v3 }
 0x3d0   : > { %7318 = vmatprep.mubr.bf16.mxu0 %v28474_v12  ;;  %8862 = vmatprep.mubr.bf16.mxu1 %v28474_v12 }
 0x3d1   : > { %21423 = vmatprep.subr.bf16.mxu0 %v24918_v0  ;;  %21535 = vmatprep.subr.bf16.mxu1 %v24919_v30  ;;  %32629 = vst [vmem:[#allocation181_spill] sm:$0xff] %v28502_v33  ;;  %v24926_v0 = vld [vmem:[%s32239_s3 + $0x1c8] ss:$20 sps:$4 sm:$0xff]  }
 0x3d2   : > { %v24927_v30 = vld [vmem:[%s32239_s3 + $0x448] ss:$20 sps:$4 sm:$0xff]  }
 0x3d3   : > { %21424 = vmatpush3.bf16.msra.mxu0 %v24920_v16  ;;  %21536 = vmatpush3.bf16.msra.mxu1 %v24921_v6  ;;  %v24928_v16 = vld [vmem:[%s32239_s3 + $0x88] ss:$20 sps:$4 sm:$0xff]   ;;  %v28528_v6 = vcombine.low %v332_v61, %v340_v3  ;;  %v24935_v3 = vld [vmem:[%s32239_s3 + $0x498] ss:$20 sps:$4 sm:$0xff]  }
 0x3d4   : > { %21425 = vmatprep.subr.bf16.mxu0 %v24922_v15  ;;  %21537 = vmatprep.subr.bf16.mxu1 %v24923_v11  ;;  %v24929_v11 = vld [vmem:[%s32239_s3 + $0x308] ss:$20 sps:$4 sm:$0xff]   ;;  %v24930_v15 = vld [vmem:[%s32239_s3 + $0x1f0] ss:$20 sps:$4 sm:$0xff]  }
 0x3d5   : > { %32630 = vst [vmem:[#allocation182_spill] sm:$0xff] %v28528_v6  ;;  %v364_v61 = vld [vmem:[%s25920_s28 + $0x238] sm:$0xff] }
 0x3d6   : > { %7319 = vmatmul.mubr.bf16.gmra.mrb[4].mxu0 %v28494_v2  ;;  %8863 = vmatmul.mubr.bf16.gmra.mrb[4].mxu1 %v28494_v2 }
 0x3d7   : > { %7328 = vmatprep.mubr.bf16.mxu0 %v28502_v33  ;;  %8872 = vmatprep.mubr.bf16.mxu1 %v28502_v33  ;;  %v24934_v33 = vld [vmem:[%s32239_s3 + $0x218] ss:$20 sps:$4 sm:$0xff]  }
 0x3d8   : > { %21426 = vmatpush3.bf16.msra.mxu0 %v24924_v52  ;;  %21538 = vmatpush3.bf16.msra.mxu1 %v24925_v46  ;;  %v24931_v52 = vld [vmem:[%s32239_s3 + $0x470] ss:$20 sps:$4 sm:$0xff]   ;;  %v28530_v46 = vcombine.high %v348_v23, %v356_v25 }
 0x3d9   : > { %21427 = vmatprep.subr.bf16.mxu0 %v24926_v0  ;;  %21539 = vmatprep.subr.bf16.mxu1 %v24927_v30  ;;  %v24932_v0 = vld [vmem:[%s32239_s3 + $0xb0] ss:$20 sps:$4 sm:$0xff]  }
 0x3da   : > { %32631 = vst [vmem:[#allocation183_spill] sm:$0xff] %v28530_v46  ;;  %v24933_v30 = vld [vmem:[%s32239_s3 + $0x330] ss:$20 sps:$4 sm:$0xff]  }
 0x3dc   : > { %21428 = vmatpush3.bf16.msra.mxu0 %v24928_v16  ;;  %21540 = vmatpush3.bf16.msra.mxu1 %v24929_v11  ;;  %v372_v16 = vld [vmem:[%s25920_s28 + $0x278] sm:$0xff] }
 0x3dd   : > { %21429 = vmatprep.subr.bf16.mxu0 %v24930_v15  ;;  %21541 = vmatprep.subr.bf16.mxu1 %v24931_v52  ;;  %v24936_v11 = vld [vmem:[%s32239_s3 + $0xd8] ss:$20 sps:$4 sm:$0xff]   ;;  %v24938_v52 = vld [vmem:[%s32239_s3 + $0x240] ss:$20 sps:$4 sm:$0xff]  }
 0x3de   : > { %7329 = vmatmul.mubr.bf16.gmra.mrb[8].mxu0 %v28528_v6  ;;  %8873 = vmatmul.mubr.bf16.gmra.mrb[8].mxu1 %v28528_v6  ;;  %v24937_v15 = vld [vmem:[%s32239_s3 + $0x358] ss:$20 sps:$4 sm:$0xff]   ;;  %v24942_v6 = vld [vmem:[%s32239_s3 + $0x268] ss:$20 sps:$4 sm:$0xff]  }
 0x3df   : > { %7338 = vmatprep.mubr.bf16.mxu0 %v28530_v46  ;;  %8882 = vmatprep.mubr.bf16.mxu1 %v28530_v46  ;;  %v28564_v46 = vcombine.high %v364_v61, %v372_v16 }
 0x3e0   : > { %21430 = vmatpush3.bf16.msra.mxu0 %v24932_v0  ;;  %21542 = vmatpush3.bf16.msra.mxu1 %v24933_v30  ;;  %v24939_v0 = vld [vmem:[%s32239_s3 + $0x4c0] ss:$20 sps:$4 sm:$0xff]   ;;  %v28562_v30 = vcombine.low %v348_v23, %v356_v25  ;;  %v24943_v23 = vld [vmem:[%s32239_s3 + $0x4e8] ss:$20 sps:$4 sm:$0xff]  }
 0x3e1   : > { %21431 = vmatprep.subr.bf16.mxu0 %v24934_v33  ;;  %21543 = vmatprep.subr.bf16.mxu1 %v24935_v3  ;;  %32633 = vst [vmem:[#allocation185_spill] sm:$0xff] %v28564_v46  ;;  %v24940_v33 = vld [vmem:[%s32239_s3 + $0x100] ss:$20 sps:$4 sm:$0xff]   ;;  %v380_v25 = vld [vmem:[%s25920_s28 + $0x2b8] sm:$0xff] }
 0x3e2   : > { %32632 = vst [vmem:[#allocation184_spill] sm:$0xff] %v28562_v30  ;;  %v24941_v3 = vld [vmem:[%s32239_s3 + $0x380] ss:$20 sps:$4 sm:$0xff]  }
 0x3e4   : > { %21432 = vmatpush3.bf16.msra.mxu0 %v24936_v11  ;;  %21544 = vmatpush3.bf16.msra.mxu1 %v24937_v15  ;;  %v388_v11 = vld [vmem:[%s25920_s28 + $0x2f8] sm:$0xff] }
 0x3e5   : > { %21433 = vmatprep.subr.bf16.mxu0 %v24938_v52  ;;  %21545 = vmatprep.subr.bf16.mxu1 %v24939_v0  ;;  %v24944_v15 = vld [vmem:[%s32239_s3 + $0x128] ss:$20 sps:$4 sm:$0xff]   ;;  %v24946_v0 = vld [vmem:[%s32239_s3 + $0x650] ss:$20 sps:$4 sm:$0xff]  }
 0x3e6   : > { %7339 = vmatmul.mubr.bf16.gmra.mrb[12].mxu0 %v28562_v30  ;;  %8883 = vmatmul.mubr.bf16.gmra.mrb[12].mxu1 %v28562_v30  ;;  %v24945_v52 = vld [vmem:[%s32239_s3 + $0x3a8] ss:$20 sps:$4 sm:$0xff]  }
 0x3e7   : > { %7348 = vmatprep.mubr.bf16.mxu0 %v28564_v46  ;;  %8892 = vmatprep.mubr.bf16.mxu1 %v28564_v46  ;;  %v28598_v46 = vcombine.high %v380_v25, %v388_v11  ;;  %v508_v30 = vld [vmem:[%s25920_s28 + $0x6b8] sm:$0xff] }
 0x3e8   : > { %21434 = vmatpush3.bf16.msra.mxu0 %v24940_v33  ;;  %21546 = vmatpush3.bf16.msra.mxu1 %v24941_v3  ;;  %v24947_v33 = vld [vmem:[%s32239_s3 + $0x8d0] ss:$20 sps:$4 sm:$0xff]   ;;  %v28596_v3 = vcombine.low %v364_v61, %v372_v16  ;;  %v404_v61 = vld [vmem:[%s25920_s28 + $0x378] sm:$0xff]  ;;  %v28606_v16 = vcombine.low %v380_v25, %v388_v11 }
 0x3e9   : > { %21435 = vmatprep.subr.bf16.mxu0 %v24942_v6  ;;  %21547 = vmatprep.subr.bf16.mxu1 %v24943_v23  ;;  %32635 = vst [vmem:[#allocation187_spill] sm:$0xff] %v28598_v46  ;;  %v396_v6 = vld [vmem:[%s25920_s28 + $0x338] sm:$0xff] }
 0x3ea   : > { %32634 = vst [vmem:[#allocation186_spill] sm:$0xff] %v28596_v3  ;;  %32636 = vst [vmem:[#allocation188_spill] sm:$0xff] %v28606_v16  ;;  %v28608_v23 = vcombine.high %v396_v6, %v404_v61  ;;  %v428_v25 = vld [vmem:[%s25920_s28 + $0x438] sm:$0xff] }
 0x3eb   : > { %v436_v11 = vld [vmem:[%s25920_s28 + $0x478] sm:$0xff] }
 0x3ec   : > { %21436 = vmatpush3.bf16.msra.mxu0 %v24944_v15  ;;  %21548 = vmatpush3.bf16.msra.mxu1 %v24945_v52  ;;  %32637 = vst [vmem:[#allocation189_spill] sm:$0xff] %v28608_v23  ;;  %v412_v15 = vld [vmem:[%s25920_s28 + $0x3b8] sm:$0xff] }
 0x3ed   : > { %21645 = vmatprep.subr.bf16.mxu0 %v24946_v0  ;;  %21757 = vmatprep.subr.bf16.mxu1 %v24947_v33  ;;  %v420_v52 = vld [vmem:[%s25920_s28 + $0x3f8] sm:$0xff]  ;;  %v28616_v0 = vcombine.low %v396_v6, %v404_v61 }
 0x3ee   : > { %7349 = vmatmul.mubr.bf16.gmra.mrb[16].mxu0 %v28596_v3  ;;  %8893 = vmatmul.mubr.bf16.gmra.mrb[16].mxu1 %v28596_v3  ;;  %v28618_v33 = vcombine.high %v412_v15, %v420_v52  ;;  %v444_v6 = vld [vmem:[%s25920_s28 + $0x4b8] sm:$0xff] }
 0x3ef   : > { %7358 = vmatprep.mubr.bf16.mxu0 %v28598_v46  ;;  %8902 = vmatprep.mubr.bf16.mxu1 %v28598_v46  ;;  %32638 = vst [vmem:[#allocation190_spill] sm:$0xff] %v28616_v0  ;;  %v452_v61 = vld [vmem:[%s25920_s28 + $0x4f8] sm:$0xff] }
 0x3f0   : > { %32639 = vst [vmem:[#allocation191_spill] sm:$0xff] %v28618_v33 }
 0x3f6   : > { %7359 = vmatmul.mubr.bf16.gmra.mrb[20].mxu0 %v28606_v16  ;;  %8903 = vmatmul.mubr.bf16.gmra.mrb[20].mxu1 %v28606_v16  ;;  %v28628_v16 = vcombine.high %v428_v25, %v436_v11 }
 0x3f7   : > { %7368 = vmatprep.mubr.bf16.mxu0 %v28608_v23  ;;  %8912 = vmatprep.mubr.bf16.mxu1 %v28608_v23  ;;  %v28626_v23 = vcombine.low %v412_v15, %v420_v52  ;;  %v460_v15 = vld [vmem:[%s25920_s28 + $0x538] sm:$0xff] }
 0x3f8   : > { %32641 = vst [vmem:[#allocation193_spill] sm:$0xff] %v28628_v16  ;;  %v468_v52 = vld [vmem:[%s25920_s28 + $0x578] sm:$0xff] }
 0x3f9   : > { %32640 = vst [vmem:[#allocation192_spill] sm:$0xff] %v28626_v23 }
 0x3fe   : > { %7369 = vmatmul.mubr.bf16.gmra.mrb[24].mxu0 %v28616_v0  ;;  %8913 = vmatmul.mubr.bf16.gmra.mrb[24].mxu1 %v28616_v0  ;;  %v28638_v0 = vcombine.high %v444_v6, %v452_v61 }
 0x3ff   : > { %7378 = vmatprep.mubr.bf16.mxu0 %v28618_v33  ;;  %8922 = vmatprep.mubr.bf16.mxu1 %v28618_v33  ;;  %v28636_v33 = vcombine.low %v428_v25, %v436_v11  ;;  %v476_v25 = vld [vmem:[%s25920_s28 + $0x5b8] sm:$0xff] }
 0x400   : > { %32643 = vst [vmem:[#allocation195_spill] sm:$0xff] %v28638_v0  ;;  %v484_v11 = vld [vmem:[%s25920_s28 + $0x5f8] sm:$0xff] }
 0x401   : > { %32642 = vst [vmem:[#allocation194_spill] sm:$0xff] %v28636_v33  ;;  %v28658_v46 = vcombine.high %v476_v25, %v484_v11 }
 0x403   : > { %32647 = vst [vmem:[#allocation199_spill] sm:$0xff] %v28658_v46 }
 0x406   : > { %7379 = vmatmul.mubr.bf16.gmra.mrb[28].mxu0 %v28626_v23  ;;  %8923 = vmatmul.mubr.bf16.gmra.mrb[28].mxu1 %v28626_v23  ;;  %v28646_v23 = vcombine.low %v444_v6, %v452_v61  ;;  %v28669_v61 = vld [vmem:[%s32240_s4] sm:$0xf] }
 0x407   : > { %7388 = vmatprep.mubr.bf16.mxu0 %v28628_v16  ;;  %8932 = vmatprep.mubr.bf16.mxu1 %v28628_v16  ;;  %v28648_v16 = vcombine.high %v460_v15, %v468_v52 }
 0x408   : > { %32644 = vst [vmem:[#allocation196_spill] sm:$0xff] %v28646_v23 }
 0x409   : > { %32645 = vst [vmem:[#allocation197_spill] sm:$0xff] %v28648_v16 }
 0x40e   : > { %7389 = vmatmul.mubr.bf16.gmra.mrb[32].mxu0 %v28636_v33  ;;  %8933 = vmatmul.mubr.bf16.gmra.mrb[32].mxu1 %v28636_v33  ;;  %v28656_v33 = vcombine.low %v460_v15, %v468_v52  ;;  %v492_v52 = vld [vmem:[%s25920_s28 + $0x638] sm:$0xff] }
 0x40f   : > { %7398 = vmatprep.mubr.bf16.mxu0 %v28638_v0  ;;  %8942 = vmatprep.mubr.bf16.mxu1 %v28638_v0  ;;  %v10303_v0 = vlaneseq }
 0x410   : > { %32646 = vst [vmem:[#allocation198_spill] sm:$0xff] %v28656_v33 }
 0x411   : > { %v28660_v6 = vshrl.u32 %v10303_v0, 7 }
 0x413   : > { %v10305_v15 = vsub.s32 0, %v28660_v6  ;;  %v10313_v0 = vsub.s32 2, %v28660_v6 }
 0x416   : > { %7399 = vmatmul.mubr.bf16.gmra.mrb[36].mxu0 %v28646_v23  ;;  %8943 = vmatmul.mubr.bf16.gmra.mrb[36].mxu1 %v28646_v23  ;;  %v28676_v23 = vrot.slane %v28669_v61, %v10305_v15  ;;  %v516_v15 = vld [vmem:[%s25920_s28 + $0x6f8] sm:$0xff] }
 0x417   : > { %7408 = vmatprep.mubr.bf16.mxu0 %v28648_v16  ;;  %8952 = vmatprep.mubr.bf16.mxu1 %v28648_v16  ;;  %v500_v16 = vld [vmem:[%s25920_s28 + $0x678] sm:$0xff] }
 0x418   : > { %v28683_v3 = vcombine.high %v492_v52, %v500_v16  ;;  %v28691_v2 = vcombine.low %v492_v52, %v500_v16  ;;  %v540_v16 = vld [vmem:[%s25920_s28 + $0x7b8] sm:$0xff] }
 0x419   : > { %v548_v52 = vld [vmem:[%s25920_s28 + $0x7f8] sm:$0xff] }
 0x41a   : > { %32649 = vst [vmem:[#allocation201_spill] sm:$0xff] %v28683_v3  ;;  %32650 = vst [vmem:[#allocation202_spill] sm:$0xff] %v28691_v2  ;;  %v28713_v12 = vcombine.high %v540_v16, %v548_v52 }
 0x41c   : > { %32655 = vst [vmem:[#allocation207_spill] sm:$0xff] %v28713_v12 }
 0x41e   : > { %7409 = vmatmul.mubr.bf16.gmra.mrb[40].mxu0 %v28656_v33  ;;  %8953 = vmatmul.mubr.bf16.gmra.mrb[40].mxu1 %v28656_v33  ;;  %v28679_v33 = vrot.slane %v28669_v61, %v10313_v0  ;;  %v28693_v0 = vcombine.high %v508_v30, %v516_v15 }
 0x41f   : > { %7418 = vmatprep.mubr.bf16.mxu0 %v28658_v46  ;;  %8962 = vmatprep.mubr.bf16.mxu1 %v28658_v46  ;;  %v28681_v46 = vcombine.low %v476_v25, %v484_v11  ;;  %v524_v25 = vld [vmem:[%s25920_s28 + $0x738] sm:$0xff] }
 0x420   : > { %32651 = vst [vmem:[#allocation203_spill] sm:$0xff] %v28693_v0  ;;  %v532_v11 = vld [vmem:[%s25920_s28 + $0x778] sm:$0xff]  ;;  %s291_s28 = scalar_lea.vmem %s32242_s6, %s18556_s20 }
 0x421   : > { %32648 = vst [vmem:[#allocation200_spill] sm:$0xff] %v28681_v46 }
 0x426   : > { %7419 = vmatmul.mubr.bf16.gmra.mrb[44].mxu0 %v28681_v46  ;;  %8963 = vmatmul.mubr.bf16.gmra.mrb[44].mxu1 %v28681_v46  ;;  %v28701_v46 = vcombine.low %v508_v30, %v516_v15  ;;  %v28719_v30 = vcombine.low %v540_v16, %v548_v52  ;;  %v24948_v15 = vld [vmem:[%s32239_s3 + $0x510] ss:$20 sps:$4 sm:$0xff]   ;;  %v24951_v16 = vld [vmem:[%s32239_s3 + $0x8f8] ss:$20 sps:$4 sm:$0xff]   ;;  %v24958_v52 = vld [vmem:[%s32239_s3 + $0x6c8] ss:$20 sps:$4 sm:$0xff]  }
 0x427   : > { %7428 = vmatprep.mubr.bf16.mxu0 %v28683_v3  ;;  %8972 = vmatprep.mubr.bf16.mxu1 %v28683_v3  ;;  %v28703_v3 = vcombine.high %v524_v25, %v532_v11 }
 0x428   : > { %32652 = vst [vmem:[#allocation204_spill] sm:$0xff] %v28701_v46  ;;  %32656 = vst [vmem:[#allocation208_spill] sm:$0xff] %v28719_v30 }
 0x429   : > { %32653 = vst [vmem:[#allocation205_spill] sm:$0xff] %v28703_v3 }
 0x42e   : > { %7429 = vmatmul.mubr.bf16.gmra.mrb[48].mxu0 %v28691_v2  ;;  %8973 = vmatmul.mubr.bf16.gmra.mrb[48].mxu1 %v28691_v2  ;;  %v28711_v2 = vcombine.low %v524_v25, %v532_v11  ;;  %v24949_v25 = vld [vmem:[%s32239_s3 + $0x790] ss:$20 sps:$4 sm:$0xff]   ;;  %v24950_v11 = vld [vmem:[%s32239_s3 + $0x678] ss:$20 sps:$4 sm:$0xff]  }
 0x42f   : > { %7438 = vmatprep.mubr.bf16.mxu0 %v28693_v0  ;;  %8982 = vmatprep.mubr.bf16.mxu1 %v28693_v0 }
 0x430   : > { %32654 = vst [vmem:[#allocation206_spill] sm:$0xff] %v28711_v2 }
 0x436   : > { %7439 = vmatmul.mubr.bf16.gmra.mrb[52].mxu0 %v28701_v46  ;;  %8983 = vmatmul.mubr.bf16.gmra.mrb[52].mxu1 %v28701_v46 }
 0x437   : > { %7448 = vmatprep.mubr.bf16.mxu0 %v28703_v3  ;;  %8992 = vmatprep.mubr.bf16.mxu1 %v28703_v3 }
 0x43e   : > { %7449 = vmatmul.mubr.bf16.gmra.mrb[56].mxu0 %v28711_v2  ;;  %8993 = vmatmul.mubr.bf16.gmra.mrb[56].mxu1 %v28711_v2  ;;  %v32695_v2 = vld [vmem:[#allocation58_spill] sm:$0xff] }
 0x43f   : > { %7458 = vmatprep.mubr.bf16.mxu0 %v28713_v12  ;;  %9002 = vmatprep.mubr.bf16.mxu1 %v28713_v12  ;;  %v32694_v12 = vld [vmem:[#allocation26_spill] sm:$0xff] }
 0x446   : > { %7459 = vmatmul.mubr.bf16.gmra.mrb[60].mxu0 %v28719_v30  ;;  %9003 = vmatmul.mubr.bf16.gmra.mrb[60].mxu1 %v28719_v30 }
 0x447   : > { %9045 = vmatprep.mubr.bf16.mxu0 %v25936_v50  ;;  %9206 = vmatprep.mubr.bf16.mxu1 %v26340_v24  ;;  %v24952_v50 = vld [vmem:[%s32239_s3 + $0x538] ss:$20 sps:$4 sm:$0xff]  }
 0x448   : > { %v24953_v24 = vld [vmem:[%s32239_s3 + $0x7b8] ss:$20 sps:$4 sm:$0xff]  }
 0x44e   : > { %9046 = vmatmul.mubr.bf16.vlgmr.msra.gmra.mrb[64].mxu0 %v25996_v7  ;;  %9207 = vmatmul.mubr.bf16.vlgmr.msra.gmra.mrb[64].mxu1 %v26354_v29  ;;  %v24954_v7 = vld [vmem:[%s32239_s3 + $0x6a0] ss:$20 sps:$4 sm:$0xff]  }
 0x44f   : > { %21646 = vmatpush3.bf16.msra.mxu0 %v24948_v15  ;;  %21758 = vmatpush3.bf16.msra.mxu1 %v24949_v25  ;;  %v24955_v29 = vld [vmem:[%s32239_s3 + $0x920] ss:$20 sps:$4 sm:$0xff]   ;;  %v24959_v15 = vld [vmem:[%s32239_s3 + $0x948] ss:$20 sps:$4 sm:$0xff]  }
 0x450   : > { %9053 = vmatprep.mubr.bf16.mxu0 %v26004_v10  ;;  %9214 = vmatprep.mubr.bf16.mxu1 %v26362_v35  ;;  %v24956_v10 = vld [vmem:[%s32239_s3 + $0x560] ss:$20 sps:$4 sm:$0xff]   ;;  %v24960_v25 = vld [vmem:[%s32239_s3 + $0x588] ss:$20 sps:$4 sm:$0xff]  }
 0x451   : > { %21647 = vmatprep.subr.bf16.mxu0 %v24950_v11  ;;  %21759 = vmatprep.subr.bf16.mxu1 %v24951_v16  ;;  %v24957_v35 = vld [vmem:[%s32239_s3 + $0x7e0] ss:$20 sps:$4 sm:$0xff]   ;;  %v24961_v11 = vld [vmem:[%s32239_s3 + $0x808] ss:$20 sps:$4 sm:$0xff]   ;;  %v24966_v16 = vld [vmem:[%s32239_s3 + $0x718] ss:$20 sps:$4 sm:$0xff]  }
 0x453   : > { %21648 = vmatpush3.bf16.msra.mxu0 %v24952_v50  ;;  %21760 = vmatpush3.bf16.msra.mxu1 %v24953_v24  ;;  %v24967_v50 = vld [vmem:[%s32239_s3 + $0x998] ss:$20 sps:$4 sm:$0xff]  }
 0x454   : > { %21649 = vmatprep.subr.bf16.mxu0 %v24954_v7  ;;  %21761 = vmatprep.subr.bf16.mxu1 %v24955_v29  ;;  %v24968_v24 = vld [vmem:[%s32239_s3 + $0x5d8] ss:$20 sps:$4 sm:$0xff]   ;;  %v24974_v29 = vld [vmem:[%s32239_s3 + $0x768] ss:$20 sps:$4 sm:$0xff]  }
 0x455   : > { %v24969_v7 = vld [vmem:[%s32239_s3 + $0x858] ss:$20 sps:$4 sm:$0xff]  }
 0x456   : > { %9054 = vmatmul.mubr.bf16.gmra.mrb[68].mxu0 %v26030_v19  ;;  %9215 = vmatmul.mubr.bf16.gmra.mrb[68].mxu1 %v26382_v45  ;;  %v24962_v19 = vld [vmem:[%s32239_s3 + $0x6f0] ss:$20 sps:$4 sm:$0xff]  }
 0x457   : > { %9061 = vmatprep.mubr.bf16.mxu0 %v26032_v20  ;;  %9222 = vmatprep.mubr.bf16.mxu1 %v26390_v51  ;;  %v24963_v20 = vld [vmem:[%s32239_s3 + $0x970] ss:$20 sps:$4 sm:$0xff]  }
 0x458   : > { %21650 = vmatpush3.bf16.msra.mxu0 %v24956_v10  ;;  %21762 = vmatpush3.bf16.msra.mxu1 %v24957_v35  ;;  %v24964_v45 = vld [vmem:[%s32239_s3 + $0x5b0] ss:$20 sps:$4 sm:$0xff]   ;;  %v24975_v10 = vld [vmem:[%s32239_s3 + $0x9e8] ss:$20 sps:$4 sm:$0xff]  }
 0x459   : > { %21651 = vmatprep.subr.bf16.mxu0 %v24958_v52  ;;  %21763 = vmatprep.subr.bf16.mxu1 %v24959_v15  ;;  %v24965_v51 = vld [vmem:[%s32239_s3 + $0x830] ss:$20 sps:$4 sm:$0xff]   ;;  %v24976_v35 = vld [vmem:[%s32239_s3 + $0x628] ss:$20 sps:$4 sm:$0xff]  }
 0x45a   : > { %v24977_v52 = vld [vmem:[%s32239_s3 + $0x8a8] ss:$20 sps:$4 sm:$0xff]  }
 0x45c   : > { %21652 = vmatpush3.bf16.msra.mxu0 %v24960_v25  ;;  %21764 = vmatpush3.bf16.msra.mxu1 %v24961_v11 }
 0x45d   : > { %21653 = vmatprep.subr.bf16.mxu0 %v24962_v19  ;;  %21765 = vmatprep.subr.bf16.mxu1 %v24963_v20 }
 0x45e   : > { %9062 = vmatmul.mubr.bf16.gmra.mrb[72].mxu0 %v26064_v31  ;;  %9223 = vmatmul.mubr.bf16.gmra.mrb[72].mxu1 %v26416_v9  ;;  %v24970_v31 = vld [vmem:[%s32239_s3 + $0x740] ss:$20 sps:$4 sm:$0xff]  }
 0x45f   : > { %9069 = vmatprep.mubr.bf16.mxu0 %v26066_v32  ;;  %9230 = vmatprep.mubr.bf16.mxu1 %v26424_v17  ;;  %v24971_v32 = vld [vmem:[%s32239_s3 + $0x9c0] ss:$20 sps:$4 sm:$0xff]  }
 0x460   : > { %21654 = vmatpush3.bf16.msra.mxu0 %v24964_v45  ;;  %21766 = vmatpush3.bf16.msra.mxu1 %v24965_v51  ;;  %v24972_v9 = vld [vmem:[%s32239_s3 + $0x600] ss:$20 sps:$4 sm:$0xff]  }
 0x461   : > { %21655 = vmatprep.subr.bf16.mxu0 %v24966_v16  ;;  %21767 = vmatprep.subr.bf16.mxu1 %v24967_v50  ;;  %v24973_v17 = vld [vmem:[%s32239_s3 + $0x880] ss:$20 sps:$4 sm:$0xff]  }
 0x464   : > { %21656 = vmatpush3.bf16.msra.mxu0 %v24968_v24  ;;  %21768 = vmatpush3.bf16.msra.mxu1 %v24969_v7 }
 0x465   : > { %21657 = vmatprep.subr.bf16.mxu0 %v24970_v31  ;;  %21769 = vmatprep.subr.bf16.mxu1 %v24971_v32 }
 0x466   : > { %9070 = vmatmul.mubr.bf16.gmra.mrb[76].mxu0 %v26098_v43  ;;  %9231 = vmatmul.mubr.bf16.gmra.mrb[76].mxu1 %v26450_v38  ;;  %v24978_v43 = vld [vmem:[%s32239_s3 + $0xb50] ss:$20 sps:$4 sm:$0xff]  }
 0x467   : > { %9077 = vmatprep.mubr.bf16.mxu0 %v26100_v44  ;;  %9238 = vmatprep.mubr.bf16.mxu1 %v26458_v41  ;;  %v24979_v44 = vld [vmem:[%s32239_s3 + $0xdd0] ss:$20 sps:$4 sm:$0xff]  }
 0x468   : > { %21658 = vmatpush3.bf16.msra.mxu0 %v24972_v9  ;;  %21770 = vmatpush3.bf16.msra.mxu1 %v24973_v17 }
 0x469   : > { %21659 = vmatprep.subr.bf16.mxu0 %v24974_v29  ;;  %21771 = vmatprep.subr.bf16.mxu1 %v24975_v10 }
 0x46c   : > { %21660 = vmatpush3.bf16.msra.mxu0 %v24976_v35  ;;  %21772 = vmatpush3.bf16.msra.mxu1 %v24977_v52 }
 0x46d   : > { %21869 = vmatprep.subr.bf16.mxu0 %v24978_v43  ;;  %21981 = vmatprep.subr.bf16.mxu1 %v24979_v44  ;;  %v32659_v44 = vld [vmem:[#allocation3_spill] sm:$0xff] }
 0x46e   : > { %9078 = vmatmul.mubr.bf16.gmra.mrb[80].mxu0 %v26132_v56  ;;  %9239 = vmatmul.mubr.bf16.gmra.mrb[80].mxu1 %v26484_v1  ;;  %v10309_v56 = vsub.s32 1, %v28660_v6 }
 0x46f   : > { %9085 = vmatprep.mubr.bf16.mxu0 %v26134_v57  ;;  %9246 = vmatprep.mubr.bf16.mxu1 %v26492_v13  ;;  %v10317_v57 = vsub.s32 3, %v28660_v6 }
 0x476   : > { %9086 = vmatmul.mubr.bf16.gmra.mrb[84].mxu0 %v26166_v4  ;;  %9247 = vmatmul.mubr.bf16.gmra.mrb[84].mxu1 %v26518_v36  ;;  %v28866_v4 = vrot.slane %v28669_v61, %v10309_v56  ;;  %v32660_v56 = vld [vmem:[#allocation11_spill] sm:$0xff] }
 0x477   : > { %9093 = vmatprep.mubr.bf16.mxu0 %v26168_v5  ;;  %9254 = vmatprep.mubr.bf16.mxu1 %v26526_v42  ;;  %v28869_v5 = vrot.slane %v28669_v61, %v10317_v57 }
 0x47e   : > { %9094 = vmatmul.mubr.bf16.gmra.mrb[88].mxu0 %v26200_v18  ;;  %9255 = vmatmul.mubr.bf16.gmra.mrb[88].mxu1 %v26552_v8 }
 0x47f   : > { %9101 = vmatprep.mubr.bf16.mxu0 %v26202_v21  ;;  %9262 = vmatprep.mubr.bf16.mxu1 %v26560_v27 }
 0x486   : > { %9102 = vmatmul.mubr.bf16.gmra.mrb[92].mxu0 %v26234_v34  ;;  %9263 = vmatmul.mubr.bf16.gmra.mrb[92].mxu1 %v26586_v55 }
 0x487   : > { %9109 = vmatprep.mubr.bf16.mxu0 %v26242_v37  ;;  %9270 = vmatprep.mubr.bf16.mxu1 %v26594_v62 }
 0x48e   : > { %9110 = vmatmul.mubr.bf16.gmra.mrb[96].mxu0 %v26268_v48  ;;  %9271 = vmatmul.mubr.bf16.gmra.mrb[96].mxu1 %v26620_v39 }
 0x48f   : > { %9117 = vmatprep.mubr.bf16.mxu0 %v26270_v49  ;;  %9278 = vmatprep.mubr.bf16.mxu1 %v26622_v40 }
 0x496   : > { %9118 = vmatmul.mubr.bf16.gmra.mrb[100].mxu0 %v26278_v53  ;;  %9279 = vmatmul.mubr.bf16.gmra.mrb[100].mxu1 %v26630_v26 }
 0x497   : > { %9125 = vmatprep.mubr.bf16.mxu0 %v26280_v54  ;;  %9286 = vmatprep.mubr.bf16.mxu1 %v26632_v58 }
 0x49e   : > { %9126 = vmatmul.mubr.bf16.gmra.mrb[104].mxu0 %v26288_v59  ;;  %9287 = vmatmul.mubr.bf16.gmra.mrb[104].mxu1 %v26640_v14  ;;  %v32657_v14 = vld [vmem:[#allocation2_spill] sm:$0xff] }
 0x49f   : > { %9133 = vmatprep.mubr.bf16.mxu0 %v26290_v60  ;;  %9294 = vmatprep.mubr.bf16.mxu1 %v26642_v22  ;;  %v32658_v22 = vld [vmem:[#allocation10_spill] sm:$0xff] }
 0x4a1   : > { %v7310_v18 = vpop.f32.mrb[0].mxu0  ;;  %v8854_v21 = vpop.f32.mrb[0].mxu1 }
 0x4a2   : > { %v10323_v34 = vadd.f32 %v28676_v23, %v7310_v18  ;;  %v10325_v37 = vadd.f32 %v28679_v33, %v8854_v21  ;;  %v7312_v48 = vpop.f32.mrb[1].mxu0  ;;  %v8856_v49 = vpop.f32.mrb[1].mxu1 }
 0x4a3   : > { %v10324_v53 = vadd.f32 %v28866_v4, %v7312_v48  ;;  %v10326_v54 = vadd.f32 %v28869_v5, %v8856_v49  ;;  %v7314_v59 = vpop.f32.mrb[2].mxu0  ;;  %v8858_v38 = vpop.f32.mrb[2].mxu1  ;;  %v32662_v48 = vld [vmem:[#allocation12_spill] sm:$0xff] }
 0x4a4   : > { %v10327_v41 = vadd.f32 %v28676_v23, %v7314_v59  ;;  %v10329_v60 = vadd.f32 %v28679_v33, %v8858_v38  ;;  %v7316_v1 = vpop.f32.mrb[3].mxu0  ;;  %v8860_v13 = vpop.f32.mrb[3].mxu1  ;;  %v10451_v8 = vmax.f32 %v10323_v34, 0.0  ;;  %v10453_v27 = vmax.f32 %v10325_v37, 0.0  ;;  %v32661_v37 = vld [vmem:[#allocation4_spill] sm:$0xff] }
 0x4a5   : > { %v10328_v36 = vadd.f32 %v28866_v4, %v7316_v1  ;;  %v10330_v42 = vadd.f32 %v28869_v5, %v8860_v13  ;;  %v10452_v39 = vmax.f32 %v10324_v53, 0.0  ;;  %v10454_v40 = vmax.f32 %v10326_v54, 0.0 }
 0x4a6   : > { %v10455_v55 = vmax.f32 %v10327_v41, 0.0  ;;  %v10457_v62 = vmax.f32 %v10329_v60, 0.0  ;;  %9134 = vmatmul.mubr.bf16.gmra.mrb[108].mxu0 %v26298_v63  ;;  %9295 = vmatmul.mubr.bf16.gmra.mrb[108].mxu1 %v26650_v28 }
 0x4a7   : > { %v10456_v26 = vmax.f32 %v10328_v36, 0.0  ;;  %v10458_v58 = vmax.f32 %v10330_v42, 0.0  ;;  %9141 = vmatprep.mubr.bf16.mxu0 %v32657_v14  ;;  %9302 = vmatprep.mubr.bf16.mxu1 %v32658_v22 }
 0x4a8   : > { %v28885_v6 = vpack.c.bf16 %v10455_v55, %v10451_v8  ;;  %v28887_v61 = vpack.c.bf16 %v10457_v62, %v10453_v27 }
 0x4a9   : > { %v7320_v15 = vpop.f32.mrb[4].mxu0  ;;  %v8864_v25 = vpop.f32.mrb[4].mxu1  ;;  %v28889_v11 = vpack.c.bf16 %v10456_v26, %v10452_v39  ;;  %v28891_v19 = vpack.c.bf16 %v10458_v58, %v10454_v40 }
 0x4aa   : > { %v10331_v63 = vadd.f32 %v28676_v23, %v7320_v15  ;;  %v10333_v28 = vadd.f32 %v28679_v33, %v8864_v25  ;;  %v7322_v20 = vpop.f32.mrb[5].mxu0  ;;  %v8866_v45 = vpop.f32.mrb[5].mxu1 }
 0x4ab   : > { %v10332_v51 = vadd.f32 %v28866_v4, %v7322_v20  ;;  %v10334_v16 = vadd.f32 %v28869_v5, %v8866_v45  ;;  %v7324_v50 = vpop.f32.mrb[6].mxu0  ;;  %v8868_v24 = vpop.f32.mrb[6].mxu1  ;;  %v32664_v20 = vld [vmem:[#allocation13_spill] sm:$0xff] }
 0x4ac   : > { %v10335_v7 = vadd.f32 %v28676_v23, %v7324_v50  ;;  %v10337_v31 = vadd.f32 %v28679_v33, %v8868_v24  ;;  %v7326_v32 = vpop.f32.mrb[7].mxu0  ;;  %v8870_v9 = vpop.f32.mrb[7].mxu1  ;;  %v10459_v10 = vmax.f32 %v10331_v63, 0.0  ;;  %v10461_v35 = vmax.f32 %v10333_v28, 0.0  ;;  %v32663_v28 = vld [vmem:[#allocation5_spill] sm:$0xff]  ;;  %v32665_v24 = vld [vmem:[#allocation6_spill] sm:$0xff] }
 0x4ad   : > { %v10336_v17 = vadd.f32 %v28866_v4, %v7326_v32  ;;  %v10338_v29 = vadd.f32 %v28869_v5, %v8870_v9  ;;  %v10460_v57 = vmax.f32 %v10332_v51, 0.0  ;;  %v10462_v18 = vmax.f32 %v10334_v16, 0.0 }
 0x4ae   : > { %v10463_v52 = vmax.f32 %v10335_v7, 0.0  ;;  %v10465_v43 = vmax.f32 %v10337_v31, 0.0  ;;  %9142 = vmatmul.mubr.bf16.gmra.mrb[112].mxu0 %v32659_v44  ;;  %9303 = vmatmul.mubr.bf16.gmra.mrb[112].mxu1 %v32660_v56  ;;  %v32666_v7 = vld [vmem:[#allocation14_spill] sm:$0xff] }
 0x4af   : > { %v10464_v21 = vmax.f32 %v10336_v17, 0.0  ;;  %v10466_v34 = vmax.f32 %v10338_v29, 0.0  ;;  %9149 = vmatprep.mubr.bf16.mxu0 %v32661_v37  ;;  %9310 = vmatprep.mubr.bf16.mxu1 %v32662_v48 }
 0x4b0   : > { %v28905_v49 = vpack.c.bf16 %v10463_v52, %v10459_v10  ;;  %v28907_v53 = vpack.c.bf16 %v10465_v43, %v10461_v35 }
 0x4b1   : > { %v7330_v54 = vpop.f32.mrb[8].mxu0  ;;  %v8874_v59 = vpop.f32.mrb[8].mxu1  ;;  %v28909_v38 = vpack.c.bf16 %v10464_v21, %v10460_v57  ;;  %v28911_v41 = vpack.c.bf16 %v10466_v34, %v10462_v18 }
 0x4b2   : > { %v10339_v60 = vadd.f32 %v28676_v23, %v7330_v54  ;;  %v10341_v1 = vadd.f32 %v28679_v33, %v8874_v59  ;;  %v7332_v13 = vpop.f32.mrb[9].mxu0  ;;  %v8876_v36 = vpop.f32.mrb[9].mxu1 }
 0x4b3   : > { %v10340_v42 = vadd.f32 %v28866_v4, %v7332_v13  ;;  %v10342_v8 = vadd.f32 %v28869_v5, %v8876_v36  ;;  %v7334_v27 = vpop.f32.mrb[10].mxu0  ;;  %v8878_v55 = vpop.f32.mrb[10].mxu1 }
 0x4b4   : > { %v10343_v62 = vadd.f32 %v28676_v23, %v7334_v27  ;;  %v10345_v39 = vadd.f32 %v28679_v33, %v8878_v55  ;;  %v7336_v40 = vpop.f32.mrb[11].mxu0  ;;  %v8880_v26 = vpop.f32.mrb[11].mxu1  ;;  %v10467_v22 = vmax.f32 %v10339_v60, 0.0  ;;  %v10469_v15 = vmax.f32 %v10341_v1, 0.0  ;;  %v32668_v27 = vld [vmem:[#allocation15_spill] sm:$0xff] }
 0x4b5   : > { %v10344_v58 = vadd.f32 %v28866_v4, %v7336_v40  ;;  %v10346_v14 = vadd.f32 %v28869_v5, %v8880_v26  ;;  %v10468_v45 = vmax.f32 %v10340_v42, 0.0  ;;  %v10470_v51 = vmax.f32 %v10342_v8, 0.0  ;;  %v32667_v8 = vld [vmem:[#allocation7_spill] sm:$0xff]  ;;  %v32669_v26 = vld [vmem:[#allocation8_spill] sm:$0xff] }
 0x4b6   : > { %v10471_v25 = vmax.f32 %v10343_v62, 0.0  ;;  %v10473_v63 = vmax.f32 %v10345_v39, 0.0  ;;  %9150 = vmatmul.mubr.bf16.gmra.mrb[116].mxu0 %v32663_v28  ;;  %9311 = vmatmul.mubr.bf16.gmra.mrb[116].mxu1 %v32664_v20 }
 0x4b7   : > { %v10472_v16 = vmax.f32 %v10344_v58, 0.0  ;;  %v10474_v50 = vmax.f32 %v10346_v14, 0.0  ;;  %9157 = vmatprep.mubr.bf16.mxu0 %v32665_v24  ;;  %9318 = vmatprep.mubr.bf16.mxu1 %v32666_v7  ;;  %v32670_v58 = vld [vmem:[#allocation16_spill] sm:$0xff] }
 0x4b8   : > { %v28925_v31 = vpack.c.bf16 %v10471_v25, %v10467_v22  ;;  %v28927_v32 = vpack.c.bf16 %v10473_v63, %v10469_v15 }
 0x4b9   : > { %v7340_v9 = vpop.f32.mrb[12].mxu0  ;;  %v8884_v17 = vpop.f32.mrb[12].mxu1  ;;  %v28929_v29 = vpack.c.bf16 %v10472_v16, %v10468_v45  ;;  %v28931_v10 = vpack.c.bf16 %v10474_v50, %v10470_v51 }
 0x4ba   : > { %v10347_v35 = vadd.f32 %v28676_v23, %v7340_v9  ;;  %v10349_v52 = vadd.f32 %v28679_v33, %v8884_v17  ;;  %v7342_v43 = vpop.f32.mrb[13].mxu0  ;;  %v8886_v44 = vpop.f32.mrb[13].mxu1 }
 0x4bb   : > { %v10348_v56 = vadd.f32 %v28866_v4, %v7342_v43  ;;  %v10350_v57 = vadd.f32 %v28869_v5, %v8886_v44  ;;  %v7344_v18 = vpop.f32.mrb[14].mxu0  ;;  %v8888_v21 = vpop.f32.mrb[14].mxu1 }
 0x4bc   : > { %v10351_v34 = vadd.f32 %v28676_v23, %v7344_v18  ;;  %v10353_v37 = vadd.f32 %v28679_v33, %v8888_v21  ;;  %v7346_v48 = vpop.f32.mrb[15].mxu0  ;;  %v8890_v54 = vpop.f32.mrb[15].mxu1  ;;  %v10475_v1 = vmax.f32 %v10347_v35, 0.0  ;;  %v10477_v13 = vmax.f32 %v10349_v52, 0.0 }
 0x4bd   : > { %v10352_v59 = vadd.f32 %v28866_v4, %v7346_v48  ;;  %v10354_v60 = vadd.f32 %v28869_v5, %v8890_v54  ;;  %v10476_v55 = vmax.f32 %v10348_v56, 0.0  ;;  %v10478_v62 = vmax.f32 %v10350_v57, 0.0  ;;  %v32672_v48 = vld [vmem:[#allocation17_spill] sm:$0xff] }
 0x4be   : > { %v10479_v36 = vmax.f32 %v10351_v34, 0.0  ;;  %v10481_v42 = vmax.f32 %v10353_v37, 0.0  ;;  %9158 = vmatmul.mubr.bf16.gmra.mrb[120].mxu0 %v32667_v8  ;;  %9319 = vmatmul.mubr.bf16.gmra.mrb[120].mxu1 %v32668_v27  ;;  %v32671_v37 = vld [vmem:[#allocation9_spill] sm:$0xff] }
 0x4bf   : > { %v10480_v39 = vmax.f32 %v10352_v59, 0.0  ;;  %v10482_v40 = vmax.f32 %v10354_v60, 0.0  ;;  %9165 = vmatprep.mubr.bf16.mxu0 %v32669_v26  ;;  %9326 = vmatprep.mubr.bf16.mxu1 %v32670_v58 }
 0x4c0   : > { %v28945_v14 = vpack.c.bf16 %v10479_v36, %v10475_v1  ;;  %v28947_v22 = vpack.c.bf16 %v10481_v42, %v10477_v13  ;;  %v32673_v13 = vld [vmem:[#allocation18_spill] sm:$0xff] }
 0x4c1   : > { %v7350_v15 = vpop.f32.mrb[16].mxu0  ;;  %v8894_v25 = vpop.f32.mrb[16].mxu1  ;;  %v28949_v63 = vpack.c.bf16 %v10480_v39, %v10476_v55  ;;  %v28951_v28 = vpack.c.bf16 %v10482_v40, %v10478_v62  ;;  %v32674_v36 = vld [vmem:[#allocation50_spill] sm:$0xff] }
 0x4c2   : > { %v10355_v20 = vadd.f32 %v28676_v23, %v7350_v15  ;;  %v10357_v45 = vadd.f32 %v28679_v33, %v8894_v25  ;;  %v7352_v51 = vpop.f32.mrb[17].mxu0  ;;  %v8896_v16 = vpop.f32.mrb[17].mxu1 }
 0x4c3   : > { %v10356_v50 = vadd.f32 %v28866_v4, %v7352_v51  ;;  %v10358_v24 = vadd.f32 %v28869_v5, %v8896_v16  ;;  %v7354_v7 = vpop.f32.mrb[18].mxu0  ;;  %v8898_v9 = vpop.f32.mrb[18].mxu1  ;;  %v24980_v16 = vld [vmem:[%s32239_s3 + $0xa10] ss:$20 sps:$4 sm:$0xff]  }
 0x4c4   : > { %v10359_v17 = vadd.f32 %v28676_v23, %v7354_v7  ;;  %v10361_v35 = vadd.f32 %v28679_v33, %v8898_v9  ;;  %v7356_v52 = vpop.f32.mrb[19].mxu0  ;;  %v8900_v43 = vpop.f32.mrb[19].mxu1  ;;  %v10483_v57 = vmax.f32 %v10355_v20, 0.0  ;;  %v10485_v18 = vmax.f32 %v10357_v45, 0.0 }
 0x4c5   : > { %v10360_v44 = vadd.f32 %v28866_v4, %v7356_v52  ;;  %v10362_v56 = vadd.f32 %v28869_v5, %v8900_v43  ;;  %v10484_v54 = vmax.f32 %v10356_v50, 0.0  ;;  %v10486_v59 = vmax.f32 %v10358_v24, 0.0  ;;  %v24981_v50 = vld [vmem:[%s32239_s3 + $0xc90] ss:$20 sps:$4 sm:$0xff]   ;;  %v24982_v43 = vld [vmem:[%s32239_s3 + $0xb78] ss:$20 sps:$4 sm:$0xff]  }
 0x4c6   : > { %v10487_v21 = vmax.f32 %v10359_v17, 0.0  ;;  %v10489_v34 = vmax.f32 %v10361_v35, 0.0  ;;  %9166 = vmatmul.mubr.bf16.gmra.mrb[124].mxu0 %v32671_v37  ;;  %9327 = vmatmul.mubr.bf16.gmra.mrb[124].mxu1 %v32672_v48  ;;  %v32676_v37 = vld [vmem:[#allocation51_spill] sm:$0xff] }
 0x4c7   : > { %v10488_v60 = vmax.f32 %v10360_v44, 0.0  ;;  %v10490_v1 = vmax.f32 %v10362_v56, 0.0  ;;  %9367 = vmatprep.mubr.bf16.mxu0 %v32673_v13  ;;  %9528 = vmatprep.mubr.bf16.mxu1 %v32674_v36  ;;  %v24983_v44 = vld [vmem:[%s32239_s3 + $0xdf8] ss:$20 sps:$4 sm:$0xff]  }
 0x4c8   : > { %v28965_v42 = vpack.c.bf16 %v10487_v21, %v10483_v57  ;;  %v28967_v8 = vpack.c.bf16 %v10489_v34, %v10485_v18  ;;  %v32675_v34 = vld [vmem:[#allocation19_spill] sm:$0xff] }
 0x4c9   : > { %v7360_v27 = vpop.f32.mrb[20].mxu0  ;;  %v8904_v55 = vpop.f32.mrb[20].mxu1  ;;  %v28969_v62 = vpack.c.bf16 %v10488_v60, %v10484_v54  ;;  %v28971_v39 = vpack.c.bf16 %v10490_v1, %v10486_v59  ;;  %v24984_v48 = vld [vmem:[%s32239_s3 + $0xa38] ss:$20 sps:$4 sm:$0xff]  }
 0x4ca   : > { %v10363_v40 = vadd.f32 %v28676_v23, %v7360_v27  ;;  %v10365_v26 = vadd.f32 %v28679_v33, %v8904_v55  ;;  %v7362_v58 = vpop.f32.mrb[21].mxu0  ;;  %v8906_v15 = vpop.f32.mrb[21].mxu1  ;;  %v24985_v13 = vld [vmem:[%s32239_s3 + $0xcb8] ss:$20 sps:$4 sm:$0xff]   ;;  %v32677_v55 = vld [vmem:[#allocation20_spill] sm:$0xff] }
 0x4cb   : > { %v10364_v25 = vadd.f32 %v28866_v4, %v7362_v58  ;;  %v10366_v20 = vadd.f32 %v28869_v5, %v8906_v15  ;;  %v7364_v45 = vpop.f32.mrb[22].mxu0  ;;  %v8908_v51 = vpop.f32.mrb[22].mxu1  ;;  %v24987_v58 = vld [vmem:[%s32239_s3 + $0xe20] ss:$20 sps:$4 sm:$0xff]  }
 0x4cc   : > { %v10367_v24 = vadd.f32 %v28676_v23, %v7364_v45  ;;  %v10369_v7 = vadd.f32 %v28679_v33, %v8908_v51  ;;  %v7366_v9 = vpop.f32.mrb[23].mxu0  ;;  %v8910_v17 = vpop.f32.mrb[23].mxu1  ;;  %v10491_v56 = vmax.f32 %v10363_v40, 0.0  ;;  %v10493_v57 = vmax.f32 %v10365_v26, 0.0  ;;  %v32678_v40 = vld [vmem:[#allocation52_spill] sm:$0xff] }
 0x4cd   : > { %v10368_v35 = vadd.f32 %v28866_v4, %v7366_v9  ;;  %v10370_v52 = vadd.f32 %v28869_v5, %v8910_v17  ;;  %v10492_v54 = vmax.f32 %v10364_v25, 0.0  ;;  %v10494_v59 = vmax.f32 %v10366_v20, 0.0  ;;  %v24986_v26 = vld [vmem:[%s32239_s3 + $0xba0] ss:$20 sps:$4 sm:$0xff]  }
 0x4ce   : > { %v10495_v18 = vmax.f32 %v10367_v24, 0.0  ;;  %v10497_v21 = vmax.f32 %v10369_v7, 0.0  ;;  %9368 = vmatmul.mubr.bf16.vlgmr.msra.gmra.mrb[128].mxu0 %v32675_v34  ;;  %9529 = vmatmul.mubr.bf16.vlgmr.msra.gmra.mrb[128].mxu1 %v32676_v37  ;;  %v24990_v37 = vld [vmem:[%s32239_s3 + $0xbc8] ss:$20 sps:$4 sm:$0xff]  }
 0x4cf   : > { %v10496_v60 = vmax.f32 %v10368_v35, 0.0  ;;  %v10498_v1 = vmax.f32 %v10370_v52, 0.0  ;;  %21870 = vmatpush3.bf16.msra.mxu0 %v24980_v16  ;;  %21982 = vmatpush3.bf16.msra.mxu1 %v24981_v50 }
 0x4d0   : > { %v29001_v36 = vpack.c.bf16 %v10495_v18, %v10491_v56  ;;  %v29003_v27 = vpack.c.bf16 %v10497_v21, %v10493_v57  ;;  %9375 = vmatprep.mubr.bf16.mxu0 %v32677_v55  ;;  %9536 = vmatprep.mubr.bf16.mxu1 %v32678_v40  ;;  %v24988_v57 = vld [vmem:[%s32239_s3 + $0xa60] ss:$20 sps:$4 sm:$0xff]   ;;  %v32680_v55 = vld [vmem:[#allocation53_spill] sm:$0xff] }
 0x4d1   : > { %v7370_v15 = vpop.f32.mrb[24].mxu0  ;;  %v8914_v25 = vpop.f32.mrb[24].mxu1  ;;  %21871 = vmatprep.subr.bf16.mxu0 %v24982_v43  ;;  %21983 = vmatprep.subr.bf16.mxu1 %v24983_v44  ;;  %v29013_v20 = vpack.c.bf16 %v10496_v60, %v10492_v54  ;;  %v29015_v45 = vpack.c.bf16 %v10498_v1, %v10494_v59  ;;  %v24989_v18 = vld [vmem:[%s32239_s3 + $0xce0] ss:$20 sps:$4 sm:$0xff]  }
 0x4d2   : > { %v10371_v51 = vadd.f32 %v28676_v23, %v7370_v15  ;;  %v10373_v16 = vadd.f32 %v28679_v33, %v8914_v25  ;;  %v7372_v50 = vpop.f32.mrb[25].mxu0  ;;  %v8916_v24 = vpop.f32.mrb[25].mxu1  ;;  %v32681_v25 = vld [vmem:[#allocation22_spill] sm:$0xff] }
 0x4d3   : > { %v10372_v7 = vadd.f32 %v28866_v4, %v7372_v50  ;;  %v10374_v9 = vadd.f32 %v28869_v5, %v8916_v24  ;;  %v7374_v17 = vpop.f32.mrb[26].mxu0  ;;  %v8918_v35 = vpop.f32.mrb[26].mxu1  ;;  %21872 = vmatpush3.bf16.msra.mxu0 %v24984_v48  ;;  %21984 = vmatpush3.bf16.msra.mxu1 %v24985_v13  ;;  %v24991_v48 = vld [vmem:[%s32239_s3 + $0xe48] ss:$20 sps:$4 sm:$0xff]   ;;  %v32682_v50 = vld [vmem:[#allocation54_spill] sm:$0xff] }
 0x4d4   : > { %v10375_v52 = vadd.f32 %v28676_v23, %v7374_v17  ;;  %v10377_v43 = vadd.f32 %v28679_v33, %v8918_v35  ;;  %v7376_v44 = vpop.f32.mrb[27].mxu0  ;;  %v8920_v56 = vpop.f32.mrb[27].mxu1  ;;  %21873 = vmatprep.subr.bf16.mxu0 %v24986_v26  ;;  %21985 = vmatprep.subr.bf16.mxu1 %v24987_v58  ;;  %v10499_v54 = vmax.f32 %v10371_v51, 0.0  ;;  %v10501_v59 = vmax.f32 %v10373_v16, 0.0  ;;  %v32679_v13 = vld [vmem:[#allocation21_spill] sm:$0xff] }
 0x4d5   : > { %v10376_v21 = vadd.f32 %v28866_v4, %v7376_v44  ;;  %v10378_v34 = vadd.f32 %v28869_v5, %v8920_v56  ;;  %v10500_v40 = vmax.f32 %v10372_v7, 0.0  ;;  %v10502_v26 = vmax.f32 %v10374_v9, 0.0  ;;  %v24992_v51 = vld [vmem:[%s32239_s3 + $0xa88] ss:$20 sps:$4 sm:$0xff]   ;;  %v24994_v35 = vld [vmem:[%s32239_s3 + $0xbf0] ss:$20 sps:$4 sm:$0xff]  }
 0x4d6   : > { %v10503_v60 = vmax.f32 %v10375_v52, 0.0  ;;  %v10505_v1 = vmax.f32 %v10377_v43, 0.0  ;;  %9376 = vmatmul.mubr.bf16.gmra.mrb[132].mxu0 %v32679_v13  ;;  %9537 = vmatmul.mubr.bf16.gmra.mrb[132].mxu1 %v32680_v55  ;;  %v24993_v16 = vld [vmem:[%s32239_s3 + $0xd08] ss:$20 sps:$4 sm:$0xff]   ;;  %v24995_v52 = vld [vmem:[%s32239_s3 + $0xe70] ss:$20 sps:$4 sm:$0xff]  }
 0x4d7   : > { %v10504_v58 = vmax.f32 %v10376_v21, 0.0  ;;  %v10506_v15 = vmax.f32 %v10378_v34, 0.0  ;;  %9383 = vmatprep.mubr.bf16.mxu0 %v32681_v25  ;;  %9544 = vmatprep.mubr.bf16.mxu1 %v32682_v50  ;;  %v24996_v55 = vld [vmem:[%s32239_s3 + $0xab0] ss:$20 sps:$4 sm:$0xff]   ;;  %v24999_v25 = vld [vmem:[%s32239_s3 + $0xe98] ss:$20 sps:$4 sm:$0xff]  }
 0x4d8   : > { %v29041_v24 = vpack.c.bf16 %v10503_v60, %v10499_v54  ;;  %v29043_v17 = vpack.c.bf16 %v10505_v1, %v10501_v59  ;;  %21874 = vmatpush3.bf16.msra.mxu0 %v24988_v57  ;;  %21986 = vmatpush3.bf16.msra.mxu1 %v24989_v18 }
 0x4d9   : > { %v7380_v7 = vpop.f32.mrb[28].mxu0  ;;  %v8924_v9 = vpop.f32.mrb[28].mxu1  ;;  %21875 = vmatprep.subr.bf16.mxu0 %v24990_v37  ;;  %21987 = vmatprep.subr.bf16.mxu1 %v24991_v48  ;;  %v29057_v43 = vpack.c.bf16 %v10504_v58, %v10500_v40  ;;  %v29059_v44 = vpack.c.bf16 %v10506_v15, %v10502_v26  ;;  %v24997_v40 = vld [vmem:[%s32239_s3 + $0xd30] ss:$20 sps:$4 sm:$0xff]   ;;  %v24998_v15 = vld [vmem:[%s32239_s3 + $0xc18] ss:$20 sps:$4 sm:$0xff]  }
 0x4da   : > { %32683 = vst [vmem:[#allocation2_spill] sm:$0xff] %v29043_v17  ;;  %v10379_v56 = vadd.f32 %v28676_v23, %v7380_v7  ;;  %v10381_v57 = vadd.f32 %v28679_v33, %v8924_v9  ;;  %v7382_v18 = vpop.f32.mrb[29].mxu0  ;;  %v8926_v21 = vpop.f32.mrb[29].mxu1  ;;  %v32684_v9 = vld [vmem:[#allocation23_spill] sm:$0xff] }
 0x4db   : > { %v10380_v34 = vadd.f32 %v28866_v4, %v7382_v18  ;;  %v10382_v37 = vadd.f32 %v28869_v5, %v8926_v21  ;;  %v7384_v48 = vpop.f32.mrb[30].mxu0  ;;  %v8928_v54 = vpop.f32.mrb[30].mxu1  ;;  %v32685_v18 = vld [vmem:[#allocation55_spill] sm:$0xff] }
 0x4dc   : > { %v10383_v59 = vadd.f32 %v28676_v23, %v7384_v48  ;;  %v10385_v60 = vadd.f32 %v28679_v33, %v8928_v54  ;;  %v7386_v1 = vpop.f32.mrb[31].mxu0  ;;  %v8930_v13 = vpop.f32.mrb[31].mxu1  ;;  %21876 = vmatpush3.bf16.msra.mxu0 %v24992_v51  ;;  %21988 = vmatpush3.bf16.msra.mxu1 %v24993_v16  ;;  %v10507_v50 = vmax.f32 %v10379_v56, 0.0  ;;  %v10509_v51 = vmax.f32 %v10381_v57, 0.0  ;;  %v32686_v54 = vld [vmem:[#allocation24_spill] sm:$0xff] }
 0x4dd   : > { %v10384_v26 = vadd.f32 %v28866_v4, %v7386_v1  ;;  %v10386_v58 = vadd.f32 %v28869_v5, %v8930_v13  ;;  %21877 = vmatprep.subr.bf16.mxu0 %v24994_v35  ;;  %21989 = vmatprep.subr.bf16.mxu1 %v24995_v52  ;;  %v10508_v21 = vmax.f32 %v10380_v34, 0.0  ;;  %v10510_v48 = vmax.f32 %v10382_v37, 0.0  ;;  %v32687_v1 = vld [vmem:[#allocation56_spill] sm:$0xff]  ;;  %v25000_v56 = vld [vmem:[%s32239_s3 + $0xad8] ss:$20 sps:$4 sm:$0xff]  }
 0x4de   : > { %v10511_v16 = vmax.f32 %v10383_v59, 0.0  ;;  %v10513_v7 = vmax.f32 %v10385_v60, 0.0  ;;  %9384 = vmatmul.mubr.bf16.gmra.mrb[136].mxu0 %v32684_v9  ;;  %9545 = vmatmul.mubr.bf16.gmra.mrb[136].mxu1 %v32685_v18  ;;  %v25001_v57 = vld [vmem:[%s32239_s3 + $0xd58] ss:$20 sps:$4 sm:$0xff]   ;;  %v25002_v59 = vld [vmem:[%s32239_s3 + $0xc40] ss:$20 sps:$4 sm:$0xff]  }
 0x4df   : > { %v10512_v35 = vmax.f32 %v10384_v26, 0.0  ;;  %v10514_v52 = vmax.f32 %v10386_v58, 0.0  ;;  %9391 = vmatprep.mubr.bf16.mxu0 %v32686_v54  ;;  %9552 = vmatprep.mubr.bf16.mxu1 %v32687_v1  ;;  %v25003_v60 = vld [vmem:[%s32239_s3 + $0xec0] ss:$20 sps:$4 sm:$0xff]  }
 0x4e0   : > { %v29085_v13 = vpack.c.bf16 %v10511_v16, %v10507_v50  ;;  %v29087_v30 = vpack.c.bf16 %v10513_v7, %v10509_v51  ;;  %21878 = vmatpush3.bf16.msra.mxu0 %v24996_v55  ;;  %21990 = vmatpush3.bf16.msra.mxu1 %v24997_v40 }
 0x4e1   : > { %v7390_v34 = vpop.f32.mrb[32].mxu0  ;;  %v8934_v37 = vpop.f32.mrb[32].mxu1  ;;  %21879 = vmatprep.subr.bf16.mxu0 %v24998_v15  ;;  %21991 = vmatprep.subr.bf16.mxu1 %v24999_v25  ;;  %v29101_v55 = vpack.c.bf16 %v10512_v35, %v10508_v21  ;;  %v29103_v40 = vpack.c.bf16 %v10514_v52, %v10510_v48  ;;  %v25004_v48 = vld [vmem:[%s32239_s3 + $0xb00] ss:$20 sps:$4 sm:$0xff]  }
 0x4e2   : > { %32688 = vst [vmem:[#allocation10_spill] sm:$0xff] %v29085_v13  ;;  %32689 = vst [vmem:[#allocation3_spill] sm:$0xff] %v29087_v30  ;;  %v10387_v26 = vadd.f32 %v28676_v23, %v7390_v34  ;;  %v10389_v58 = vadd.f32 %v28679_v33, %v8934_v37  ;;  %v7392_v50 = vpop.f32.mrb[33].mxu0  ;;  %v8936_v51 = vpop.f32.mrb[33].mxu1  ;;  %v25005_v52 = vld [vmem:[%s32239_s3 + $0xd80] ss:$20 sps:$4 sm:$0xff]  }
 0x4e3   : > { %32690 = vst [vmem:[#allocation11_spill] sm:$0xff] %v29101_v55  ;;  %32691 = vst [vmem:[#allocation4_spill] sm:$0xff] %v29103_v40  ;;  %v10388_v15 = vadd.f32 %v28866_v4, %v7392_v50  ;;  %v10390_v25 = vadd.f32 %v28869_v5, %v8936_v51  ;;  %v7394_v16 = vpop.f32.mrb[34].mxu0  ;;  %v8938_v7 = vpop.f32.mrb[34].mxu1  ;;  %v25006_v34 = vld [vmem:[%s32239_s3 + $0xc68] ss:$20 sps:$4 sm:$0xff]  }
 0x4e4   : > { %v10391_v9 = vadd.f32 %v28676_v23, %v7394_v16  ;;  %v10393_v18 = vadd.f32 %v28679_v33, %v8938_v7  ;;  %v7396_v21 = vpop.f32.mrb[35].mxu0  ;;  %v8940_v35 = vpop.f32.mrb[35].mxu1  ;;  %21880 = vmatpush3.bf16.msra.mxu0 %v25000_v56  ;;  %21992 = vmatpush3.bf16.msra.mxu1 %v25001_v57  ;;  %v25007_v56 = vld [vmem:[%s32239_s3 + $0xee8] ss:$20 sps:$4 sm:$0xff]   ;;  %v10515_v57 = vmax.f32 %v10387_v26, 0.0  ;;  %v10517_v37 = vmax.f32 %v10389_v58, 0.0 }
 0x4e5   : > { %v10392_v54 = vadd.f32 %v28866_v4, %v7396_v21  ;;  %v10394_v1 = vadd.f32 %v28869_v5, %v8940_v35  ;;  %21881 = vmatprep.subr.bf16.mxu0 %v25002_v59  ;;  %21993 = vmatprep.subr.bf16.mxu1 %v25003_v60  ;;  %v32692_v16 = vld [vmem:[#allocation25_spill] sm:$0xff]  ;;  %v10516_v21 = vmax.f32 %v10388_v15, 0.0  ;;  %v10518_v35 = vmax.f32 %v10390_v25, 0.0  ;;  %v32793_v55 = vld [vmem:[#allocation91_spill] sm:$0xff] }
 0x4e6   : > { %v10519_v50 = vmax.f32 %v10391_v9, 0.0  ;;  %v10521_v51 = vmax.f32 %v10393_v18, 0.0  ;;  %9392 = vmatmul.mubr.bf16.gmra.mrb[140].mxu0 %v32692_v16  ;;  %v32693_v7 = vld [vmem:[#allocation57_spill] sm:$0xff] }
 0x4e7   : > { %9553 = vmatmul.mubr.bf16.gmra.mrb[140].mxu1 %v32693_v7  ;;  %v10520_v59 = vmax.f32 %v10392_v54, 0.0  ;;  %v10522_v60 = vmax.f32 %v10394_v1, 0.0  ;;  %9399 = vmatprep.mubr.bf16.mxu0 %v32694_v12  ;;  %v25008_v26 = vld [vmem:[%s32239_s3 + $0xb28] ss:$20 sps:$4 sm:$0xff]   ;;  %v25011_v12 = vld [vmem:[%s32239_s3 + $0x12d0] ss:$20 sps:$4 sm:$0xff]  }
 0x4e8   : > { %9560 = vmatprep.mubr.bf16.mxu1 %v32695_v2  ;;  %v29129_v3 = vpack.c.bf16 %v10519_v50, %v10515_v57  ;;  %v29131_v46 = vpack.c.bf16 %v10521_v51, %v10517_v37  ;;  %21882 = vmatpush3.bf16.msra.mxu0 %v25004_v48  ;;  %v25009_v58 = vld [vmem:[%s32239_s3 + $0xda8] ss:$20 sps:$4 sm:$0xff]   ;;  %v25010_v2 = vld [vmem:[%s32239_s3 + $0x1050] ss:$20 sps:$4 sm:$0xff]  }
 0x4e9   : > { %21994 = vmatpush3.bf16.msra.mxu1 %v25005_v52  ;;  %v7400_v15 = vpop.f32.mrb[36].mxu0  ;;  %v8944_v25 = vpop.f32.mrb[36].mxu1  ;;  %21883 = vmatprep.subr.bf16.mxu0 %v25006_v34  ;;  %v29145_v9 = vpack.c.bf16 %v10520_v59, %v10516_v21  ;;  %v29147_v18 = vpack.c.bf16 %v10522_v60, %v10518_v35 }
 0x4ea   : > { %32696 = vst [vmem:[#allocation12_spill] sm:$0xff] %v29129_v3  ;;  %32697 = vst [vmem:[#allocation5_spill] sm:$0xff] %v29131_v46  ;;  %21995 = vmatprep.subr.bf16.mxu1 %v25007_v56  ;;  %v10395_v48 = vadd.f32 %v28676_v23, %v7400_v15  ;;  %v10397_v52 = vadd.f32 %v28679_v33, %v8944_v25  ;;  %v7402_v54 = vpop.f32.mrb[37].mxu0  ;;  %v8946_v1 = vpop.f32.mrb[37].mxu1 }
 0x4eb   : > { %32698 = vst [vmem:[#allocation13_spill] sm:$0xff] %v29145_v9  ;;  %32699 = vst [vmem:[#allocation6_spill] sm:$0xff] %v29147_v18  ;;  %v10396_v34 = vadd.f32 %v28866_v4, %v7402_v54  ;;  %v10398_v56 = vadd.f32 %v28869_v5, %v8946_v1  ;;  %v7404_v57 = vpop.f32.mrb[38].mxu0  ;;  %v8948_v37 = vpop.f32.mrb[38].mxu1  ;;  %v32700_v54 = vld [vmem:[#allocation27_spill] sm:$0xff] }
 0x4ec   : > { %v10399_v50 = vadd.f32 %v28676_v23, %v7404_v57  ;;  %v10401_v51 = vadd.f32 %v28679_v33, %v8948_v37  ;;  %v7406_v16 = vpop.f32.mrb[39].mxu0  ;;  %v8950_v7 = vpop.f32.mrb[39].mxu1  ;;  %21884 = vmatpush3.bf16.msra.mxu0 %v25008_v26  ;;  %v10523_v59 = vmax.f32 %v10395_v48, 0.0  ;;  %v10525_v60 = vmax.f32 %v10397_v52, 0.0  ;;  %v32701_v1 = vld [vmem:[#allocation59_spill] sm:$0xff]  ;;  %v32702_v26 = vld [vmem:[#allocation28_spill] sm:$0xff] }
 0x4ed   : > { %21996 = vmatpush3.bf16.msra.mxu1 %v25009_v58  ;;  %v10400_v21 = vadd.f32 %v28866_v4, %v7406_v16  ;;  %v10402_v35 = vadd.f32 %v28869_v5, %v8950_v7  ;;  %22093 = vmatprep.subr.bf16.mxu0 %v25010_v2  ;;  %v10524_v57 = vmax.f32 %v10396_v34, 0.0  ;;  %v10526_v37 = vmax.f32 %v10398_v56, 0.0  ;;  %v32703_v58 = vld [vmem:[#allocation60_spill] sm:$0xff] }
 0x4ee   : > { %22205 = vmatprep.subr.bf16.mxu1 %v25011_v12  ;;  %v10527_v15 = vmax.f32 %v10399_v50, 0.0  ;;  %v10529_v25 = vmax.f32 %v10401_v51, 0.0  ;;  %9400 = vmatmul.mubr.bf16.gmra.mrb[144].mxu0 %v32700_v54 }
 0x4ef   : > { %9561 = vmatmul.mubr.bf16.gmra.mrb[144].mxu1 %v32701_v1  ;;  %v10528_v0 = vmax.f32 %v10400_v21, 0.0  ;;  %v10530_v46 = vmax.f32 %v10402_v35, 0.0  ;;  %9407 = vmatprep.mubr.bf16.mxu0 %v32702_v26 }
 0x4f0   : > { %9568 = vmatprep.mubr.bf16.mxu1 %v32703_v58  ;;  %v29161_v16 = vpack.c.bf16 %v10527_v15, %v10523_v59  ;;  %v29163_v2 = vpack.c.bf16 %v10529_v25, %v10525_v60 }
 0x4f1   : > { %v7410_v12 = vpop.f32.mrb[40].mxu0  ;;  %v8954_v48 = vpop.f32.mrb[40].mxu1  ;;  %v29165_v52 = vpack.c.bf16 %v10528_v0, %v10524_v57  ;;  %v29167_v50 = vpack.c.bf16 %v10530_v46, %v10526_v37 }
 0x4f2   : > { %32704 = vst [vmem:[#allocation14_spill] sm:$0xff] %v29161_v16  ;;  %32705 = vst [vmem:[#allocation7_spill] sm:$0xff] %v29163_v2  ;;  %v10403_v51 = vadd.f32 %v28676_v23, %v7410_v12  ;;  %v10405_v34 = vadd.f32 %v28679_v33, %v8954_v48  ;;  %v7412_v56 = vpop.f32.mrb[41].mxu0  ;;  %v8956_v7 = vpop.f32.mrb[41].mxu1  ;;  %v32708_v12 = vld [vmem:[#allocation29_spill] sm:$0xff]  ;;  %v32710_v16 = vld [vmem:[#allocation30_spill] sm:$0xff] }
 0x4f3   : > { %32706 = vst [vmem:[#allocation15_spill] sm:$0xff] %v29165_v52  ;;  %32707 = vst [vmem:[#allocation8_spill] sm:$0xff] %v29167_v50  ;;  %v10404_v21 = vadd.f32 %v28866_v4, %v7412_v56  ;;  %v10406_v35 = vadd.f32 %v28869_v5, %v8956_v7  ;;  %v7414_v59 = vpop.f32.mrb[42].mxu0  ;;  %v8958_v15 = vpop.f32.mrb[42].mxu1  ;;  %v32709_v48 = vld [vmem:[#allocation61_spill] sm:$0xff] }
 0x4f4   : > { %v10407_v60 = vadd.f32 %v28676_v23, %v7414_v59  ;;  %v10409_v25 = vadd.f32 %v28679_v33, %v8958_v15  ;;  %v7416_v0 = vpop.f32.mrb[43].mxu0  ;;  %v8960_v54 = vpop.f32.mrb[43].mxu1  ;;  %v10531_v57 = vmax.f32 %v10403_v51, 0.0  ;;  %v10533_v37 = vmax.f32 %v10405_v34, 0.0  ;;  %v32711_v15 = vld [vmem:[#allocation62_spill] sm:$0xff] }
 0x4f5   : > { %v10408_v46 = vadd.f32 %v28866_v4, %v7416_v0  ;;  %v10410_v1 = vadd.f32 %v28869_v5, %v8960_v54  ;;  %v10532_v56 = vmax.f32 %v10404_v21, 0.0  ;;  %v10534_v7 = vmax.f32 %v10406_v35, 0.0 }
 0x4f6   : > { %v10535_v26 = vmax.f32 %v10407_v60, 0.0  ;;  %v10537_v58 = vmax.f32 %v10409_v25, 0.0  ;;  %9408 = vmatmul.mubr.bf16.gmra.mrb[148].mxu0 %v32708_v12 }
 0x4f7   : > { %9569 = vmatmul.mubr.bf16.gmra.mrb[148].mxu1 %v32709_v48  ;;  %v10536_v2 = vmax.f32 %v10408_v46, 0.0  ;;  %v10538_v59 = vmax.f32 %v10410_v1, 0.0  ;;  %9415 = vmatprep.mubr.bf16.mxu0 %v32710_v16 }
 0x4f8   : > { %9576 = vmatprep.mubr.bf16.mxu1 %v32711_v15  ;;  %v29181_v50 = vpack.c.bf16 %v10535_v26, %v10531_v57  ;;  %v29183_v0 = vpack.c.bf16 %v10537_v58, %v10533_v37 }
 0x4f9   : > { %v7420_v51 = vpop.f32.mrb[44].mxu0  ;;  %v8964_v34 = vpop.f32.mrb[44].mxu1  ;;  %v29185_v60 = vpack.c.bf16 %v10536_v2, %v10532_v56  ;;  %v29187_v25 = vpack.c.bf16 %v10538_v59, %v10534_v7 }
 0x4fa   : > { %32712 = vst [vmem:[#allocation16_spill] sm:$0xff] %v29181_v50  ;;  %32713 = vst [vmem:[#allocation9_spill] sm:$0xff] %v29183_v0  ;;  %v10411_v54 = vadd.f32 %v28676_v23, %v7420_v51  ;;  %v10413_v21 = vadd.f32 %v28679_v33, %v8964_v34  ;;  %v7422_v35 = vpop.f32.mrb[45].mxu0  ;;  %v8966_v46 = vpop.f32.mrb[45].mxu1  ;;  %v32716_v34 = vld [vmem:[#allocation31_spill] sm:$0xff] }
 0x4fb   : > { %32714 = vst [vmem:[#allocation17_spill] sm:$0xff] %v29185_v60  ;;  %32715 = vst [vmem:[#allocation18_spill] sm:$0xff] %v29187_v25  ;;  %v10412_v16 = vadd.f32 %v28866_v4, %v7422_v35  ;;  %v10414_v1 = vadd.f32 %v28869_v5, %v8966_v46  ;;  %v7424_v57 = vpop.f32.mrb[46].mxu0  ;;  %v8968_v26 = vpop.f32.mrb[46].mxu1  ;;  %v32717_v35 = vld [vmem:[#allocation63_spill] sm:$0xff]  ;;  %v32718_v25 = vld [vmem:[#allocation32_spill] sm:$0xff] }
 0x4fc   : > { %v10415_v37 = vadd.f32 %v28676_v23, %v7424_v57  ;;  %v10417_v58 = vadd.f32 %v28679_v33, %v8968_v26  ;;  %v7426_v2 = vpop.f32.mrb[47].mxu0  ;;  %v8970_v12 = vpop.f32.mrb[47].mxu1  ;;  %v10539_v7 = vmax.f32 %v10411_v54, 0.0  ;;  %v10541_v59 = vmax.f32 %v10413_v21, 0.0  ;;  %v32719_v26 = vld [vmem:[#allocation64_spill] sm:$0xff] }
 0x4fd   : > { %v10416_v48 = vadd.f32 %v28866_v4, %v7426_v2  ;;  %v10418_v56 = vadd.f32 %v28869_v5, %v8970_v12  ;;  %v10540_v46 = vmax.f32 %v10412_v16, 0.0  ;;  %v10542_v0 = vmax.f32 %v10414_v1, 0.0 }
 0x4fe   : > { %v10543_v15 = vmax.f32 %v10415_v37, 0.0  ;;  %v10545_v51 = vmax.f32 %v10417_v58, 0.0  ;;  %9416 = vmatmul.mubr.bf16.gmra.mrb[152].mxu0 %v32716_v34 }
 0x4ff   : > { %9577 = vmatmul.mubr.bf16.gmra.mrb[152].mxu1 %v32717_v35  ;;  %v10544_v50 = vmax.f32 %v10416_v48, 0.0  ;;  %v10546_v57 = vmax.f32 %v10418_v56, 0.0  ;;  %9423 = vmatprep.mubr.bf16.mxu0 %v32718_v25 }
 0x500   : > { %9584 = vmatprep.mubr.bf16.mxu1 %v32719_v26  ;;  %v29201_v60 = vpack.c.bf16 %v10543_v15, %v10539_v7  ;;  %v29203_v2 = vpack.c.bf16 %v10545_v51, %v10541_v59 }
 0x501   : > { %v7430_v54 = vpop.f32.mrb[48].mxu0  ;;  %v8974_v21 = vpop.f32.mrb[48].mxu1  ;;  %v29205_v37 = vpack.c.bf16 %v10544_v50, %v10540_v46  ;;  %v29207_v58 = vpack.c.bf16 %v10546_v57, %v10542_v0 }
 0x502   : > { %32720 = vst [vmem:[#allocation50_spill] sm:$0xff] %v29201_v60  ;;  %32721 = vst [vmem:[#allocation19_spill] sm:$0xff] %v29203_v2  ;;  %v10419_v12 = vadd.f32 %v28676_v23, %v7430_v54  ;;  %v10421_v16 = vadd.f32 %v28679_v33, %v8974_v21  ;;  %v7432_v1 = vpop.f32.mrb[49].mxu0  ;;  %v8976_v48 = vpop.f32.mrb[49].mxu1  ;;  %v32724_v21 = vld [vmem:[#allocation33_spill] sm:$0xff] }
 0x503   : > { %32722 = vst [vmem:[#allocation51_spill] sm:$0xff] %v29205_v37  ;;  %32723 = vst [vmem:[#allocation20_spill] sm:$0xff] %v29207_v58  ;;  %v10420_v25 = vadd.f32 %v28866_v4, %v7432_v1  ;;  %v10422_v56 = vadd.f32 %v28869_v5, %v8976_v48  ;;  %v7434_v7 = vpop.f32.mrb[50].mxu0  ;;  %v8978_v15 = vpop.f32.mrb[50].mxu1  ;;  %v32725_v1 = vld [vmem:[#allocation65_spill] sm:$0xff]  ;;  %v32726_v58 = vld [vmem:[#allocation34_spill] sm:$0xff] }
 0x504   : > { %v10423_v59 = vadd.f32 %v28676_v23, %v7434_v7  ;;  %v10425_v51 = vadd.f32 %v28679_v33, %v8978_v15  ;;  %v7436_v50 = vpop.f32.mrb[51].mxu0  ;;  %v8980_v34 = vpop.f32.mrb[51].mxu1  ;;  %v10547_v46 = vmax.f32 %v10419_v12, 0.0  ;;  %v10549_v57 = vmax.f32 %v10421_v16, 0.0  ;;  %v32727_v15 = vld [vmem:[#allocation66_spill] sm:$0xff] }
 0x505   : > { %v10424_v0 = vadd.f32 %v28866_v4, %v7436_v50  ;;  %v10426_v35 = vadd.f32 %v28869_v5, %v8980_v34  ;;  %v10548_v48 = vmax.f32 %v10420_v25, 0.0  ;;  %v10550_v2 = vmax.f32 %v10422_v56, 0.0 }
 0x506   : > { %v10551_v26 = vmax.f32 %v10423_v59, 0.0  ;;  %v10553_v54 = vmax.f32 %v10425_v51, 0.0  ;;  %9424 = vmatmul.mubr.bf16.gmra.mrb[156].mxu0 %v32724_v21 }
 0x507   : > { %9585 = vmatmul.mubr.bf16.gmra.mrb[156].mxu1 %v32725_v1  ;;  %v10552_v60 = vmax.f32 %v10424_v0, 0.0  ;;  %v10554_v7 = vmax.f32 %v10426_v35, 0.0  ;;  %9431 = vmatprep.mubr.bf16.mxu0 %v32726_v58 }
 0x508   : > { %9592 = vmatprep.mubr.bf16.mxu1 %v32727_v15  ;;  %v29221_v37 = vpack.c.bf16 %v10551_v26, %v10547_v46  ;;  %v29223_v50 = vpack.c.bf16 %v10553_v54, %v10549_v57 }
 0x509   : > { %v7440_v12 = vpop.f32.mrb[52].mxu0  ;;  %v8984_v16 = vpop.f32.mrb[52].mxu1  ;;  %v29225_v59 = vpack.c.bf16 %v10552_v60, %v10548_v48  ;;  %v29227_v51 = vpack.c.bf16 %v10554_v7, %v10550_v2 }
 0x50a   : > { %32728 = vst [vmem:[#allocation52_spill] sm:$0xff] %v29221_v37  ;;  %32729 = vst [vmem:[#allocation21_spill] sm:$0xff] %v29223_v50  ;;  %v10427_v34 = vadd.f32 %v28676_v23, %v7440_v12  ;;  %v10429_v25 = vadd.f32 %v28679_v33, %v8984_v16  ;;  %v7442_v56 = vpop.f32.mrb[53].mxu0  ;;  %v8986_v0 = vpop.f32.mrb[53].mxu1  ;;  %v32732_v16 = vld [vmem:[#allocation35_spill] sm:$0xff] }
 0x50b   : > { %32730 = vst [vmem:[#allocation53_spill] sm:$0xff] %v29225_v59  ;;  %32731 = vst [vmem:[#allocation22_spill] sm:$0xff] %v29227_v51  ;;  %v10428_v58 = vadd.f32 %v28866_v4, %v7442_v56  ;;  %v10430_v35 = vadd.f32 %v28869_v5, %v8986_v0  ;;  %v7444_v46 = vpop.f32.mrb[54].mxu0  ;;  %v8988_v26 = vpop.f32.mrb[54].mxu1  ;;  %v32733_v56 = vld [vmem:[#allocation67_spill] sm:$0xff]  ;;  %v32734_v51 = vld [vmem:[#allocation36_spill] sm:$0xff] }
 0x50c   : > { %v10431_v57 = vadd.f32 %v28676_v23, %v7444_v46  ;;  %v10433_v54 = vadd.f32 %v28679_v33, %v8988_v26  ;;  %v7446_v60 = vpop.f32.mrb[55].mxu0  ;;  %v8990_v21 = vpop.f32.mrb[55].mxu1  ;;  %v10555_v48 = vmax.f32 %v10427_v34, 0.0  ;;  %v10557_v7 = vmax.f32 %v10429_v25, 0.0  ;;  %v32735_v26 = vld [vmem:[#allocation68_spill] sm:$0xff] }
 0x50d   : > { %v10432_v2 = vadd.f32 %v28866_v4, %v7446_v60  ;;  %v10434_v1 = vadd.f32 %v28869_v5, %v8990_v21  ;;  %v10556_v0 = vmax.f32 %v10428_v58, 0.0  ;;  %v10558_v50 = vmax.f32 %v10430_v35, 0.0 }
 0x50e   : > { %v10559_v15 = vmax.f32 %v10431_v57, 0.0  ;;  %v10561_v12 = vmax.f32 %v10433_v54, 0.0  ;;  %9432 = vmatmul.mubr.bf16.gmra.mrb[160].mxu0 %v32732_v16 }
 0x50f   : > { %9593 = vmatmul.mubr.bf16.gmra.mrb[160].mxu1 %v32733_v56  ;;  %v10560_v37 = vmax.f32 %v10432_v2, 0.0  ;;  %v10562_v46 = vmax.f32 %v10434_v1, 0.0  ;;  %9439 = vmatprep.mubr.bf16.mxu0 %v32734_v51 }
 0x510   : > { %9600 = vmatprep.mubr.bf16.mxu1 %v32735_v26  ;;  %v29241_v59 = vpack.c.bf16 %v10559_v15, %v10555_v48  ;;  %v29243_v60 = vpack.c.bf16 %v10561_v12, %v10557_v7 }
 0x511   : > { %v7450_v34 = vpop.f32.mrb[56].mxu0  ;;  %v8994_v25 = vpop.f32.mrb[56].mxu1  ;;  %v29245_v57 = vpack.c.bf16 %v10560_v37, %v10556_v0  ;;  %v29247_v54 = vpack.c.bf16 %v10562_v46, %v10558_v50 }
 0x512   : > { %32736 = vst [vmem:[#allocation54_spill] sm:$0xff] %v29241_v59  ;;  %32737 = vst [vmem:[#allocation23_spill] sm:$0xff] %v29243_v60  ;;  %v10435_v21 = vadd.f32 %v28676_v23, %v7450_v34  ;;  %v10437_v58 = vadd.f32 %v28679_v33, %v8994_v25  ;;  %v7452_v35 = vpop.f32.mrb[57].mxu0  ;;  %v8996_v2 = vpop.f32.mrb[57].mxu1  ;;  %v32740_v25 = vld [vmem:[#allocation37_spill] sm:$0xff] }
 0x513   : > { %32738 = vst [vmem:[#allocation55_spill] sm:$0xff] %v29245_v57  ;;  %32739 = vst [vmem:[#allocation24_spill] sm:$0xff] %v29247_v54  ;;  %v10436_v51 = vadd.f32 %v28866_v4, %v7452_v35  ;;  %v10438_v1 = vadd.f32 %v28869_v5, %v8996_v2  ;;  %v7454_v48 = vpop.f32.mrb[58].mxu0  ;;  %v8998_v15 = vpop.f32.mrb[58].mxu1  ;;  %v32741_v35 = vld [vmem:[#allocation69_spill] sm:$0xff]  ;;  %v32742_v54 = vld [vmem:[#allocation38_spill] sm:$0xff] }
 0x514   : > { %v10439_v7 = vadd.f32 %v28676_v23, %v7454_v48  ;;  %v10441_v12 = vadd.f32 %v28679_v33, %v8998_v15  ;;  %v7456_v37 = vpop.f32.mrb[59].mxu0  ;;  %v9000_v16 = vpop.f32.mrb[59].mxu1  ;;  %v10563_v0 = vmax.f32 %v10435_v21, 0.0  ;;  %v10565_v46 = vmax.f32 %v10437_v58, 0.0  ;;  %v32743_v15 = vld [vmem:[#allocation70_spill] sm:$0xff] }
 0x515   : > { %v10440_v50 = vadd.f32 %v28866_v4, %v7456_v37  ;;  %v10442_v56 = vadd.f32 %v28869_v5, %v9000_v16  ;;  %v10564_v2 = vmax.f32 %v10436_v51, 0.0  ;;  %v10566_v60 = vmax.f32 %v10438_v1, 0.0 }
 0x516   : > { %v10567_v26 = vmax.f32 %v10439_v7, 0.0  ;;  %v10569_v34 = vmax.f32 %v10441_v12, 0.0  ;;  %9440 = vmatmul.mubr.bf16.gmra.mrb[164].mxu0 %v32740_v25 }
 0x517   : > { %9601 = vmatmul.mubr.bf16.gmra.mrb[164].mxu1 %v32741_v35  ;;  %v10568_v59 = vmax.f32 %v10440_v50, 0.0  ;;  %v10570_v48 = vmax.f32 %v10442_v56, 0.0  ;;  %9447 = vmatprep.mubr.bf16.mxu0 %v32742_v54 }
 0x518   : > { %9608 = vmatprep.mubr.bf16.mxu1 %v32743_v15  ;;  %v29261_v57 = vpack.c.bf16 %v10567_v26, %v10563_v0  ;;  %v29263_v37 = vpack.c.bf16 %v10569_v34, %v10565_v46 }
 0x519   : > { %v7460_v21 = vpop.f32.mrb[60].mxu0  ;;  %v9004_v58 = vpop.f32.mrb[60].mxu1  ;;  %v29265_v7 = vpack.c.bf16 %v10568_v59, %v10564_v2  ;;  %v29267_v12 = vpack.c.bf16 %v10570_v48, %v10566_v60 }
 0x51a   : > { %32744 = vst [vmem:[#allocation56_spill] sm:$0xff] %v29261_v57  ;;  %32745 = vst [vmem:[#allocation25_spill] sm:$0xff] %v29263_v37  ;;  %v10443_v16 = vadd.f32 %v28676_v23, %v7460_v21  ;;  %v10445_v51 = vadd.f32 %v28679_v33, %v9004_v58  ;;  %v7462_v1 = vpop.f32.mrb[61].mxu0  ;;  %v9006_v50 = vpop.f32.mrb[61].mxu1  ;;  %v32748_v58 = vld [vmem:[#allocation39_spill] sm:$0xff] }
 0x51b   : > { %32746 = vst [vmem:[#allocation57_spill] sm:$0xff] %v29265_v7  ;;  %32747 = vst [vmem:[#allocation26_spill] sm:$0xff] %v29267_v12  ;;  %v10444_v54 = vadd.f32 %v28866_v4, %v7462_v1  ;;  %v10446_v56 = vadd.f32 %v28869_v5, %v9006_v50  ;;  %v7464_v0 = vpop.f32.mrb[62].mxu0  ;;  %v9008_v26 = vpop.f32.mrb[62].mxu1  ;;  %v32749_v1 = vld [vmem:[#allocation71_spill] sm:$0xff] }
 0x51c   : > { %v10447_v46 = vadd.f32 %v28676_v23, %v7464_v0  ;;  %v10449_v34 = vadd.f32 %v28679_v33, %v9008_v26  ;;  %v7466_v59 = vpop.f32.mrb[63].mxu0  ;;  %v9010_v25 = vpop.f32.mrb[63].mxu1  ;;  %v10571_v2 = vmax.f32 %v10443_v16, 0.0  ;;  %v10573_v48 = vmax.f32 %v10445_v51, 0.0  ;;  %v32750_v0 = vld [vmem:[#allocation40_spill] sm:$0xff] }
 0x51d   : > { %v10448_v60 = vadd.f32 %v28866_v4, %v7466_v59  ;;  %v10450_v35 = vadd.f32 %v28869_v5, %v9010_v25  ;;  %v10572_v50 = vmax.f32 %v10444_v54, 0.0  ;;  %v10574_v37 = vmax.f32 %v10446_v56, 0.0  ;;  %v32751_v33 = vld [vmem:[#allocation72_spill] sm:$0xff] }
 0x51e   : > { %v10575_v15 = vmax.f32 %v10447_v46, 0.0  ;;  %v10577_v21 = vmax.f32 %v10449_v34, 0.0  ;;  %9448 = vmatmul.mubr.bf16.gmra.mrb[168].mxu0 %v32748_v58 }
 0x51f   : > { %9609 = vmatmul.mubr.bf16.gmra.mrb[168].mxu1 %v32749_v1  ;;  %v10576_v57 = vmax.f32 %v10448_v60, 0.0  ;;  %v10578_v23 = vmax.f32 %v10450_v35, 0.0  ;;  %9455 = vmatprep.mubr.bf16.mxu0 %v32750_v0 }
 0x520   : > { %9616 = vmatprep.mubr.bf16.mxu1 %v32751_v33  ;;  %v29281_v26 = vpack.c.bf16 %v10575_v15, %v10571_v2  ;;  %v29283_v4 = vpack.c.bf16 %v10577_v21, %v10573_v48  ;;  %v32756_v48 = vld [vmem:[#allocation41_spill] sm:$0xff] }
 0x521   : > { %v21437_v5 = vpop.f32.mrb[64].mxu0  ;;  %v21549_v16 = vpop.f32.mrb[64].mxu1  ;;  %v29285_v51 = vpack.c.bf16 %v10576_v57, %v10572_v50  ;;  %v29287_v46 = vpack.c.bf16 %v10578_v23, %v10574_v37  ;;  %v32757_v21 = vld [vmem:[#allocation73_spill] sm:$0xff]  ;;  %v32758_v37 = vld [vmem:[#allocation42_spill] sm:$0xff] }
 0x522   : > { %32752 = vst [vmem:[#allocation58_spill] sm:$0xff] %v29281_v26  ;;  %32753 = vst [vmem:[#allocation27_spill] sm:$0xff] %v29283_v4  ;;  %v21438_v34 = vpop.f32.mrb[65].mxu0  ;;  %v21550_v59 = vpop.f32.mrb[65].mxu1  ;;  %v32759_v50 = vld [vmem:[#allocation74_spill] sm:$0xff] }
 0x523   : > { %32754 = vst [vmem:[#allocation59_spill] sm:$0xff] %v29285_v51  ;;  %32755 = vst [vmem:[#allocation28_spill] sm:$0xff] %v29287_v46  ;;  %v21439_v54 = vadd.f32 %v21438_v34, %v21437_v5  ;;  %v21551_v56 = vadd.f32 %v21550_v59, %v21549_v16  ;;  %v21440_v25 = vpop.f32.mrb[66].mxu0  ;;  %v21552_v60 = vpop.f32.mrb[66].mxu1 }
 0x524   : > { %v21441_v35 = vpop.f32.mrb[67].mxu0  ;;  %v21553_v58 = vpop.f32.mrb[67].mxu1 }
 0x525   : > { %v29289_v1 = vadd.f32 %v21551_v56, %v21439_v54  ;;  %v21442_v2 = vadd.f32 %v21441_v35, %v21440_v25  ;;  %v21554_v15 = vadd.f32 %v21553_v58, %v21552_v60 }
 0x526   : > { %9456 = vmatmul.mubr.bf16.gmra.mrb[172].mxu0 %v32756_v48 }
 0x527   : > { %9617 = vmatmul.mubr.bf16.gmra.mrb[172].mxu1 %v32757_v21  ;;  %v29293_v57 = vadd.f32 %v21554_v15, %v21442_v2  ;;  %9463 = vmatprep.mubr.bf16.mxu0 %v32758_v37  ;;  %v32760_v2 = vld [vmem:[#allocation43_spill] sm:$0xff]  ;;  %v32762_v21 = vld [vmem:[#allocation44_spill] sm:$0xff] }
 0x528   : > { %9624 = vmatprep.mubr.bf16.mxu1 %v32759_v50  ;;  %v32761_v15 = vld [vmem:[#allocation75_spill] sm:$0xff]  ;;  %v32763_v37 = vld [vmem:[#allocation76_spill] sm:$0xff] }
 0x529   : > { %v21443_v23 = vpop.f32.mrb[68].mxu0  ;;  %v21555_v0 = vpop.f32.mrb[68].mxu1 }
 0x52a   : > { %v21444_v33 = vpop.f32.mrb[69].mxu0  ;;  %v21556_v5 = vpop.f32.mrb[69].mxu1 }
 0x52b   : > { %v21445_v16 = vadd.f32 %v21444_v33, %v21443_v23  ;;  %v21557_v34 = vadd.f32 %v21556_v5, %v21555_v0  ;;  %v21446_v59 = vpop.f32.mrb[70].mxu0  ;;  %v21558_v54 = vpop.f32.mrb[70].mxu1 }
 0x52c   : > { %v21447_v56 = vpop.f32.mrb[71].mxu0  ;;  %v21559_v25 = vpop.f32.mrb[71].mxu1 }
 0x52d   : > { %v29297_v60 = vadd.f32 %v21557_v34, %v21445_v16  ;;  %v21448_v35 = vadd.f32 %v21447_v56, %v21446_v59  ;;  %v21560_v58 = vadd.f32 %v21559_v25, %v21558_v54 }
 0x52e   : > { %9464 = vmatmul.mubr.bf16.gmra.mrb[176].mxu0 %v32760_v2 }
 0x52f   : > { %9625 = vmatmul.mubr.bf16.gmra.mrb[176].mxu1 %v32761_v15  ;;  %v29301_v48 = vadd.f32 %v21560_v58, %v21448_v35  ;;  %9471 = vmatprep.mubr.bf16.mxu0 %v32762_v21  ;;  %v32764_v35 = vld [vmem:[#allocation45_spill] sm:$0xff]  ;;  %v32766_v21 = vld [vmem:[#allocation46_spill] sm:$0xff] }
 0x530   : > { %9632 = vmatprep.mubr.bf16.mxu1 %v32763_v37  ;;  %v32765_v58 = vld [vmem:[#allocation77_spill] sm:$0xff]  ;;  %v32767_v37 = vld [vmem:[#allocation78_spill] sm:$0xff] }
 0x531   : > { %v21449_v50 = vpop.f32.mrb[72].mxu0  ;;  %v21561_v23 = vpop.f32.mrb[72].mxu1 }
 0x532   : > { %v21450_v0 = vpop.f32.mrb[73].mxu0  ;;  %v21562_v33 = vpop.f32.mrb[73].mxu1 }
 0x533   : > { %v21451_v5 = vadd.f32 %v21450_v0, %v21449_v50  ;;  %v21563_v4 = vadd.f32 %v21562_v33, %v21561_v23  ;;  %v21452_v16 = vpop.f32.mrb[74].mxu0  ;;  %v21564_v34 = vpop.f32.mrb[74].mxu1 }
 0x534   : > { %v21453_v59 = vpop.f32.mrb[75].mxu0  ;;  %v21565_v54 = vpop.f32.mrb[75].mxu1 }
 0x535   : > { %v29305_v56 = vadd.f32 %v21563_v4, %v21451_v5  ;;  %v21454_v25 = vadd.f32 %v21453_v59, %v21452_v16  ;;  %v21566_v2 = vadd.f32 %v21565_v54, %v21564_v34 }
 0x536   : > { %9472 = vmatmul.mubr.bf16.gmra.mrb[180].mxu0 %v32764_v35 }
 0x537   : > { %9633 = vmatmul.mubr.bf16.gmra.mrb[180].mxu1 %v32765_v58  ;;  %v29309_v15 = vadd.f32 %v21566_v2, %v21454_v25  ;;  %9479 = vmatprep.mubr.bf16.mxu0 %v32766_v21  ;;  %v32768_v25 = vld [vmem:[#allocation47_spill] sm:$0xff]  ;;  %v32770_v21 = vld [vmem:[#allocation48_spill] sm:$0xff] }
 0x538   : > { %9640 = vmatprep.mubr.bf16.mxu1 %v32767_v37  ;;  %v32769_v2 = vld [vmem:[#allocation79_spill] sm:$0xff]  ;;  %v32771_v37 = vld [vmem:[#allocation80_spill] sm:$0xff] }
 0x539   : > { %v21455_v50 = vpop.f32.mrb[76].mxu0  ;;  %v21567_v23 = vpop.f32.mrb[76].mxu1 }
 0x53a   : > { %v21456_v0 = vpop.f32.mrb[77].mxu0  ;;  %v21568_v33 = vpop.f32.mrb[77].mxu1 }
 0x53b   : > { %v21457_v26 = vadd.f32 %v21456_v0, %v21455_v50  ;;  %v21569_v46 = vadd.f32 %v21568_v33, %v21567_v23  ;;  %v21458_v4 = vpop.f32.mrb[78].mxu0  ;;  %v21570_v5 = vpop.f32.mrb[78].mxu1 }
 0x53c   : > { %v21459_v16 = vpop.f32.mrb[79].mxu0  ;;  %v21571_v34 = vpop.f32.mrb[79].mxu1 }
 0x53d   : > { %v29313_v59 = vadd.f32 %v21569_v46, %v21457_v26  ;;  %v21460_v54 = vadd.f32 %v21459_v16, %v21458_v4  ;;  %v21572_v35 = vadd.f32 %v21571_v34, %v21570_v5 }
 0x53e   : > { %9480 = vmatmul.mubr.bf16.gmra.mrb[184].mxu0 %v32768_v25 }
 0x53f   : > { %9641 = vmatmul.mubr.bf16.gmra.mrb[184].mxu1 %v32769_v2  ;;  %v29317_v58 = vadd.f32 %v21572_v35, %v21460_v54  ;;  %9487 = vmatprep.mubr.bf16.mxu0 %v32770_v21  ;;  %v32772_v54 = vld [vmem:[#allocation49_spill] sm:$0xff]  ;;  %v32774_v21 = vld [vmem:[#allocation82_spill] sm:$0xff] }
 0x540   : > { %9648 = vmatprep.mubr.bf16.mxu1 %v32771_v37  ;;  %v32773_v35 = vld [vmem:[#allocation81_spill] sm:$0xff]  ;;  %v32775_v37 = vld [vmem:[#allocation114_spill] sm:$0xff] }
 0x541   : > { %v21461_v50 = vpop.f32.mrb[80].mxu0  ;;  %v21573_v23 = vpop.f32.mrb[80].mxu1 }
 0x542   : > { %v21462_v0 = vpop.f32.mrb[81].mxu0  ;;  %v21574_v33 = vpop.f32.mrb[81].mxu1 }
 0x543   : > { %v21463_v51 = vadd.f32 %v21462_v0, %v21461_v50  ;;  %v21575_v12 = vadd.f32 %v21574_v33, %v21573_v23  ;;  %v21464_v26 = vpop.f32.mrb[82].mxu0  ;;  %v21576_v46 = vpop.f32.mrb[82].mxu1 }
 0x544   : > { %v21465_v4 = vpop.f32.mrb[83].mxu0  ;;  %v21577_v5 = vpop.f32.mrb[83].mxu1 }
 0x545   : > { %v29321_v16 = vadd.f32 %v21575_v12, %v21463_v51  ;;  %v21466_v34 = vadd.f32 %v21465_v4, %v21464_v26  ;;  %v21578_v25 = vadd.f32 %v21577_v5, %v21576_v46  ;;  %v25012_v26 = vld [vmem:[%s32239_s3 + $0xf10] ss:$20 sps:$4 sm:$0xff]  }
 0x546   : > { %9488 = vmatmul.mubr.bf16.gmra.mrb[188].mxu0 %v32772_v54  ;;  %v25013_v46 = vld [vmem:[%s32239_s3 + $0x1190] ss:$20 sps:$4 sm:$0xff]  }
 0x547   : > { %9649 = vmatmul.mubr.bf16.gmra.mrb[188].mxu1 %v32773_v35  ;;  %v29325_v2 = vadd.f32 %v21578_v25, %v21466_v34  ;;  %9689 = vmatprep.mubr.bf16.mxu0 %v32774_v21  ;;  %v25014_v34 = vld [vmem:[%s32239_s3 + $0x1078] ss:$20 sps:$4 sm:$0xff]  }
 0x548   : > { %9850 = vmatprep.mubr.bf16.mxu1 %v32775_v37  ;;  %v25015_v25 = vld [vmem:[%s32239_s3 + $0x12f8] ss:$20 sps:$4 sm:$0xff]  }
 0x549   : > { %v21467_v50 = vpop.f32.mrb[84].mxu0  ;;  %v21579_v23 = vpop.f32.mrb[84].mxu1  ;;  %v32776_v37 = vld [vmem:[#allocation83_spill] sm:$0xff] }
 0x54a   : > { %v21468_v0 = vpop.f32.mrb[85].mxu0  ;;  %v21580_v33 = vpop.f32.mrb[85].mxu1 }
 0x54b   : > { %v21469_v7 = vadd.f32 %v21468_v0, %v21467_v50  ;;  %v21581_v52 = vadd.f32 %v21580_v33, %v21579_v23  ;;  %v21470_v12 = vpop.f32.mrb[86].mxu0  ;;  %v21582_v51 = vpop.f32.mrb[86].mxu1  ;;  %v32777_v50 = vld [vmem:[#allocation115_spill] sm:$0xff] }
 0x54c   : > { %v21471_v4 = vpop.f32.mrb[87].mxu0  ;;  %v21583_v5 = vpop.f32.mrb[87].mxu1  ;;  %v25016_v0 = vld [vmem:[%s32239_s3 + $0xf38] ss:$20 sps:$4 sm:$0xff]  }
 0x54d   : > { %v29341_v54 = vadd.f32 %v21581_v52, %v21469_v7  ;;  %v21472_v35 = vadd.f32 %v21471_v4, %v21470_v12  ;;  %v21584_v21 = vadd.f32 %v21583_v5, %v21582_v51  ;;  %v25017_v33 = vld [vmem:[%s32239_s3 + $0x11b8] ss:$20 sps:$4 sm:$0xff]   ;;  %v25018_v52 = vld [vmem:[%s32239_s3 + $0x10a0] ss:$20 sps:$4 sm:$0xff]  }
 0x54e   : > { %9690 = vmatmul.mubr.bf16.vlgmr.msra.gmra.mrb[192].mxu0 %v32776_v37  ;;  %v25019_v7 = vld [vmem:[%s32239_s3 + $0x1320] ss:$20 sps:$4 sm:$0xff]  }
 0x54f   : > { %9851 = vmatmul.mubr.bf16.vlgmr.msra.gmra.mrb[192].mxu1 %v32777_v50  ;;  %v29345_v23 = vadd.f32 %v21584_v21, %v21472_v35  ;;  %22094 = vmatpush3.bf16.msra.mxu0 %v25012_v26  ;;  %v32778_v26 = vld [vmem:[#allocation84_spill] sm:$0xff] }
 0x550   : > { %22206 = vmatpush3.bf16.msra.mxu1 %v25013_v46  ;;  %22095 = vmatprep.subr.bf16.mxu0 %v25014_v34  ;;  %v32779_v46 = vld [vmem:[#allocation116_spill] sm:$0xff] }
 0x551   : > { %22207 = vmatprep.subr.bf16.mxu1 %v25015_v25  ;;  %v21473_v12 = vpop.f32.mrb[88].mxu0  ;;  %v21585_v51 = vpop.f32.mrb[88].mxu1  ;;  %9697 = vmatprep.mubr.bf16.mxu0 %v32778_v26  ;;  %v25020_v37 = vld [vmem:[%s32239_s3 + $0xf60] ss:$20 sps:$4 sm:$0xff]  }
 0x552   : > { %9858 = vmatprep.mubr.bf16.mxu1 %v32779_v46  ;;  %v21474_v4 = vpop.f32.mrb[89].mxu0  ;;  %v21586_v5 = vpop.f32.mrb[89].mxu1  ;;  %v25021_v50 = vld [vmem:[%s32239_s3 + $0x11e0] ss:$20 sps:$4 sm:$0xff]  }
 0x553   : > { %v21475_v35 = vadd.f32 %v21474_v4, %v21473_v12  ;;  %v21587_v21 = vadd.f32 %v21586_v5, %v21585_v51  ;;  %22096 = vmatpush3.bf16.msra.mxu0 %v25016_v0  ;;  %v21476_v34 = vpop.f32.mrb[90].mxu0  ;;  %v21588_v25 = vpop.f32.mrb[90].mxu1  ;;  %v25022_v12 = vld [vmem:[%s32239_s3 + $0x10c8] ss:$20 sps:$4 sm:$0xff]  }
 0x554   : > { %22208 = vmatpush3.bf16.msra.mxu1 %v25017_v33  ;;  %v21477_v3 = vpop.f32.mrb[91].mxu0  ;;  %v21589_v26 = vpop.f32.mrb[91].mxu1  ;;  %22097 = vmatprep.subr.bf16.mxu0 %v25018_v52  ;;  %v25023_v0 = vld [vmem:[%s32239_s3 + $0x1348] ss:$20 sps:$4 sm:$0xff]  }
 0x555   : > { %22209 = vmatprep.subr.bf16.mxu1 %v25019_v7  ;;  %v29373_v33 = vadd.f32 %v21587_v21, %v21475_v35  ;;  %v21478_v51 = vadd.f32 %v21477_v3, %v21476_v34  ;;  %v21590_v46 = vadd.f32 %v21589_v26, %v21588_v25  ;;  %v32780_v4 = vld [vmem:[#allocation85_spill] sm:$0xff]  ;;  %v25026_v3 = vld [vmem:[%s32239_s3 + $0x10f0] ss:$20 sps:$4 sm:$0xff]  }
 0x556   : > { %9698 = vmatmul.mubr.bf16.gmra.mrb[196].mxu0 %v32780_v4  ;;  %v32781_v5 = vld [vmem:[#allocation117_spill] sm:$0xff]  ;;  %v25027_v35 = vld [vmem:[%s32239_s3 + $0x1370] ss:$20 sps:$4 sm:$0xff]  }
 0x557   : > { %9859 = vmatmul.mubr.bf16.gmra.mrb[196].mxu1 %v32781_v5  ;;  %v29377_v18 = vadd.f32 %v21590_v46, %v21478_v51  ;;  %22098 = vmatpush3.bf16.msra.mxu0 %v25020_v37  ;;  %v25024_v52 = vld [vmem:[%s32239_s3 + $0xf88] ss:$20 sps:$4 sm:$0xff]   ;;  %v32782_v25 = vld [vmem:[#allocation86_spill] sm:$0xff] }
 0x558   : > { %22210 = vmatpush3.bf16.msra.mxu1 %v25021_v50  ;;  %v25025_v7 = vld [vmem:[%s32239_s3 + $0x1208] ss:$20 sps:$4 sm:$0xff]   ;;  %22099 = vmatprep.subr.bf16.mxu0 %v25022_v12  ;;  %v32783_v37 = vld [vmem:[#allocation118_spill] sm:$0xff] }
 0x559   : > { %22211 = vmatprep.subr.bf16.mxu1 %v25023_v0  ;;  %v21479_v21 = vpop.f32.mrb[92].mxu0  ;;  %v21591_v34 = vpop.f32.mrb[92].mxu1  ;;  %9705 = vmatprep.mubr.bf16.mxu0 %v32782_v25  ;;  %v25028_v4 = vld [vmem:[%s32239_s3 + $0xfb0] ss:$20 sps:$4 sm:$0xff]  }
 0x55a   : > { %9866 = vmatprep.mubr.bf16.mxu1 %v32783_v37  ;;  %v21480_v50 = vpop.f32.mrb[93].mxu0  ;;  %v21592_v26 = vpop.f32.mrb[93].mxu1  ;;  %v25029_v5 = vld [vmem:[%s32239_s3 + $0x1230] ss:$20 sps:$4 sm:$0xff]  }
 0x55b   : > { %v21481_v51 = vadd.f32 %v21480_v50, %v21479_v21  ;;  %v21593_v46 = vadd.f32 %v21592_v26, %v21591_v34  ;;  %22100 = vmatpush3.bf16.msra.mxu0 %v25024_v52  ;;  %v21482_v12 = vpop.f32.mrb[94].mxu0  ;;  %v21594_v0 = vpop.f32.mrb[94].mxu1  ;;  %v25030_v21 = vld [vmem:[%s32239_s3 + $0x1118] ss:$20 sps:$4 sm:$0xff]  }
 0x55c   : > { %22212 = vmatpush3.bf16.msra.mxu1 %v25025_v7  ;;  %v21483_v9 = vpop.f32.mrb[95].mxu0  ;;  %v21595_v25 = vpop.f32.mrb[95].mxu1  ;;  %22101 = vmatprep.subr.bf16.mxu0 %v25026_v3  ;;  %v25031_v52 = vld [vmem:[%s32239_s3 + $0x1398] ss:$20 sps:$4 sm:$0xff]  }
 0x55d   : > { %22213 = vmatprep.subr.bf16.mxu1 %v25027_v35  ;;  %v29405_v7 = vadd.f32 %v21593_v46, %v21481_v51  ;;  %v21484_v34 = vadd.f32 %v21483_v9, %v21482_v12  ;;  %v21596_v37 = vadd.f32 %v21595_v25, %v21594_v0  ;;  %v32784_v50 = vld [vmem:[#allocation87_spill] sm:$0xff]  ;;  %v25034_v9 = vld [vmem:[%s32239_s3 + $0x1140] ss:$20 sps:$4 sm:$0xff]  }
 0x55e   : > { %9706 = vmatmul.mubr.bf16.gmra.mrb[200].mxu0 %v32784_v50  ;;  %v32785_v26 = vld [vmem:[#allocation119_spill] sm:$0xff]  ;;  %v25035_v51 = vld [vmem:[%s32239_s3 + $0x13c0] ss:$20 sps:$4 sm:$0xff]  }
 0x55f   : > { %9867 = vmatmul.mubr.bf16.gmra.mrb[200].mxu1 %v32785_v26  ;;  %v29409_v30 = vadd.f32 %v21596_v37, %v21484_v34  ;;  %22102 = vmatpush3.bf16.msra.mxu0 %v25028_v4  ;;  %v25032_v3 = vld [vmem:[%s32239_s3 + $0xfd8] ss:$20 sps:$4 sm:$0xff]   ;;  %v32786_v0 = vld [vmem:[#allocation88_spill] sm:$0xff] }
 0x560   : > { %22214 = vmatpush3.bf16.msra.mxu1 %v25029_v5  ;;  %v25033_v35 = vld [vmem:[%s32239_s3 + $0x1258] ss:$20 sps:$4 sm:$0xff]   ;;  %22103 = vmatprep.subr.bf16.mxu0 %v25030_v21  ;;  %v32787_v4 = vld [vmem:[#allocation120_spill] sm:$0xff] }
 0x561   : > { %22215 = vmatprep.subr.bf16.mxu1 %v25031_v52  ;;  %v21485_v46 = vpop.f32.mrb[96].mxu0  ;;  %v21597_v12 = vpop.f32.mrb[96].mxu1  ;;  %9713 = vmatprep.mubr.bf16.mxu0 %v32786_v0  ;;  %v25036_v50 = vld [vmem:[%s32239_s3 + $0x1000] ss:$20 sps:$4 sm:$0xff]  }
 0x562   : > { %9874 = vmatprep.mubr.bf16.mxu1 %v32787_v4  ;;  %v21486_v5 = vpop.f32.mrb[97].mxu0  ;;  %v21598_v25 = vpop.f32.mrb[97].mxu1  ;;  %v25037_v26 = vld [vmem:[%s32239_s3 + $0x1280] ss:$20 sps:$4 sm:$0xff]  }
 0x563   : > { %v21487_v34 = vadd.f32 %v21486_v5, %v21485_v46  ;;  %v21599_v37 = vadd.f32 %v21598_v25, %v21597_v12  ;;  %22104 = vmatpush3.bf16.msra.mxu0 %v25032_v3  ;;  %v21488_v21 = vpop.f32.mrb[98].mxu0  ;;  %v21600_v52 = vpop.f32.mrb[98].mxu1  ;;  %v25038_v46 = vld [vmem:[%s32239_s3 + $0x1168] ss:$20 sps:$4 sm:$0xff]  }
 0x564   : > { %22216 = vmatpush3.bf16.msra.mxu1 %v25033_v35  ;;  %v21489_v13 = vpop.f32.mrb[99].mxu0  ;;  %v21601_v0 = vpop.f32.mrb[99].mxu1  ;;  %22105 = vmatprep.subr.bf16.mxu0 %v25034_v9  ;;  %v25039_v3 = vld [vmem:[%s32239_s3 + $0x13e8] ss:$20 sps:$4 sm:$0xff]  }
 0x565   : > { %22217 = vmatprep.subr.bf16.mxu1 %v25035_v51  ;;  %v29437_v35 = vadd.f32 %v21599_v37, %v21487_v34  ;;  %v21490_v12 = vadd.f32 %v21489_v13, %v21488_v21  ;;  %v21602_v4 = vadd.f32 %v21601_v0, %v21600_v52  ;;  %v32788_v5 = vld [vmem:[#allocation89_spill] sm:$0xff]  ;;  %v32790_v37 = vld [vmem:[#allocation90_spill] sm:$0xff] }
 0x566   : > { %9714 = vmatmul.mubr.bf16.gmra.mrb[204].mxu0 %v32788_v5  ;;  %v32789_v25 = vld [vmem:[#allocation121_spill] sm:$0xff]  ;;  %v32791_v21 = vld [vmem:[#allocation122_spill] sm:$0xff] }
 0x567   : > { %9875 = vmatmul.mubr.bf16.gmra.mrb[204].mxu1 %v32789_v25  ;;  %v29441_v40 = vadd.f32 %v21602_v4, %v21490_v12  ;;  %22106 = vmatpush3.bf16.msra.mxu0 %v25036_v50  ;;  %v25040_v9 = vld [vmem:[%s32239_s3 + $0x1028] ss:$20 sps:$4 sm:$0xff]  }
 0x568   : > { %22218 = vmatpush3.bf16.msra.mxu1 %v25037_v26  ;;  %v25041_v51 = vld [vmem:[%s32239_s3 + $0x12a8] ss:$20 sps:$4 sm:$0xff]   ;;  %22107 = vmatprep.subr.bf16.mxu0 %v25038_v46 }
 0x569   : > { %22219 = vmatprep.subr.bf16.mxu1 %v25039_v3  ;;  %v21491_v13 = vpop.f32.mrb[100].mxu0  ;;  %v21603_v34 = vpop.f32.mrb[100].mxu1  ;;  %9721 = vmatprep.mubr.bf16.mxu0 %v32790_v37 }
 0x56a   : > { %9882 = vmatprep.mubr.bf16.mxu1 %v32791_v21  ;;  %v21492_v52 = vpop.f32.mrb[101].mxu0  ;;  %v21604_v0 = vpop.f32.mrb[101].mxu1  ;;  %v32794_v21 = vld [vmem:[#allocation123_spill] sm:$0xff] }
 0x56b   : > { %v21493_v50 = vadd.f32 %v21492_v52, %v21491_v13  ;;  %v21605_v26 = vadd.f32 %v21604_v0, %v21603_v34  ;;  %22108 = vmatpush3.bf16.msra.mxu0 %v25040_v9  ;;  %v21494_v12 = vpop.f32.mrb[102].mxu0  ;;  %v21606_v4 = vpop.f32.mrb[102].mxu1  ;;  %v32796_v9 = vld [vmem:[#allocation92_spill] sm:$0xff] }
 0x56c   : > { %22220 = vmatpush3.bf16.msra.mxu1 %v25041_v51  ;;  %10768 = vmatprep.subr.bf16.mxu0 %v28889_v11  ;;  %v21495_v46 = vpop.f32.mrb[103].mxu0  ;;  %v21607_v3 = vpop.f32.mrb[103].mxu1  ;;  %v32797_v51 = vld [vmem:[#allocation124_spill] sm:$0xff] }
 0x56d   : > { %10859 = vmatprep.subr.bf16.mxu1 %v28891_v19  ;;  %v29453_v5 = vadd.f32 %v21605_v26, %v21493_v50  ;;  %v21496_v25 = vadd.f32 %v21495_v46, %v21494_v12  ;;  %v21608_v37 = vadd.f32 %v21607_v3, %v21606_v4 }
 0x56e   : > { %9722 = vmatmul.mubr.bf16.gmra.mrb[208].mxu0 %v32793_v55 }
 0x56f   : > { %32792 = vst [vmem:[#allocation60_spill] sm:$0xff] %v29453_v5  ;;  %9883 = vmatmul.mubr.bf16.gmra.mrb[208].mxu1 %v32794_v21  ;;  %v29457_v13 = vadd.f32 %v21608_v37, %v21496_v25  ;;  %9729 = vmatprep.mubr.bf16.mxu0 %v32796_v9  ;;  %v32799_v25 = vld [vmem:[#allocation93_spill] sm:$0xff]  ;;  %v32802_v9 = vld [vmem:[#allocation94_spill] sm:$0xff] }
 0x570   : > { %9890 = vmatprep.mubr.bf16.mxu1 %v32797_v51  ;;  %v32800_v37 = vld [vmem:[#allocation125_spill] sm:$0xff]  ;;  %v32803_v51 = vld [vmem:[#allocation126_spill] sm:$0xff] }
 0x571   : > { %32795 = vst [vmem:[#allocation29_spill] sm:$0xff] %v29457_v13  ;;  %v21497_v34 = vpop.f32.mrb[104].mxu0  ;;  %v21609_v11 = vpop.f32.mrb[104].mxu1 }
 0x572   : > { %v21498_v52 = vpop.f32.mrb[105].mxu0  ;;  %v21610_v19 = vpop.f32.mrb[105].mxu1 }
 0x573   : > { %v21499_v0 = vadd.f32 %v21498_v52, %v21497_v34  ;;  %v21611_v17 = vadd.f32 %v21610_v19, %v21609_v11  ;;  %v21500_v50 = vpop.f32.mrb[106].mxu0  ;;  %v21612_v26 = vpop.f32.mrb[106].mxu1 }
 0x574   : > { %v21501_v12 = vpop.f32.mrb[107].mxu0  ;;  %v21613_v4 = vpop.f32.mrb[107].mxu1 }
 0x575   : > { %v29461_v46 = vadd.f32 %v21611_v17, %v21499_v0  ;;  %v21502_v55 = vadd.f32 %v21501_v12, %v21500_v50  ;;  %v21614_v3 = vadd.f32 %v21613_v4, %v21612_v26 }
 0x576   : > { %9730 = vmatmul.mubr.bf16.gmra.mrb[212].mxu0 %v32799_v25 }
 0x577   : > { %32798 = vst [vmem:[#allocation61_spill] sm:$0xff] %v29461_v46  ;;  %9891 = vmatmul.mubr.bf16.gmra.mrb[212].mxu1 %v32800_v37  ;;  %v29465_v21 = vadd.f32 %v21614_v3, %v21502_v55  ;;  %9737 = vmatprep.mubr.bf16.mxu0 %v32802_v9  ;;  %v32805_v55 = vld [vmem:[#allocation95_spill] sm:$0xff]  ;;  %v32807_v37 = vld [vmem:[#allocation96_spill] sm:$0xff] }
 0x578   : > { %9898 = vmatprep.mubr.bf16.mxu1 %v32803_v51  ;;  %v32806_v3 = vld [vmem:[#allocation127_spill] sm:$0xff]  ;;  %v32808_v9 = vld [vmem:[#allocation128_spill] sm:$0xff] }
 0x579   : > { %32801 = vst [vmem:[#allocation30_spill] sm:$0xff] %v29465_v21  ;;  %v21503_v34 = vpop.f32.mrb[108].mxu0  ;;  %v21615_v11 = vpop.f32.mrb[108].mxu1 }
 0x57a   : > { %v21504_v52 = vpop.f32.mrb[109].mxu0  ;;  %v21616_v19 = vpop.f32.mrb[109].mxu1 }
 0x57b   : > { %v21505_v13 = vadd.f32 %v21504_v52, %v21503_v34  ;;  %v21617_v5 = vadd.f32 %v21616_v19, %v21615_v11  ;;  %v21506_v17 = vpop.f32.mrb[110].mxu0  ;;  %v21618_v0 = vpop.f32.mrb[110].mxu1 }
 0x57c   : > { %v21507_v50 = vpop.f32.mrb[111].mxu0  ;;  %v21619_v26 = vpop.f32.mrb[111].mxu1 }
 0x57d   : > { %v21508_v12 = vadd.f32 %v21507_v50, %v21506_v17  ;;  %v21620_v4 = vadd.f32 %v21619_v26, %v21618_v0  ;;  %v29469_v25 = vadd.f32 %v21617_v5, %v21505_v13 }
 0x57e   : > { %9738 = vmatmul.mubr.bf16.gmra.mrb[216].mxu0 %v32805_v55 }
 0x57f   : > { %32804 = vst [vmem:[#allocation62_spill] sm:$0xff] %v29469_v25  ;;  %9899 = vmatmul.mubr.bf16.gmra.mrb[216].mxu1 %v32806_v3  ;;  %9745 = vmatprep.mubr.bf16.mxu0 %v32807_v37  ;;  %v29475_v51 = vadd.f32 %v21620_v4, %v21508_v12  ;;  %v32811_v3 = vld [vmem:[#allocation97_spill] sm:$0xff]  ;;  %v32813_v12 = vld [vmem:[#allocation98_spill] sm:$0xff] }
 0x580   : > { %9906 = vmatprep.mubr.bf16.mxu1 %v32808_v9  ;;  %v32812_v37 = vld [vmem:[#allocation129_spill] sm:$0xff]  ;;  %v32814_v4 = vld [vmem:[#allocation130_spill] sm:$0xff] }
 0x581   : > { %32809 = vst [vmem:[#allocation31_spill] sm:$0xff] %v29475_v51  ;;  %v21509_v34 = vpop.f32.mrb[112].mxu0  ;;  %v21621_v11 = vpop.f32.mrb[112].mxu1 }
 0x582   : > { %v21510_v52 = vpop.f32.mrb[113].mxu0  ;;  %v21622_v19 = vpop.f32.mrb[113].mxu1 }
 0x583   : > { %v21511_v21 = vadd.f32 %v21510_v52, %v21509_v34  ;;  %v21623_v46 = vadd.f32 %v21622_v19, %v21621_v11  ;;  %v21512_v17 = vpop.f32.mrb[114].mxu0  ;;  %v21624_v0 = vpop.f32.mrb[114].mxu1 }
 0x584   : > { %v21513_v5 = vpop.f32.mrb[115].mxu0  ;;  %v21625_v13 = vpop.f32.mrb[115].mxu1 }
 0x585   : > { %v21514_v50 = vadd.f32 %v21513_v5, %v21512_v17  ;;  %v21626_v26 = vadd.f32 %v21625_v13, %v21624_v0  ;;  %v29477_v55 = vadd.f32 %v21623_v46, %v21511_v21 }
 0x586   : > { %9746 = vmatmul.mubr.bf16.gmra.mrb[220].mxu0 %v32811_v3 }
 0x587   : > { %32810 = vst [vmem:[#allocation63_spill] sm:$0xff] %v29477_v55  ;;  %9907 = vmatmul.mubr.bf16.gmra.mrb[220].mxu1 %v32812_v37  ;;  %9753 = vmatprep.mubr.bf16.mxu0 %v32813_v12  ;;  %v29483_v9 = vadd.f32 %v21626_v26, %v21514_v50  ;;  %v32817_v37 = vld [vmem:[#allocation99_spill] sm:$0xff]  ;;  %v32819_v50 = vld [vmem:[#allocation100_spill] sm:$0xff] }
 0x588   : > { %9914 = vmatprep.mubr.bf16.mxu1 %v32814_v4  ;;  %v32818_v12 = vld [vmem:[#allocation131_spill] sm:$0xff]  ;;  %v32820_v26 = vld [vmem:[#allocation132_spill] sm:$0xff] }
 0x589   : > { %32815 = vst [vmem:[#allocation32_spill] sm:$0xff] %v29483_v9  ;;  %v21515_v34 = vpop.f32.mrb[116].mxu0  ;;  %v21627_v11 = vpop.f32.mrb[116].mxu1 }
 0x58a   : > { %v21516_v52 = vpop.f32.mrb[117].mxu0  ;;  %v21628_v19 = vpop.f32.mrb[117].mxu1 }
 0x58b   : > { %v21517_v51 = vadd.f32 %v21516_v52, %v21515_v34  ;;  %v21629_v25 = vadd.f32 %v21628_v19, %v21627_v11  ;;  %v21518_v17 = vpop.f32.mrb[118].mxu0  ;;  %v21630_v0 = vpop.f32.mrb[118].mxu1 }
 0x58c   : > { %v21519_v46 = vpop.f32.mrb[119].mxu0  ;;  %v21631_v21 = vpop.f32.mrb[119].mxu1 }
 0x58d   : > { %v21520_v5 = vadd.f32 %v21519_v46, %v21518_v17  ;;  %v21632_v13 = vadd.f32 %v21631_v21, %v21630_v0  ;;  %v29485_v3 = vadd.f32 %v21629_v25, %v21517_v51 }
 0x58e   : > { %9754 = vmatmul.mubr.bf16.gmra.mrb[224].mxu0 %v32817_v37 }
 0x58f   : > { %32816 = vst [vmem:[#allocation64_spill] sm:$0xff] %v29485_v3  ;;  %9915 = vmatmul.mubr.bf16.gmra.mrb[224].mxu1 %v32818_v12  ;;  %9761 = vmatprep.mubr.bf16.mxu0 %v32819_v50  ;;  %v29491_v4 = vadd.f32 %v21632_v13, %v21520_v5  ;;  %v32823_v12 = vld [vmem:[#allocation101_spill] sm:$0xff]  ;;  %v32825_v5 = vld [vmem:[#allocation102_spill] sm:$0xff] }
 0x590   : > { %9922 = vmatprep.mubr.bf16.mxu1 %v32820_v26  ;;  %v32824_v50 = vld [vmem:[#allocation133_spill] sm:$0xff]  ;;  %v32826_v13 = vld [vmem:[#allocation134_spill] sm:$0xff] }
 0x591   : > { %32821 = vst [vmem:[#allocation33_spill] sm:$0xff] %v29491_v4  ;;  %v21521_v34 = vpop.f32.mrb[120].mxu0  ;;  %v21633_v11 = vpop.f32.mrb[120].mxu1 }
 0x592   : > { %v21522_v52 = vpop.f32.mrb[121].mxu0  ;;  %v21634_v19 = vpop.f32.mrb[121].mxu1 }
 0x593   : > { %v21523_v9 = vadd.f32 %v21522_v52, %v21521_v34  ;;  %v21635_v55 = vadd.f32 %v21634_v19, %v21633_v11  ;;  %v21524_v17 = vpop.f32.mrb[122].mxu0  ;;  %v21636_v0 = vpop.f32.mrb[122].mxu1 }
 0x594   : > { %v21525_v25 = vpop.f32.mrb[123].mxu0  ;;  %v21637_v51 = vpop.f32.mrb[123].mxu1 }
 0x595   : > { %v21526_v46 = vadd.f32 %v21525_v25, %v21524_v17  ;;  %v21638_v21 = vadd.f32 %v21637_v51, %v21636_v0  ;;  %v29493_v37 = vadd.f32 %v21635_v55, %v21523_v9 }
 0x596   : > { %9762 = vmatmul.mubr.bf16.gmra.mrb[228].mxu0 %v32823_v12 }
 0x597   : > { %32822 = vst [vmem:[#allocation65_spill] sm:$0xff] %v29493_v37  ;;  %9923 = vmatmul.mubr.bf16.gmra.mrb[228].mxu1 %v32824_v50  ;;  %9769 = vmatprep.mubr.bf16.mxu0 %v32825_v5  ;;  %v29499_v26 = vadd.f32 %v21638_v21, %v21526_v46  ;;  %v32828_v50 = vld [vmem:[#allocation103_spill] sm:$0xff]  ;;  %v32830_v46 = vld [vmem:[#allocation104_spill] sm:$0xff] }
 0x598   : > { %9930 = vmatprep.mubr.bf16.mxu1 %v32826_v13  ;;  %v32829_v5 = vld [vmem:[#allocation135_spill] sm:$0xff]  ;;  %v32831_v21 = vld [vmem:[#allocation136_spill] sm:$0xff] }
 0x599   : > { %32827 = vst [vmem:[#allocation34_spill] sm:$0xff] %v29499_v26  ;;  %v21527_v34 = vpop.f32.mrb[124].mxu0  ;;  %v21639_v11 = vpop.f32.mrb[124].mxu1 }
 0x59a   : > { %v21528_v52 = vpop.f32.mrb[125].mxu0  ;;  %v21640_v19 = vpop.f32.mrb[125].mxu1 }
 0x59b   : > { %v21529_v4 = vadd.f32 %v21528_v52, %v21527_v34  ;;  %v21641_v3 = vadd.f32 %v21640_v19, %v21639_v11  ;;  %v21530_v17 = vpop.f32.mrb[126].mxu0  ;;  %v21642_v0 = vpop.f32.mrb[126].mxu1 }
 0x59c   : > { %v21531_v55 = vpop.f32.mrb[127].mxu0  ;;  %v21643_v9 = vpop.f32.mrb[127].mxu1 }
 0x59d   : > { %v21532_v25 = vadd.f32 %v21531_v55, %v21530_v17  ;;  %v21644_v51 = vadd.f32 %v21643_v9, %v21642_v0  ;;  %v29501_v12 = vadd.f32 %v21641_v3, %v21529_v4 }
 0x59e   : > { %9770 = vmatmul.mubr.bf16.gmra.mrb[232].mxu0 %v32828_v50 }
 0x59f   : > { %9931 = vmatmul.mubr.bf16.gmra.mrb[232].mxu1 %v32829_v5  ;;  %9777 = vmatprep.mubr.bf16.mxu0 %v32830_v46  ;;  %v29507_v13 = vadd.f32 %v21644_v51, %v21532_v25  ;;  %v32833_v5 = vld [vmem:[#allocation105_spill] sm:$0xff]  ;;  %v32835_v51 = vld [vmem:[#allocation106_spill] sm:$0xff] }
 0x5a0   : > { %9938 = vmatprep.mubr.bf16.mxu1 %v32831_v21  ;;  %v32834_v46 = vld [vmem:[#allocation137_spill] sm:$0xff]  ;;  %v32836_v21 = vld [vmem:[#allocation138_spill] sm:$0xff] }
 0x5a1   : > { %32832 = vst [vmem:[#allocation66_spill] sm:$0xff] %v29507_v13  ;;  %v21661_v34 = vpop.f32.mrb[128].mxu0  ;;  %v21773_v11 = vpop.f32.mrb[128].mxu1 }
 0x5a2   : > { %v21662_v52 = vpop.f32.mrb[129].mxu0  ;;  %v21774_v19 = vpop.f32.mrb[129].mxu1 }
 0x5a3   : > { %v21663_v26 = vadd.f32 %v21662_v52, %v21661_v34  ;;  %v21775_v37 = vadd.f32 %v21774_v19, %v21773_v11  ;;  %v21664_v17 = vpop.f32.mrb[130].mxu0  ;;  %v21776_v0 = vpop.f32.mrb[130].mxu1 }
 0x5a4   : > { %v21665_v3 = vpop.f32.mrb[131].mxu0  ;;  %v21777_v4 = vpop.f32.mrb[131].mxu1 }
 0x5a5   : > { %v9370_v55 = vadd.f32 %v21663_v26, %v29289_v1  ;;  %v21666_v9 = vadd.f32 %v21665_v3, %v21664_v17  ;;  %v21778_v50 = vadd.f32 %v21777_v4, %v21776_v0 }
 0x5a6   : > { %9778 = vmatmul.mubr.bf16.gmra.mrb[236].mxu0 %v32833_v5 }
 0x5a7   : > { %9939 = vmatmul.mubr.bf16.gmra.mrb[236].mxu1 %v32834_v46  ;;  %v9373_v25 = vadd.f32 %v21666_v9, %v29293_v57  ;;  %9785 = vmatprep.mubr.bf16.mxu0 %v32835_v51  ;;  %v29515_v34 = vadd.f32 %v21775_v37, %v9370_v55  ;;  %v32837_v51 = vld [vmem:[#allocation107_spill] sm:$0xff] }
 0x5a8   : > { %9946 = vmatprep.mubr.bf16.mxu1 %v32836_v21  ;;  %v32838_v37 = vld [vmem:[#allocation139_spill] sm:$0xff] }
 0x5a9   : > { %v21667_v11 = vpop.f32.mrb[132].mxu0  ;;  %v21779_v52 = vpop.f32.mrb[132].mxu1  ;;  %v29517_v19 = vadd.f32 %v21778_v50, %v9373_v25  ;;  %v32839_v50 = vld [vmem:[#allocation108_spill] sm:$0xff] }
 0x5aa   : > { %v21668_v13 = vpop.f32.mrb[133].mxu0  ;;  %v21780_v1 = vpop.f32.mrb[133].mxu1  ;;  %v32840_v25 = vld [vmem:[#allocation140_spill] sm:$0xff] }
 0x5ab   : > { %v21669_v26 = vadd.f32 %v21668_v13, %v21667_v11  ;;  %v21781_v17 = vadd.f32 %v21780_v1, %v21779_v52  ;;  %v21670_v0 = vpop.f32.mrb[134].mxu0  ;;  %v21782_v3 = vpop.f32.mrb[134].mxu1 }
 0x5ac   : > { %v21671_v4 = vpop.f32.mrb[135].mxu0  ;;  %v21783_v5 = vpop.f32.mrb[135].mxu1 }
 0x5ad   : > { %v9378_v57 = vadd.f32 %v21669_v26, %v29297_v60  ;;  %v21672_v9 = vadd.f32 %v21671_v4, %v21670_v0  ;;  %v21784_v46 = vadd.f32 %v21783_v5, %v21782_v3 }
 0x5ae   : > { %9786 = vmatmul.mubr.bf16.gmra.mrb[240].mxu0 %v32837_v51 }
 0x5af   : > { %9947 = vmatmul.mubr.bf16.gmra.mrb[240].mxu1 %v32838_v37  ;;  %v9381_v55 = vadd.f32 %v21672_v9, %v29301_v48  ;;  %9793 = vmatprep.mubr.bf16.mxu0 %v32839_v50  ;;  %v29525_v13 = vadd.f32 %v21781_v17, %v9378_v57  ;;  %v32841_v50 = vld [vmem:[#allocation109_spill] sm:$0xff] }
 0x5b0   : > { %9954 = vmatprep.mubr.bf16.mxu1 %v32840_v25  ;;  %v32842_v17 = vld [vmem:[#allocation141_spill] sm:$0xff] }
 0x5b1   : > { %v21673_v21 = vpop.f32.mrb[136].mxu0  ;;  %v21785_v11 = vpop.f32.mrb[136].mxu1  ;;  %v29527_v52 = vadd.f32 %v21784_v46, %v9381_v55  ;;  %v32843_v46 = vld [vmem:[#allocation110_spill] sm:$0xff] }
 0x5b2   : > { %v21674_v1 = vpop.f32.mrb[137].mxu0  ;;  %v21786_v60 = vpop.f32.mrb[137].mxu1  ;;  %v32844_v55 = vld [vmem:[#allocation142_spill] sm:$0xff] }
 0x5b3   : > { %v21675_v26 = vadd.f32 %v21674_v1, %v21673_v21  ;;  %v21787_v0 = vadd.f32 %v21786_v60, %v21785_v11  ;;  %v21676_v3 = vpop.f32.mrb[138].mxu0  ;;  %v21788_v4 = vpop.f32.mrb[138].mxu1 }
 0x5b4   : > { %v21677_v5 = vpop.f32.mrb[139].mxu0  ;;  %v21789_v51 = vpop.f32.mrb[139].mxu1 }
 0x5b5   : > { %v9386_v48 = vadd.f32 %v21675_v26, %v29305_v56  ;;  %v21678_v9 = vadd.f32 %v21677_v5, %v21676_v3  ;;  %v21790_v37 = vadd.f32 %v21789_v51, %v21788_v4 }
 0x5b6   : > { %9794 = vmatmul.mubr.bf16.gmra.mrb[244].mxu0 %v32841_v50 }
 0x5b7   : > { %9955 = vmatmul.mubr.bf16.gmra.mrb[244].mxu1 %v32842_v17  ;;  %v9389_v57 = vadd.f32 %v21678_v9, %v29309_v15  ;;  %9801 = vmatprep.mubr.bf16.mxu0 %v32843_v46  ;;  %v29535_v25 = vadd.f32 %v21787_v0, %v9386_v48  ;;  %v32845_v46 = vld [vmem:[#allocation111_spill] sm:$0xff] }
 0x5b8   : > { %9962 = vmatprep.mubr.bf16.mxu1 %v32844_v55  ;;  %v32846_v0 = vld [vmem:[#allocation143_spill] sm:$0xff] }
 0x5b9   : > { %v21679_v21 = vpop.f32.mrb[140].mxu0  ;;  %v29537_v1 = vadd.f32 %v21790_v37, %v9389_v57  ;;  %v32847_v37 = vld [vmem:[#allocation112_spill] sm:$0xff] }
 0x5ba   : > { %v21791_v11 = vpop.f32.mrb[140].mxu1  ;;  %v21680_v60 = vpop.f32.mrb[141].mxu0  ;;  %v32848_v57 = vld [vmem:[#allocation144_spill] sm:$0xff] }
 0x5bb   : > { %v21792_v56 = vpop.f32.mrb[141].mxu1  ;;  %v21681_v26 = vadd.f32 %v21680_v60, %v21679_v21  ;;  %v21682_v4 = vpop.f32.mrb[142].mxu0 }
 0x5bc   : > { %v21793_v3 = vadd.f32 %v21792_v56, %v21791_v11  ;;  %v21794_v5 = vpop.f32.mrb[142].mxu1  ;;  %v21683_v51 = vpop.f32.mrb[143].mxu0 }
 0x5bd   : > { %v21795_v50 = vpop.f32.mrb[143].mxu1  ;;  %v9394_v15 = vadd.f32 %v21681_v26, %v29313_v59  ;;  %v21684_v9 = vadd.f32 %v21683_v51, %v21682_v4 }
 0x5be   : > { %v21796_v17 = vadd.f32 %v21795_v50, %v21794_v5  ;;  %9802 = vmatmul.mubr.bf16.gmra.mrb[248].mxu0 %v32845_v46 }
 0x5bf   : > { %9963 = vmatmul.mubr.bf16.gmra.mrb[248].mxu1 %v32846_v0  ;;  %v9397_v48 = vadd.f32 %v21684_v9, %v29317_v58  ;;  %9809 = vmatprep.mubr.bf16.mxu0 %v32847_v37  ;;  %v29545_v55 = vadd.f32 %v21793_v3, %v9394_v15  ;;  %v32849_v3 = vld [vmem:[#allocation113_spill] sm:$0xff] }
 0x5c0   : > { %9970 = vmatprep.mubr.bf16.mxu1 %v32848_v57  ;;  %v32850_v15 = vld [vmem:[#allocation145_spill] sm:$0xff] }
 0x5c1   : > { %v21685_v21 = vpop.f32.mrb[144].mxu0  ;;  %v29547_v60 = vadd.f32 %v21796_v17, %v9397_v48  ;;  %v32851_v48 = vld [vmem:[#allocation146_spill] sm:$0xff] }
 0x5c2   : > { %v21797_v11 = vpop.f32.mrb[144].mxu1  ;;  %v21686_v59 = vpop.f32.mrb[145].mxu0 }
 0x5c3   : > { %v21798_v56 = vpop.f32.mrb[145].mxu1  ;;  %v21687_v26 = vadd.f32 %v21686_v59, %v21685_v21  ;;  %v21688_v5 = vpop.f32.mrb[146].mxu0 }
 0x5c4   : > { %v21799_v4 = vadd.f32 %v21798_v56, %v21797_v11  ;;  %v21800_v51 = vpop.f32.mrb[146].mxu1  ;;  %v21689_v50 = vpop.f32.mrb[147].mxu0 }
 0x5c5   : > { %v21801_v58 = vpop.f32.mrb[147].mxu1  ;;  %v9402_v9 = vadd.f32 %v21687_v26, %v29321_v16  ;;  %v21690_v46 = vadd.f32 %v21689_v50, %v21688_v5 }
 0x5c6   : > { %v21802_v0 = vadd.f32 %v21801_v58, %v21800_v51  ;;  %9810 = vmatmul.mubr.bf16.gmra.mrb[252].mxu0 %v32849_v3 }
 0x5c7   : > { %9971 = vmatmul.mubr.bf16.gmra.mrb[252].mxu1 %v32850_v15  ;;  %v9405_v17 = vadd.f32 %v21690_v46, %v29325_v2  ;;  %10011 = vmatprep.mubr.bf16.mxu0 %v32851_v48  ;;  %v29556_v37 = vadd.f32 %v21799_v4, %v9402_v9  ;;  %v32852_v9 = vld [vmem:[#allocation147_spill] sm:$0xff]  ;;  %v32853_v46 = vld [vmem:[#allocation178_spill] sm:$0xff] }
 0x5c8   : > { %10172 = vmatprep.mubr.bf16.mxu1 %v28452_v47  ;;  %v32855_v48 = vld [vmem:[#allocation179_spill] sm:$0xff] }
 0x5c9   : > { %v21691_v57 = vpop.f32.mrb[148].mxu0  ;;  %v29561_v21 = vadd.f32 %v21802_v0, %v9405_v17  ;;  %v32854_v17 = vld [vmem:[#allocation148_spill] sm:$0xff] }
 0x5ca   : > { %v21803_v16 = vpop.f32.mrb[148].mxu1  ;;  %v21692_v11 = vpop.f32.mrb[149].mxu0 }
 0x5cb   : > { %v21804_v59 = vpop.f32.mrb[149].mxu1  ;;  %v21693_v56 = vadd.f32 %v21692_v11, %v21691_v57  ;;  %v21694_v5 = vpop.f32.mrb[150].mxu0 }
 0x5cc   : > { %v21805_v26 = vadd.f32 %v21804_v59, %v21803_v16  ;;  %v21806_v2 = vpop.f32.mrb[150].mxu1  ;;  %v21695_v47 = vpop.f32.mrb[151].mxu0 }
 0x5cd   : > { %v21807_v4 = vpop.f32.mrb[151].mxu1  ;;  %v9410_v51 = vadd.f32 %v21693_v56, %v29341_v54  ;;  %v21696_v50 = vadd.f32 %v21695_v47, %v21694_v5  ;;  %v32857_v47 = vld [vmem:[#allocation180_spill] sm:$0xff] }
 0x5ce   : > { %v21808_v58 = vadd.f32 %v21807_v4, %v21806_v2  ;;  %10012 = vmatmul.mubr.bf16.vlgmr.msra.gmra.mrb[0].mxu0 %v32852_v9  ;;  %v32856_v2 = vld [vmem:[#allocation149_spill] sm:$0xff] }
 0x5cf   : > { %10173 = vmatmul.mubr.bf16.vlgmr.msra.gmra.mrb[0].mxu1 %v32853_v46  ;;  %v9413_v0 = vadd.f32 %v21696_v50, %v29345_v23  ;;  %10769 = vmatpush1.bf16.msra.mxu0 %v28885_v6  ;;  %v29575_v3 = vadd.f32 %v21805_v26, %v9410_v51  ;;  %v32859_v4 = vld [vmem:[#allocation181_spill] sm:$0xff] }
 0x5d0   : > { %10860 = vmatpush1.bf16.msra.mxu1 %v28887_v61  ;;  %10770 = vmatprep.subr.bf16.mxu0 %v28909_v38 }
 0x5d1   : > { %10861 = vmatprep.subr.bf16.mxu1 %v28911_v41  ;;  %v21697_v15 = vpop.f32.mrb[152].mxu0  ;;  %10019 = vmatprep.mubr.bf16.mxu0 %v32854_v17  ;;  %v29581_v57 = vadd.f32 %v21808_v58, %v9413_v0  ;;  %v32861_v17 = vld [vmem:[#allocation182_spill] sm:$0xff] }
 0x5d2   : > { %v21809_v54 = vpop.f32.mrb[152].mxu1  ;;  %10180 = vmatprep.mubr.bf16.mxu1 %v32855_v48  ;;  %v21698_v16 = vpop.f32.mrb[153].mxu0  ;;  %v32863_v48 = vld [vmem:[#allocation183_spill] sm:$0xff] }
 0x5d3   : > { %v21810_v23 = vpop.f32.mrb[153].mxu1  ;;  %v21699_v11 = vadd.f32 %v21698_v16, %v21697_v15  ;;  %10771 = vmatpush1.bf16.msra.mxu0 %v28905_v49  ;;  %v21700_v61 = vpop.f32.mrb[154].mxu0 }
 0x5d4   : > { %v21811_v6 = vadd.f32 %v21810_v23, %v21809_v54  ;;  %10862 = vmatpush1.bf16.msra.mxu1 %v28907_v53  ;;  %v21812_v38 = vpop.f32.mrb[154].mxu1  ;;  %10772 = vmatprep.subr.bf16.mxu0 %v28929_v29  ;;  %v21701_v41 = vpop.f32.mrb[155].mxu0  ;;  %v32860_v54 = vld [vmem:[#allocation151_spill] sm:$0xff] }
 0x5d5   : > { %10863 = vmatprep.subr.bf16.mxu1 %v28931_v10  ;;  %v21813_v59 = vpop.f32.mrb[155].mxu1  ;;  %v9418_v56 = vadd.f32 %v21699_v11, %v29373_v33  ;;  %v21702_v26 = vadd.f32 %v21701_v41, %v21700_v61  ;;  %v32858_v33 = vld [vmem:[#allocation150_spill] sm:$0xff] }
 0x5d6   : > { %v21814_v5 = vadd.f32 %v21813_v59, %v21812_v38  ;;  %10020 = vmatmul.mubr.bf16.gmra.mrb[4].mxu0 %v32856_v2  ;;  %v32864_v59 = vld [vmem:[#allocation153_spill] sm:$0xff]  ;;  %v32869_v2 = vld [vmem:[#allocation154_spill] sm:$0xff] }
 0x5d7   : > { %10181 = vmatmul.mubr.bf16.gmra.mrb[4].mxu1 %v32857_v47  ;;  %v9421_v49 = vadd.f32 %v21702_v26, %v29377_v18  ;;  %10773 = vmatpush1.bf16.msra.mxu0 %v28925_v31  ;;  %v29593_v53 = vadd.f32 %v21811_v6, %v9418_v56  ;;  %v32865_v56 = vld [vmem:[#allocation184_spill] sm:$0xff]  ;;  %v32870_v47 = vld [vmem:[#allocation185_spill] sm:$0xff] }
 0x5d8   : > { %10864 = vmatpush1.bf16.msra.mxu1 %v28927_v32  ;;  %10774 = vmatprep.subr.bf16.mxu0 %v28949_v63 }
 0x5d9   : > { %10865 = vmatprep.subr.bf16.mxu1 %v28951_v28  ;;  %v21703_v29 = vpop.f32.mrb[156].mxu0  ;;  %10027 = vmatprep.mubr.bf16.mxu0 %v32858_v33  ;;  %v29599_v51 = vadd.f32 %v21814_v5, %v9421_v49  ;;  %v32871_v33 = vld [vmem:[#allocation10_spill] sm:$0xff] }
 0x5da   : > { %v21815_v10 = vpop.f32.mrb[156].mxu1  ;;  %10188 = vmatprep.mubr.bf16.mxu1 %v32859_v4  ;;  %v21704_v50 = vpop.f32.mrb[157].mxu0  ;;  %v32872_v4 = vld [vmem:[#allocation3_spill] sm:$0xff] }
 0x5db   : > { %v21816_v18 = vpop.f32.mrb[157].mxu1  ;;  %v21705_v58 = vadd.f32 %v21704_v50, %v21703_v29  ;;  %10775 = vmatpush1.bf16.msra.mxu0 %v28945_v14  ;;  %v21706_v32 = vpop.f32.mrb[158].mxu0 }
 0x5dc   : > { %v21817_v31 = vadd.f32 %v21816_v18, %v21815_v10  ;;  %10866 = vmatpush1.bf16.msra.mxu1 %v28947_v22  ;;  %v21818_v63 = vpop.f32.mrb[158].mxu1  ;;  %10776 = vmatprep.subr.bf16.mxu0 %v28969_v62  ;;  %v21707_v28 = vpop.f32.mrb[159].mxu0 }
 0x5dd   : > { %10867 = vmatprep.subr.bf16.mxu1 %v28971_v39  ;;  %v21819_v9 = vpop.f32.mrb[159].mxu1  ;;  %v9426_v46 = vadd.f32 %v21705_v58, %v29405_v7  ;;  %v21708_v0 = vadd.f32 %v21707_v28, %v21706_v32  ;;  %v32862_v7 = vld [vmem:[#allocation152_spill] sm:$0xff]  ;;  %v32873_v58 = vld [vmem:[#allocation13_spill] sm:$0xff] }
 0x5de   : > { %v21820_v15 = vadd.f32 %v21819_v9, %v21818_v63  ;;  %10028 = vmatmul.mubr.bf16.gmra.mrb[8].mxu0 %v32860_v54  ;;  %v32875_v28 = vld [vmem:[#allocation60_spill] sm:$0xff]  ;;  %v32877_v54 = vld [vmem:[#allocation186_spill] sm:$0xff] }
 0x5df   : > { %10189 = vmatmul.mubr.bf16.gmra.mrb[8].mxu1 %v32861_v17  ;;  %v9429_v14 = vadd.f32 %v21708_v0, %v29409_v30  ;;  %10777 = vmatpush1.bf16.msra.mxu0 %v28965_v42  ;;  %v29611_v22 = vadd.f32 %v21817_v31, %v9426_v46  ;;  %v32874_v31 = vld [vmem:[#allocation6_spill] sm:$0xff]  ;;  %v32878_v17 = vld [vmem:[#allocation29_spill] sm:$0xff] }
 0x5e0   : > { %10868 = vmatpush1.bf16.msra.mxu1 %v28967_v8  ;;  %10778 = vmatprep.subr.bf16.mxu0 %v29013_v20 }
 0x5e1   : > { %10869 = vmatprep.subr.bf16.mxu1 %v29015_v45  ;;  %v21709_v62 = vpop.f32.mrb[160].mxu0  ;;  %10035 = vmatprep.mubr.bf16.mxu0 %v32862_v7  ;;  %v29617_v16 = vadd.f32 %v21820_v15, %v9429_v14  ;;  %v32876_v15 = vld [vmem:[#allocation155_spill] sm:$0xff] }
 0x5e2   : > { %v21821_v39 = vpop.f32.mrb[160].mxu1  ;;  %10196 = vmatprep.mubr.bf16.mxu1 %v32863_v48  ;;  %v21710_v23 = vpop.f32.mrb[161].mxu0  ;;  %v32881_v48 = vld [vmem:[#allocation15_spill] sm:$0xff] }
 0x5e3   : > { %v21822_v30 = vpop.f32.mrb[161].mxu1  ;;  %v21711_v11 = vadd.f32 %v21710_v23, %v21709_v62  ;;  %10779 = vmatpush1.bf16.msra.mxu0 %v29001_v36  ;;  %v21712_v8 = vpop.f32.mrb[162].mxu0  ;;  %v32879_v62 = vld [vmem:[#allocation12_spill] sm:$0xff] }
 0x5e4   : > { %v21823_v42 = vadd.f32 %v21822_v30, %v21821_v39  ;;  %10870 = vmatpush1.bf16.msra.mxu1 %v29003_v27  ;;  %v21824_v20 = vpop.f32.mrb[162].mxu1  ;;  %10780 = vmatprep.subr.bf16.mxu0 %v29057_v43  ;;  %v21713_v45 = vpop.f32.mrb[163].mxu0  ;;  %v32866_v27 = vld [vmem:[#allocation2_spill] sm:$0xff]  ;;  %v32867_v43 = vld [vmem:[#allocation11_spill] sm:$0xff]  ;;  %v32880_v39 = vld [vmem:[#allocation5_spill] sm:$0xff] }
 0x5e5   : > { %10871 = vmatprep.subr.bf16.mxu1 %v29059_v44  ;;  %v21825_v6 = vpop.f32.mrb[163].mxu1  ;;  %v9434_v61 = vadd.f32 %v21711_v11, %v29437_v35  ;;  %v21714_v38 = vadd.f32 %v21713_v45, %v21712_v8  ;;  %v32868_v44 = vld [vmem:[#allocation4_spill] sm:$0xff]  ;;  %v32884_v8 = vld [vmem:[#allocation187_spill] sm:$0xff] }
 0x5e6   : > { %v21826_v41 = vadd.f32 %v21825_v6, %v21824_v20  ;;  %10036 = vmatmul.mubr.bf16.gmra.mrb[12].mxu0 %v32864_v59  ;;  %v32882_v23 = vld [vmem:[#allocation8_spill] sm:$0xff]  ;;  %v32886_v59 = vld [vmem:[#allocation7_spill] sm:$0xff] }
 0x5e7   : > { %10197 = vmatmul.mubr.bf16.gmra.mrb[12].mxu1 %v32865_v56  ;;  %v9437_v36 = vadd.f32 %v21714_v38, %v29441_v40  ;;  %10781 = vmatpush1.bf16.msra.mxu0 %v29041_v24  ;;  %v29629_v26 = vadd.f32 %v21823_v42, %v9434_v61  ;;  %v32883_v42 = vld [vmem:[#allocation156_spill] sm:$0xff] }
 0x5e8   : > { %10872 = vmatpush1.bf16.msra.mxu1 %v32866_v27  ;;  %10782 = vmatprep.subr.bf16.mxu0 %v32867_v43  ;;  %v32887_v27 = vld [vmem:[#allocation17_spill] sm:$0xff]  ;;  %v32888_v43 = vld [vmem:[#allocation18_spill] sm:$0xff] }
 0x5e9   : > { %10873 = vmatprep.subr.bf16.mxu1 %v32868_v44  ;;  %v21715_v5 = vpop.f32.mrb[164].mxu0  ;;  %10043 = vmatprep.mubr.bf16.mxu0 %v32869_v2  ;;  %v29635_v49 = vadd.f32 %v21826_v41, %v9437_v36  ;;  %v32885_v41 = vld [vmem:[#allocation14_spill] sm:$0xff] }
 0x5ea   : > { %v21827_v35 = vpop.f32.mrb[164].mxu1  ;;  %10204 = vmatprep.mubr.bf16.mxu1 %v32870_v47  ;;  %v21716_v29 = vpop.f32.mrb[165].mxu0 }
 0x5eb   : > { %v21828_v40 = vpop.f32.mrb[165].mxu1  ;;  %v21717_v10 = vadd.f32 %v21716_v29, %v21715_v5  ;;  %10783 = vmatpush1.bf16.msra.mxu0 %v32871_v33  ;;  %v21718_v50 = vpop.f32.mrb[166].mxu0 }
 0x5ec   : > { %v21829_v24 = vadd.f32 %v21828_v40, %v21827_v35  ;;  %10874 = vmatpush1.bf16.msra.mxu1 %v32872_v4  ;;  %v21830_v18 = vpop.f32.mrb[166].mxu1  ;;  %10784 = vmatprep.subr.bf16.mxu0 %v32873_v58  ;;  %v21719_v32 = vpop.f32.mrb[167].mxu0  ;;  %v32889_v35 = vld [vmem:[#allocation61_spill] sm:$0xff]  ;;  %v32893_v4 = vld [vmem:[#allocation16_spill] sm:$0xff]  ;;  %v32895_v58 = vld [vmem:[#allocation51_spill] sm:$0xff] }
 0x5ed   : > { %10875 = vmatprep.subr.bf16.mxu1 %v32874_v31  ;;  %v21831_v63 = vpop.f32.mrb[167].mxu1  ;;  %v9442_v9 = vadd.f32 %v21717_v10, %v32875_v28  ;;  %v21720_v46 = vadd.f32 %v21719_v32, %v21718_v50  ;;  %v32890_v40 = vld [vmem:[#allocation157_spill] sm:$0xff]  ;;  %v32891_v10 = vld [vmem:[#allocation188_spill] sm:$0xff]  ;;  %v32897_v28 = vld [vmem:[#allocation158_spill] sm:$0xff] }
 0x5ee   : > { %v21832_v0 = vadd.f32 %v21831_v63, %v21830_v18  ;;  %10044 = vmatmul.mubr.bf16.gmra.mrb[16].mxu0 %v32876_v15  ;;  %v32894_v50 = vld [vmem:[#allocation9_spill] sm:$0xff]  ;;  %v32896_v31 = vld [vmem:[#allocation20_spill] sm:$0xff] }
 0x5ef   : > { %10205 = vmatmul.mubr.bf16.gmra.mrb[16].mxu1 %v32877_v54  ;;  %v9445_v14 = vadd.f32 %v21720_v46, %v32878_v17  ;;  %10785 = vmatpush1.bf16.msra.mxu0 %v32879_v62  ;;  %v29647_v7 = vadd.f32 %v21829_v24, %v9442_v9  ;;  %v32892_v24 = vld [vmem:[#allocation30_spill] sm:$0xff]  ;;  %v32898_v9 = vld [vmem:[#allocation189_spill] sm:$0xff]  ;;  %v32900_v62 = vld [vmem:[#allocation19_spill] sm:$0xff] }
 0x5f0   : > { %10876 = vmatpush1.bf16.msra.mxu1 %v32880_v39  ;;  %10786 = vmatprep.subr.bf16.mxu0 %v32881_v48 }
 0x5f1   : > { %10877 = vmatprep.subr.bf16.mxu1 %v32882_v23  ;;  %v21721_v30 = vpop.f32.mrb[168].mxu0  ;;  %10051 = vmatprep.mubr.bf16.mxu0 %v32883_v42  ;;  %v29653_v20 = vadd.f32 %v21832_v0, %v9445_v14  ;;  %v32899_v14 = vld [vmem:[#allocation50_spill] sm:$0xff]  ;;  %v32901_v23 = vld [vmem:[#allocation53_spill] sm:$0xff] }
 0x5f2   : > { %v21833_v11 = vpop.f32.mrb[168].mxu1  ;;  %10212 = vmatprep.mubr.bf16.mxu1 %v32884_v8  ;;  %v21722_v45 = vpop.f32.mrb[169].mxu0  ;;  %v32903_v8 = vld [vmem:[#allocation62_spill] sm:$0xff] }
 0x5f3   : > { %v21834_v6 = vpop.f32.mrb[169].mxu1  ;;  %v21723_v61 = vadd.f32 %v21722_v45, %v21721_v30  ;;  %10787 = vmatpush1.bf16.msra.mxu0 %v32885_v41  ;;  %v21724_v56 = vpop.f32.mrb[170].mxu0  ;;  %v32902_v30 = vld [vmem:[#allocation22_spill] sm:$0xff] }
 0x5f4   : > { %v21835_v38 = vadd.f32 %v21834_v6, %v21833_v11  ;;  %10878 = vmatpush1.bf16.msra.mxu1 %v32886_v59  ;;  %v21836_v36 = vpop.f32.mrb[170].mxu1  ;;  %10788 = vmatprep.subr.bf16.mxu0 %v32887_v27  ;;  %v21725_v44 = vpop.f32.mrb[171].mxu0  ;;  %v32905_v41 = vld [vmem:[#allocation190_spill] sm:$0xff]  ;;  %v32907_v27 = vld [vmem:[#allocation52_spill] sm:$0xff] }
 0x5f5   : > { %10879 = vmatprep.subr.bf16.mxu1 %v32888_v43  ;;  %v21837_v5 = vpop.f32.mrb[171].mxu1  ;;  %v9450_v2 = vadd.f32 %v21723_v61, %v32889_v35  ;;  %v21726_v47 = vadd.f32 %v21725_v44, %v21724_v56  ;;  %v32906_v56 = vld [vmem:[#allocation31_spill] sm:$0xff]  ;;  %v32908_v43 = vld [vmem:[#allocation21_spill] sm:$0xff] }
 0x5f6   : > { %v21838_v29 = vadd.f32 %v21837_v5, %v21836_v36  ;;  %10052 = vmatmul.mubr.bf16.gmra.mrb[20].mxu0 %v32890_v40  ;;  %v32909_v44 = vld [vmem:[#allocation55_spill] sm:$0xff]  ;;  %v32910_v5 = vld [vmem:[#allocation24_spill] sm:$0xff] }
 0x5f7   : > { %10213 = vmatmul.mubr.bf16.gmra.mrb[20].mxu1 %v32891_v10  ;;  %v9453_v33 = vadd.f32 %v21726_v47, %v32892_v24  ;;  %10789 = vmatpush1.bf16.msra.mxu0 %v32893_v4  ;;  %v29665_v18 = vadd.f32 %v21835_v38, %v9450_v2  ;;  %v32904_v38 = vld [vmem:[#allocation159_spill] sm:$0xff] }
 0x5f8   : > { %10880 = vmatpush1.bf16.msra.mxu1 %v32894_v50  ;;  %10790 = vmatprep.subr.bf16.mxu0 %v32895_v58  ;;  %v32912_v40 = vld [vmem:[#allocation191_spill] sm:$0xff]  ;;  %v32913_v50 = vld [vmem:[#allocation54_spill] sm:$0xff] }
 0x5f9   : > { %10881 = vmatprep.subr.bf16.mxu1 %v32896_v31  ;;  %v21727_v32 = vpop.f32.mrb[172].mxu0  ;;  %10059 = vmatprep.mubr.bf16.mxu0 %v32897_v28  ;;  %v29671_v46 = vadd.f32 %v21838_v29, %v9453_v33  ;;  %v32911_v29 = vld [vmem:[#allocation160_spill] sm:$0xff]  ;;  %v32914_v58 = vld [vmem:[#allocation23_spill] sm:$0xff]  ;;  %v32916_v28 = vld [vmem:[#allocation26_spill] sm:$0xff] }
 0x5fa   : > { %v21839_v63 = vpop.f32.mrb[172].mxu1  ;;  %10220 = vmatprep.mubr.bf16.mxu1 %v32898_v9  ;;  %v21728_v0 = vpop.f32.mrb[173].mxu0 }
 0x5fb   : > { %v21840_v15 = vpop.f32.mrb[173].mxu1  ;;  %v21729_v54 = vadd.f32 %v21728_v0, %v21727_v32  ;;  %10791 = vmatpush1.bf16.msra.mxu0 %v32899_v14  ;;  %v21730_v39 = vpop.f32.mrb[174].mxu0 }
 0x5fc   : > { %v21841_v17 = vadd.f32 %v21840_v15, %v21839_v63  ;;  %10882 = vmatpush1.bf16.msra.mxu1 %v32900_v62  ;;  %v21842_v48 = vpop.f32.mrb[174].mxu1  ;;  %10792 = vmatprep.subr.bf16.mxu0 %v32901_v23  ;;  %v21731_v11 = vpop.f32.mrb[175].mxu0  ;;  %v32915_v63 = vld [vmem:[#allocation57_spill] sm:$0xff]  ;;  %v32917_v15 = vld [vmem:[#allocation63_spill] sm:$0xff]  ;;  %v32920_v23 = vld [vmem:[#allocation32_spill] sm:$0xff] }
 0x5fd   : > { %10883 = vmatprep.subr.bf16.mxu1 %v32902_v30  ;;  %v21843_v42 = vpop.f32.mrb[175].mxu1  ;;  %v9458_v45 = vadd.f32 %v21729_v54, %v32903_v8  ;;  %v21732_v6 = vadd.f32 %v21731_v11, %v21730_v39  ;;  %v32918_v62 = vld [vmem:[#allocation161_spill] sm:$0xff]  ;;  %v32919_v39 = vld [vmem:[#allocation192_spill] sm:$0xff]  ;;  %v32923_v8 = vld [vmem:[#allocation59_spill] sm:$0xff] }
 0x5fe   : > { %v21844_v61 = vadd.f32 %v21843_v42, %v21842_v48  ;;  %10060 = vmatmul.mubr.bf16.gmra.mrb[24].mxu0 %v32904_v38  ;;  %v32921_v11 = vld [vmem:[#allocation56_spill] sm:$0xff]  ;;  %v32922_v42 = vld [vmem:[#allocation25_spill] sm:$0xff] }
 0x5ff   : > { %10221 = vmatmul.mubr.bf16.gmra.mrb[24].mxu1 %v32905_v41  ;;  %v29680_v59 = vadd.f32 %v21841_v17, %v9458_v45  ;;  %v9461_v36 = vadd.f32 %v21732_v6, %v32906_v56  ;;  %10793 = vmatpush1.bf16.msra.mxu0 %v32907_v27  ;;  %v32924_v45 = vld [vmem:[#allocation28_spill] sm:$0xff]  ;;  %v32925_v41 = vld [vmem:[#allocation162_spill] sm:$0xff]  ;;  %v32926_v56 = vld [vmem:[#allocation193_spill] sm:$0xff] }
 0x600   : > { %10884 = vmatpush1.bf16.msra.mxu1 %v32908_v43  ;;  %10794 = vmatprep.subr.bf16.mxu0 %v32909_v44 }
 0x601   : > { %10885 = vmatprep.subr.bf16.mxu1 %v32910_v5  ;;  %v29687_v35 = vadd.f32 %v21844_v61, %v9461_v36  ;;  %v21733_v2 = vpop.f32.mrb[176].mxu0  ;;  %10067 = vmatprep.mubr.bf16.mxu0 %v32911_v29  ;;  %v32927_v5 = vld [vmem:[#allocation58_spill] sm:$0xff] }
 0x602   : > { %v21845_v47 = vpop.f32.mrb[176].mxu1  ;;  %10228 = vmatprep.mubr.bf16.mxu1 %v32912_v40  ;;  %v21734_v10 = vpop.f32.mrb[177].mxu0 }
 0x603   : > { %v21846_v24 = vpop.f32.mrb[177].mxu1  ;;  %v21735_v33 = vadd.f32 %v21734_v10, %v21733_v2  ;;  %10795 = vmatpush1.bf16.msra.mxu0 %v32913_v50  ;;  %v21736_v31 = vpop.f32.mrb[178].mxu0  ;;  %v32928_v2 = vld [vmem:[#allocation27_spill] sm:$0xff] }
 0x604   : > { %v21847_v4 = vadd.f32 %v21846_v24, %v21845_v47  ;;  %10886 = vmatpush1.bf16.msra.mxu1 %v32914_v58  ;;  %v21848_v32 = vpop.f32.mrb[178].mxu1  ;;  %10796 = vmatprep.subr.bf16.mxu0 %v32915_v63  ;;  %v21737_v9 = vpop.f32.mrb[179].mxu0  ;;  %v32929_v24 = vld [vmem:[#allocation64_spill] sm:$0xff]  ;;  %v32930_v58 = vld [vmem:[#allocation163_spill] sm:$0xff]  ;;  %v32932_v63 = vld [vmem:[#allocation33_spill] sm:$0xff] }
 0x605   : > { %10887 = vmatprep.subr.bf16.mxu1 %v32916_v28  ;;  %v21849_v0 = vpop.f32.mrb[179].mxu1  ;;  %v9466_v54 = vadd.f32 %v21735_v33, %v32917_v15  ;;  %v21738_v17 = vadd.f32 %v21737_v9, %v21736_v31  ;;  %v32931_v31 = vld [vmem:[#allocation194_spill] sm:$0xff]  ;;  %v32933_v9 = vld [vmem:[#allocation164_spill] sm:$0xff] }
 0x606   : > { %v21850_v14 = vadd.f32 %v21849_v0, %v21848_v32  ;;  %10068 = vmatmul.mubr.bf16.gmra.mrb[28].mxu0 %v32918_v62  ;;  %v32934_v0 = vld [vmem:[#allocation195_spill] sm:$0xff] }
 0x607   : > { %10229 = vmatmul.mubr.bf16.gmra.mrb[28].mxu1 %v32919_v39  ;;  %v29698_v48 = vadd.f32 %v21847_v4, %v9466_v54  ;;  %v9469_v30 = vadd.f32 %v21738_v17, %v32920_v23  ;;  %10797 = vmatpush1.bf16.msra.mxu0 %v32921_v11 }
 0x608   : > { %10888 = vmatpush1.bf16.msra.mxu1 %v32922_v42  ;;  %10798 = vmatprep.subr.bf16.mxu0 %v32923_v8 }
 0x609   : > { %10889 = vmatprep.subr.bf16.mxu1 %v32924_v45  ;;  %v29705_v6 = vadd.f32 %v21850_v14, %v9469_v30  ;;  %v21739_v61 = vpop.f32.mrb[180].mxu0  ;;  %10075 = vmatprep.mubr.bf16.mxu0 %v32925_v41  ;;  %v32935_v45 = vld [vmem:[#allocation65_spill] sm:$0xff] }
 0x60a   : > { %v21851_v38 = vpop.f32.mrb[180].mxu1  ;;  %10236 = vmatprep.mubr.bf16.mxu1 %v32926_v56  ;;  %v21740_v36 = vpop.f32.mrb[181].mxu0  ;;  %v32936_v56 = vld [vmem:[#allocation165_spill] sm:$0xff] }
 0x60b   : > { %v21852_v27 = vpop.f32.mrb[181].mxu1  ;;  %v21741_v43 = vadd.f32 %v21740_v36, %v21739_v61  ;;  %10799 = vmatpush1.bf16.msra.mxu0 %v32927_v5  ;;  %v21742_v47 = vpop.f32.mrb[182].mxu0  ;;  %v32937_v36 = vld [vmem:[#allocation196_spill] sm:$0xff]  ;;  %v32939_v5 = vld [vmem:[#allocation166_spill] sm:$0xff] }
 0x60c   : > { %v21853_v44 = vadd.f32 %v21852_v27, %v21851_v38  ;;  %10890 = vmatpush1.bf16.msra.mxu1 %v32928_v2  ;;  %v21854_v29 = vpop.f32.mrb[182].mxu1  ;;  %v21743_v40 = vpop.f32.mrb[183].mxu0  ;;  %v32940_v2 = vld [vmem:[#allocation197_spill] sm:$0xff] }
 0x60d   : > { %v21855_v10 = vpop.f32.mrb[183].mxu1  ;;  %v9474_v33 = vadd.f32 %v21741_v43, %v32929_v24  ;;  %v21744_v4 = vadd.f32 %v21743_v40, %v21742_v47  ;;  %v32938_v43 = vld [vmem:[#allocation34_spill] sm:$0xff] }
 0x60e   : > { %v21856_v50 = vadd.f32 %v21855_v10, %v21854_v29  ;;  %10076 = vmatmul.mubr.bf16.gmra.mrb[32].mxu0 %v32930_v58 }
 0x60f   : > { %10237 = vmatmul.mubr.bf16.gmra.mrb[32].mxu1 %v32931_v31  ;;  %v29714_v32 = vadd.f32 %v21853_v44, %v9474_v33  ;;  %v9477_v28 = vadd.f32 %v21744_v4, %v32932_v63  ;;  %10083 = vmatprep.mubr.bf16.mxu0 %v32933_v9 }
 0x610   : > { %10244 = vmatprep.mubr.bf16.mxu1 %v32934_v0 }
 0x611   : > { %v29719_v15 = vadd.f32 %v21856_v50, %v9477_v28  ;;  %v21745_v54 = vpop.f32.mrb[184].mxu0 }
 0x612   : > { %v21857_v17 = vpop.f32.mrb[184].mxu1  ;;  %v21746_v14 = vpop.f32.mrb[185].mxu0 }
 0x613   : > { %v21858_v62 = vpop.f32.mrb[185].mxu1  ;;  %v21747_v39 = vadd.f32 %v21746_v14, %v21745_v54  ;;  %v21748_v30 = vpop.f32.mrb[186].mxu0  ;;  %v32941_v54 = vld [vmem:[#allocation167_spill] sm:$0xff] }
 0x614   : > { %v21859_v23 = vadd.f32 %v21858_v62, %v21857_v17  ;;  %v21860_v11 = vpop.f32.mrb[186].mxu1  ;;  %v21749_v42 = vpop.f32.mrb[187].mxu0  ;;  %v32942_v17 = vld [vmem:[#allocation198_spill] sm:$0xff] }
 0x615   : > { %v21861_v8 = vpop.f32.mrb[187].mxu1  ;;  %v9482_v61 = vadd.f32 %v21747_v39, %v32935_v45  ;;  %v21750_v38 = vadd.f32 %v21749_v42, %v21748_v30  ;;  %v32943_v62 = vld [vmem:[#allocation66_spill] sm:$0xff]  ;;  %v32945_v30 = vld [vmem:[#allocation199_spill] sm:$0xff] }
 0x616   : > { %v21862_v41 = vadd.f32 %v21861_v8, %v21860_v11  ;;  %10084 = vmatmul.mubr.bf16.gmra.mrb[36].mxu0 %v32936_v56 }
 0x617   : > { %10245 = vmatmul.mubr.bf16.gmra.mrb[36].mxu1 %v32937_v36  ;;  %v29724_v27 = vadd.f32 %v21859_v23, %v9482_v61  ;;  %v9485_v44 = vadd.f32 %v21750_v38, %v32938_v43  ;;  %10091 = vmatprep.mubr.bf16.mxu0 %v32939_v5  ;;  %v32944_v23 = vld [vmem:[#allocation168_spill] sm:$0xff] }
 0x618   : > { %10252 = vmatprep.mubr.bf16.mxu1 %v32940_v2 }
 0x619   : > { %v29729_v47 = vadd.f32 %v21862_v41, %v9485_v44  ;;  %v21751_v29 = vpop.f32.mrb[188].mxu0 }
 0x61a   : > { %v21863_v40 = vpop.f32.mrb[188].mxu1  ;;  %v21752_v10 = vpop.f32.mrb[189].mxu0 }
 0x61b   : > { %v21864_v24 = vpop.f32.mrb[189].mxu1  ;;  %v21753_v33 = vadd.f32 %v21752_v10, %v21751_v29  ;;  %v21754_v50 = vpop.f32.mrb[190].mxu0  ;;  %v32946_v29 = vld [vmem:[#allocation169_spill] sm:$0xff] }
 0x61c   : > { %v21865_v4 = vadd.f32 %v21864_v24, %v21863_v40  ;;  %v21866_v58 = vpop.f32.mrb[190].mxu1  ;;  %v21755_v31 = vpop.f32.mrb[191].mxu0  ;;  %v32947_v40 = vld [vmem:[#allocation200_spill] sm:$0xff] }
 0x61d   : > { %v21867_v63 = vpop.f32.mrb[191].mxu1  ;;  %v9490_v28 = vadd.f32 %v21753_v33, %v29501_v12  ;;  %v21756_v9 = vadd.f32 %v21755_v31, %v21754_v50  ;;  %v32948_v33 = vld [vmem:[#allocation170_spill] sm:$0xff] }
 0x61e   : > { %v21868_v0 = vadd.f32 %v21867_v63, %v21866_v58  ;;  %10092 = vmatmul.mubr.bf16.gmra.mrb[40].mxu0 %v32941_v54 }
 0x61f   : > { %10253 = vmatmul.mubr.bf16.gmra.mrb[40].mxu1 %v32942_v17  ;;  %v29734_v14 = vadd.f32 %v21865_v4, %v9490_v28  ;;  %v9493_v39 = vadd.f32 %v21756_v9, %v32943_v62  ;;  %10099 = vmatprep.mubr.bf16.mxu0 %v32944_v23  ;;  %v32949_v4 = vld [vmem:[#allocation201_spill] sm:$0xff] }
 0x620   : > { %10260 = vmatprep.mubr.bf16.mxu1 %v32945_v30  ;;  %v32950_v30 = vld [vmem:[#allocation171_spill] sm:$0xff] }
 0x621   : > { %v29739_v11 = vadd.f32 %v21868_v0, %v9493_v39  ;;  %v21885_v42 = vpop.f32.mrb[192].mxu0 }
 0x622   : > { %v21997_v8 = vpop.f32.mrb[192].mxu1  ;;  %v21886_v45 = vpop.f32.mrb[193].mxu0 }
 0x623   : > { %v21998_v12 = vpop.f32.mrb[193].mxu1  ;;  %v21887_v61 = vadd.f32 %v21886_v45, %v21885_v42  ;;  %v21888_v41 = vpop.f32.mrb[194].mxu0  ;;  %v32951_v42 = vld [vmem:[#allocation202_spill] sm:$0xff] }
 0x624   : > { %v21999_v38 = vadd.f32 %v21998_v12, %v21997_v8  ;;  %v22000_v56 = vpop.f32.mrb[194].mxu1  ;;  %v21889_v36 = vpop.f32.mrb[195].mxu0  ;;  %v32952_v12 = vld [vmem:[#allocation172_spill] sm:$0xff] }
 0x625   : > { %v22001_v43 = vpop.f32.mrb[195].mxu1  ;;  %v9692_v44 = vadd.f32 %v21887_v61, %v29515_v34  ;;  %v21890_v5 = vadd.f32 %v21889_v36, %v21888_v41  ;;  %v32953_v61 = vld [vmem:[#allocation203_spill] sm:$0xff] }
 0x626   : > { %v22002_v2 = vadd.f32 %v22001_v43, %v22000_v56  ;;  %10100 = vmatmul.mubr.bf16.gmra.mrb[44].mxu0 %v32946_v29 }
 0x627   : > { %10261 = vmatmul.mubr.bf16.gmra.mrb[44].mxu1 %v32947_v40  ;;  %v29744_v10 = vadd.f32 %v21999_v38, %v9692_v44  ;;  %v9695_v24 = vadd.f32 %v21890_v5, %v29517_v19  ;;  %10107 = vmatprep.mubr.bf16.mxu0 %v32948_v33 }
 0x628   : > { %10268 = vmatprep.mubr.bf16.mxu1 %v32949_v4  ;;  %v32954_v4 = vld [vmem:[#allocation173_spill] sm:$0xff] }
 0x629   : > { %v29749_v50 = vadd.f32 %v22002_v2, %v9695_v24  ;;  %v21891_v58 = vpop.f32.mrb[196].mxu0 }
 0x62a   : > { %v22003_v31 = vpop.f32.mrb[196].mxu1  ;;  %v21892_v63 = vpop.f32.mrb[197].mxu0 }
 0x62b   : > { %v22004_v34 = vpop.f32.mrb[197].mxu1  ;;  %v21893_v28 = vadd.f32 %v21892_v63, %v21891_v58  ;;  %v21894_v0 = vpop.f32.mrb[198].mxu0  ;;  %v32955_v58 = vld [vmem:[#allocation204_spill] sm:$0xff] }
 0x62c   : > { %v22005_v9 = vadd.f32 %v22004_v34, %v22003_v31  ;;  %v22006_v54 = vpop.f32.mrb[198].mxu1  ;;  %v21895_v17 = vpop.f32.mrb[199].mxu0  ;;  %v32956_v34 = vld [vmem:[#allocation174_spill] sm:$0xff] }
 0x62d   : > { %v22007_v62 = vpop.f32.mrb[199].mxu1  ;;  %v9700_v39 = vadd.f32 %v21893_v28, %v29525_v13  ;;  %v21896_v23 = vadd.f32 %v21895_v17, %v21894_v0  ;;  %v32957_v28 = vld [vmem:[#allocation205_spill] sm:$0xff] }
 0x62e   : > { %v22008_v19 = vadd.f32 %v22007_v62, %v22006_v54  ;;  %10108 = vmatmul.mubr.bf16.gmra.mrb[48].mxu0 %v32950_v30 }
 0x62f   : > { %10269 = vmatmul.mubr.bf16.gmra.mrb[48].mxu1 %v32951_v42  ;;  %v29754_v8 = vadd.f32 %v22005_v9, %v9700_v39  ;;  %v9703_v45 = vadd.f32 %v21896_v23, %v29527_v52  ;;  %10115 = vmatprep.mubr.bf16.mxu0 %v32952_v12 }
 0x630   : > { %10276 = vmatprep.mubr.bf16.mxu1 %v32953_v61  ;;  %v32958_v61 = vld [vmem:[#allocation175_spill] sm:$0xff] }
 0x631   : > { %v29759_v38 = vadd.f32 %v22008_v19, %v9703_v45  ;;  %v21897_v41 = vpop.f32.mrb[200].mxu0 }
 0x632   : > { %v22009_v56 = vpop.f32.mrb[200].mxu1  ;;  %v21898_v36 = vpop.f32.mrb[201].mxu0 }
 0x633   : > { %v22010_v13 = vpop.f32.mrb[201].mxu1  ;;  %v21899_v43 = vadd.f32 %v21898_v36, %v21897_v41  ;;  %v21900_v5 = vpop.f32.mrb[202].mxu0  ;;  %v32959_v41 = vld [vmem:[#allocation206_spill] sm:$0xff] }
 0x634   : > { %v22011_v44 = vadd.f32 %v22010_v13, %v22009_v56  ;;  %v22012_v2 = vpop.f32.mrb[202].mxu1  ;;  %v21901_v29 = vpop.f32.mrb[203].mxu0  ;;  %v32960_v13 = vld [vmem:[#allocation176_spill] sm:$0xff] }
 0x635   : > { %v22013_v40 = vpop.f32.mrb[203].mxu1  ;;  %v9708_v24 = vadd.f32 %v21899_v43, %v29535_v25  ;;  %v21902_v33 = vadd.f32 %v21901_v29, %v21900_v5  ;;  %v32961_v43 = vld [vmem:[#allocation207_spill] sm:$0xff] }
 0x636   : > { %v22014_v52 = vadd.f32 %v22013_v40, %v22012_v2  ;;  %10116 = vmatmul.mubr.bf16.gmra.mrb[52].mxu0 %v32954_v4  ;;  %v25044_v4 = vld [vmem:[%s29567_s17 + $0x4] ss:$8 sps:$4 sm:$0xff]  }
 0x637   : > { %10277 = vmatmul.mubr.bf16.gmra.mrb[52].mxu1 %v32955_v58  ;;  %v29764_v31 = vadd.f32 %v22011_v44, %v9708_v24  ;;  %v9711_v63 = vadd.f32 %v21902_v33, %v29537_v1  ;;  %10123 = vmatprep.mubr.bf16.mxu0 %v32956_v34 }
 0x638   : > { %10284 = vmatprep.mubr.bf16.mxu1 %v32957_v28 }
 0x639   : > { %v29769_v9 = vadd.f32 %v22014_v52, %v9711_v63  ;;  %v21903_v0 = vpop.f32.mrb[204].mxu0 }
 0x63a   : > { %v22015_v54 = vpop.f32.mrb[204].mxu1  ;;  %v21904_v17 = vpop.f32.mrb[205].mxu0 }
 0x63b   : > { %v22016_v25 = vpop.f32.mrb[205].mxu1  ;;  %v21905_v62 = vadd.f32 %v21904_v17, %v21903_v0  ;;  %v21906_v23 = vpop.f32.mrb[206].mxu0  ;;  %v32962_v0 = vld [vmem:[#allocation177_spill] sm:$0xff] }
 0x63c   : > { %v22017_v39 = vadd.f32 %v22016_v25, %v22015_v54  ;;  %v22018_v19 = vpop.f32.mrb[206].mxu1  ;;  %v21907_v30 = vpop.f32.mrb[207].mxu0  ;;  %v32963_v54 = vld [vmem:[#allocation208_spill] sm:$0xff] }
 0x63d   : > { %v22019_v42 = vpop.f32.mrb[207].mxu1  ;;  %v9716_v45 = vadd.f32 %v21905_v62, %v29545_v55  ;;  %v21908_v12 = vadd.f32 %v21907_v30, %v21906_v23 }
 0x63e   : > { %v22020_v1 = vadd.f32 %v22019_v42, %v22018_v19  ;;  %10124 = vmatmul.mubr.bf16.gmra.mrb[56].mxu0 %v32958_v61  ;;  %v25047_v61 = vld [vmem:[%s29567_s17 + $0x14] ss:$8 sps:$4 sm:$0xff]  }
 0x63f   : > { %10285 = vmatmul.mubr.bf16.gmra.mrb[56].mxu1 %v32959_v41  ;;  %v29774_v56 = vadd.f32 %v22017_v39, %v9716_v45  ;;  %v9719_v36 = vadd.f32 %v21908_v12, %v29547_v60  ;;  %10131 = vmatprep.mubr.bf16.mxu0 %v32960_v13 }
 0x640   : > { %10292 = vmatprep.mubr.bf16.mxu1 %v32961_v43 }
 0x641   : > { %v29779_v44 = vadd.f32 %v22020_v1, %v9719_v36  ;;  %v21909_v5 = vpop.f32.mrb[208].mxu0 }
 0x642   : > { %v22021_v2 = vpop.f32.mrb[208].mxu1  ;;  %v21910_v55 = vpop.f32.mrb[209].mxu0 }
 0x643   : > { %v22022_v29 = vpop.f32.mrb[209].mxu1  ;;  %v21911_v40 = vadd.f32 %v21910_v55, %v21909_v5  ;;  %v21912_v33 = vpop.f32.mrb[210].mxu0 }
 0x644   : > { %v22023_v24 = vadd.f32 %v22022_v29, %v22021_v2  ;;  %v22024_v52 = vpop.f32.mrb[210].mxu1  ;;  %v21913_v58 = vpop.f32.mrb[211].mxu0 }
 0x645   : > { %v22025_v63 = vpop.f32.mrb[211].mxu1  ;;  %v9724_v60 = vadd.f32 %v21911_v40, %v29556_v37  ;;  %v21914_v34 = vadd.f32 %v21913_v58, %v21912_v33  ;;  %v25042_v37 = vld [vmem:[%s29567_s17] ss:$8 sps:$4 sm:$0xff]  }
 0x646   : > { %v22026_v28 = vadd.f32 %v22025_v63, %v22024_v52  ;;  %10132 = vmatmul.mubr.bf16.gmra.mrb[60].mxu0 %v32962_v0  ;;  %v25045_v52 = vld [vmem:[%s29567_s17 + $0x10] ss:$8 sps:$4 sm:$0xff]  }
 0x647   : > { %10293 = vmatmul.mubr.bf16.gmra.mrb[60].mxu1 %v32963_v54  ;;  %v29785_v17 = vadd.f32 %v22023_v24, %v9724_v60  ;;  %v9727_v25 = vadd.f32 %v21914_v34, %v29561_v21  ;;  %10800 = vmatprep.mubr.bf16.mxu0 %v25044_v4 }
 0x648   : > { %10891 = vmatprep.mubr.bf16.mxu1 %v25044_v4 }
 0x649   : > { %v29788_v62 = vadd.f32 %v22026_v28, %v9727_v25  ;;  %v21915_v39 = vpop.f32.mrb[212].mxu0 }
 0x64a   : > { %v22027_v23 = vpop.f32.mrb[212].mxu1  ;;  %v21916_v19 = vpop.f32.mrb[213].mxu0 }
 0x64b   : > { %v22028_v30 = vpop.f32.mrb[213].mxu1  ;;  %v21917_v42 = vadd.f32 %v21916_v19, %v21915_v39  ;;  %v21918_v12 = vpop.f32.mrb[214].mxu0 }
 0x64c   : > { %v22029_v45 = vadd.f32 %v22028_v30, %v22027_v23  ;;  %v22030_v1 = vpop.f32.mrb[214].mxu1  ;;  %v21919_v41 = vpop.f32.mrb[215].mxu0 }
 0x64d   : > { %v22031_v36 = vpop.f32.mrb[215].mxu1  ;;  %v9732_v13 = vadd.f32 %v21917_v42, %v29575_v3  ;;  %v21920_v21 = vadd.f32 %v21919_v41, %v21918_v12 }
 0x64e   : > { %v22032_v43 = vadd.f32 %v22031_v36, %v22030_v1  ;;  %10801 = vmatmul.mubr.bf16.vlgmr.msra.gmra.mrb[64].mxu0 %v25042_v37 }
 0x64f   : > { %10892 = vmatmul.mubr.bf16.vlgmr.msra.gmra.mrb[64].mxu1 %v25042_v37  ;;  %v29793_v5 = vadd.f32 %v22029_v45, %v9732_v13  ;;  %v9735_v2 = vadd.f32 %v21920_v21, %v29581_v57  ;;  %10810 = vmatprep.mubr.bf16.mxu0 %v25047_v61 }
 0x650   : > { %10901 = vmatprep.mubr.bf16.mxu1 %v25047_v61 }
 0x651   : > { %v29796_v55 = vadd.f32 %v22032_v43, %v9735_v2  ;;  %v21921_v29 = vpop.f32.mrb[216].mxu0 }
 0x652   : > { %v22033_v40 = vpop.f32.mrb[216].mxu1  ;;  %v21922_v24 = vpop.f32.mrb[217].mxu0 }
 0x653   : > { %v22034_v33 = vpop.f32.mrb[217].mxu1  ;;  %v21923_v4 = vadd.f32 %v21922_v24, %v21921_v29  ;;  %v21924_v3 = vpop.f32.mrb[218].mxu0 }
 0x654   : > { %v22035_v58 = vadd.f32 %v22034_v33, %v22033_v40  ;;  %v22036_v63 = vpop.f32.mrb[218].mxu1  ;;  %v21925_v60 = vpop.f32.mrb[219].mxu0 }
 0x655   : > { %v22037_v34 = vpop.f32.mrb[219].mxu1  ;;  %v9740_v28 = vadd.f32 %v21923_v4, %v29593_v53  ;;  %v21926_v0 = vadd.f32 %v21925_v60, %v21924_v3 }
 0x656   : > { %v22038_v54 = vadd.f32 %v22037_v34, %v22036_v63  ;;  %10811 = vmatmul.mubr.bf16.gmra.mrb[68].mxu0 %v25045_v52 }
 0x657   : > { %10902 = vmatmul.mubr.bf16.gmra.mrb[68].mxu1 %v25045_v52  ;;  %v29800_v57 = vadd.f32 %v22035_v58, %v9740_v28  ;;  %v9743_v25 = vadd.f32 %v21926_v0, %v29599_v51 }
 0x659   : > { %v29803_v39 = vadd.f32 %v22038_v54, %v9743_v25  ;;  %v21927_v23 = vpop.f32.mrb[220].mxu0 }
 0x65a   : > { %v22039_v19 = vpop.f32.mrb[220].mxu1  ;;  %v21928_v30 = vpop.f32.mrb[221].mxu0 }
 0x65b   : > { %v22040_v37 = vpop.f32.mrb[221].mxu1  ;;  %v21929_v42 = vadd.f32 %v21928_v30, %v21927_v23  ;;  %v21930_v12 = vpop.f32.mrb[222].mxu0 }
 0x65c   : > { %v22041_v45 = vadd.f32 %v22040_v37, %v22039_v19  ;;  %v22042_v1 = vpop.f32.mrb[222].mxu1  ;;  %v21931_v61 = vpop.f32.mrb[223].mxu0 }
 0x65d   : > { %v22043_v53 = vpop.f32.mrb[223].mxu1  ;;  %v9748_v41 = vadd.f32 %v21929_v42, %v29611_v22  ;;  %v21932_v36 = vadd.f32 %v21931_v61, %v21930_v12 }
 0x65e   : > { %v22044_v13 = vadd.f32 %v22043_v53, %v22042_v1 }
 0x65f   : > { %v29806_v21 = vadd.f32 %v22041_v45, %v9748_v41  ;;  %v9751_v51 = vadd.f32 %v21932_v36, %v29617_v16 }
 0x661   : > { %v29809_v43 = vadd.f32 %v22044_v13, %v9751_v51  ;;  %v21933_v2 = vpop.f32.mrb[224].mxu0 }
 0x662   : > { %v22045_v29 = vpop.f32.mrb[224].mxu1  ;;  %v21934_v40 = vpop.f32.mrb[225].mxu0 }
 0x663   : > { %v22046_v24 = vpop.f32.mrb[225].mxu1  ;;  %v21935_v33 = vadd.f32 %v21934_v40, %v21933_v2  ;;  %v21936_v4 = vpop.f32.mrb[226].mxu0 }
 0x664   : > { %v22047_v52 = vadd.f32 %v22046_v24, %v22045_v29  ;;  %v22048_v58 = vpop.f32.mrb[226].mxu1  ;;  %v21937_v3 = vpop.f32.mrb[227].mxu0 }
 0x665   : > { %v22049_v63 = vpop.f32.mrb[227].mxu1  ;;  %v9756_v22 = vadd.f32 %v21935_v33, %v29629_v26  ;;  %v21938_v60 = vadd.f32 %v21937_v3, %v21936_v4 }
 0x666   : > { %v22050_v34 = vadd.f32 %v22049_v63, %v22048_v58 }
 0x667   : > { %v29812_v28 = vadd.f32 %v22047_v52, %v9756_v22  ;;  %v9759_v16 = vadd.f32 %v21938_v60, %v29635_v49 }
 0x669   : > { %v29815_v0 = vadd.f32 %v22050_v34, %v9759_v16  ;;  %v21939_v54 = vpop.f32.mrb[228].mxu0 }
 0x66a   : > { %v22051_v25 = vpop.f32.mrb[228].mxu1  ;;  %v21940_v23 = vpop.f32.mrb[229].mxu0 }
 0x66b   : > { %v22052_v19 = vpop.f32.mrb[229].mxu1  ;;  %v21941_v30 = vadd.f32 %v21940_v23, %v21939_v54  ;;  %v21942_v42 = vpop.f32.mrb[230].mxu0 }
 0x66c   : > { %v22053_v37 = vadd.f32 %v22052_v19, %v22051_v25  ;;  %v22054_v45 = vpop.f32.mrb[230].mxu1  ;;  %v21943_v12 = vpop.f32.mrb[231].mxu0 }
 0x66d   : > { %v22055_v1 = vpop.f32.mrb[231].mxu1  ;;  %v9764_v26 = vadd.f32 %v21941_v30, %v29647_v7  ;;  %v21944_v61 = vadd.f32 %v21943_v12, %v21942_v42  ;;  %v25049_v42 = vld [vmem:[%s32241_s5 + $0xc0] sm:$0xff]  }
 0x66e   : > { %v22056_v53 = vadd.f32 %v22055_v1, %v22054_v45  ;;  %v25051_v1 = vld [vmem:[%s32241_s5 + $0x80] sm:$0xff]   ;;  %22339 = vmatprep.subr.bf16.mxu1 %v25049_v42 }
 0x66f   : > { %v29818_v41 = vadd.f32 %v22053_v37, %v9764_v26  ;;  %v9767_v49 = vadd.f32 %v21944_v61, %v29653_v20  ;;  %22340 = vmatpush3.bf16.msra.mxu1 %v25051_v1  ;;  %v25055_v1 = vld [vmem:[%s32241_s5 + $0x88] sm:$0xff]  }
 0x671   : > { %v29821_v36 = vadd.f32 %v22056_v53, %v9767_v49  ;;  %v21945_v13 = vpop.f32.mrb[232].mxu0 }
 0x672   : > { %v22057_v51 = vpop.f32.mrb[232].mxu1  ;;  %v21946_v2 = vpop.f32.mrb[233].mxu0 }
 0x673   : > { %v22058_v29 = vpop.f32.mrb[233].mxu1  ;;  %v21947_v40 = vadd.f32 %v21946_v2, %v21945_v13  ;;  %v21948_v33 = vpop.f32.mrb[234].mxu0 }
 0x674   : > { %v22059_v24 = vadd.f32 %v22058_v29, %v22057_v51  ;;  %v22060_v52 = vpop.f32.mrb[234].mxu1  ;;  %v21949_v4 = vpop.f32.mrb[235].mxu0 }
 0x675   : > { %v22061_v58 = vpop.f32.mrb[235].mxu1  ;;  %v9772_v7 = vadd.f32 %v21947_v40, %v29665_v18  ;;  %v21950_v3 = vadd.f32 %v21949_v4, %v21948_v33  ;;  %v25048_v18 = vld [vmem:[%s32241_s5 + $0x40] sm:$0xff]  }
 0x676   : > { %v22062_v63 = vadd.f32 %v22061_v58, %v22060_v52  ;;  %22317 = vmatprep.subr.bf16.mxu0 %v25048_v18  ;;  %v25060_v58 = vld [vmem:[%s29567_s17 + $0x24] ss:$8 sps:$4 sm:$0xff]  }
 0x677   : > { %v29824_v22 = vadd.f32 %v22059_v24, %v9772_v7  ;;  %v9775_v20 = vadd.f32 %v21950_v3, %v29671_v46  ;;  %v25050_v46 = vld [vmem:[%s32241_s5] sm:$0xff]   ;;  %10820 = vmatprep.mubr.bf16.mxu0 %v25060_v58  ;;  %10911 = vmatprep.mubr.bf16.mxu1 %v25060_v58  ;;  %v25053_v18 = vld [vmem:[%s32241_s5 + $0xc8] sm:$0xff]  }
 0x678   : > { %22318 = vmatpush3.bf16.msra.mxu0 %v25050_v46  ;;  %22341 = vmatprep.subr.bf16.mxu1 %v25053_v18 }
 0x679   : > { %v29827_v60 = vadd.f32 %v22062_v63, %v9775_v20  ;;  %v21951_v34 = vpop.f32.mrb[236].mxu0  ;;  %v25058_v63 = vld [vmem:[%s29567_s17 + $0x20] ss:$8 sps:$4 sm:$0xff]   ;;  %22342 = vmatpush3.bf16.msra.mxu1 %v25055_v1 }
 0x67a   : > { %v22063_v16 = vpop.f32.mrb[236].mxu1  ;;  %v21952_v54 = vpop.f32.mrb[237].mxu0  ;;  %10821 = vmatmul.mubr.bf16.gmra.mrb[72].mxu0 %v25058_v63  ;;  %10912 = vmatmul.mubr.bf16.gmra.mrb[72].mxu1 %v25058_v63 }
 0x67b   : > { %v22064_v25 = vpop.f32.mrb[237].mxu1  ;;  %v21953_v23 = vadd.f32 %v21952_v54, %v21951_v34  ;;  %v21954_v30 = vpop.f32.mrb[238].mxu0 }
 0x67c   : > { %v22065_v19 = vadd.f32 %v22064_v25, %v22063_v16  ;;  %v22066_v37 = vpop.f32.mrb[238].mxu1  ;;  %v21955_v45 = vpop.f32.mrb[239].mxu0 }
 0x67d   : > { %v22067_v12 = vpop.f32.mrb[239].mxu1  ;;  %v9780_v26 = vadd.f32 %v21953_v23, %v29680_v59  ;;  %v21956_v61 = vadd.f32 %v21955_v45, %v21954_v30 }
 0x67e   : > { %v22068_v53 = vadd.f32 %v22067_v12, %v22066_v37 }
 0x67f   : > { %v29842_v49 = vadd.f32 %v22065_v19, %v9780_v26  ;;  %v9783_v13 = vadd.f32 %v21956_v61, %v29687_v35  ;;  %v25069_v26 = vld [vmem:[%s29567_s17 + $0x34] ss:$8 sps:$4 sm:$0xff]  }
 0x680   : > { %10830 = vmatprep.mubr.bf16.mxu0 %v25069_v26  ;;  %10921 = vmatprep.mubr.bf16.mxu1 %v25069_v26  ;;  %v25073_v26 = vld [vmem:[%s32241_s5 + $0xa0] sm:$0xff]  }
 0x681   : > { %v29845_v51 = vadd.f32 %v22068_v53, %v9783_v13  ;;  %v21957_v2 = vpop.f32.mrb[240].mxu0  ;;  %v25067_v13 = vld [vmem:[%s29567_s17 + $0x30] ss:$8 sps:$4 sm:$0xff]  }
 0x682   : > { %v22069_v29 = vpop.f32.mrb[240].mxu1  ;;  %v21958_v40 = vpop.f32.mrb[241].mxu0  ;;  %10831 = vmatmul.mubr.bf16.gmra.mrb[76].mxu0 %v25067_v13  ;;  %10922 = vmatmul.mubr.bf16.gmra.mrb[76].mxu1 %v25067_v13 }
 0x683   : > { %v22070_v24 = vpop.f32.mrb[241].mxu1  ;;  %v21959_v33 = vadd.f32 %v21958_v40, %v21957_v2  ;;  %v21960_v52 = vpop.f32.mrb[242].mxu0 }
 0x684   : > { %v22071_v59 = vadd.f32 %v22070_v24, %v22069_v29  ;;  %v22072_v4 = vpop.f32.mrb[242].mxu1  ;;  %v21961_v7 = vpop.f32.mrb[243].mxu0  ;;  %v25056_v24 = vld [vmem:[%s32241_s5 + $0x50] sm:$0xff]  }
 0x685   : > { %v22073_v3 = vpop.f32.mrb[243].mxu1  ;;  %v9788_v20 = vadd.f32 %v21959_v33, %v29698_v48  ;;  %v21962_v34 = vadd.f32 %v21961_v7, %v21960_v52  ;;  %v25052_v48 = vld [vmem:[%s32241_s5 + $0x48] sm:$0xff]   ;;  %v25057_v33 = vld [vmem:[%s32241_s5 + $0xd0] sm:$0xff]  }
 0x686   : > { %v22074_v16 = vadd.f32 %v22073_v3, %v22072_v4  ;;  %22319 = vmatprep.subr.bf16.mxu0 %v25052_v48  ;;  %v25062_v4 = vld [vmem:[%s32241_s5 + $0x90] sm:$0xff]   ;;  %22343 = vmatprep.subr.bf16.mxu1 %v25057_v33  ;;  %v25070_v48 = vld [vmem:[%s32241_s5 + $0x60] sm:$0xff]  }
 0x687   : > { %v29850_v35 = vadd.f32 %v22071_v59, %v9788_v20  ;;  %v9791_v54 = vadd.f32 %v21962_v34, %v29705_v6  ;;  %v25054_v6 = vld [vmem:[%s32241_s5 + $0x8] sm:$0xff]   ;;  %22344 = vmatpush3.bf16.msra.mxu1 %v25062_v4  ;;  %v25063_v20 = vld [vmem:[%s32241_s5 + $0x58] sm:$0xff]  }
 0x688   : > { %22320 = vmatpush3.bf16.msra.mxu0 %v25054_v6  ;;  %v25064_v34 = vld [vmem:[%s32241_s5 + $0xd8] sm:$0xff]  }
 0x689   : > { %v29853_v25 = vadd.f32 %v22074_v16, %v9791_v54  ;;  %v21963_v23 = vpop.f32.mrb[244].mxu0  ;;  %22321 = vmatprep.subr.bf16.mxu0 %v25056_v24  ;;  %22345 = vmatprep.subr.bf16.mxu1 %v25064_v34 }
 0x68a   : > { %v22075_v19 = vpop.f32.mrb[244].mxu1  ;;  %v21964_v30 = vpop.f32.mrb[245].mxu0 }
 0x68b   : > { %v22076_v37 = vpop.f32.mrb[245].mxu1  ;;  %v21965_v42 = vadd.f32 %v21964_v30, %v21963_v23  ;;  %v21966_v45 = vpop.f32.mrb[246].mxu0  ;;  %v25065_v30 = vld [vmem:[%s32241_s5 + $0x18] sm:$0xff]  }
 0x68c   : > { %v22077_v46 = vadd.f32 %v22076_v37, %v22075_v19  ;;  %v22078_v12 = vpop.f32.mrb[246].mxu1  ;;  %v21967_v61 = vpop.f32.mrb[247].mxu0  ;;  %v25066_v37 = vld [vmem:[%s32241_s5 + $0x98] sm:$0xff]  }
 0x68d   : > { %v22079_v53 = vpop.f32.mrb[247].mxu1  ;;  %v9796_v2 = vadd.f32 %v21965_v42, %v29714_v32  ;;  %v21968_v29 = vadd.f32 %v21967_v61, %v21966_v45  ;;  %v25061_v32 = vld [vmem:[%s32241_s5 + $0x10] sm:$0xff]   ;;  %v25072_v45 = vld [vmem:[%s32241_s5 + $0x20] sm:$0xff]   ;;  %22346 = vmatpush3.bf16.msra.mxu1 %v25066_v37 }
 0x68e   : > { %v22080_v40 = vadd.f32 %v22079_v53, %v22078_v12  ;;  %22322 = vmatpush3.bf16.msra.mxu0 %v25061_v32  ;;  %v25074_v61 = vld [vmem:[%s29567_s17 + $0x40] ss:$8 sps:$4 sm:$0xff]   ;;  %v25076_v53 = vld [vmem:[%s29567_s17 + $0x44] ss:$8 sps:$4 sm:$0xff]   ;;  %v10710_v32 = vld [vmem:[%s29567_s17 + $0x50] sm:$0x33] }
 0x68f   : > { %v29876_v59 = vadd.f32 %v22077_v46, %v9796_v2  ;;  %v9799_v52 = vadd.f32 %v21968_v29, %v29719_v15  ;;  %22323 = vmatprep.subr.bf16.mxu0 %v25063_v20  ;;  %v25071_v46 = vld [vmem:[%s32241_s5 + $0xe0] sm:$0xff]   ;;  %10840 = vmatprep.mubr.bf16.mxu0 %v25076_v53  ;;  %v25080_v20 = vld [vmem:[%s32241_s5 + $0xa8] sm:$0xff]   ;;  %v19465_v34 = vcombine.high %v10710_v32, %v10710_v32  ;;  %v25081_v37 = vld [vmem:[%s32241_s5 + $0x70] sm:$0xff]  }
 0x690   : > { %22347 = vmatprep.subr.bf16.mxu1 %v25071_v46  ;;  %10931 = vmatprep.mubr.bf16.mxu1 %v25076_v53  ;;  %v25088_v53 = vld [vmem:[%s32241_s5 + $0xf8] sm:$0xff]  }
 0x691   : > { %v29885_v58 = vadd.f32 %v22080_v40, %v9799_v52  ;;  %v21969_v7 = vpop.f32.mrb[248].mxu0  ;;  %10841 = vmatmul.mubr.bf16.gmra.mrb[80].mxu0 %v25074_v61  ;;  %10932 = vmatmul.mubr.bf16.gmra.mrb[80].mxu1 %v25074_v61  ;;  %v25077_v52 = vld [vmem:[%s32241_s5 + $0x68] sm:$0xff]  }
 0x692   : > { %v22081_v3 = vpop.f32.mrb[248].mxu1  ;;  %v21970_v63 = vpop.f32.mrb[249].mxu0  ;;  %22324 = vmatpush3.bf16.msra.mxu0 %v25065_v30  ;;  %22348 = vmatpush3.bf16.msra.mxu1 %v25073_v26 }
 0x693   : > { %v22082_v15 = vpop.f32.mrb[249].mxu1  ;;  %v21971_v16 = vadd.f32 %v21970_v63, %v21969_v7  ;;  %v21972_v23 = vpop.f32.mrb[250].mxu0  ;;  %22325 = vmatprep.subr.bf16.mxu0 %v25070_v48  ;;  %v25082_v48 = vld [vmem:[%s32241_s5 + $0xf0] sm:$0xff]   ;;  %10850 = vmatprep.mubr.bf16.mxu0 %v19465_v34 }
 0x694   : > { %v22083_v54 = vadd.f32 %v22082_v15, %v22081_v3  ;;  %v22084_v19 = vpop.f32.mrb[250].mxu1  ;;  %v21973_v18 = vpop.f32.mrb[251].mxu0  ;;  %v25079_v15 = vld [vmem:[%s32241_s5 + $0x28] sm:$0xff]   ;;  %10941 = vmatprep.mubr.bf16.mxu1 %v19465_v34 }
 0x695   : > { %v22085_v42 = vpop.f32.mrb[251].mxu1  ;;  %v9804_v12 = vadd.f32 %v21971_v16, %v29724_v27  ;;  %v21974_v6 = vadd.f32 %v21973_v18, %v21972_v23  ;;  %v19464_v18 = vcombine.low %v10710_v32, %v10710_v32 }
 0x696   : > { %v22086_v1 = vadd.f32 %v22085_v42, %v22084_v19  ;;  %22326 = vmatpush3.bf16.msra.mxu0 %v25072_v45  ;;  %v25086_v45 = vld [vmem:[%s32241_s5 + $0xb0] sm:$0xff]  }
 0x697   : > { %v29914_v13 = vadd.f32 %v22083_v54, %v9804_v12  ;;  %v9807_v2 = vadd.f32 %v21974_v6, %v29729_v47  ;;  %v25078_v47 = vld [vmem:[%s32241_s5 + $0xe8] sm:$0xff]   ;;  %22327 = vmatprep.subr.bf16.mxu0 %v25077_v52  ;;  %v25090_v52 = vld [vmem:[%s32241_s5 + $0xb8] sm:$0xff]  }
 0x698   : > { %22349 = vmatprep.subr.bf16.mxu1 %v25078_v47 }
 0x699   : > { %v29917_v27 = vadd.f32 %v22086_v1, %v9807_v2  ;;  %v21975_v29 = vpop.f32.mrb[252].mxu0  ;;  %22350 = vmatpush3.bf16.msra.mxu1 %v25080_v20  ;;  %10851 = vmatmul.mubr.bf16.gmra.mrb[84].mxu0 %v19464_v18 }
 0x69a   : > { %v22087_v40 = vpop.f32.mrb[252].mxu1  ;;  %v21976_v24 = vpop.f32.mrb[253].mxu0  ;;  %22328 = vmatpush3.bf16.msra.mxu0 %v25079_v15  ;;  %22351 = vmatprep.subr.bf16.mxu1 %v25082_v48  ;;  %v25092_v15 = vld [vmem:[%s32241_s5 + $0x1c0] sm:$0xff]  }
 0x69b   : > { %v22088_v33 = vpop.f32.mrb[253].mxu1  ;;  %v21977_v4 = vadd.f32 %v21976_v24, %v21975_v29  ;;  %v21978_v3 = vpop.f32.mrb[254].mxu0  ;;  %22329 = vmatprep.subr.bf16.mxu0 %v25081_v37  ;;  %10942 = vmatmul.mubr.bf16.gmra.mrb[84].mxu1 %v19464_v18 }
 0x69c   : > { %v22089_v7 = vadd.f32 %v22088_v33, %v22087_v40  ;;  %v22090_v63 = vpop.f32.mrb[254].mxu1  ;;  %v21979_v16 = vpop.f32.mrb[255].mxu0  ;;  %v25089_v33 = vld [vmem:[%s32241_s5 + $0x38] sm:$0xff]  }
 0x69d   : > { %v22091_v54 = vpop.f32.mrb[255].mxu1  ;;  %v9812_v23 = vadd.f32 %v21977_v4, %v29734_v14  ;;  %v21980_v19 = vadd.f32 %v21979_v16, %v21978_v3  ;;  %v25085_v14 = vld [vmem:[%s32241_s5 + $0x30] sm:$0xff]   ;;  %22352 = vmatpush3.bf16.msra.mxu1 %v25086_v45 }
 0x69e   : > { %v22092_v30 = vadd.f32 %v22091_v54, %v22090_v63  ;;  %22330 = vmatpush3.bf16.msra.mxu0 %v25085_v14  ;;  %22353 = vmatprep.subr.bf16.mxu1 %v25088_v53  ;;  %v25091_v63 = vld [vmem:[%s32241_s5 + $0x140] sm:$0xff]  }
 0x69f   : > { %v29939_v42 = vadd.f32 %v22089_v7, %v9812_v23  ;;  %v9815_v46 = vadd.f32 %v21980_v19, %v29739_v11  ;;  %v25087_v11 = vld [vmem:[%s32241_s5 + $0x78] sm:$0xff]  }
 0x6a0   : > { %22331 = vmatprep.subr.bf16.mxu0 %v25087_v11 }
 0x6a1   : > { %v29948_v12 = vadd.f32 %v22092_v30, %v9815_v46  ;;  %v22109_v6 = vpop.f32.mrb[0].mxu0  ;;  %22354 = vmatpush3.bf16.msra.mxu1 %v25090_v52 }
 0x6a2   : > { %v22221_v1 = vpop.f32.mrb[0].mxu1  ;;  %v22110_v26 = vpop.f32.mrb[1].mxu0  ;;  %22332 = vmatpush3.bf16.msra.mxu0 %v25089_v33  ;;  %22383 = vmatprep.subr.bf16.mxu1 %v25092_v15 }
 0x6a3   : > { %v22222_v61 = vpop.f32.mrb[1].mxu1  ;;  %v22111_v2 = vadd.f32 %v22110_v26, %v22109_v6  ;;  %v22112_v40 = vpop.f32.mrb[2].mxu0  ;;  %22361 = vmatprep.subr.bf16.mxu0 %v25091_v63 }
 0x6a4   : > { %v22223_v29 = vadd.f32 %v22222_v61, %v22221_v1  ;;  %v22224_v24 = vpop.f32.mrb[2].mxu1  ;;  %v22113_v47 = vpop.f32.mrb[3].mxu0 }
 0x6a5   : > { %v22225_v32 = vpop.f32.mrb[3].mxu1  ;;  %v10014_v4 = vadd.f32 %v22111_v2, %v29744_v10  ;;  %v22114_v7 = vadd.f32 %v22113_v47, %v22112_v40 }
 0x6a6   : > { %v22226_v3 = vadd.f32 %v22225_v32, %v22224_v24 }
 0x6a7   : > { %v10175_v20 = vadd.f32 %v22223_v29, %v10014_v4  ;;  %v10017_v34 = vadd.f32 %v22114_v7, %v29749_v50 }
 0x6a9   : > { %v10178_v16 = vadd.f32 %v22226_v3, %v10017_v34  ;;  %v22115_v54 = vpop.f32.mrb[4].mxu0 }
 0x6aa   : > { %v22227_v10 = vpop.f32.mrb[4].mxu1  ;;  %v22116_v23 = vpop.f32.mrb[5].mxu0 }
 0x6ab   : > { %v22228_v19 = vpop.f32.mrb[5].mxu1  ;;  %v10643_v30 = vadd.f32 %v10178_v16, %v10175_v20  ;;  %v22117_v37 = vadd.f32 %v22116_v23, %v22115_v54  ;;  %v22118_v18 = vpop.f32.mrb[6].mxu0 }
 0x6ac   : > { %v22229_v48 = vadd.f32 %v22228_v19, %v22227_v10  ;;  %v22230_v46 = vpop.f32.mrb[6].mxu1  ;;  %v22119_v14 = vpop.f32.mrb[7].mxu0 }
 0x6ad   : > { %v22231_v45 = vpop.f32.mrb[7].mxu1  ;;  %v10022_v6 = vadd.f32 %v22117_v37, %v29754_v8  ;;  %v22120_v1 = vadd.f32 %v22119_v14, %v22118_v18 }
 0x6ae   : > { %v22232_v26 = vadd.f32 %v22231_v45, %v22230_v46 }
 0x6af   : > { %v10183_v61 = vadd.f32 %v22229_v48, %v10022_v6  ;;  %v10025_v50 = vadd.f32 %v22120_v1, %v29759_v38 }
 0x6b1   : > { %v10644_v11 = vadd.f32 %v10643_v30, %v10183_v61  ;;  %v10186_v53 = vadd.f32 %v22232_v26, %v10025_v50  ;;  %v22121_v2 = vpop.f32.mrb[8].mxu0 }
 0x6b2   : > { %v22233_v29 = vpop.f32.mrb[8].mxu1  ;;  %v22122_v40 = vpop.f32.mrb[9].mxu0 }
 0x6b3   : > { %v22234_v24 = vpop.f32.mrb[9].mxu1  ;;  %v10645_v33 = vadd.f32 %v10644_v11, %v10186_v53  ;;  %v22123_v52 = vadd.f32 %v22122_v40, %v22121_v2  ;;  %v22124_v32 = vpop.f32.mrb[10].mxu0 }
 0x6b4   : > { %v22235_v47 = vadd.f32 %v22234_v24, %v22233_v29  ;;  %v22236_v4 = vpop.f32.mrb[10].mxu1  ;;  %v22125_v7 = vpop.f32.mrb[11].mxu0 }
 0x6b5   : > { %v22237_v3 = vpop.f32.mrb[11].mxu1  ;;  %v10030_v8 = vadd.f32 %v22123_v52, %v29764_v31  ;;  %v22126_v63 = vadd.f32 %v22125_v7, %v22124_v32 }
 0x6b6   : > { %v22238_v15 = vadd.f32 %v22237_v3, %v22236_v4 }
 0x6b7   : > { %v10191_v20 = vadd.f32 %v22235_v47, %v10030_v8  ;;  %v10033_v38 = vadd.f32 %v22126_v63, %v29769_v9 }
 0x6b9   : > { %v10646_v34 = vadd.f32 %v10645_v33, %v10191_v20  ;;  %v10194_v16 = vadd.f32 %v22238_v15, %v10033_v38  ;;  %v22127_v54 = vpop.f32.mrb[12].mxu0 }
 0x6ba   : > { %v22239_v10 = vpop.f32.mrb[12].mxu1  ;;  %v22128_v23 = vpop.f32.mrb[13].mxu0 }
 0x6bb   : > { %v22240_v19 = vpop.f32.mrb[13].mxu1  ;;  %v10647_v30 = vadd.f32 %v10646_v34, %v10194_v16  ;;  %v22129_v37 = vadd.f32 %v22128_v23, %v22127_v54  ;;  %v22130_v18 = vpop.f32.mrb[14].mxu0 }
 0x6bc   : > { %v22241_v48 = vadd.f32 %v22240_v19, %v22239_v10  ;;  %v22242_v46 = vpop.f32.mrb[14].mxu1  ;;  %v22131_v14 = vpop.f32.mrb[15].mxu0 }
 0x6bd   : > { %v22243_v45 = vpop.f32.mrb[15].mxu1  ;;  %v10038_v31 = vadd.f32 %v22129_v37, %v29774_v56  ;;  %v22132_v6 = vadd.f32 %v22131_v14, %v22130_v18 }
 0x6be   : > { %v22244_v1 = vadd.f32 %v22243_v45, %v22242_v46 }
 0x6bf   : > { %v10199_v26 = vadd.f32 %v22241_v48, %v10038_v31  ;;  %v10041_v9 = vadd.f32 %v22132_v6, %v29779_v44 }
 0x6c1   : > { %v10648_v61 = vadd.f32 %v10647_v30, %v10199_v26  ;;  %v10202_v50 = vadd.f32 %v22244_v1, %v10041_v9  ;;  %v22133_v11 = vpop.f32.mrb[16].mxu0 }
 0x6c2   : > { %v22245_v53 = vpop.f32.mrb[16].mxu1  ;;  %v22134_v2 = vpop.f32.mrb[17].mxu0 }
 0x6c3   : > { %v22246_v29 = vpop.f32.mrb[17].mxu1  ;;  %v29976_v40 = vadd.f32 %v10648_v61, %v10202_v50  ;;  %v22135_v24 = vadd.f32 %v22134_v2, %v22133_v11  ;;  %v22136_v52 = vpop.f32.mrb[18].mxu0 }
 0x6c4   : > { %v22247_v33 = vadd.f32 %v22246_v29, %v22245_v53  ;;  %v22248_v47 = vpop.f32.mrb[18].mxu1  ;;  %v22137_v32 = vpop.f32.mrb[19].mxu0 }
 0x6c5   : > { %v22249_v4 = vpop.f32.mrb[19].mxu1  ;;  %v10046_v56 = vadd.f32 %v22135_v24, %v29785_v17  ;;  %v22138_v7 = vadd.f32 %v22137_v32, %v22136_v52 }
 0x6c6   : > { %v22250_v3 = vadd.f32 %v22249_v4, %v22248_v47 }
 0x6c7   : > { %v10207_v8 = vadd.f32 %v22247_v33, %v10046_v56  ;;  %v10049_v44 = vadd.f32 %v22138_v7, %v29788_v62 }
 0x6c9   : > { %v10210_v63 = vadd.f32 %v22250_v3, %v10049_v44  ;;  %v22139_v15 = vpop.f32.mrb[20].mxu0 }
 0x6ca   : > { %v22251_v20 = vpop.f32.mrb[20].mxu1  ;;  %v22140_v38 = vpop.f32.mrb[21].mxu0 }
 0x6cb   : > { %v22252_v34 = vpop.f32.mrb[21].mxu1  ;;  %v10656_v16 = vadd.f32 %v10210_v63, %v10207_v8  ;;  %v22141_v54 = vadd.f32 %v22140_v38, %v22139_v15  ;;  %v22142_v23 = vpop.f32.mrb[22].mxu0 }
 0x6cc   : > { %v22253_v10 = vadd.f32 %v22252_v34, %v22251_v20  ;;  %v22254_v19 = vpop.f32.mrb[22].mxu1  ;;  %v22143_v30 = vpop.f32.mrb[23].mxu0 }
 0x6cd   : > { %v22255_v37 = vpop.f32.mrb[23].mxu1  ;;  %v10054_v48 = vadd.f32 %v22141_v54, %v29793_v5  ;;  %v22144_v17 = vadd.f32 %v22143_v30, %v22142_v23 }
 0x6ce   : > { %v22256_v18 = vadd.f32 %v22255_v37, %v22254_v19 }
 0x6cf   : > { %v10215_v46 = vadd.f32 %v22253_v10, %v10054_v48  ;;  %v10057_v14 = vadd.f32 %v22144_v17, %v29796_v55 }
 0x6d1   : > { %v10657_v62 = vadd.f32 %v10656_v16, %v10215_v46  ;;  %v10218_v45 = vadd.f32 %v22256_v18, %v10057_v14  ;;  %v22145_v31 = vpop.f32.mrb[24].mxu0 }
 0x6d2   : > { %v22257_v6 = vpop.f32.mrb[24].mxu1  ;;  %v22146_v1 = vpop.f32.mrb[25].mxu0 }
 0x6d3   : > { %v22258_v26 = vpop.f32.mrb[25].mxu1  ;;  %v10658_v9 = vadd.f32 %v10657_v62, %v10218_v45  ;;  %v22147_v61 = vadd.f32 %v22146_v1, %v22145_v31  ;;  %v22148_v11 = vpop.f32.mrb[26].mxu0 }
 0x6d4   : > { %v22259_v50 = vadd.f32 %v22258_v26, %v22257_v6  ;;  %v22260_v53 = vpop.f32.mrb[26].mxu1  ;;  %v22149_v2 = vpop.f32.mrb[27].mxu0 }
 0x6d5   : > { %v22261_v29 = vpop.f32.mrb[27].mxu1  ;;  %v10062_v5 = vadd.f32 %v22147_v61, %v29800_v57  ;;  %v22150_v24 = vadd.f32 %v22149_v2, %v22148_v11 }
 0x6d6   : > { %v22262_v33 = vadd.f32 %v22261_v29, %v22260_v53 }
 0x6d7   : > { %v10223_v52 = vadd.f32 %v22259_v50, %v10062_v5  ;;  %v10065_v55 = vadd.f32 %v22150_v24, %v29803_v39 }
 0x6d9   : > { %v10659_v47 = vadd.f32 %v10658_v9, %v10223_v52  ;;  %v10226_v32 = vadd.f32 %v22262_v33, %v10065_v55  ;;  %v22151_v4 = vpop.f32.mrb[28].mxu0 }
 0x6da   : > { %v22263_v56 = vpop.f32.mrb[28].mxu1  ;;  %v22152_v7 = vpop.f32.mrb[29].mxu0 }
 0x6db   : > { %v22264_v3 = vpop.f32.mrb[29].mxu1  ;;  %v10660_v8 = vadd.f32 %v10659_v47, %v10226_v32  ;;  %v22153_v44 = vadd.f32 %v22152_v7, %v22151_v4  ;;  %v22154_v15 = vpop.f32.mrb[30].mxu0 }
 0x6dc   : > { %v22265_v63 = vadd.f32 %v22264_v3, %v22263_v56  ;;  %v22266_v20 = vpop.f32.mrb[30].mxu1  ;;  %v22155_v38 = vpop.f32.mrb[31].mxu0 }
 0x6dd   : > { %v22267_v34 = vpop.f32.mrb[31].mxu1  ;;  %v10070_v57 = vadd.f32 %v22153_v44, %v29806_v21  ;;  %v22156_v16 = vadd.f32 %v22155_v38, %v22154_v15 }
 0x6de   : > { %v22268_v54 = vadd.f32 %v22267_v34, %v22266_v20 }
 0x6df   : > { %v10231_v10 = vadd.f32 %v22265_v63, %v10070_v57  ;;  %v10073_v39 = vadd.f32 %v22156_v16, %v29809_v43 }
 0x6e1   : > { %v10661_v23 = vadd.f32 %v10660_v8, %v10231_v10  ;;  %v10234_v19 = vadd.f32 %v22268_v54, %v10073_v39  ;;  %v22157_v30 = vpop.f32.mrb[32].mxu0 }
 0x6e2   : > { %v22269_v37 = vpop.f32.mrb[32].mxu1  ;;  %v22158_v48 = vpop.f32.mrb[33].mxu0 }
 0x6e3   : > { %v22270_v17 = vpop.f32.mrb[33].mxu1  ;;  %v29986_v18 = vadd.f32 %v10661_v23, %v10234_v19  ;;  %v22159_v46 = vadd.f32 %v22158_v48, %v22157_v30  ;;  %v22160_v62 = vpop.f32.mrb[34].mxu0 }
 0x6e4   : > { %v22271_v14 = vadd.f32 %v22270_v17, %v22269_v37  ;;  %v22272_v45 = vpop.f32.mrb[34].mxu1  ;;  %v22161_v31 = vpop.f32.mrb[35].mxu0 }
 0x6e5   : > { %v22273_v6 = vpop.f32.mrb[35].mxu1  ;;  %v10078_v21 = vadd.f32 %v22159_v46, %v29812_v28  ;;  %v22162_v1 = vadd.f32 %v22161_v31, %v22160_v62 }
 0x6e6   : > { %v22274_v26 = vadd.f32 %v22273_v6, %v22272_v45 }
 0x6e7   : > { %v10239_v9 = vadd.f32 %v22271_v14, %v10078_v21  ;;  %v10081_v43 = vadd.f32 %v22162_v1, %v29815_v0 }
 0x6e9   : > { %v10242_v61 = vadd.f32 %v22274_v26, %v10081_v43  ;;  %v22163_v50 = vpop.f32.mrb[36].mxu0 }
 0x6ea   : > { %v22275_v11 = vpop.f32.mrb[36].mxu1  ;;  %v22164_v53 = vpop.f32.mrb[37].mxu0 }
 0x6eb   : > { %v22276_v2 = vpop.f32.mrb[37].mxu1  ;;  %v10669_v29 = vadd.f32 %v10242_v61, %v10239_v9  ;;  %v22165_v5 = vadd.f32 %v22164_v53, %v22163_v50  ;;  %v22166_v33 = vpop.f32.mrb[38].mxu0 }
 0x6ec   : > { %v22277_v24 = vadd.f32 %v22276_v2, %v22275_v11  ;;  %v22278_v52 = vpop.f32.mrb[38].mxu1  ;;  %v22167_v55 = vpop.f32.mrb[39].mxu0 }
 0x6ed   : > { %v22279_v47 = vpop.f32.mrb[39].mxu1  ;;  %v10086_v32 = vadd.f32 %v22165_v5, %v29818_v41  ;;  %v22168_v28 = vadd.f32 %v22167_v55, %v22166_v33 }
 0x6ee   : > { %v22280_v4 = vadd.f32 %v22279_v47, %v22278_v52 }
 0x6ef   : > { %v10247_v56 = vadd.f32 %v22277_v24, %v10086_v32  ;;  %v10089_v7 = vadd.f32 %v22168_v28, %v29821_v36 }
 0x6f1   : > { %v10670_v0 = vadd.f32 %v10669_v29, %v10247_v56  ;;  %v10250_v3 = vadd.f32 %v22280_v4, %v10089_v7  ;;  %v22169_v8 = vpop.f32.mrb[40].mxu0 }
 0x6f2   : > { %v22281_v44 = vpop.f32.mrb[40].mxu1  ;;  %v22170_v63 = vpop.f32.mrb[41].mxu0 }
 0x6f3   : > { %v22282_v15 = vpop.f32.mrb[41].mxu1  ;;  %v10671_v20 = vadd.f32 %v10670_v0, %v10250_v3  ;;  %v22171_v38 = vadd.f32 %v22170_v63, %v22169_v8  ;;  %v22172_v57 = vpop.f32.mrb[42].mxu0 }
 0x6f4   : > { %v22283_v34 = vadd.f32 %v22282_v15, %v22281_v44  ;;  %v22284_v16 = vpop.f32.mrb[42].mxu1  ;;  %v22173_v54 = vpop.f32.mrb[43].mxu0 }
 0x6f5   : > { %v22285_v10 = vpop.f32.mrb[43].mxu1  ;;  %v10094_v41 = vadd.f32 %v22171_v38, %v29824_v22  ;;  %v22174_v39 = vadd.f32 %v22173_v54, %v22172_v57 }
 0x6f6   : > { %v22286_v23 = vadd.f32 %v22285_v10, %v22284_v16 }
 0x6f7   : > { %v10255_v19 = vadd.f32 %v22283_v34, %v10094_v41  ;;  %v10097_v36 = vadd.f32 %v22174_v39, %v29827_v60 }
 0x6f9   : > { %v10672_v30 = vadd.f32 %v10671_v20, %v10255_v19  ;;  %v10258_v37 = vadd.f32 %v22286_v23, %v10097_v36  ;;  %v22175_v48 = vpop.f32.mrb[44].mxu0 }
 0x6fa   : > { %v22287_v17 = vpop.f32.mrb[44].mxu1  ;;  %v22176_v46 = vpop.f32.mrb[45].mxu0 }
 0x6fb   : > { %v22288_v14 = vpop.f32.mrb[45].mxu1  ;;  %v10673_v62 = vadd.f32 %v10672_v30, %v10258_v37  ;;  %v22177_v45 = vadd.f32 %v22176_v46, %v22175_v48  ;;  %v22178_v6 = vpop.f32.mrb[46].mxu0 }
 0x6fc   : > { %v22289_v31 = vadd.f32 %v22288_v14, %v22287_v17  ;;  %v22290_v21 = vpop.f32.mrb[46].mxu1  ;;  %v22179_v1 = vpop.f32.mrb[47].mxu0 }
 0x6fd   : > { %v22291_v26 = vpop.f32.mrb[47].mxu1  ;;  %v10102_v22 = vadd.f32 %v22177_v45, %v29842_v49  ;;  %v22180_v9 = vadd.f32 %v22179_v1, %v22178_v6 }
 0x6fe   : > { %v22292_v43 = vadd.f32 %v22291_v26, %v22290_v21 }
 0x6ff   : > { %v10263_v61 = vadd.f32 %v22289_v31, %v10102_v22  ;;  %v10105_v60 = vadd.f32 %v22180_v9, %v29845_v51 }
 0x701   : > { %v10674_v50 = vadd.f32 %v10673_v62, %v10263_v61  ;;  %v10266_v11 = vadd.f32 %v22292_v43, %v10105_v60  ;;  %v22181_v53 = vpop.f32.mrb[48].mxu0 }
 0x702   : > { %v22293_v2 = vpop.f32.mrb[48].mxu1  ;;  %v22182_v29 = vpop.f32.mrb[49].mxu0 }
 0x703   : > { %v22294_v5 = vpop.f32.mrb[49].mxu1  ;;  %v29996_v24 = vadd.f32 %v10674_v50, %v10266_v11  ;;  %v22183_v33 = vadd.f32 %v22182_v29, %v22181_v53  ;;  %v22184_v55 = vpop.f32.mrb[50].mxu0 }
 0x704   : > { %v22295_v52 = vadd.f32 %v22294_v5, %v22293_v2  ;;  %v22296_v47 = vpop.f32.mrb[50].mxu1  ;;  %v22185_v32 = vpop.f32.mrb[51].mxu0 }
 0x705   : > { %v22297_v28 = vpop.f32.mrb[51].mxu1  ;;  %v10110_v49 = vadd.f32 %v22183_v33, %v29850_v35  ;;  %v22186_v4 = vadd.f32 %v22185_v32, %v22184_v55 }
 0x706   : > { %v22298_v56 = vadd.f32 %v22297_v28, %v22296_v47 }
 0x707   : > { %v10271_v7 = vadd.f32 %v22295_v52, %v10110_v49  ;;  %v10113_v51 = vadd.f32 %v22186_v4, %v29853_v25 }
 0x709   : > { %v10274_v0 = vadd.f32 %v22298_v56, %v10113_v51  ;;  %v22187_v3 = vpop.f32.mrb[52].mxu0 }
 0x70a   : > { %v22299_v8 = vpop.f32.mrb[52].mxu1  ;;  %v22188_v44 = vpop.f32.mrb[53].mxu0 }
 0x70b   : > { %v22300_v63 = vpop.f32.mrb[53].mxu1  ;;  %v10682_v15 = vadd.f32 %v10274_v0, %v10271_v7  ;;  %v22189_v20 = vadd.f32 %v22188_v44, %v22187_v3  ;;  %v22190_v34 = vpop.f32.mrb[54].mxu0 }
 0x70c   : > { %v22301_v38 = vadd.f32 %v22300_v63, %v22299_v8  ;;  %v22302_v57 = vpop.f32.mrb[54].mxu1  ;;  %v22191_v16 = vpop.f32.mrb[55].mxu0 }
 0x70d   : > { %v22303_v54 = vpop.f32.mrb[55].mxu1  ;;  %v10118_v10 = vadd.f32 %v22189_v20, %v29876_v59  ;;  %v22192_v35 = vadd.f32 %v22191_v16, %v22190_v34  ;;  %v25094_v34 = vld [vmem:[%s32241_s5 + $0x180] sm:$0xff]   ;;  %v25095_v16 = vld [vmem:[%s32241_s5 + $0x148] sm:$0xff]  }
 0x70e   : > { %v22304_v41 = vadd.f32 %v22303_v54, %v22302_v57  ;;  %v25096_v54 = vld [vmem:[%s32241_s5 + $0x1c8] sm:$0xff]  }
 0x70f   : > { %v10279_v39 = vadd.f32 %v22301_v38, %v10118_v10  ;;  %v10121_v23 = vadd.f32 %v22192_v35, %v29885_v58  ;;  %v25097_v35 = vld [vmem:[%s32241_s5 + $0x108] sm:$0xff]  }
 0x711   : > { %v10683_v25 = vadd.f32 %v10682_v15, %v10279_v39  ;;  %v10282_v19 = vadd.f32 %v22304_v41, %v10121_v23  ;;  %v22193_v36 = vpop.f32.mrb[56].mxu0  ;;  %v25098_v41 = vld [vmem:[%s32241_s5 + $0x188] sm:$0xff]  }
 0x712   : > { %v22305_v30 = vpop.f32.mrb[56].mxu1  ;;  %v22194_v37 = vpop.f32.mrb[57].mxu0 }
 0x713   : > { %v22306_v48 = vpop.f32.mrb[57].mxu1  ;;  %v10684_v17 = vadd.f32 %v10683_v25, %v10282_v19  ;;  %v22195_v46 = vadd.f32 %v22194_v37, %v22193_v36  ;;  %v22196_v62 = vpop.f32.mrb[58].mxu0  ;;  %v25099_v25 = vld [vmem:[%s32241_s5 + $0x150] sm:$0xff]  }
 0x714   : > { %v22307_v14 = vadd.f32 %v22306_v48, %v22305_v30  ;;  %v22308_v45 = vpop.f32.mrb[58].mxu1  ;;  %v22197_v31 = vpop.f32.mrb[59].mxu0  ;;  %v25100_v19 = vld [vmem:[%s32241_s5 + $0x1d0] sm:$0xff]  }
 0x715   : > { %v22309_v6 = vpop.f32.mrb[59].mxu1  ;;  %v10126_v59 = vadd.f32 %v22195_v46, %v29914_v13  ;;  %v22198_v21 = vadd.f32 %v22197_v31, %v22196_v62  ;;  %v25102_v31 = vld [vmem:[%s32241_s5 + $0x190] sm:$0xff]  }
 0x716   : > { %v22310_v1 = vadd.f32 %v22309_v6, %v22308_v45  ;;  %v25101_v45 = vld [vmem:[%s32241_s5 + $0x110] sm:$0xff]  }
 0x717   : > { %v10287_v26 = vadd.f32 %v22307_v14, %v10126_v59  ;;  %v10129_v58 = vadd.f32 %v22198_v21, %v29917_v27  ;;  %v25103_v21 = vld [vmem:[%s32241_s5 + $0x158] sm:$0xff]  }
 0x719   : > { %v10685_v22 = vadd.f32 %v10684_v17, %v10287_v26  ;;  %v10290_v9 = vadd.f32 %v22310_v1, %v10129_v58  ;;  %v22199_v43 = vpop.f32.mrb[60].mxu0  ;;  %v25104_v1 = vld [vmem:[%s32241_s5 + $0x1d8] sm:$0xff]  }
 0x71a   : > { %v22311_v61 = vpop.f32.mrb[60].mxu1  ;;  %v22200_v60 = vpop.f32.mrb[61].mxu0  ;;  %v25105_v26 = vld [vmem:[%s32241_s5 + $0x118] sm:$0xff]  }
 0x71b   : > { %v22312_v50 = vpop.f32.mrb[61].mxu1  ;;  %v10686_v11 = vadd.f32 %v10685_v22, %v10290_v9  ;;  %v22201_v53 = vadd.f32 %v22200_v60, %v22199_v43  ;;  %v22202_v29 = vpop.f32.mrb[62].mxu0  ;;  %v25106_v58 = vld [vmem:[%s32241_s5 + $0x198] sm:$0xff]   ;;  %v25107_v22 = vld [vmem:[%s32241_s5 + $0x160] sm:$0xff]   ;;  %v25111_v60 = vld [vmem:[%s32241_s5 + $0x168] sm:$0xff]  }
 0x71c   : > { %v22313_v2 = vadd.f32 %v22312_v50, %v22311_v61  ;;  %v22314_v5 = vpop.f32.mrb[62].mxu1  ;;  %v22203_v33 = vpop.f32.mrb[63].mxu0  ;;  %v25108_v9 = vld [vmem:[%s32241_s5 + $0x1e0] sm:$0xff]   ;;  %v25112_v50 = vld [vmem:[%s32241_s5 + $0x1e8] sm:$0xff]  }
 0x71d   : > { %v22315_v52 = vpop.f32.mrb[63].mxu1  ;;  %v10134_v13 = vadd.f32 %v22201_v53, %v29939_v42  ;;  %v22204_v55 = vadd.f32 %v22203_v33, %v22202_v29  ;;  %v25109_v43 = vld [vmem:[%s32241_s5 + $0x120] sm:$0xff]   ;;  %v25114_v53 = vld [vmem:[%s32241_s5 + $0x1a8] sm:$0xff]   ;;  %v25116_v29 = vld [vmem:[%s32241_s5 + $0x1f0] sm:$0xff]  }
 0x71e   : > { %v22316_v47 = vadd.f32 %v22315_v52, %v22314_v5  ;;  %v25110_v61 = vld [vmem:[%s32241_s5 + $0x1a0] sm:$0xff]   ;;  %v25117_v5 = vld [vmem:[%s32241_s5 + $0x130] sm:$0xff]   ;;  %v25119_v52 = vld [vmem:[%s32241_s5 + $0x178] sm:$0xff]  }
 0x71f   : > { %v10295_v32 = vadd.f32 %v22313_v2, %v10134_v13  ;;  %v10137_v27 = vadd.f32 %v22204_v55, %v29948_v12  ;;  %v25093_v12 = vld [vmem:[%s32241_s5 + $0x100] sm:$0xff]   ;;  %v25115_v2 = vld [vmem:[%s32241_s5 + $0x170] sm:$0xff]   ;;  %v25120_v13 = vld [vmem:[%s32241_s5 + $0x1f8] sm:$0xff]  }
 0x720   : > { %v25118_v33 = vld [vmem:[%s32241_s5 + $0x1b0] sm:$0xff]   ;;  %v25121_v55 = vld [vmem:[%s32241_s5 + $0x138] sm:$0xff]  }
 0x721   : > { %v10687_v28 = vadd.f32 %v10686_v11, %v10295_v32  ;;  %v10298_v49 = vadd.f32 %v22316_v47, %v10137_v27  ;;  %v10802_v4 = vpop.f32.mrb[64].mxu0  ;;  %v25113_v11 = vld [vmem:[%s32241_s5 + $0x128] sm:$0xff]   ;;  %v25122_v47 = vld [vmem:[%s32241_s5 + $0x1b8] sm:$0xff]   ;;  %v25123_v32 = vld [vmem:[%s32241_s5 + $0x240] sm:$0xff]  }
 0x722   : > { %v10893_v56 = vpop.f32.mrb[64].mxu1  ;;  %v10804_v7 = vpop.f32.mrb[65].mxu0  ;;  %v25124_v27 = vld [vmem:[%s32241_s5 + $0x2c0] sm:$0xff]  }
 0x723   : > { %v10895_v51 = vpop.f32.mrb[65].mxu1  ;;  %v30006_v0 = vadd.f32 %v10687_v28, %v10298_v49  ;;  %v10806_v3 = vpop.f32.mrb[66].mxu0  ;;  %v25125_v28 = vld [vmem:[%s32241_s5 + $0x200] sm:$0xff]  }
 0x724   : > { %v10897_v8 = vpop.f32.mrb[66].mxu1  ;;  %v30008_v44 = vpack.c.bf16 %v10806_v3, %v10802_v4  ;;  %v10808_v42 = vpop.f32.mrb[67].mxu0  ;;  %v25128_v3 = vld [vmem:[%s32241_s5 + $0x2c8] sm:$0xff]  }
 0x725   : > { %v30010_v63 = vpack.c.bf16 %v10897_v8, %v10893_v56  ;;  %v10899_v15 = vpop.f32.mrb[67].mxu1  ;;  %v30012_v20 = vpack.c.bf16 %v10808_v42, %v10804_v7  ;;  %v25126_v56 = vld [vmem:[%s32241_s5 + $0x280] sm:$0xff]   ;;  %v25129_v42 = vld [vmem:[%s32241_s5 + $0x208] sm:$0xff]  }
 0x726   : > { %v30014_v38 = vpack.c.bf16 %v10899_v15, %v10895_v51  ;;  %v11404_v49 = vrot.slane %v30008_v44, 2  ;;  %v25127_v51 = vld [vmem:[%s32241_s5 + $0x248] sm:$0xff]  }
 0x727   : > { %11275 = vmatprep.mubr.bf16.mxu0 %v30012_v20  ;;  %v11405_v57 = vrot.slane %v30012_v20, 2  ;;  %v11406_v4 = vrot.slane %v30010_v63, 2  ;;  %v11762_v7 = vrot.slane %v30012_v20, 4  ;;  %v25130_v15 = vld [vmem:[%s32241_s5 + $0x288] sm:$0xff]  }
 0x728   : > { %11315 = vmatprep.mubr.bf16.mxu1 %v30014_v38  ;;  %11276 = vmatmul.mubr.bf16.vlgmr.msra.gmra.mrb[88].mxu0 %v30008_v44  ;;  %v11407_v10 = vrot.slane %v30014_v38, 2  ;;  %v11764_v8 = vrot.slane %v30014_v38, 4 }
 0x729   : > { %11316 = vmatmul.mubr.bf16.vlgmr.msra.gmra.mrb[88].mxu1 %v30010_v63  ;;  %22362 = vmatpush3.bf16.msra.mxu0 %v25093_v12  ;;  %v10812_v39 = vpop.f32.mrb[68].mxu0  ;;  %v25131_v12 = vld [vmem:[%s32241_s5 + $0x250] sm:$0xff]  }
 0x72a   : > { %22384 = vmatpush3.bf16.msra.mxu1 %v25094_v34  ;;  %v10903_v23 = vpop.f32.mrb[68].mxu1  ;;  %11636 = vmatprep.mubr.bf16.mxu0 %v11405_v57  ;;  %v10814_v36 = vpop.f32.mrb[69].mxu0  ;;  %v25132_v34 = vld [vmem:[%s32241_s5 + $0x2d0] sm:$0xff]  }
 0x72b   : > { %11676 = vmatprep.mubr.bf16.mxu1 %v11407_v10  ;;  %v10905_v30 = vpop.f32.mrb[69].mxu1  ;;  %22363 = vmatprep.subr.bf16.mxu0 %v25095_v16  ;;  %v10816_v37 = vpop.f32.mrb[70].mxu0  ;;  %v25133_v57 = vld [vmem:[%s32241_s5 + $0x210] sm:$0xff]   ;;  %v25136_v10 = vld [vmem:[%s32241_s5 + $0x2d8] sm:$0xff]  }
 0x72c   : > { %22385 = vmatprep.subr.bf16.mxu1 %v25096_v54  ;;  %v10907_v48 = vpop.f32.mrb[70].mxu1  ;;  %v30046_v17 = vpack.c.bf16 %v10816_v37, %v10812_v39  ;;  %v10818_v14 = vpop.f32.mrb[71].mxu0  ;;  %v25134_v16 = vld [vmem:[%s32241_s5 + $0x290] sm:$0xff]   ;;  %v25135_v54 = vld [vmem:[%s32241_s5 + $0x258] sm:$0xff]   ;;  %v25139_v39 = vld [vmem:[%s32241_s5 + $0x260] sm:$0xff]  }
 0x72d   : > { %v30048_v46 = vpack.c.bf16 %v10907_v48, %v10903_v23  ;;  %v10909_v62 = vpop.f32.mrb[71].mxu1  ;;  %22364 = vmatpush3.bf16.msra.mxu0 %v25097_v35  ;;  %v30056_v6 = vpack.c.bf16 %v10818_v14, %v10814_v36  ;;  %v25137_v35 = vld [vmem:[%s32241_s5 + $0x218] sm:$0xff]   ;;  %v25140_v23 = vld [vmem:[%s32241_s5 + $0x2e0] sm:$0xff]   ;;  %v25143_v36 = vld [vmem:[%s32241_s5 + $0x268] sm:$0xff]  }
 0x72e   : > { %22386 = vmatpush3.bf16.msra.mxu1 %v25098_v41  ;;  %v30058_v59 = vpack.c.bf16 %v10909_v62, %v10905_v30  ;;  %22365 = vmatprep.subr.bf16.mxu0 %v25099_v25  ;;  %v25138_v41 = vld [vmem:[%s32241_s5 + $0x298] sm:$0xff]   ;;  %v25141_v25 = vld [vmem:[%s32241_s5 + $0x220] sm:$0xff]   ;;  %v25144_v30 = vld [vmem:[%s32241_s5 + $0x2e8] sm:$0xff]  }
 0x72f   : > { %22387 = vmatprep.subr.bf16.mxu1 %v25100_v19  ;;  %v25142_v19 = vld [vmem:[%s32241_s5 + $0x2a0] sm:$0xff]   ;;  %v25145_v37 = vld [vmem:[%s32241_s5 + $0x228] sm:$0xff]   ;;  %v25147_v14 = vld [vmem:[%s32241_s5 + $0x270] sm:$0xff]  }
 0x730   : > { %v25146_v48 = vld [vmem:[%s32241_s5 + $0x2a8] sm:$0xff]  }
 0x731   : > { %22366 = vmatpush3.bf16.msra.mxu0 %v25101_v45 }
 0x732   : > { %22388 = vmatpush3.bf16.msra.mxu1 %v25102_v31  ;;  %22367 = vmatprep.subr.bf16.mxu0 %v25103_v21  ;;  %v25148_v31 = vld [vmem:[%s32241_s5 + $0x2f0] sm:$0xff]  }
 0x733   : > { %22389 = vmatprep.subr.bf16.mxu1 %v25104_v1 }
 0x735   : > { %22368 = vmatpush3.bf16.msra.mxu0 %v25105_v26 }
 0x736   : > { %22390 = vmatpush3.bf16.msra.mxu1 %v25106_v58  ;;  %22369 = vmatprep.subr.bf16.mxu0 %v25107_v22  ;;  %v25149_v22 = vld [vmem:[%s32241_s5 + $0x230] sm:$0xff]  }
 0x737   : > { %22391 = vmatprep.subr.bf16.mxu1 %v25108_v9 }
 0x739   : > { %22370 = vmatpush3.bf16.msra.mxu0 %v25109_v43 }
 0x73a   : > { %22392 = vmatpush3.bf16.msra.mxu1 %v25110_v61  ;;  %22371 = vmatprep.subr.bf16.mxu0 %v25111_v60 }
 0x73b   : > { %22393 = vmatprep.subr.bf16.mxu1 %v25112_v50  ;;  %v25150_v50 = vld [vmem:[%s32241_s5 + $0x2b0] sm:$0xff]  }
 0x73d   : > { %22372 = vmatpush3.bf16.msra.mxu0 %v25113_v11  ;;  %v25151_v11 = vld [vmem:[%s32241_s5 + $0x278] sm:$0xff]  }
 0x73e   : > { %22394 = vmatpush3.bf16.msra.mxu1 %v25114_v53  ;;  %22373 = vmatprep.subr.bf16.mxu0 %v25115_v2 }
 0x73f   : > { %22395 = vmatprep.subr.bf16.mxu1 %v25116_v29  ;;  %v25152_v29 = vld [vmem:[%s32241_s5 + $0x2f8] sm:$0xff]  }
 0x741   : > { %22374 = vmatpush3.bf16.msra.mxu0 %v25117_v5  ;;  %v25153_v5 = vld [vmem:[%s32241_s5 + $0x238] sm:$0xff]  }
 0x742   : > { %22396 = vmatpush3.bf16.msra.mxu1 %v25118_v33  ;;  %22375 = vmatprep.subr.bf16.mxu0 %v25119_v52  ;;  %v25154_v33 = vld [vmem:[%s32241_s5 + $0x2b8] sm:$0xff]   ;;  %v25155_v52 = vld [vmem:[%s32241_s5 + $0x340] sm:$0xff]  }
 0x743   : > { %22397 = vmatprep.subr.bf16.mxu1 %v25120_v13 }
 0x745   : > { %22376 = vmatpush3.bf16.msra.mxu0 %v25121_v55 }
 0x746   : > { %22398 = vmatpush3.bf16.msra.mxu1 %v25122_v47  ;;  %22405 = vmatprep.subr.bf16.mxu0 %v25123_v32  ;;  %v25156_v47 = vld [vmem:[%s32241_s5 + $0x3c0] sm:$0xff]  }
 0x747   : > { %22427 = vmatprep.subr.bf16.mxu1 %v25124_v27 }
 0x748   : > { %11637 = vmatmul.mubr.bf16.vlgmr.msra.gmra.mrb[92].mxu0 %v11404_v49 }
 0x749   : > { %11677 = vmatmul.mubr.bf16.vlgmr.msra.gmra.mrb[92].mxu1 %v11406_v4  ;;  %22406 = vmatpush3.bf16.msra.mxu0 %v25125_v28  ;;  %v25157_v4 = vld [vmem:[%s32241_s5 + $0x300] sm:$0xff]  }
 0x74a   : > { %11993 = vmatprep.mubr.bf16.mxu0 %v11762_v7  ;;  %22428 = vmatpush3.bf16.msra.mxu1 %v25126_v56 }
 0x74b   : > { %12033 = vmatprep.mubr.bf16.mxu1 %v11764_v8  ;;  %22407 = vmatprep.subr.bf16.mxu0 %v25127_v51  ;;  %v11761_v8 = vrot.slane %v30008_v44, 4 }
 0x74c   : > { %22429 = vmatprep.subr.bf16.mxu1 %v25128_v3 }
 0x74d   : > { %22408 = vmatpush3.bf16.msra.mxu0 %v25129_v42  ;;  %v10822_v62 = vpop.f32.mrb[72].mxu0  ;;  %v10913_v45 = vpop.f32.mrb[72].mxu1  ;;  %v25158_v42 = vld [vmem:[%s32241_s5 + $0x380] sm:$0xff]  }
 0x74e   : > { %22430 = vmatpush3.bf16.msra.mxu1 %v25130_v15  ;;  %22409 = vmatprep.subr.bf16.mxu0 %v25131_v12  ;;  %v10824_v21 = vpop.f32.mrb[73].mxu0  ;;  %v10915_v1 = vpop.f32.mrb[73].mxu1 }
 0x74f   : > { %22431 = vmatprep.subr.bf16.mxu1 %v25132_v34  ;;  %v10826_v26 = vpop.f32.mrb[74].mxu0  ;;  %v10917_v58 = vpop.f32.mrb[74].mxu1  ;;  %v11763_v34 = vrot.slane %v30010_v63, 4 }
 0x750   : > { %v30205_v9 = vpack.c.bf16 %v10826_v26, %v10822_v62  ;;  %v30207_v43 = vpack.c.bf16 %v10917_v58, %v10913_v45  ;;  %v10828_v61 = vpop.f32.mrb[75].mxu0  ;;  %v10919_v60 = vpop.f32.mrb[75].mxu1 }
 0x751   : > { %22410 = vmatpush3.bf16.msra.mxu0 %v25133_v57  ;;  %v30215_v53 = vpack.c.bf16 %v10828_v61, %v10824_v21  ;;  %v30217_v2 = vpack.c.bf16 %v10919_v60, %v10915_v1  ;;  %v25159_v57 = vld [vmem:[%s32241_s5 + $0x348] sm:$0xff]   ;;  %v25168_v1 = vld [vmem:[%s32241_s5 + $0x3d8] sm:$0xff]   ;;  %v25171_v60 = vld [vmem:[%s32241_s5 + $0x360] sm:$0xff]  }
 0x752   : > { %22432 = vmatpush3.bf16.msra.mxu1 %v25134_v16  ;;  %22411 = vmatprep.subr.bf16.mxu0 %v25135_v54  ;;  %v12119_v16 = vrot.slane %v30012_v20, 6  ;;  %v25160_v54 = vld [vmem:[%s32241_s5 + $0x3c8] sm:$0xff]   ;;  %v25163_v20 = vld [vmem:[%s32241_s5 + $0x350] sm:$0xff]   ;;  %v25170_v61 = vld [vmem:[%s32241_s5 + $0x398] sm:$0xff]  }
 0x753   : > { %22433 = vmatprep.subr.bf16.mxu1 %v25136_v10  ;;  %v12121_v10 = vrot.slane %v30014_v38, 6  ;;  %v25164_v38 = vld [vmem:[%s32241_s5 + $0x3d0] sm:$0xff]  }
 0x755   : > { %22412 = vmatpush3.bf16.msra.mxu0 %v25137_v35  ;;  %v10832_v13 = vpop.f32.mrb[76].mxu0  ;;  %v10923_v55 = vpop.f32.mrb[76].mxu1  ;;  %v25161_v35 = vld [vmem:[%s32241_s5 + $0x308] sm:$0xff]  }
 0x756   : > { %22434 = vmatpush3.bf16.msra.mxu1 %v25138_v41  ;;  %22413 = vmatprep.subr.bf16.mxu0 %v25139_v39  ;;  %v10834_v32 = vpop.f32.mrb[77].mxu0  ;;  %v10925_v27 = vpop.f32.mrb[77].mxu1  ;;  %v25162_v41 = vld [vmem:[%s32241_s5 + $0x388] sm:$0xff]  }
 0x757   : > { %22435 = vmatprep.subr.bf16.mxu1 %v25140_v23  ;;  %v10836_v28 = vpop.f32.mrb[78].mxu0  ;;  %v10927_v49 = vpop.f32.mrb[78].mxu1 }
 0x758   : > { %v30237_v56 = vpack.c.bf16 %v10836_v28, %v10832_v13  ;;  %v30239_v7 = vpack.c.bf16 %v10927_v49, %v10923_v55  ;;  %v10838_v51 = vpop.f32.mrb[79].mxu0  ;;  %v10929_v3 = vpop.f32.mrb[79].mxu1 }
 0x759   : > { %22414 = vmatpush3.bf16.msra.mxu0 %v25141_v25  ;;  %v30245_v15 = vpack.c.bf16 %v10838_v51, %v10834_v32  ;;  %v30247_v12 = vpack.c.bf16 %v10929_v3, %v10925_v27  ;;  %v25178_v51 = vld [vmem:[%s32241_s5 + $0x3a8] sm:$0xff]   ;;  %v25179_v3 = vld [vmem:[%s32241_s5 + $0x370] sm:$0xff]  }
 0x75a   : > { %22436 = vmatpush3.bf16.msra.mxu1 %v25142_v19  ;;  %22415 = vmatprep.subr.bf16.mxu0 %v25143_v36  ;;  %v25165_v36 = vld [vmem:[%s32241_s5 + $0x310] sm:$0xff]  }
 0x75b   : > { %22437 = vmatprep.subr.bf16.mxu1 %v25144_v30 }
 0x75d   : > { %22416 = vmatpush3.bf16.msra.mxu0 %v25145_v37 }
 0x75e   : > { %22438 = vmatpush3.bf16.msra.mxu1 %v25146_v48  ;;  %22417 = vmatprep.subr.bf16.mxu0 %v25147_v14  ;;  %v25166_v48 = vld [vmem:[%s32241_s5 + $0x390] sm:$0xff]   ;;  %v25167_v14 = vld [vmem:[%s32241_s5 + $0x358] sm:$0xff]  }
 0x75f   : > { %22439 = vmatprep.subr.bf16.mxu1 %v25148_v31 }
 0x761   : > { %22418 = vmatpush3.bf16.msra.mxu0 %v25149_v22  ;;  %v25169_v22 = vld [vmem:[%s32241_s5 + $0x318] sm:$0xff]  }
 0x762   : > { %22440 = vmatpush3.bf16.msra.mxu1 %v25150_v50  ;;  %22419 = vmatprep.subr.bf16.mxu0 %v25151_v11  ;;  %v25172_v50 = vld [vmem:[%s32241_s5 + $0x3e0] sm:$0xff]  }
 0x763   : > { %22441 = vmatprep.subr.bf16.mxu1 %v25152_v29  ;;  %v25173_v11 = vld [vmem:[%s32241_s5 + $0x320] sm:$0xff]  }
 0x764   : > { %v10842_v39 = vpop.f32.mrb[80].mxu0  ;;  %v10933_v23 = vpop.f32.mrb[80].mxu1 }
 0x765   : > { %22420 = vmatpush3.bf16.msra.mxu0 %v25153_v5  ;;  %v10844_v25 = vpop.f32.mrb[81].mxu0  ;;  %v10935_v19 = vpop.f32.mrb[81].mxu1 }
 0x766   : > { %22442 = vmatpush3.bf16.msra.mxu1 %v25154_v33  ;;  %22449 = vmatprep.subr.bf16.mxu0 %v25155_v52  ;;  %v10846_v30 = vpop.f32.mrb[82].mxu0  ;;  %v10937_v37 = vpop.f32.mrb[82].mxu1  ;;  %v25174_v33 = vld [vmem:[%s32241_s5 + $0x3a0] sm:$0xff]   ;;  %v25175_v52 = vld [vmem:[%s32241_s5 + $0x368] sm:$0xff]  }
 0x767   : > { %22471 = vmatprep.subr.bf16.mxu1 %v25156_v47  ;;  %v30279_v62 = vpack.c.bf16 %v10846_v30, %v10842_v39  ;;  %v30281_v45 = vpack.c.bf16 %v10937_v37, %v10933_v23  ;;  %v10848_v31 = vpop.f32.mrb[83].mxu0  ;;  %v10939_v21 = vpop.f32.mrb[83].mxu1  ;;  %v25176_v47 = vld [vmem:[%s32241_s5 + $0x3e8] sm:$0xff]   ;;  %v25190_v39 = vld [vmem:[%s32241_s5 + $0x480] sm:$0xff]   ;;  %v25196_v30 = vld [vmem:[%s32241_s5 + $0x4d0] sm:$0xff]  }
 0x768   : > { %11994 = vmatmul.mubr.bf16.vlgmr.msra.gmra.mrb[96].mxu0 %v11761_v8  ;;  %v30286_v26 = vpack.c.bf16 %v10848_v31, %v10844_v25  ;;  %v30288_v58 = vpack.c.bf16 %v10939_v21, %v10935_v19  ;;  %v25180_v8 = vld [vmem:[%s32241_s5 + $0x3f0] sm:$0xff]   ;;  %v25191_v23 = vld [vmem:[%s32241_s5 + $0x448] sm:$0xff]   ;;  %v12120_v25 = vrot.slane %v30010_v63, 6  ;;  %v25200_v31 = vld [vmem:[%s32241_s5 + $0x4d8] sm:$0xff]  }
 0x769   : > { %12034 = vmatmul.mubr.bf16.vlgmr.msra.gmra.mrb[96].mxu1 %v11763_v34  ;;  %22450 = vmatpush3.bf16.msra.mxu0 %v25157_v4  ;;  %v25177_v4 = vld [vmem:[%s32241_s5 + $0x328] sm:$0xff]   ;;  %v25182_v34 = vld [vmem:[%s32241_s5 + $0x3b0] sm:$0xff]   ;;  %v25201_v21 = vld [vmem:[%s32241_s5 + $0x418] sm:$0xff]  }
 0x76a   : > { %12350 = vmatprep.mubr.bf16.mxu0 %v12119_v16  ;;  %22472 = vmatpush3.bf16.msra.mxu1 %v25158_v42  ;;  %v25181_v42 = vld [vmem:[%s32241_s5 + $0x330] sm:$0xff]   ;;  %v25184_v16 = vld [vmem:[%s32241_s5 + $0x3f8] sm:$0xff]   ;;  %v25192_v19 = vld [vmem:[%s32241_s5 + $0x4c8] sm:$0xff]  }
 0x76b   : > { %12390 = vmatprep.mubr.bf16.mxu1 %v12121_v10  ;;  %22451 = vmatprep.subr.bf16.mxu0 %v25159_v57  ;;  %v25183_v57 = vld [vmem:[%s32241_s5 + $0x378] sm:$0xff]   ;;  %v25195_v63 = vld [vmem:[%s32241_s5 + $0x450] sm:$0xff]  }
 0x76c   : > { %22473 = vmatprep.subr.bf16.mxu1 %v25160_v54  ;;  %v30305_v29 = vpop.f32.mrb[84].mxu0  ;;  %v25185_v54 = vld [vmem:[%s32241_s5 + $0x338] sm:$0xff]   ;;  %v25197_v37 = vld [vmem:[%s32241_s5 + $0x410] sm:$0xff]  }
 0x76d   : > { %22452 = vmatpush3.bf16.msra.mxu0 %v25161_v35  ;;  %v30315_v13 = vpop.f32.mrb[85].mxu0  ;;  %v25186_v10 = vld [vmem:[%s32241_s5 + $0x3b8] sm:$0xff]   ;;  %v25187_v35 = vld [vmem:[%s32241_s5 + $0x440] sm:$0xff]  }
 0x76e   : > { %22474 = vmatpush3.bf16.msra.mxu1 %v25162_v41  ;;  %22453 = vmatprep.subr.bf16.mxu0 %v25163_v20  ;;  %v30307_v5 = vpop.f32.mrb[84].mxu1  ;;  %v10856_v32 = vpop.f32.mrb[86].mxu0  ;;  %v25188_v41 = vld [vmem:[%s32241_s5 + $0x4c0] sm:$0xff]  }
 0x76f   : > { %22475 = vmatprep.subr.bf16.mxu1 %v25164_v38  ;;  %v30317_v55 = vpop.f32.mrb[85].mxu1  ;;  %v10857_v28 = vpop.f32.mrb[87].mxu0  ;;  %v25189_v20 = vld [vmem:[%s32241_s5 + $0x400] sm:$0xff]   ;;  %v12118_v38 = vrot.slane %v30008_v44, 6  ;;  %v25193_v44 = vld [vmem:[%s32241_s5 + $0x408] sm:$0xff]   ;;  %v25211_v32 = vld [vmem:[%s32241_s5 + $0x470] sm:$0xff]  }
 0x770   : > { %v10947_v27 = vpop.f32.mrb[86].mxu1  ;;  %v25213_v28 = vld [vmem:[%s32241_s5 + $0x430] sm:$0xff]  }
 0x771   : > { %22454 = vmatpush3.bf16.msra.mxu0 %v25165_v36  ;;  %v10948_v49 = vpop.f32.mrb[87].mxu1  ;;  %v25194_v36 = vld [vmem:[%s32241_s5 + $0x488] sm:$0xff]   ;;  %v25212_v27 = vld [vmem:[%s32241_s5 + $0x4f0] sm:$0xff]  }
 0x772   : > { %22476 = vmatpush3.bf16.msra.mxu1 %v25166_v48  ;;  %22455 = vmatprep.subr.bf16.mxu0 %v25167_v14  ;;  %v25198_v48 = vld [vmem:[%s32241_s5 + $0x490] sm:$0xff]   ;;  %v25199_v14 = vld [vmem:[%s32241_s5 + $0x458] sm:$0xff]  }
 0x773   : > { %22477 = vmatprep.subr.bf16.mxu1 %v25168_v1  ;;  %v25202_v1 = vld [vmem:[%s32241_s5 + $0x498] sm:$0xff]   ;;  %v25214_v49 = vld [vmem:[%s32241_s5 + $0x4b0] sm:$0xff]  }
 0x775   : > { %22456 = vmatpush3.bf16.msra.mxu0 %v25169_v22  ;;  %v25203_v22 = vld [vmem:[%s32241_s5 + $0x460] sm:$0xff]  }
 0x776   : > { %22478 = vmatpush3.bf16.msra.mxu1 %v25170_v61  ;;  %22457 = vmatprep.subr.bf16.mxu0 %v25171_v60  ;;  %v25204_v61 = vld [vmem:[%s32241_s5 + $0x4e0] sm:$0xff]  }
 0x777   : > { %22479 = vmatprep.subr.bf16.mxu1 %v25172_v50  ;;  %v25205_v60 = vld [vmem:[%s32241_s5 + $0x420] sm:$0xff]  }
 0x778   : > { %v25206_v50 = vld [vmem:[%s32241_s5 + $0x4a0] sm:$0xff]  }
 0x779   : > { %22458 = vmatpush3.bf16.msra.mxu0 %v25173_v11  ;;  %v25207_v11 = vld [vmem:[%s32241_s5 + $0x468] sm:$0xff]  }
 0x77a   : > { %22480 = vmatpush3.bf16.msra.mxu1 %v25174_v33  ;;  %22459 = vmatprep.subr.bf16.mxu0 %v25175_v52  ;;  %v25208_v33 = vld [vmem:[%s32241_s5 + $0x4e8] sm:$0xff]  }
 0x77b   : > { %22481 = vmatprep.subr.bf16.mxu1 %v25176_v47  ;;  %v25209_v52 = vld [vmem:[%s32241_s5 + $0x428] sm:$0xff]  }
 0x77c   : > { %v25210_v47 = vld [vmem:[%s32241_s5 + $0x4a8] sm:$0xff]  }
 0x77d   : > { %22460 = vmatpush3.bf16.msra.mxu0 %v25177_v4  ;;  %v25215_v4 = vld [vmem:[%s32241_s5 + $0x478] sm:$0xff]  }
 0x77e   : > { %22482 = vmatpush3.bf16.msra.mxu1 %v25178_v51  ;;  %22461 = vmatprep.subr.bf16.mxu0 %v25179_v3  ;;  %v25216_v51 = vld [vmem:[%s32241_s5 + $0x4f8] sm:$0xff]  }
 0x77f   : > { %22483 = vmatprep.subr.bf16.mxu1 %v25180_v8  ;;  %v25217_v3 = vld [vmem:[%s32241_s5 + $0x438] sm:$0xff]  }
 0x780   : > { %v25218_v8 = vld [vmem:[%s32241_s5 + $0x4b8] sm:$0xff]  }
 0x781   : > { %22462 = vmatpush3.bf16.msra.mxu0 %v25181_v42  ;;  %v25219_v42 = vld [vmem:[%s32241_s5 + $0x540] sm:$0xff]  }
 0x782   : > { %22484 = vmatpush3.bf16.msra.mxu1 %v25182_v34  ;;  %22463 = vmatprep.subr.bf16.mxu0 %v25183_v57  ;;  %v25220_v34 = vld [vmem:[%s32241_s5 + $0x5c0] sm:$0xff]  }
 0x783   : > { %22485 = vmatprep.subr.bf16.mxu1 %v25184_v16  ;;  %v25221_v57 = vld [vmem:[%s32241_s5 + $0x500] sm:$0xff]  }
 0x784   : > { %v25222_v16 = vld [vmem:[%s32241_s5 + $0x580] sm:$0xff]  }
 0x785   : > { %22464 = vmatpush3.bf16.msra.mxu0 %v25185_v54  ;;  %v25223_v54 = vld [vmem:[%s32241_s5 + $0x548] sm:$0xff]  }
 0x786   : > { %22486 = vmatpush3.bf16.msra.mxu1 %v25186_v10  ;;  %22493 = vmatprep.subr.bf16.mxu0 %v25187_v35  ;;  %v12829_v10 = vrot.slane %v30056_v6, 2  ;;  %v25224_v35 = vld [vmem:[%s32241_s5 + $0x5c8] sm:$0xff]  }
 0x787   : > { %22515 = vmatprep.subr.bf16.mxu1 %v25188_v41  ;;  %v12831_v41 = vrot.slane %v30058_v59, 2 }
 0x788   : > { %12351 = vmatmul.mubr.bf16.vlgmr.msra.gmra.mrb[100].mxu0 %v12118_v38  ;;  %v25226_v38 = vld [vmem:[%s32241_s5 + $0x588] sm:$0xff]  }
 0x789   : > { %12391 = vmatmul.mubr.bf16.vlgmr.msra.gmra.mrb[100].mxu1 %v12120_v25  ;;  %22494 = vmatpush3.bf16.msra.mxu0 %v25189_v20  ;;  %v25225_v20 = vld [vmem:[%s32241_s5 + $0x508] sm:$0xff]   ;;  %v25229_v25 = vld [vmem:[%s32241_s5 + $0x510] sm:$0xff]  }
 0x78a   : > { %22516 = vmatpush3.bf16.msra.mxu1 %v25190_v39  ;;  %22495 = vmatprep.subr.bf16.mxu0 %v25191_v23  ;;  %v25227_v39 = vld [vmem:[%s32241_s5 + $0x550] sm:$0xff]  }
 0x78b   : > { %22517 = vmatprep.subr.bf16.mxu1 %v25192_v19  ;;  %12699 = vmatprep.mubr.bf16.mxu0 %v30056_v6  ;;  %v25228_v23 = vld [vmem:[%s32241_s5 + $0x5d0] sm:$0xff]  }
 0x78c   : > { %12739 = vmatprep.mubr.bf16.mxu1 %v30058_v59  ;;  %v25230_v19 = vld [vmem:[%s32241_s5 + $0x590] sm:$0xff]  }
 0x78d   : > { %22496 = vmatpush3.bf16.msra.mxu0 %v25193_v44  ;;  %v25231_v44 = vld [vmem:[%s32241_s5 + $0x558] sm:$0xff]  }
 0x78e   : > { %22518 = vmatpush3.bf16.msra.mxu1 %v25194_v36  ;;  %22497 = vmatprep.subr.bf16.mxu0 %v25195_v63  ;;  %v25232_v36 = vld [vmem:[%s32241_s5 + $0x5d8] sm:$0xff]  }
 0x78f   : > { %22519 = vmatprep.subr.bf16.mxu1 %v25196_v30  ;;  %v25233_v63 = vld [vmem:[%s32241_s5 + $0x518] sm:$0xff]  }
 0x790   : > { %v25234_v30 = vld [vmem:[%s32241_s5 + $0x598] sm:$0xff]  }
 0x791   : > { %22498 = vmatpush3.bf16.msra.mxu0 %v25197_v37  ;;  %v25235_v37 = vld [vmem:[%s32241_s5 + $0x560] sm:$0xff]  }
 0x792   : > { %22520 = vmatpush3.bf16.msra.mxu1 %v25198_v48  ;;  %22499 = vmatprep.subr.bf16.mxu0 %v25199_v14  ;;  %v25236_v48 = vld [vmem:[%s32241_s5 + $0x5e0] sm:$0xff]  }
 0x793   : > { %22521 = vmatprep.subr.bf16.mxu1 %v25200_v31  ;;  %v25237_v14 = vld [vmem:[%s32241_s5 + $0x520] sm:$0xff]  }
 0x794   : > { %v25238_v31 = vld [vmem:[%s32241_s5 + $0x5a0] sm:$0xff]  }
 0x795   : > { %22500 = vmatpush3.bf16.msra.mxu0 %v25201_v21  ;;  %v25239_v21 = vld [vmem:[%s32241_s5 + $0x568] sm:$0xff]  }
 0x796   : > { %22522 = vmatpush3.bf16.msra.mxu1 %v25202_v1  ;;  %22501 = vmatprep.subr.bf16.mxu0 %v25203_v22  ;;  %v25240_v1 = vld [vmem:[%s32241_s5 + $0x5e8] sm:$0xff]  }
 0x797   : > { %22523 = vmatprep.subr.bf16.mxu1 %v25204_v61  ;;  %v25241_v22 = vld [vmem:[%s32241_s5 + $0x528] sm:$0xff]  }
 0x798   : > { %v25242_v61 = vld [vmem:[%s32241_s5 + $0x5a8] sm:$0xff]  }
 0x799   : > { %22502 = vmatpush3.bf16.msra.mxu0 %v25205_v60  ;;  %v25243_v60 = vld [vmem:[%s32241_s5 + $0x570] sm:$0xff]  }
 0x79a   : > { %22524 = vmatpush3.bf16.msra.mxu1 %v25206_v50  ;;  %22503 = vmatprep.subr.bf16.mxu0 %v25207_v11  ;;  %v25244_v50 = vld [vmem:[%s32241_s5 + $0x5f0] sm:$0xff]  }
 0x79b   : > { %22525 = vmatprep.subr.bf16.mxu1 %v25208_v33  ;;  %v25245_v11 = vld [vmem:[%s32241_s5 + $0x530] sm:$0xff]  }
 0x79c   : > { %v25246_v33 = vld [vmem:[%s32241_s5 + $0x5b0] sm:$0xff]  }
 0x79d   : > { %22504 = vmatpush3.bf16.msra.mxu0 %v25209_v52  ;;  %v25247_v52 = vld [vmem:[%s32241_s5 + $0x578] sm:$0xff]  }
 0x79e   : > { %22526 = vmatpush3.bf16.msra.mxu1 %v25210_v47  ;;  %22505 = vmatprep.subr.bf16.mxu0 %v25211_v32  ;;  %v25248_v47 = vld [vmem:[%s32241_s5 + $0x5f8] sm:$0xff]  }
 0x79f   : > { %22527 = vmatprep.subr.bf16.mxu1 %v25212_v27  ;;  %v25249_v32 = vld [vmem:[%s32241_s5 + $0x538] sm:$0xff]  }
 0x7a0   : > { %v25250_v27 = vld [vmem:[%s32241_s5 + $0x5b8] sm:$0xff]  }
 0x7a1   : > { %22506 = vmatpush3.bf16.msra.mxu0 %v25213_v28  ;;  %v25251_v28 = vld [vmem:[%s32241_s5 + $0x640] sm:$0xff]  }
 0x7a2   : > { %22528 = vmatpush3.bf16.msra.mxu1 %v25214_v49  ;;  %22507 = vmatprep.subr.bf16.mxu0 %v25215_v4  ;;  %v25252_v49 = vld [vmem:[%s32241_s5 + $0x6c0] sm:$0xff]  }
 0x7a3   : > { %22529 = vmatprep.subr.bf16.mxu1 %v25216_v51  ;;  %v25253_v4 = vld [vmem:[%s32241_s5 + $0x600] sm:$0xff]   ;;  %v12828_v51 = vrot.slane %v30046_v17, 2 }
 0x7a5   : > { %22508 = vmatpush3.bf16.msra.mxu0 %v25217_v3  ;;  %v25254_v3 = vld [vmem:[%s32241_s5 + $0x680] sm:$0xff]  }
 0x7a6   : > { %22530 = vmatpush3.bf16.msra.mxu1 %v25218_v8  ;;  %22537 = vmatprep.subr.bf16.mxu0 %v25219_v42  ;;  %v12830_v8 = vrot.slane %v30048_v46, 2  ;;  %v25255_v42 = vld [vmem:[%s32241_s5 + $0x648] sm:$0xff]  }
 0x7a7   : > { %22559 = vmatprep.subr.bf16.mxu1 %v25220_v34  ;;  %v13186_v34 = vrot.slane %v30056_v6, 4 }
 0x7a8   : > { %12700 = vmatmul.mubr.bf16.vlgmr.msra.gmra.mrb[104].mxu0 %v30046_v17 }
 0x7a9   : > { %12740 = vmatmul.mubr.bf16.vlgmr.msra.gmra.mrb[104].mxu1 %v30048_v46  ;;  %22538 = vmatpush3.bf16.msra.mxu0 %v25221_v57  ;;  %v25256_v57 = vld [vmem:[%s32241_s5 + $0x6c8] sm:$0xff]  }
 0x7aa   : > { %13060 = vmatprep.mubr.bf16.mxu0 %v12829_v10  ;;  %22560 = vmatpush3.bf16.msra.mxu1 %v25222_v16  ;;  %v13188_v16 = vrot.slane %v30058_v59, 4  ;;  %v25258_v10 = vld [vmem:[%s32241_s5 + $0x688] sm:$0xff]  }
 0x7ab   : > { %13100 = vmatprep.mubr.bf16.mxu1 %v12831_v41  ;;  %22539 = vmatprep.subr.bf16.mxu0 %v25223_v54  ;;  %v25257_v54 = vld [vmem:[%s32241_s5 + $0x608] sm:$0xff]   ;;  %v25260_v41 = vld [vmem:[%s32241_s5 + $0x6d0] sm:$0xff]  }
 0x7ac   : > { %22561 = vmatprep.subr.bf16.mxu1 %v25224_v35  ;;  %v25259_v35 = vld [vmem:[%s32241_s5 + $0x650] sm:$0xff]  }
 0x7ad   : > { %22540 = vmatpush3.bf16.msra.mxu0 %v25225_v20  ;;  %v25261_v20 = vld [vmem:[%s32241_s5 + $0x610] sm:$0xff]  }
 0x7ae   : > { %22562 = vmatpush3.bf16.msra.mxu1 %v25226_v38  ;;  %22541 = vmatprep.subr.bf16.mxu0 %v25227_v39  ;;  %v25262_v38 = vld [vmem:[%s32241_s5 + $0x690] sm:$0xff]   ;;  %v25263_v39 = vld [vmem:[%s32241_s5 + $0x658] sm:$0xff]  }
 0x7af   : > { %22563 = vmatprep.subr.bf16.mxu1 %v25228_v23  ;;  %v25264_v23 = vld [vmem:[%s32241_s5 + $0x6d8] sm:$0xff]  }
 0x7b1   : > { %22542 = vmatpush3.bf16.msra.mxu0 %v25229_v25  ;;  %v25265_v25 = vld [vmem:[%s32241_s5 + $0x618] sm:$0xff]  }
 0x7b2   : > { %22564 = vmatpush3.bf16.msra.mxu1 %v25230_v19  ;;  %22543 = vmatprep.subr.bf16.mxu0 %v25231_v44  ;;  %v25266_v19 = vld [vmem:[%s32241_s5 + $0x698] sm:$0xff]   ;;  %v25267_v44 = vld [vmem:[%s32241_s5 + $0x660] sm:$0xff]  }
 0x7b3   : > { %22565 = vmatprep.subr.bf16.mxu1 %v25232_v36  ;;  %v25268_v36 = vld [vmem:[%s32241_s5 + $0x6e0] sm:$0xff]  }
 0x7b5   : > { %22544 = vmatpush3.bf16.msra.mxu0 %v25233_v63  ;;  %v25269_v63 = vld [vmem:[%s32241_s5 + $0x620] sm:$0xff]  }
 0x7b6   : > { %22566 = vmatpush3.bf16.msra.mxu1 %v25234_v30  ;;  %22545 = vmatprep.subr.bf16.mxu0 %v25235_v37  ;;  %v25270_v30 = vld [vmem:[%s32241_s5 + $0x6a0] sm:$0xff]   ;;  %v25271_v37 = vld [vmem:[%s32241_s5 + $0x668] sm:$0xff]  }
 0x7b7   : > { %22567 = vmatprep.subr.bf16.mxu1 %v25236_v48  ;;  %v25272_v48 = vld [vmem:[%s32241_s5 + $0x6e8] sm:$0xff]  }
 0x7b9   : > { %22546 = vmatpush3.bf16.msra.mxu0 %v25237_v14  ;;  %v25273_v14 = vld [vmem:[%s32241_s5 + $0x628] sm:$0xff]  }
 0x7ba   : > { %22568 = vmatpush3.bf16.msra.mxu1 %v25238_v31  ;;  %22547 = vmatprep.subr.bf16.mxu0 %v25239_v21  ;;  %v25274_v31 = vld [vmem:[%s32241_s5 + $0x6a8] sm:$0xff]   ;;  %v25275_v21 = vld [vmem:[%s32241_s5 + $0x670] sm:$0xff]  }
 0x7bb   : > { %22569 = vmatprep.subr.bf16.mxu1 %v25240_v1  ;;  %v25276_v1 = vld [vmem:[%s32241_s5 + $0x6f0] sm:$0xff]  }
 0x7bd   : > { %22548 = vmatpush3.bf16.msra.mxu0 %v25241_v22  ;;  %v25277_v22 = vld [vmem:[%s32241_s5 + $0x630] sm:$0xff]  }
 0x7be   : > { %22570 = vmatpush3.bf16.msra.mxu1 %v25242_v61  ;;  %22549 = vmatprep.subr.bf16.mxu0 %v25243_v60  ;;  %v25278_v61 = vld [vmem:[%s32241_s5 + $0x6b0] sm:$0xff]   ;;  %v25279_v60 = vld [vmem:[%s32241_s5 + $0x678] sm:$0xff]  }
 0x7bf   : > { %22571 = vmatprep.subr.bf16.mxu1 %v25244_v50  ;;  %v25280_v50 = vld [vmem:[%s32241_s5 + $0x6f8] sm:$0xff]  }
 0x7c1   : > { %22550 = vmatpush3.bf16.msra.mxu0 %v25245_v11  ;;  %v25281_v11 = vld [vmem:[%s32241_s5 + $0x638] sm:$0xff]  }
 0x7c2   : > { %22572 = vmatpush3.bf16.msra.mxu1 %v25246_v33  ;;  %22551 = vmatprep.subr.bf16.mxu0 %v25247_v52  ;;  %v25282_v33 = vld [vmem:[%s32241_s5 + $0x6b8] sm:$0xff]   ;;  %v25283_v52 = vld [vmem:[%s32241_s5 + $0x740] sm:$0xff]  }
 0x7c3   : > { %22573 = vmatprep.subr.bf16.mxu1 %v25248_v47  ;;  %v10650_v47 = vrot.slane %v29976_v40, 4 }
 0x7c5   : > { %22552 = vmatpush3.bf16.msra.mxu0 %v25249_v32  ;;  %v25284_v32 = vld [vmem:[%s32241_s5 + $0x7c0] sm:$0xff]  }
 0x7c6   : > { %22574 = vmatpush3.bf16.msra.mxu1 %v25250_v27  ;;  %22581 = vmatprep.subr.bf16.mxu0 %v25251_v28  ;;  %v10663_v27 = vrot.slane %v29986_v18, 4  ;;  %v10676_v28 = vrot.slane %v29996_v24, 4 }
 0x7c7   : > { %22603 = vmatprep.subr.bf16.mxu1 %v25252_v49  ;;  %v10689_v49 = vrot.slane %v30006_v0, 4 }
 0x7c8   : > { %13061 = vmatmul.mubr.bf16.vlgmr.msra.gmra.mrb[108].mxu0 %v12828_v51  ;;  %v13185_v51 = vrot.slane %v30046_v17, 4 }
 0x7c9   : > { %13101 = vmatmul.mubr.bf16.vlgmr.msra.gmra.mrb[108].mxu1 %v12830_v8  ;;  %22582 = vmatpush3.bf16.msra.mxu0 %v25253_v4  ;;  %v25285_v4 = vld [vmem:[%s32241_s5 + $0x700] sm:$0xff]   ;;  %v10651_v8 = vadd.f32 %v10650_v47, %v29976_v40  ;;  %v25288_v40 = vld [vmem:[%s32241_s5 + $0x7c8] sm:$0xff]  }
 0x7ca   : > { %13417 = vmatprep.mubr.bf16.mxu0 %v13186_v34  ;;  %22604 = vmatpush3.bf16.msra.mxu1 %v25254_v3  ;;  %v25286_v3 = vld [vmem:[%s32241_s5 + $0x780] sm:$0xff]   ;;  %v25287_v34 = vld [vmem:[%s32241_s5 + $0x748] sm:$0xff]  }
 0x7cb   : > { %13457 = vmatprep.mubr.bf16.mxu1 %v13188_v16  ;;  %22583 = vmatprep.subr.bf16.mxu0 %v25255_v42  ;;  %v13187_v42 = vrot.slane %v30048_v46, 4  ;;  %v10677_v16 = vadd.f32 %v10676_v28, %v29996_v24  ;;  %v25291_v24 = vld [vmem:[%s32241_s5 + $0x750] sm:$0xff]   ;;  %v25305_v28 = vld [vmem:[%s32241_s5 + $0x728] sm:$0xff]  }
 0x7cc   : > { %22605 = vmatprep.subr.bf16.mxu1 %v25256_v57  ;;  %v10664_v57 = vadd.f32 %v10663_v27, %v29986_v18  ;;  %v25290_v18 = vld [vmem:[%s32241_s5 + $0x788] sm:$0xff]  }
 0x7cd   : > { %22584 = vmatpush3.bf16.msra.mxu0 %v25257_v54  ;;  %v10690_v54 = vadd.f32 %v10689_v49, %v30006_v0  ;;  %v10652_v0 = vrot.slane %v10651_v8, 2  ;;  %v10974_v49 = vld [vmem:[%s287_s29] sm:$0xf] }
 0x7ce   : > { %22606 = vmatpush3.bf16.msra.mxu1 %v25258_v10  ;;  %22585 = vmatprep.subr.bf16.mxu0 %v25259_v35  ;;  %v13543_v10 = vrot.slane %v30056_v6, 6  ;;  %v13545_v35 = vrot.slane %v30058_v59, 6  ;;  %v25292_v6 = vld [vmem:[%s32241_s5 + $0x7d0] sm:$0xff]   ;;  %v10665_v59 = vrot.slane %v10664_v57, 2 }
 0x7cf   : > { %22607 = vmatprep.subr.bf16.mxu1 %v25260_v41  ;;  %v25289_v41 = vld [vmem:[%s32241_s5 + $0x708] sm:$0xff]  }
 0x7d1   : > { %22586 = vmatpush3.bf16.msra.mxu0 %v25261_v20  ;;  %v10678_v20 = vrot.slane %v10677_v16, 2 }
 0x7d2   : > { %22608 = vmatpush3.bf16.msra.mxu1 %v25262_v38  ;;  %22587 = vmatprep.subr.bf16.mxu0 %v25263_v39  ;;  %v10691_v38 = vrot.slane %v10690_v54, 2  ;;  %v25293_v39 = vld [vmem:[%s32241_s5 + $0x710] sm:$0xff]  }
 0x7d3   : > { %22609 = vmatprep.subr.bf16.mxu1 %v25264_v23  ;;  %v25294_v23 = vld [vmem:[%s32241_s5 + $0x790] sm:$0xff]  }
 0x7d5   : > { %22588 = vmatpush3.bf16.msra.mxu0 %v25265_v25  ;;  %v25295_v25 = vld [vmem:[%s32241_s5 + $0x758] sm:$0xff]  }
 0x7d6   : > { %22610 = vmatpush3.bf16.msra.mxu1 %v25266_v19  ;;  %22589 = vmatprep.subr.bf16.mxu0 %v25267_v44  ;;  %v10653_v19 = vadd.f32 %v10652_v0, %v10651_v8  ;;  %v25296_v44 = vld [vmem:[%s32241_s5 + $0x7d8] sm:$0xff]   ;;  %v10976_v8 = vrot.slane %v10974_v49, 1 }
 0x7d7   : > { %22611 = vmatprep.subr.bf16.mxu1 %v25268_v36  ;;  %v10666_v36 = vadd.f32 %v10665_v59, %v10664_v57 }
 0x7d9   : > { %22590 = vmatpush3.bf16.msra.mxu0 %v25269_v63  ;;  %v10679_v63 = vadd.f32 %v10678_v20, %v10677_v16  ;;  %v25308_v16 = vld [vmem:[%s32241_s5 + $0x7f0] sm:$0xff]  }
 0x7da   : > { %22612 = vmatpush3.bf16.msra.mxu1 %v25270_v30  ;;  %22591 = vmatprep.subr.bf16.mxu0 %v25271_v37  ;;  %v10692_v30 = vadd.f32 %v10691_v38, %v10690_v54  ;;  %v25297_v37 = vld [vmem:[%s32241_s5 + $0x718] sm:$0xff]   ;;  %v25309_v20 = vld [vmem:[%s32241_s5 + $0x730] sm:$0xff]  }
 0x7db   : > { %22613 = vmatprep.subr.bf16.mxu1 %v25272_v48  ;;  %v25298_v48 = vld [vmem:[%s32241_s5 + $0x798] sm:$0xff]  }
 0x7dd   : > { %22592 = vmatpush3.bf16.msra.mxu0 %v25273_v14  ;;  %v25299_v14 = vld [vmem:[%s32241_s5 + $0x760] sm:$0xff]  }
 0x7de   : > { %22614 = vmatpush3.bf16.msra.mxu1 %v25274_v31  ;;  %22593 = vmatprep.subr.bf16.mxu0 %v25275_v21  ;;  %v10654_v31 = vrot.slane %v10653_v19, 1  ;;  %v25300_v21 = vld [vmem:[%s32241_s5 + $0x7e0] sm:$0xff]  }
 0x7df   : > { %22615 = vmatprep.subr.bf16.mxu1 %v25276_v1  ;;  %v10667_v1 = vrot.slane %v10666_v36, 1 }
 0x7e1   : > { %22594 = vmatpush3.bf16.msra.mxu0 %v25277_v22  ;;  %v10680_v22 = vrot.slane %v10679_v63, 1  ;;  %v10668_v47 = vadd.f32 %v10667_v1, %v10666_v36  ;;  %v25312_v36 = vld [vmem:[%s32241_s5 + $0x7f8] sm:$0xff]  }
 0x7e2   : > { %22616 = vmatpush3.bf16.msra.mxu1 %v25278_v61  ;;  %22595 = vmatprep.subr.bf16.mxu0 %v25279_v60  ;;  %v10693_v61 = vrot.slane %v10692_v30, 1  ;;  %v25301_v60 = vld [vmem:[%s32241_s5 + $0x720] sm:$0xff]   ;;  %v25313_v1 = vld [vmem:[%s32241_s5 + $0x738] sm:$0xff]  }
 0x7e3   : > { %22617 = vmatprep.subr.bf16.mxu1 %v25280_v50  ;;  %v25302_v50 = vld [vmem:[%s32241_s5 + $0x7a0] sm:$0xff]   ;;  %v10697_v54 = vmul.f32 0.015625, %v10668_v47  ;;  %v13542_v47 = vrot.slane %v30046_v17, 6  ;;  %v25321_v17 = vld [vmem:[%s32241_s5 + $0x808] sm:$0xff]  }
 0x7e4   : > { %v10694_v27 = vadd.f32 %v10693_v61, %v10692_v30  ;;  %v25315_v61 = vld [vmem:[%s32241_s5 + $0x840] sm:$0xff]  }
 0x7e5   : > { %22596 = vmatpush3.bf16.msra.mxu0 %v25281_v11  ;;  %v25303_v11 = vld [vmem:[%s32241_s5 + $0x768] sm:$0xff]  }
 0x7e6   : > { %22618 = vmatpush3.bf16.msra.mxu1 %v25282_v33  ;;  %22625 = vmatprep.subr.bf16.mxu0 %v25283_v52  ;;  %v10655_v33 = vadd.f32 %v10654_v31, %v10653_v19  ;;  %v25304_v52 = vld [vmem:[%s32241_s5 + $0x7e8] sm:$0xff]  }
 0x7e7   : > { %22647 = vmatprep.subr.bf16.mxu1 %v25284_v32  ;;  %v10681_v32 = vadd.f32 %v10680_v22, %v10679_v63  ;;  %v10984_v63 = vadd.f32 %v10976_v8, %v10697_v54  ;;  %v25314_v22 = vld [vmem:[%s32241_s5 + $0x7b8] sm:$0xff]   ;;  %v25326_v8 = vld [vmem:[%s32241_s5 + $0x890] sm:$0xff]   ;;  %v25331_v54 = vld [vmem:[%s32241_s5 + $0x860] sm:$0xff]  }
 0x7e8   : > { %13418 = vmatmul.mubr.bf16.vlgmr.msra.gmra.mrb[112].mxu0 %v13185_v51  ;;  %v25307_v51 = vld [vmem:[%s32241_s5 + $0x770] sm:$0xff]  }
 0x7e9   : > { %13458 = vmatmul.mubr.bf16.vlgmr.msra.gmra.mrb[112].mxu1 %v13187_v42  ;;  %22626 = vmatpush3.bf16.msra.mxu0 %v25285_v4  ;;  %v25306_v4 = vld [vmem:[%s32241_s5 + $0x7a8] sm:$0xff]   ;;  %v10977_v42 = vrot.slane %v10974_v49, 2 }
 0x7ea   : > { %13774 = vmatprep.mubr.bf16.mxu0 %v13543_v10  ;;  %22648 = vmatpush3.bf16.msra.mxu1 %v25286_v3  ;;  %v10696_v3 = vmul.f32 0.015625, %v10655_v33  ;;  %v10698_v10 = vmul.f32 0.015625, %v10681_v32  ;;  %v25316_v33 = vld [vmem:[%s32241_s5 + $0x8c0] sm:$0xff]  }
 0x7eb   : > { %13814 = vmatprep.mubr.bf16.mxu1 %v13545_v35  ;;  %22627 = vmatprep.subr.bf16.mxu0 %v25287_v34  ;;  %v10978_v35 = vrot.slane %v10974_v49, 3  ;;  %v25318_v32 = vld [vmem:[%s32241_s5 + $0x880] sm:$0xff]  }
 0x7ec   : > { %22649 = vmatprep.subr.bf16.mxu1 %v25288_v40  ;;  %v10699_v40 = vmul.f32 0.015625, %v10694_v27  ;;  %v10983_v19 = vadd.f32 %v10974_v49, %v10696_v3  ;;  %v10985_v30 = vadd.f32 %v10977_v42, %v10698_v10  ;;  %v13544_v27 = vrot.slane %v30048_v46, 6  ;;  %v25320_v49 = vld [vmem:[%s32241_s5 + $0x8c8] sm:$0xff]   ;;  %v25325_v3 = vld [vmem:[%s32241_s5 + $0x810] sm:$0xff]   ;;  %v25327_v42 = vld [vmem:[%s32241_s5 + $0x858] sm:$0xff]  }
 0x7ed   : > { %22628 = vmatpush3.bf16.msra.mxu0 %v25289_v41  ;;  %v25322_v46 = vld [vmem:[%s32241_s5 + $0x888] sm:$0xff]   ;;  %v25332_v10 = vld [vmem:[%s32241_s5 + $0x8e0] sm:$0xff]  }
 0x7ee   : > { %22650 = vmatpush3.bf16.msra.mxu1 %v25290_v18  ;;  %22629 = vmatprep.subr.bf16.mxu0 %v25291_v24 }
 0x7ef   : > { %22651 = vmatprep.subr.bf16.mxu1 %v25292_v6 }
 0x7f1   : > { %22630 = vmatpush3.bf16.msra.mxu0 %v25293_v39 }
 0x7f2   : > { %22652 = vmatpush3.bf16.msra.mxu1 %v25294_v23  ;;  %22631 = vmatprep.subr.bf16.mxu0 %v25295_v25  ;;  %v25310_v23 = vld [vmem:[%s32241_s5 + $0x7b0] sm:$0xff]   ;;  %v25311_v25 = vld [vmem:[%s32241_s5 + $0x778] sm:$0xff]  }
 0x7f3   : > { %22653 = vmatprep.subr.bf16.mxu1 %v25296_v44 }
 0x7f5   : > { %22632 = vmatpush3.bf16.msra.mxu0 %v25297_v37  ;;  %v10986_v37 = vadd.f32 %v10978_v35, %v10699_v40  ;;  %v25333_v40 = vld [vmem:[%s32241_s5 + $0x820] sm:$0xff]  }
 0x7f6   : > { %22654 = vmatpush3.bf16.msra.mxu1 %v25298_v48  ;;  %22633 = vmatprep.subr.bf16.mxu0 %v25299_v14  ;;  %v25334_v35 = vld [vmem:[%s32241_s5 + $0x8a0] sm:$0xff]  }
 0x7f7   : > { %22655 = vmatprep.subr.bf16.mxu1 %v25300_v21 }
 0x7f9   : > { %22634 = vmatpush3.bf16.msra.mxu0 %v25301_v60 }
 0x7fa   : > { %22656 = vmatpush3.bf16.msra.mxu1 %v25302_v50  ;;  %22635 = vmatprep.subr.bf16.mxu0 %v25303_v11 }
 0x7fb   : > { %v22333_v34 = vpop.f32.mrb[88].mxu0  ;;  %22657 = vmatprep.subr.bf16.mxu1 %v25304_v52  ;;  %v25317_v52 = vld [vmem:[%s32241_s5 + $0x800] sm:$0xff]  }
 0x7fc   : > { %v22355_v57 = vpop.f32.mrb[88].mxu1  ;;  %v22334_v41 = vpop.f32.mrb[89].mxu0 }
 0x7fd   : > { %v22356_v18 = vpop.f32.mrb[89].mxu1  ;;  %v22335_v24 = vadd.f32 %v22334_v41, %v22333_v34  ;;  %22636 = vmatpush3.bf16.msra.mxu0 %v25305_v28  ;;  %v22336_v6 = vpop.f32.mrb[90].mxu0  ;;  %v25319_v28 = vld [vmem:[%s32241_s5 + $0x848] sm:$0xff]   ;;  %v25328_v34 = vld [vmem:[%s32241_s5 + $0x8d8] sm:$0xff]  }
 0x7fe   : > { %v22357_v0 = vadd.f32 %v22356_v18, %v22355_v57  ;;  %v22358_v59 = vpop.f32.mrb[90].mxu1  ;;  %22658 = vmatpush3.bf16.msra.mxu1 %v25306_v4  ;;  %v22337_v38 = vpop.f32.mrb[91].mxu0  ;;  %22637 = vmatprep.subr.bf16.mxu0 %v25307_v51  ;;  %v25323_v4 = vld [vmem:[%s32241_s5 + $0x850] sm:$0xff]   ;;  %v25329_v57 = vld [vmem:[%s32241_s5 + $0x818] sm:$0xff]   ;;  %v25335_v41 = vld [vmem:[%s32241_s5 + $0x868] sm:$0xff]  }
 0x7ff   : > { %v22359_v39 = vpop.f32.mrb[91].mxu1  ;;  %22659 = vmatprep.subr.bf16.mxu1 %v25308_v16  ;;  %v25324_v51 = vld [vmem:[%s32241_s5 + $0x8d0] sm:$0xff]   ;;  %v25330_v16 = vld [vmem:[%s32241_s5 + $0x898] sm:$0xff]   ;;  %v25336_v18 = vld [vmem:[%s32241_s5 + $0x8e8] sm:$0xff]  }
 0x800   : > { %v11318_v44 = vadd.f32 %v22357_v0, %v22335_v24  ;;  %v25337_v24 = vld [vmem:[%s32241_s5 + $0x828] sm:$0xff]   ;;  %v25339_v6 = vld [vmem:[%s32241_s5 + $0x870] sm:$0xff]  }
 0x801   : > { %22638 = vmatpush3.bf16.msra.mxu0 %v25309_v20  ;;  %v25338_v0 = vld [vmem:[%s32241_s5 + $0x8a8] sm:$0xff]   ;;  %v25340_v38 = vld [vmem:[%s32241_s5 + $0x8f0] sm:$0xff]  }
 0x802   : > { %v11324_v48 = vrot.slane %v11318_v44, 1  ;;  %v11325_v14 = vrot.slane %v11318_v44, 2  ;;  %v11326_v31 = vrot.slane %v11318_v44, 3  ;;  %v30760_v21 = vadd.f32 %v11318_v44, %v10983_v19  ;;  %22660 = vmatpush3.bf16.msra.mxu1 %v25310_v23  ;;  %22639 = vmatprep.subr.bf16.mxu0 %v25311_v25 }
 0x803   : > { %22661 = vmatprep.subr.bf16.mxu1 %v25312_v36 }
 0x804   : > { %v30771_v60 = vadd.f32 %v11324_v48, %v10984_v63  ;;  %v30773_v50 = vadd.f32 %v11325_v14, %v10985_v30  ;;  %v30775_v11 = vadd.f32 %v11326_v31, %v10986_v37  ;;  %v25341_v63 = vld [vmem:[%s32241_s5 + $0x830] sm:$0xff]   ;;  %v25343_v14 = vld [vmem:[%s32241_s5 + $0x878] sm:$0xff]  }
 0x805   : > { %22640 = vmatpush3.bf16.msra.mxu0 %v25313_v1  ;;  %v25342_v48 = vld [vmem:[%s32241_s5 + $0x8b0] sm:$0xff]   ;;  %v25344_v1 = vld [vmem:[%s32241_s5 + $0x8f8] sm:$0xff]  }
 0x806   : > { %22662 = vmatpush3.bf16.msra.mxu1 %v25314_v22  ;;  %22669 = vmatprep.subr.bf16.mxu0 %v25315_v61 }
 0x807   : > { %22691 = vmatprep.subr.bf16.mxu1 %v25316_v33 }
 0x808   : > { %13775 = vmatmul.mubr.bf16.vlgmr.msra.gmra.mrb[116].mxu0 %v13542_v47  ;;  %v25345_v47 = vld [vmem:[%s32241_s5 + $0x838] sm:$0xff]  }
 0x809   : > { %13815 = vmatmul.mubr.bf16.vlgmr.msra.gmra.mrb[116].mxu1 %v13544_v27  ;;  %22670 = vmatpush3.bf16.msra.mxu0 %v25317_v52  ;;  %v25347_v27 = vld [vmem:[%s32241_s5 + $0x940] sm:$0xff]  }
 0x80a   : > { %14123 = vmatprep.mubr.bf16.mxu0 %v30215_v53  ;;  %22692 = vmatpush3.bf16.msra.mxu1 %v25318_v32  ;;  %v25346_v32 = vld [vmem:[%s32241_s5 + $0x8b8] sm:$0xff]  }
 0x80b   : > { %14163 = vmatprep.mubr.bf16.mxu1 %v30217_v2  ;;  %22671 = vmatprep.subr.bf16.mxu0 %v25319_v28 }
 0x80c   : > { %22693 = vmatprep.subr.bf16.mxu1 %v25320_v49 }
 0x80d   : > { %22672 = vmatpush3.bf16.msra.mxu0 %v25321_v17  ;;  %v25348_v17 = vld [vmem:[%s32241_s5 + $0x9c0] sm:$0xff]  }
 0x80e   : > { %22694 = vmatpush3.bf16.msra.mxu1 %v25322_v46  ;;  %22673 = vmatprep.subr.bf16.mxu0 %v25323_v4  ;;  %v25349_v46 = vld [vmem:[%s32241_s5 + $0x900] sm:$0xff]   ;;  %v25352_v4 = vld [vmem:[%s32241_s5 + $0x9c8] sm:$0xff]  }
 0x80f   : > { %22695 = vmatprep.subr.bf16.mxu1 %v25324_v51  ;;  %v14255_v51 = vrot.slane %v30217_v2, 2 }
 0x811   : > { %22674 = vmatpush3.bf16.msra.mxu0 %v25325_v3  ;;  %v25353_v3 = vld [vmem:[%s32241_s5 + $0x908] sm:$0xff]  }
 0x812   : > { %22696 = vmatpush3.bf16.msra.mxu1 %v25326_v8  ;;  %22675 = vmatprep.subr.bf16.mxu0 %v25327_v42  ;;  %v25354_v8 = vld [vmem:[%s32241_s5 + $0x988] sm:$0xff]   ;;  %v25355_v42 = vld [vmem:[%s32241_s5 + $0x950] sm:$0xff]  }
 0x813   : > { %22697 = vmatprep.subr.bf16.mxu1 %v25328_v34  ;;  %v25356_v34 = vld [vmem:[%s32241_s5 + $0x9d0] sm:$0xff]  }
 0x815   : > { %22676 = vmatpush3.bf16.msra.mxu0 %v25329_v57  ;;  %v25357_v57 = vld [vmem:[%s32241_s5 + $0x910] sm:$0xff]  }
 0x816   : > { %22698 = vmatpush3.bf16.msra.mxu1 %v25330_v16  ;;  %22677 = vmatprep.subr.bf16.mxu0 %v25331_v54  ;;  %v25358_v16 = vld [vmem:[%s32241_s5 + $0x990] sm:$0xff]   ;;  %v25359_v54 = vld [vmem:[%s32241_s5 + $0x958] sm:$0xff]  }
 0x817   : > { %22699 = vmatprep.subr.bf16.mxu1 %v25332_v10  ;;  %v25360_v10 = vld [vmem:[%s32241_s5 + $0x9d8] sm:$0xff]  }
 0x819   : > { %22678 = vmatpush3.bf16.msra.mxu0 %v25333_v40  ;;  %v25361_v40 = vld [vmem:[%s32241_s5 + $0x918] sm:$0xff]  }
 0x81a   : > { %22700 = vmatpush3.bf16.msra.mxu1 %v25334_v35  ;;  %22679 = vmatprep.subr.bf16.mxu0 %v25335_v41  ;;  %v25362_v35 = vld [vmem:[%s32241_s5 + $0x998] sm:$0xff]   ;;  %v25363_v41 = vld [vmem:[%s32241_s5 + $0x960] sm:$0xff]  }
 0x81b   : > { %v22377_v59 = vpop.f32.mrb[92].mxu0  ;;  %22701 = vmatprep.subr.bf16.mxu1 %v25336_v18  ;;  %v25364_v18 = vld [vmem:[%s32241_s5 + $0x9e0] sm:$0xff]  }
 0x81c   : > { %v22399_v20 = vpop.f32.mrb[92].mxu1  ;;  %v22378_v39 = vpop.f32.mrb[93].mxu0 }
 0x81d   : > { %v22400_v23 = vpop.f32.mrb[93].mxu1  ;;  %v22379_v25 = vadd.f32 %v22378_v39, %v22377_v59  ;;  %v22380_v44 = vpop.f32.mrb[94].mxu0  ;;  %22680 = vmatpush3.bf16.msra.mxu0 %v25337_v24  ;;  %v25365_v24 = vld [vmem:[%s32241_s5 + $0x920] sm:$0xff]   ;;  %v25368_v59 = vld [vmem:[%s32241_s5 + $0x9e8] sm:$0xff]   ;;  %v25371_v39 = vld [vmem:[%s32241_s5 + $0x970] sm:$0xff]  }
 0x81e   : > { %v22401_v19 = vadd.f32 %v22400_v23, %v22399_v20  ;;  %v22402_v36 = vpop.f32.mrb[94].mxu1  ;;  %22702 = vmatpush3.bf16.msra.mxu1 %v25338_v0  ;;  %v22381_v30 = vpop.f32.mrb[95].mxu0  ;;  %22681 = vmatprep.subr.bf16.mxu0 %v25339_v6  ;;  %v25366_v0 = vld [vmem:[%s32241_s5 + $0x9a0] sm:$0xff]   ;;  %v25367_v6 = vld [vmem:[%s32241_s5 + $0x968] sm:$0xff]  }
 0x81f   : > { %v22403_v37 = vpop.f32.mrb[95].mxu1  ;;  %22703 = vmatprep.subr.bf16.mxu1 %v25340_v38  ;;  %v25369_v20 = vld [vmem:[%s32241_s5 + $0x928] sm:$0xff]  }
 0x820   : > { %v11679_v31 = vadd.f32 %v22401_v19, %v22379_v25  ;;  %v25370_v38 = vld [vmem:[%s32241_s5 + $0x9a8] sm:$0xff]   ;;  %v25372_v25 = vld [vmem:[%s32241_s5 + $0x9f0] sm:$0xff]  }
 0x821   : > { %22682 = vmatpush3.bf16.msra.mxu0 %v25341_v63  ;;  %v25373_v37 = vld [vmem:[%s32241_s5 + $0x930] sm:$0xff]  }
 0x822   : > { %v11685_v22 = vrot.slane %v11679_v31, 1  ;;  %v11686_v61 = vrot.slane %v11679_v31, 2  ;;  %v11687_v33 = vrot.slane %v11679_v31, 3  ;;  %v30869_v52 = vadd.f32 %v11679_v31, %v30760_v21  ;;  %22704 = vmatpush3.bf16.msra.mxu1 %v25342_v48  ;;  %22683 = vmatprep.subr.bf16.mxu0 %v25343_v14 }
 0x823   : > { %22705 = vmatprep.subr.bf16.mxu1 %v25344_v1  ;;  %v25374_v1 = vld [vmem:[%s32241_s5 + $0x9b0] sm:$0xff]  }
 0x824   : > { %v30881_v28 = vadd.f32 %v11685_v22, %v30771_v60  ;;  %v30884_v21 = vadd.f32 %v11686_v61, %v30773_v50  ;;  %v30887_v49 = vadd.f32 %v11687_v33, %v30775_v11  ;;  %v25350_v60 = vld [vmem:[%s32241_s5 + $0x980] sm:$0xff]   ;;  %v25351_v50 = vld [vmem:[%s32241_s5 + $0x948] sm:$0xff]   ;;  %v14253_v11 = vrot.slane %v30215_v53, 2  ;;  %v25375_v22 = vld [vmem:[%s32241_s5 + $0x978] sm:$0xff]  }
 0x825   : > { %22684 = vmatpush3.bf16.msra.mxu0 %v25345_v47  ;;  %v25376_v33 = vld [vmem:[%s32241_s5 + $0x9f8] sm:$0xff]  }
 0x826   : > { %22706 = vmatpush3.bf16.msra.mxu1 %v25346_v32  ;;  %22713 = vmatprep.subr.bf16.mxu0 %v25347_v27  ;;  %v25377_v32 = vld [vmem:[%s32241_s5 + $0x938] sm:$0xff]  }
 0x827   : > { %22735 = vmatprep.subr.bf16.mxu1 %v25348_v17 }
 0x828   : > { %14124 = vmatmul.mubr.bf16.vlgmr.msra.gmra.mrb[120].mxu0 %v30205_v9 }
 0x829   : > { %14164 = vmatmul.mubr.bf16.vlgmr.msra.gmra.mrb[120].mxu1 %v30207_v43  ;;  %22714 = vmatpush3.bf16.msra.mxu0 %v25349_v46 }
 0x82a   : > { %14484 = vmatprep.mubr.bf16.mxu0 %v14253_v11  ;;  %22736 = vmatpush3.bf16.msra.mxu1 %v25350_v60  ;;  %v25379_v11 = vld [vmem:[%s32241_s5 + $0xa40] sm:$0xff]  }
 0x82b   : > { %14524 = vmatprep.mubr.bf16.mxu1 %v14255_v51  ;;  %22715 = vmatprep.subr.bf16.mxu0 %v25351_v50  ;;  %v25378_v50 = vld [vmem:[%s32241_s5 + $0x9b8] sm:$0xff]  }
 0x82c   : > { %22737 = vmatprep.subr.bf16.mxu1 %v25352_v4  ;;  %v25380_v4 = vld [vmem:[%s32241_s5 + $0xac0] sm:$0xff]  }
 0x82d   : > { %22716 = vmatpush3.bf16.msra.mxu0 %v25353_v3 }
 0x82e   : > { %22738 = vmatpush3.bf16.msra.mxu1 %v25354_v8  ;;  %22717 = vmatprep.subr.bf16.mxu0 %v25355_v42  ;;  %v25381_v8 = vld [vmem:[%s32241_s5 + $0xa00] sm:$0xff]   ;;  %v14252_v42 = vrot.slane %v30205_v9, 2 }
 0x82f   : > { %22739 = vmatprep.subr.bf16.mxu1 %v25356_v34  ;;  %v14254_v34 = vrot.slane %v30207_v43, 2 }
 0x831   : > { %22718 = vmatpush3.bf16.msra.mxu0 %v25357_v57  ;;  %v25384_v57 = vld [vmem:[%s32241_s5 + $0xac8] sm:$0xff]  }
 0x832   : > { %22740 = vmatpush3.bf16.msra.mxu1 %v25358_v16  ;;  %22719 = vmatprep.subr.bf16.mxu0 %v25359_v54  ;;  %v14612_v16 = vrot.slane %v30217_v2, 4  ;;  %v25385_v54 = vld [vmem:[%s32241_s5 + $0xa08] sm:$0xff]  }
 0x833   : > { %22741 = vmatprep.subr.bf16.mxu1 %v25360_v10  ;;  %v25386_v10 = vld [vmem:[%s32241_s5 + $0xa88] sm:$0xff]  }
 0x835   : > { %22720 = vmatpush3.bf16.msra.mxu0 %v25361_v40  ;;  %v25387_v40 = vld [vmem:[%s32241_s5 + $0xa50] sm:$0xff]  }
 0x836   : > { %22742 = vmatpush3.bf16.msra.mxu1 %v25362_v35  ;;  %22721 = vmatprep.subr.bf16.mxu0 %v25363_v41  ;;  %v25388_v35 = vld [vmem:[%s32241_s5 + $0xad0] sm:$0xff]  }
 0x837   : > { %22743 = vmatprep.subr.bf16.mxu1 %v25364_v18  ;;  %v25389_v41 = vld [vmem:[%s32241_s5 + $0xa10] sm:$0xff]  }
 0x838   : > { %v25390_v18 = vld [vmem:[%s32241_s5 + $0xa90] sm:$0xff]  }
 0x839   : > { %22722 = vmatpush3.bf16.msra.mxu0 %v25365_v24  ;;  %v25391_v24 = vld [vmem:[%s32241_s5 + $0xa58] sm:$0xff]  }
 0x83a   : > { %22744 = vmatpush3.bf16.msra.mxu1 %v25366_v0  ;;  %22723 = vmatprep.subr.bf16.mxu0 %v25367_v6  ;;  %v25392_v0 = vld [vmem:[%s32241_s5 + $0xad8] sm:$0xff]  }
 0x83b   : > { %v22421_v23 = vpop.f32.mrb[96].mxu0  ;;  %22745 = vmatprep.subr.bf16.mxu1 %v25368_v59  ;;  %v25393_v6 = vld [vmem:[%s32241_s5 + $0xa18] sm:$0xff]  }
 0x83c   : > { %v22443_v19 = vpop.f32.mrb[96].mxu1  ;;  %v22422_v44 = vpop.f32.mrb[97].mxu0  ;;  %v25394_v59 = vld [vmem:[%s32241_s5 + $0xa98] sm:$0xff]  }
 0x83d   : > { %v22423_v36 = vadd.f32 %v22422_v44, %v22421_v23  ;;  %v22444_v63 = vpop.f32.mrb[97].mxu1  ;;  %v22424_v30 = vpop.f32.mrb[98].mxu0  ;;  %22724 = vmatpush3.bf16.msra.mxu0 %v25369_v20  ;;  %v25395_v20 = vld [vmem:[%s32241_s5 + $0xa60] sm:$0xff]   ;;  %v25401_v44 = vld [vmem:[%s32241_s5 + $0xa28] sm:$0xff]  }
 0x83e   : > { %v22445_v48 = vadd.f32 %v22444_v63, %v22443_v19  ;;  %v22446_v14 = vpop.f32.mrb[98].mxu1  ;;  %22746 = vmatpush3.bf16.msra.mxu1 %v25370_v38  ;;  %v22425_v31 = vpop.f32.mrb[99].mxu0  ;;  %22725 = vmatprep.subr.bf16.mxu0 %v25371_v39  ;;  %v25396_v38 = vld [vmem:[%s32241_s5 + $0xae0] sm:$0xff]   ;;  %v25400_v19 = vld [vmem:[%s32241_s5 + $0xae8] sm:$0xff]   ;;  %v25403_v63 = vld [vmem:[%s32241_s5 + $0xa70] sm:$0xff]  }
 0x83f   : > { %v22447_v61 = vpop.f32.mrb[99].mxu1  ;;  %22747 = vmatprep.subr.bf16.mxu1 %v25372_v25  ;;  %v25397_v39 = vld [vmem:[%s32241_s5 + $0xa20] sm:$0xff]   ;;  %v25399_v25 = vld [vmem:[%s32241_s5 + $0xa68] sm:$0xff]  }
 0x840   : > { %v12036_v47 = vadd.f32 %v22445_v48, %v22423_v36  ;;  %v25398_v23 = vld [vmem:[%s32241_s5 + $0xaa0] sm:$0xff]   ;;  %v25402_v36 = vld [vmem:[%s32241_s5 + $0xaa8] sm:$0xff]   ;;  %v25405_v61 = vld [vmem:[%s32241_s5 + $0xa30] sm:$0xff]  }
 0x841   : > { %22726 = vmatpush3.bf16.msra.mxu0 %v25373_v37  ;;  %v25404_v37 = vld [vmem:[%s32241_s5 + $0xaf0] sm:$0xff]  }
 0x842   : > { %v12042_v27 = vrot.slane %v12036_v47, 1  ;;  %v12043_v17 = vrot.slane %v12036_v47, 2  ;;  %v12044_v46 = vrot.slane %v12036_v47, 3  ;;  %v30984_v60 = vadd.f32 %v12036_v47, %v30869_v52  ;;  %22748 = vmatpush3.bf16.msra.mxu1 %v25374_v1  ;;  %22727 = vmatprep.subr.bf16.mxu0 %v25375_v22 }
 0x843   : > { %22749 = vmatprep.subr.bf16.mxu1 %v25376_v33 }
 0x844   : > { %v30996_v51 = vadd.f32 %v12042_v27, %v30881_v28  ;;  %v30999_v52 = vadd.f32 %v12043_v17, %v30884_v21  ;;  %v31002_v3 = vadd.f32 %v12044_v46, %v30887_v49  ;;  %v25382_v28 = vld [vmem:[%s32241_s5 + $0xa80] sm:$0xff]   ;;  %v25383_v21 = vld [vmem:[%s32241_s5 + $0xa48] sm:$0xff]   ;;  %v14610_v49 = vrot.slane %v30215_v53, 4  ;;  %v25406_v27 = vld [vmem:[%s32241_s5 + $0xab0] sm:$0xff]  }
 0x845   : > { %22728 = vmatpush3.bf16.msra.mxu0 %v25377_v32  ;;  %v25407_v17 = vld [vmem:[%s32241_s5 + $0xa78] sm:$0xff]  }
 0x846   : > { %22750 = vmatpush3.bf16.msra.mxu1 %v25378_v50  ;;  %22757 = vmatprep.subr.bf16.mxu0 %v25379_v11  ;;  %v25408_v50 = vld [vmem:[%s32241_s5 + $0xaf8] sm:$0xff]  }
 0x847   : > { %22779 = vmatprep.subr.bf16.mxu1 %v25380_v4  ;;  %v25409_v4 = vld [vmem:[%s32241_s5 + $0xa38] sm:$0xff]  }
 0x848   : > { %14485 = vmatmul.mubr.bf16.vlgmr.msra.gmra.mrb[124].mxu0 %v14252_v42 }
 0x849   : > { %14525 = vmatmul.mubr.bf16.vlgmr.msra.gmra.mrb[124].mxu1 %v14254_v34  ;;  %22758 = vmatpush3.bf16.msra.mxu0 %v25381_v8 }
 0x84a   : > { %14841 = vmatprep.mubr.bf16.mxu0 %v14610_v49  ;;  %22780 = vmatpush3.bf16.msra.mxu1 %v25382_v28  ;;  %v25411_v49 = vld [vmem:[%s32241_s5 + $0xb40] sm:$0xff]  }
 0x84b   : > { %14881 = vmatprep.mubr.bf16.mxu1 %v14612_v16  ;;  %22759 = vmatprep.subr.bf16.mxu0 %v25383_v21  ;;  %v25410_v21 = vld [vmem:[%s32241_s5 + $0xab8] sm:$0xff]  }
 0x84c   : > { %22781 = vmatprep.subr.bf16.mxu1 %v25384_v57  ;;  %v25412_v57 = vld [vmem:[%s32241_s5 + $0xbc0] sm:$0xff]  }
 0x84d   : > { %22760 = vmatpush3.bf16.msra.mxu0 %v25385_v54 }
 0x84e   : > { %22782 = vmatpush3.bf16.msra.mxu1 %v25386_v10  ;;  %22761 = vmatprep.subr.bf16.mxu0 %v25387_v40  ;;  %v25413_v10 = vld [vmem:[%s32241_s5 + $0xb00] sm:$0xff]   ;;  %v14609_v40 = vrot.slane %v30205_v9, 4 }
 0x84f   : > { %22783 = vmatprep.subr.bf16.mxu1 %v25388_v35  ;;  %v14611_v35 = vrot.slane %v30207_v43, 4 }
 0x851   : > { %22762 = vmatpush3.bf16.msra.mxu0 %v25389_v41  ;;  %v25416_v41 = vld [vmem:[%s32241_s5 + $0xbc8] sm:$0xff]  }
 0x852   : > { %22784 = vmatpush3.bf16.msra.mxu1 %v25390_v18  ;;  %22763 = vmatprep.subr.bf16.mxu0 %v25391_v24  ;;  %v14969_v18 = vrot.slane %v30217_v2, 6  ;;  %v25417_v24 = vld [vmem:[%s32241_s5 + $0xb08] sm:$0xff]   ;;  %v25420_v2 = vld [vmem:[%s32241_s5 + $0xbd0] sm:$0xff]  }
 0x853   : > { %22785 = vmatprep.subr.bf16.mxu1 %v25392_v0  ;;  %v25418_v0 = vld [vmem:[%s32241_s5 + $0xb88] sm:$0xff]  }
 0x855   : > { %22764 = vmatpush3.bf16.msra.mxu0 %v25393_v6  ;;  %v25421_v6 = vld [vmem:[%s32241_s5 + $0xb10] sm:$0xff]  }
 0x856   : > { %22786 = vmatpush3.bf16.msra.mxu1 %v25394_v59  ;;  %22765 = vmatprep.subr.bf16.mxu0 %v25395_v20  ;;  %v25422_v59 = vld [vmem:[%s32241_s5 + $0xb90] sm:$0xff]   ;;  %v25423_v20 = vld [vmem:[%s32241_s5 + $0xb58] sm:$0xff]  }
 0x857   : > { %22787 = vmatprep.subr.bf16.mxu1 %v25396_v38  ;;  %v25424_v38 = vld [vmem:[%s32241_s5 + $0xbd8] sm:$0xff]  }
 0x859   : > { %22766 = vmatpush3.bf16.msra.mxu0 %v25397_v39  ;;  %v25425_v39 = vld [vmem:[%s32241_s5 + $0xb18] sm:$0xff]  }
 0x85a   : > { %22788 = vmatpush3.bf16.msra.mxu1 %v25398_v23  ;;  %22767 = vmatprep.subr.bf16.mxu0 %v25399_v25  ;;  %v25426_v23 = vld [vmem:[%s32241_s5 + $0xb98] sm:$0xff]   ;;  %v25427_v25 = vld [vmem:[%s32241_s5 + $0xb60] sm:$0xff]  }
 0x85b   : > { %v22465_v30 = vpop.f32.mrb[100].mxu0  ;;  %22789 = vmatprep.subr.bf16.mxu1 %v25400_v19  ;;  %v25428_v19 = vld [vmem:[%s32241_s5 + $0xbe0] sm:$0xff]  }
 0x85c   : > { %v22487_v48 = vpop.f32.mrb[100].mxu1  ;;  %v22466_v14 = vpop.f32.mrb[101].mxu0 }
 0x85d   : > { %v22467_v31 = vadd.f32 %v22466_v14, %v22465_v30  ;;  %v22488_v1 = vpop.f32.mrb[101].mxu1  ;;  %v22468_v22 = vpop.f32.mrb[102].mxu0  ;;  %22768 = vmatpush3.bf16.msra.mxu0 %v25401_v44  ;;  %v25429_v44 = vld [vmem:[%s32241_s5 + $0xb20] sm:$0xff]   ;;  %v25432_v30 = vld [vmem:[%s32241_s5 + $0xbe8] sm:$0xff]   ;;  %v25435_v14 = vld [vmem:[%s32241_s5 + $0xb70] sm:$0xff]  }
 0x85e   : > { %v22489_v33 = vadd.f32 %v22488_v1, %v22487_v48  ;;  %v22490_v47 = vpop.f32.mrb[102].mxu1  ;;  %22790 = vmatpush3.bf16.msra.mxu1 %v25402_v36  ;;  %v22469_v32 = vpop.f32.mrb[103].mxu0  ;;  %22769 = vmatprep.subr.bf16.mxu0 %v25403_v63  ;;  %v25430_v36 = vld [vmem:[%s32241_s5 + $0xba0] sm:$0xff]   ;;  %v25431_v63 = vld [vmem:[%s32241_s5 + $0xb68] sm:$0xff]   ;;  %v25436_v1 = vld [vmem:[%s32241_s5 + $0xbf0] sm:$0xff]  }
 0x85f   : > { %v22491_v46 = vpop.f32.mrb[103].mxu1  ;;  %22791 = vmatprep.subr.bf16.mxu1 %v25404_v37  ;;  %v25433_v37 = vld [vmem:[%s32241_s5 + $0xb28] sm:$0xff]  }
 0x860   : > { %v12393_v11 = vadd.f32 %v22489_v33, %v22467_v31  ;;  %v25434_v48 = vld [vmem:[%s32241_s5 + $0xba8] sm:$0xff]  }
 0x861   : > { %22770 = vmatpush3.bf16.msra.mxu0 %v25405_v61 }
 0x862   : > { %v12399_v8 = vrot.slane %v12393_v11, 1  ;;  %v12400_v42 = vrot.slane %v12393_v11, 2  ;;  %v12401_v28 = vrot.slane %v12393_v11, 3  ;;  %v31096_v34 = vadd.f32 %v12393_v11, %v30984_v60  ;;  %22792 = vmatpush3.bf16.msra.mxu1 %v25406_v27  ;;  %22771 = vmatprep.subr.bf16.mxu0 %v25407_v17  ;;  %v25437_v27 = vld [vmem:[%s32241_s5 + $0xb30] sm:$0xff]  }
 0x863   : > { %22793 = vmatprep.subr.bf16.mxu1 %v25408_v50  ;;  %v25438_v11 = vld [vmem:[%s32241_s5 + $0xbb0] sm:$0xff]  }
 0x864   : > { %v31108_v16 = vadd.f32 %v12399_v8, %v30996_v51  ;;  %v31111_v60 = vadd.f32 %v12400_v42, %v30999_v52  ;;  %v31114_v54 = vadd.f32 %v12401_v28, %v31002_v3  ;;  %v25414_v51 = vld [vmem:[%s32241_s5 + $0xb80] sm:$0xff]   ;;  %v25415_v52 = vld [vmem:[%s32241_s5 + $0xb48] sm:$0xff]   ;;  %v14967_v3 = vrot.slane %v30215_v53, 6  ;;  %v25419_v53 = vld [vmem:[%s32241_s5 + $0xb50] sm:$0xff]  }
 0x865   : > { %22772 = vmatpush3.bf16.msra.mxu0 %v25409_v4  ;;  %v25439_v4 = vld [vmem:[%s32241_s5 + $0xb78] sm:$0xff]  }
 0x866   : > { %22794 = vmatpush3.bf16.msra.mxu1 %v25410_v21  ;;  %22801 = vmatprep.subr.bf16.mxu0 %v25411_v49  ;;  %v25440_v42 = vld [vmem:[%s32241_s5 + $0xbf8] sm:$0xff]  }
 0x867   : > { %22823 = vmatprep.subr.bf16.mxu1 %v25412_v57  ;;  %v25441_v21 = vld [vmem:[%s32241_s5 + $0xb38] sm:$0xff]  }
 0x868   : > { %14842 = vmatmul.mubr.bf16.vlgmr.msra.gmra.mrb[128].mxu0 %v14609_v40 }
 0x869   : > { %14882 = vmatmul.mubr.bf16.vlgmr.msra.gmra.mrb[128].mxu1 %v14611_v35  ;;  %22802 = vmatpush3.bf16.msra.mxu0 %v25413_v10  ;;  %v25443_v35 = vld [vmem:[%s32241_s5 + $0xc40] sm:$0xff]  }
 0x86a   : > { %15198 = vmatprep.mubr.bf16.mxu0 %v14967_v3  ;;  %22824 = vmatpush3.bf16.msra.mxu1 %v25414_v51  ;;  %v25442_v51 = vld [vmem:[%s32241_s5 + $0xbb8] sm:$0xff]  }
 0x86b   : > { %15238 = vmatprep.mubr.bf16.mxu1 %v14969_v18  ;;  %22803 = vmatprep.subr.bf16.mxu0 %v25415_v52  ;;  %v25444_v52 = vld [vmem:[%s32241_s5 + $0xcc0] sm:$0xff]  }
 0x86c   : > { %22825 = vmatprep.subr.bf16.mxu1 %v25416_v41  ;;  %v25445_v18 = vld [vmem:[%s32241_s5 + $0xc00] sm:$0xff]  }
 0x86d   : > { %22804 = vmatpush3.bf16.msra.mxu0 %v25417_v24  ;;  %v14966_v24 = vrot.slane %v30205_v9, 6  ;;  %v25449_v9 = vld [vmem:[%s32241_s5 + $0xc08] sm:$0xff]  }
 0x86e   : > { %22826 = vmatpush3.bf16.msra.mxu1 %v25418_v0  ;;  %22805 = vmatprep.subr.bf16.mxu0 %v25419_v53  ;;  %v14968_v0 = vrot.slane %v30207_v43, 6  ;;  %v25450_v43 = vld [vmem:[%s32241_s5 + $0xc88] sm:$0xff]   ;;  %v25451_v53 = vld [vmem:[%s32241_s5 + $0xc50] sm:$0xff]  }
 0x86f   : > { %22827 = vmatprep.subr.bf16.mxu1 %v25420_v2  ;;  %v25452_v2 = vld [vmem:[%s32241_s5 + $0xcd0] sm:$0xff]  }
 0x871   : > { %22806 = vmatpush3.bf16.msra.mxu0 %v25421_v6  ;;  %v25453_v6 = vld [vmem:[%s32241_s5 + $0xc10] sm:$0xff]  }
 0x872   : > { %22828 = vmatpush3.bf16.msra.mxu1 %v25422_v59  ;;  %22807 = vmatprep.subr.bf16.mxu0 %v25423_v20  ;;  %v25454_v59 = vld [vmem:[%s32241_s5 + $0xc90] sm:$0xff]   ;;  %v25455_v20 = vld [vmem:[%s32241_s5 + $0xc58] sm:$0xff]  }
 0x873   : > { %22829 = vmatprep.subr.bf16.mxu1 %v25424_v38  ;;  %v25456_v38 = vld [vmem:[%s32241_s5 + $0xcd8] sm:$0xff]  }
 0x875   : > { %22808 = vmatpush3.bf16.msra.mxu0 %v25425_v39  ;;  %v25457_v39 = vld [vmem:[%s32241_s5 + $0xc18] sm:$0xff]  }
 0x876   : > { %22830 = vmatpush3.bf16.msra.mxu1 %v25426_v23  ;;  %22809 = vmatprep.subr.bf16.mxu0 %v25427_v25  ;;  %v25458_v23 = vld [vmem:[%s32241_s5 + $0xc98] sm:$0xff]   ;;  %v25459_v25 = vld [vmem:[%s32241_s5 + $0xc60] sm:$0xff]  }
 0x877   : > { %22831 = vmatprep.subr.bf16.mxu1 %v25428_v19  ;;  %v25460_v19 = vld [vmem:[%s32241_s5 + $0xce0] sm:$0xff]  }
 0x879   : > { %22810 = vmatpush3.bf16.msra.mxu0 %v25429_v44  ;;  %v25461_v44 = vld [vmem:[%s32241_s5 + $0xc20] sm:$0xff]  }
 0x87a   : > { %22832 = vmatpush3.bf16.msra.mxu1 %v25430_v36  ;;  %22811 = vmatprep.subr.bf16.mxu0 %v25431_v63  ;;  %v25462_v36 = vld [vmem:[%s32241_s5 + $0xca0] sm:$0xff]   ;;  %v25463_v63 = vld [vmem:[%s32241_s5 + $0xc68] sm:$0xff]  }
 0x87b   : > { %v22509_v31 = vpop.f32.mrb[104].mxu0  ;;  %22833 = vmatprep.subr.bf16.mxu1 %v25432_v30  ;;  %v25464_v30 = vld [vmem:[%s32241_s5 + $0xce8] sm:$0xff]  }
 0x87c   : > { %v22531_v22 = vpop.f32.mrb[104].mxu1  ;;  %v22510_v61 = vpop.f32.mrb[105].mxu0 }
 0x87d   : > { %v22511_v33 = vadd.f32 %v22510_v61, %v22509_v31  ;;  %v22532_v47 = vpop.f32.mrb[105].mxu1  ;;  %v22512_v32 = vpop.f32.mrb[106].mxu0  ;;  %22812 = vmatpush3.bf16.msra.mxu0 %v25433_v37  ;;  %v25465_v37 = vld [vmem:[%s32241_s5 + $0xc28] sm:$0xff]  }
 0x87e   : > { %v22533_v17 = vadd.f32 %v22532_v47, %v22531_v22  ;;  %v22534_v46 = vpop.f32.mrb[106].mxu1  ;;  %22834 = vmatpush3.bf16.msra.mxu1 %v25434_v48  ;;  %v22513_v50 = vpop.f32.mrb[107].mxu0  ;;  %22813 = vmatprep.subr.bf16.mxu0 %v25435_v14  ;;  %v25466_v48 = vld [vmem:[%s32241_s5 + $0xca8] sm:$0xff]   ;;  %v25467_v14 = vld [vmem:[%s32241_s5 + $0xc70] sm:$0xff]  }
 0x87f   : > { %v22535_v8 = vpop.f32.mrb[107].mxu1  ;;  %22835 = vmatprep.subr.bf16.mxu1 %v25436_v1  ;;  %v25468_v1 = vld [vmem:[%s32241_s5 + $0xcf0] sm:$0xff]  }
 0x880   : > { %v12742_v28 = vadd.f32 %v22533_v17, %v22511_v33 }
 0x881   : > { %22814 = vmatpush3.bf16.msra.mxu0 %v25437_v27  ;;  %v25469_v27 = vld [vmem:[%s32241_s5 + $0xc30] sm:$0xff]  }
 0x882   : > { %v12748_v49 = vrot.slane %v12742_v28, 1  ;;  %v12749_v57 = vrot.slane %v12742_v28, 2  ;;  %v12750_v10 = vrot.slane %v12742_v28, 3  ;;  %v31208_v40 = vadd.f32 %v12742_v28, %v31096_v34  ;;  %22836 = vmatpush3.bf16.msra.mxu1 %v25438_v11  ;;  %22815 = vmatprep.subr.bf16.mxu0 %v25439_v4  ;;  %v25470_v11 = vld [vmem:[%s32241_s5 + $0xcb0] sm:$0xff]   ;;  %v25471_v4 = vld [vmem:[%s32241_s5 + $0xc78] sm:$0xff]  }
 0x883   : > { %22837 = vmatprep.subr.bf16.mxu1 %v25440_v42  ;;  %v25472_v42 = vld [vmem:[%s32241_s5 + $0xcf8] sm:$0xff]  }
 0x884   : > { %v31220_v3 = vadd.f32 %v12748_v49, %v31108_v16  ;;  %v31223_v34 = vadd.f32 %v12749_v57, %v31111_v60  ;;  %v31226_v41 = vadd.f32 %v12750_v10, %v31114_v54  ;;  %v25446_v16 = vld [vmem:[%s32241_s5 + $0xc80] sm:$0xff]   ;;  %v25447_v60 = vld [vmem:[%s32241_s5 + $0xc48] sm:$0xff]  }
 0x885   : > { %22816 = vmatpush3.bf16.msra.mxu0 %v25441_v21  ;;  %v25448_v54 = vld [vmem:[%s32241_s5 + $0xcc8] sm:$0xff]   ;;  %v25473_v21 = vld [vmem:[%s32241_s5 + $0xc38] sm:$0xff]  }
 0x886   : > { %22838 = vmatpush3.bf16.msra.mxu1 %v25442_v51  ;;  %22845 = vmatprep.subr.bf16.mxu0 %v25443_v35  ;;  %v25474_v35 = vld [vmem:[%s32241_s5 + $0xcb8] sm:$0xff]  }
 0x887   : > { %22867 = vmatprep.subr.bf16.mxu1 %v25444_v52  ;;  %v25475_v52 = vld [vmem:[%s32241_s5 + $0xd40] sm:$0xff]  }
 0x888   : > { %15199 = vmatmul.mubr.bf16.vlgmr.msra.gmra.mrb[132].mxu0 %v14966_v24 }
 0x889   : > { %15239 = vmatmul.mubr.bf16.vlgmr.msra.gmra.mrb[132].mxu1 %v14968_v0  ;;  %22846 = vmatpush3.bf16.msra.mxu0 %v25445_v18  ;;  %v25476_v18 = vld [vmem:[%s32241_s5 + $0xdc0] sm:$0xff]  }
 0x88a   : > { %15547 = vmatprep.mubr.bf16.mxu0 %v30245_v15  ;;  %22868 = vmatpush3.bf16.msra.mxu1 %v25446_v16  ;;  %v25477_v0 = vld [vmem:[%s32241_s5 + $0xd00] sm:$0xff]  }
 0x88b   : > { %15587 = vmatprep.mubr.bf16.mxu1 %v30247_v12  ;;  %22847 = vmatprep.subr.bf16.mxu0 %v25447_v60  ;;  %v25478_v60 = vld [vmem:[%s32241_s5 + $0xd80] sm:$0xff]  }
 0x88c   : > { %22869 = vmatprep.subr.bf16.mxu1 %v25448_v54  ;;  %v15679_v54 = vrot.slane %v30247_v12, 2 }
 0x88d   : > { %22848 = vmatpush3.bf16.msra.mxu0 %v25449_v9  ;;  %v25481_v9 = vld [vmem:[%s32241_s5 + $0xd08] sm:$0xff]  }
 0x88e   : > { %22870 = vmatpush3.bf16.msra.mxu1 %v25450_v43  ;;  %22849 = vmatprep.subr.bf16.mxu0 %v25451_v53  ;;  %v25482_v43 = vld [vmem:[%s32241_s5 + $0xd88] sm:$0xff]   ;;  %v25483_v53 = vld [vmem:[%s32241_s5 + $0xd50] sm:$0xff]  }
 0x88f   : > { %22871 = vmatprep.subr.bf16.mxu1 %v25452_v2  ;;  %v25484_v2 = vld [vmem:[%s32241_s5 + $0xdd0] sm:$0xff]  }
 0x891   : > { %22850 = vmatpush3.bf16.msra.mxu0 %v25453_v6  ;;  %v25485_v6 = vld [vmem:[%s32241_s5 + $0xd10] sm:$0xff]  }
 0x892   : > { %22872 = vmatpush3.bf16.msra.mxu1 %v25454_v59  ;;  %22851 = vmatprep.subr.bf16.mxu0 %v25455_v20  ;;  %v25486_v59 = vld [vmem:[%s32241_s5 + $0xd90] sm:$0xff]   ;;  %v25487_v20 = vld [vmem:[%s32241_s5 + $0xd58] sm:$0xff]  }
 0x893   : > { %22873 = vmatprep.subr.bf16.mxu1 %v25456_v38  ;;  %v25488_v38 = vld [vmem:[%s32241_s5 + $0xdd8] sm:$0xff]  }
 0x895   : > { %22852 = vmatpush3.bf16.msra.mxu0 %v25457_v39  ;;  %v25489_v39 = vld [vmem:[%s32241_s5 + $0xd18] sm:$0xff]  }
 0x896   : > { %22874 = vmatpush3.bf16.msra.mxu1 %v25458_v23  ;;  %22853 = vmatprep.subr.bf16.mxu0 %v25459_v25  ;;  %v25490_v23 = vld [vmem:[%s32241_s5 + $0xd98] sm:$0xff]   ;;  %v25491_v25 = vld [vmem:[%s32241_s5 + $0xd60] sm:$0xff]  }
 0x897   : > { %22875 = vmatprep.subr.bf16.mxu1 %v25460_v19  ;;  %v25492_v19 = vld [vmem:[%s32241_s5 + $0xde0] sm:$0xff]  }
 0x899   : > { %22854 = vmatpush3.bf16.msra.mxu0 %v25461_v44  ;;  %v25493_v44 = vld [vmem:[%s32241_s5 + $0xd20] sm:$0xff]  }
 0x89a   : > { %22876 = vmatpush3.bf16.msra.mxu1 %v25462_v36  ;;  %22855 = vmatprep.subr.bf16.mxu0 %v25463_v63  ;;  %v25494_v36 = vld [vmem:[%s32241_s5 + $0xda0] sm:$0xff]   ;;  %v25495_v63 = vld [vmem:[%s32241_s5 + $0xd68] sm:$0xff]  }
 0x89b   : > { %v22553_v31 = vpop.f32.mrb[108].mxu0  ;;  %22877 = vmatprep.subr.bf16.mxu1 %v25464_v30  ;;  %v25496_v30 = vld [vmem:[%s32241_s5 + $0xde8] sm:$0xff]  }
 0x89c   : > { %v22575_v22 = vpop.f32.mrb[108].mxu1  ;;  %v22554_v61 = vpop.f32.mrb[109].mxu0 }
 0x89d   : > { %v22555_v33 = vadd.f32 %v22554_v61, %v22553_v31  ;;  %v22576_v47 = vpop.f32.mrb[109].mxu1  ;;  %v22556_v32 = vpop.f32.mrb[110].mxu0  ;;  %22856 = vmatpush3.bf16.msra.mxu0 %v25465_v37  ;;  %v25497_v37 = vld [vmem:[%s32241_s5 + $0xd28] sm:$0xff]  }
 0x89e   : > { %v22577_v17 = vadd.f32 %v22576_v47, %v22575_v22  ;;  %v22578_v46 = vpop.f32.mrb[110].mxu1  ;;  %22878 = vmatpush3.bf16.msra.mxu1 %v25466_v48  ;;  %v22557_v50 = vpop.f32.mrb[111].mxu0  ;;  %22857 = vmatprep.subr.bf16.mxu0 %v25467_v14  ;;  %v25498_v48 = vld [vmem:[%s32241_s5 + $0xda8] sm:$0xff]   ;;  %v25499_v14 = vld [vmem:[%s32241_s5 + $0xd70] sm:$0xff]  }
 0x89f   : > { %v22579_v8 = vpop.f32.mrb[111].mxu1  ;;  %22879 = vmatprep.subr.bf16.mxu1 %v25468_v1  ;;  %v25500_v1 = vld [vmem:[%s32241_s5 + $0xdf0] sm:$0xff]  }
 0x8a0   : > { %v13103_v28 = vadd.f32 %v22577_v17, %v22555_v33 }
 0x8a1   : > { %22858 = vmatpush3.bf16.msra.mxu0 %v25469_v27  ;;  %v25501_v27 = vld [vmem:[%s32241_s5 + $0xd30] sm:$0xff]  }
 0x8a2   : > { %v13109_v49 = vrot.slane %v13103_v28, 1  ;;  %v13110_v57 = vrot.slane %v13103_v28, 2  ;;  %v13111_v10 = vrot.slane %v13103_v28, 3  ;;  %v31320_v51 = vadd.f32 %v13103_v28, %v31208_v40  ;;  %22880 = vmatpush3.bf16.msra.mxu1 %v25470_v11  ;;  %22859 = vmatprep.subr.bf16.mxu0 %v25471_v4  ;;  %v25502_v11 = vld [vmem:[%s32241_s5 + $0xdb0] sm:$0xff]   ;;  %v25503_v4 = vld [vmem:[%s32241_s5 + $0xd78] sm:$0xff]  }
 0x8a3   : > { %22881 = vmatprep.subr.bf16.mxu1 %v25472_v42  ;;  %v25504_v42 = vld [vmem:[%s32241_s5 + $0xdf8] sm:$0xff]  }
 0x8a4   : > { %v31332_v24 = vadd.f32 %v13109_v49, %v31220_v3  ;;  %v31335_v40 = vadd.f32 %v13110_v57, %v31223_v34  ;;  %v31338_v16 = vadd.f32 %v13111_v10, %v31226_v41  ;;  %v25479_v3 = vld [vmem:[%s32241_s5 + $0xd48] sm:$0xff]   ;;  %v15677_v34 = vrot.slane %v30245_v15, 2 }
 0x8a5   : > { %22860 = vmatpush3.bf16.msra.mxu0 %v25473_v21  ;;  %v25480_v41 = vld [vmem:[%s32241_s5 + $0xdc8] sm:$0xff]   ;;  %v25505_v21 = vld [vmem:[%s32241_s5 + $0xd38] sm:$0xff]  }
 0x8a6   : > { %22882 = vmatpush3.bf16.msra.mxu1 %v25474_v35  ;;  %22889 = vmatprep.subr.bf16.mxu0 %v25475_v52  ;;  %v25506_v52 = vld [vmem:[%s32241_s5 + $0xdb8] sm:$0xff]  }
 0x8a7   : > { %22911 = vmatprep.subr.bf16.mxu1 %v25476_v18  ;;  %v25507_v18 = vld [vmem:[%s32241_s5 + $0xe40] sm:$0xff]  }
 0x8a8   : > { %15548 = vmatmul.mubr.bf16.vlgmr.msra.gmra.mrb[136].mxu0 %v30237_v56 }
 0x8a9   : > { %15588 = vmatmul.mubr.bf16.vlgmr.msra.gmra.mrb[136].mxu1 %v30239_v7  ;;  %22890 = vmatpush3.bf16.msra.mxu0 %v25477_v0  ;;  %v25508_v0 = vld [vmem:[%s32241_s5 + $0xec0] sm:$0xff]  }
 0x8aa   : > { %15908 = vmatprep.mubr.bf16.mxu0 %v15677_v34  ;;  %22912 = vmatpush3.bf16.msra.mxu1 %v25478_v60  ;;  %v25509_v34 = vld [vmem:[%s32241_s5 + $0xe00] sm:$0xff]  }
 0x8ab   : > { %15948 = vmatprep.mubr.bf16.mxu1 %v15679_v54  ;;  %22891 = vmatprep.subr.bf16.mxu0 %v25479_v3  ;;  %v15678_v54 = vrot.slane %v30239_v7, 2 }
 0x8ac   : > { %22913 = vmatprep.subr.bf16.mxu1 %v25480_v41  ;;  %v15676_v41 = vrot.slane %v30237_v56, 2 }
 0x8ad   : > { %22892 = vmatpush3.bf16.msra.mxu0 %v25481_v9  ;;  %v25512_v9 = vld [vmem:[%s32241_s5 + $0xec8] sm:$0xff]  }
 0x8ae   : > { %22914 = vmatpush3.bf16.msra.mxu1 %v25482_v43  ;;  %22893 = vmatprep.subr.bf16.mxu0 %v25483_v53  ;;  %v16036_v43 = vrot.slane %v30247_v12, 4  ;;  %v25513_v53 = vld [vmem:[%s32241_s5 + $0xe08] sm:$0xff]  }
 0x8af   : > { %22915 = vmatprep.subr.bf16.mxu1 %v25484_v2  ;;  %v25514_v2 = vld [vmem:[%s32241_s5 + $0xe88] sm:$0xff]  }
 0x8b1   : > { %22894 = vmatpush3.bf16.msra.mxu0 %v25485_v6  ;;  %v25515_v6 = vld [vmem:[%s32241_s5 + $0xe50] sm:$0xff]  }
 0x8b2   : > { %22916 = vmatpush3.bf16.msra.mxu1 %v25486_v59  ;;  %22895 = vmatprep.subr.bf16.mxu0 %v25487_v20  ;;  %v25516_v59 = vld [vmem:[%s32241_s5 + $0xed0] sm:$0xff]  }
 0x8b3   : > { %22917 = vmatprep.subr.bf16.mxu1 %v25488_v38  ;;  %v25517_v20 = vld [vmem:[%s32241_s5 + $0xe10] sm:$0xff]  }
 0x8b4   : > { %v25518_v38 = vld [vmem:[%s32241_s5 + $0xe90] sm:$0xff]  }
 0x8b5   : > { %22896 = vmatpush3.bf16.msra.mxu0 %v25489_v39  ;;  %v25519_v39 = vld [vmem:[%s32241_s5 + $0xe58] sm:$0xff]  }
 0x8b6   : > { %22918 = vmatpush3.bf16.msra.mxu1 %v25490_v23  ;;  %22897 = vmatprep.subr.bf16.mxu0 %v25491_v25  ;;  %v25520_v23 = vld [vmem:[%s32241_s5 + $0xed8] sm:$0xff]  }
 0x8b7   : > { %22919 = vmatprep.subr.bf16.mxu1 %v25492_v19  ;;  %v25521_v25 = vld [vmem:[%s32241_s5 + $0xe18] sm:$0xff]  }
 0x8b8   : > { %v25522_v19 = vld [vmem:[%s32241_s5 + $0xe98] sm:$0xff]  }
 0x8b9   : > { %22898 = vmatpush3.bf16.msra.mxu0 %v25493_v44  ;;  %v25523_v44 = vld [vmem:[%s32241_s5 + $0xe60] sm:$0xff]  }
 0x8ba   : > { %22920 = vmatpush3.bf16.msra.mxu1 %v25494_v36  ;;  %22899 = vmatprep.subr.bf16.mxu0 %v25495_v63  ;;  %v25524_v36 = vld [vmem:[%s32241_s5 + $0xee0] sm:$0xff]  }
 0x8bb   : > { %v22597_v31 = vpop.f32.mrb[112].mxu0  ;;  %22921 = vmatprep.subr.bf16.mxu1 %v25496_v30  ;;  %v25525_v63 = vld [vmem:[%s32241_s5 + $0xe20] sm:$0xff]  }
 0x8bc   : > { %v22619_v22 = vpop.f32.mrb[112].mxu1  ;;  %v22598_v61 = vpop.f32.mrb[113].mxu0  ;;  %v25526_v30 = vld [vmem:[%s32241_s5 + $0xea0] sm:$0xff]  }
 0x8bd   : > { %v22599_v33 = vadd.f32 %v22598_v61, %v22597_v31  ;;  %v22620_v47 = vpop.f32.mrb[113].mxu1  ;;  %v22600_v32 = vpop.f32.mrb[114].mxu0  ;;  %22900 = vmatpush3.bf16.msra.mxu0 %v25497_v37  ;;  %v25527_v37 = vld [vmem:[%s32241_s5 + $0xe68] sm:$0xff]   ;;  %v25532_v61 = vld [vmem:[%s32241_s5 + $0xef0] sm:$0xff]  }
 0x8be   : > { %v22621_v17 = vadd.f32 %v22620_v47, %v22619_v22  ;;  %v22622_v46 = vpop.f32.mrb[114].mxu1  ;;  %22922 = vmatpush3.bf16.msra.mxu1 %v25498_v48  ;;  %v22601_v50 = vpop.f32.mrb[115].mxu0  ;;  %22901 = vmatprep.subr.bf16.mxu0 %v25499_v14  ;;  %v25528_v48 = vld [vmem:[%s32241_s5 + $0xee8] sm:$0xff]  }
 0x8bf   : > { %v22623_v8 = vpop.f32.mrb[115].mxu1  ;;  %22923 = vmatprep.subr.bf16.mxu1 %v25500_v1  ;;  %v25529_v14 = vld [vmem:[%s32241_s5 + $0xe28] sm:$0xff]   ;;  %v25531_v1 = vld [vmem:[%s32241_s5 + $0xe70] sm:$0xff]  }
 0x8c0   : > { %v13460_v28 = vadd.f32 %v22621_v17, %v22599_v33  ;;  %v25530_v31 = vld [vmem:[%s32241_s5 + $0xea8] sm:$0xff]   ;;  %v25533_v46 = vld [vmem:[%s32241_s5 + $0xe30] sm:$0xff]  }
 0x8c1   : > { %22902 = vmatpush3.bf16.msra.mxu0 %v25501_v27  ;;  %v25534_v8 = vld [vmem:[%s32241_s5 + $0xeb0] sm:$0xff]  }
 0x8c2   : > { %v13466_v49 = vrot.slane %v13460_v28, 1  ;;  %v13467_v57 = vrot.slane %v13460_v28, 2  ;;  %v13468_v10 = vrot.slane %v13460_v28, 3  ;;  %v31432_v35 = vadd.f32 %v13460_v28, %v31320_v51  ;;  %22924 = vmatpush3.bf16.msra.mxu1 %v25502_v11  ;;  %22903 = vmatprep.subr.bf16.mxu0 %v25503_v4 }
 0x8c3   : > { %22925 = vmatprep.subr.bf16.mxu1 %v25504_v42  ;;  %v25535_v42 = vld [vmem:[%s32241_s5 + $0xe78] sm:$0xff]  }
 0x8c4   : > { %v31444_v60 = vadd.f32 %v13466_v49, %v31332_v24  ;;  %v31447_v51 = vadd.f32 %v13467_v57, %v31335_v40  ;;  %v31450_v3 = vadd.f32 %v13468_v10, %v31338_v16  ;;  %v25510_v24 = vld [vmem:[%s32241_s5 + $0xe80] sm:$0xff]   ;;  %v25511_v40 = vld [vmem:[%s32241_s5 + $0xe48] sm:$0xff]   ;;  %v16034_v16 = vrot.slane %v30245_v15, 4  ;;  %v25537_v57 = vld [vmem:[%s32241_s5 + $0xe38] sm:$0xff]  }
 0x8c5   : > { %22904 = vmatpush3.bf16.msra.mxu0 %v25505_v21  ;;  %v25536_v21 = vld [vmem:[%s32241_s5 + $0xef8] sm:$0xff]  }
 0x8c6   : > { %22926 = vmatpush3.bf16.msra.mxu1 %v25506_v52  ;;  %22933 = vmatprep.subr.bf16.mxu0 %v25507_v18 }
 0x8c7   : > { %22955 = vmatprep.subr.bf16.mxu1 %v25508_v0 }
 0x8c8   : > { %15909 = vmatmul.mubr.bf16.vlgmr.msra.gmra.mrb[140].mxu0 %v15676_v41  ;;  %v25539_v41 = vld [vmem:[%s32241_s5 + $0xf40] sm:$0xff]  }
 0x8c9   : > { %15949 = vmatmul.mubr.bf16.vlgmr.msra.gmra.mrb[140].mxu1 %v15678_v54  ;;  %22934 = vmatpush3.bf16.msra.mxu0 %v25509_v34  ;;  %v25538_v34 = vld [vmem:[%s32241_s5 + $0xeb8] sm:$0xff]  }
 0x8ca   : > { %16265 = vmatprep.mubr.bf16.mxu0 %v16034_v16  ;;  %22956 = vmatpush3.bf16.msra.mxu1 %v25510_v24  ;;  %v25540_v24 = vld [vmem:[%s32241_s5 + $0xfc0] sm:$0xff]  }
 0x8cb   : > { %16305 = vmatprep.mubr.bf16.mxu1 %v16036_v43  ;;  %22935 = vmatprep.subr.bf16.mxu0 %v25511_v40  ;;  %v25541_v16 = vld [vmem:[%s32241_s5 + $0xf00] sm:$0xff]   ;;  %v16035_v43 = vrot.slane %v30239_v7, 4 }
 0x8cc   : > { %22957 = vmatprep.subr.bf16.mxu1 %v25512_v9  ;;  %v16033_v9 = vrot.slane %v30237_v56, 4 }
 0x8cd   : > { %22936 = vmatpush3.bf16.msra.mxu0 %v25513_v53  ;;  %v25544_v53 = vld [vmem:[%s32241_s5 + $0xfc8] sm:$0xff]  }
 0x8ce   : > { %22958 = vmatpush3.bf16.msra.mxu1 %v25514_v2  ;;  %22937 = vmatprep.subr.bf16.mxu0 %v25515_v6  ;;  %v16393_v2 = vrot.slane %v30247_v12, 6  ;;  %v25545_v6 = vld [vmem:[%s32241_s5 + $0xf08] sm:$0xff]   ;;  %v25548_v12 = vld [vmem:[%s32241_s5 + $0xfd0] sm:$0xff]  }
 0x8cf   : > { %22959 = vmatprep.subr.bf16.mxu1 %v25516_v59  ;;  %v25546_v59 = vld [vmem:[%s32241_s5 + $0xf88] sm:$0xff]  }
 0x8d1   : > { %22938 = vmatpush3.bf16.msra.mxu0 %v25517_v20  ;;  %v25549_v20 = vld [vmem:[%s32241_s5 + $0xf10] sm:$0xff]  }
 0x8d2   : > { %22960 = vmatpush3.bf16.msra.mxu1 %v25518_v38  ;;  %22939 = vmatprep.subr.bf16.mxu0 %v25519_v39  ;;  %v25550_v38 = vld [vmem:[%s32241_s5 + $0xf90] sm:$0xff]   ;;  %v25551_v39 = vld [vmem:[%s32241_s5 + $0xf58] sm:$0xff]  }
 0x8d3   : > { %22961 = vmatprep.subr.bf16.mxu1 %v25520_v23  ;;  %v25552_v23 = vld [vmem:[%s32241_s5 + $0xfd8] sm:$0xff]  }
 0x8d5   : > { %22940 = vmatpush3.bf16.msra.mxu0 %v25521_v25  ;;  %v25553_v25 = vld [vmem:[%s32241_s5 + $0xf18] sm:$0xff]  }
 0x8d6   : > { %22962 = vmatpush3.bf16.msra.mxu1 %v25522_v19  ;;  %22941 = vmatprep.subr.bf16.mxu0 %v25523_v44  ;;  %v25554_v19 = vld [vmem:[%s32241_s5 + $0xf98] sm:$0xff]   ;;  %v25555_v44 = vld [vmem:[%s32241_s5 + $0xf60] sm:$0xff]  }
 0x8d7   : > { %22963 = vmatprep.subr.bf16.mxu1 %v25524_v36  ;;  %v25556_v36 = vld [vmem:[%s32241_s5 + $0xfe0] sm:$0xff]  }
 0x8d9   : > { %22942 = vmatpush3.bf16.msra.mxu0 %v25525_v63  ;;  %v25557_v63 = vld [vmem:[%s32241_s5 + $0xf20] sm:$0xff]  }
 0x8da   : > { %22964 = vmatpush3.bf16.msra.mxu1 %v25526_v30  ;;  %22943 = vmatprep.subr.bf16.mxu0 %v25527_v37  ;;  %v25558_v30 = vld [vmem:[%s32241_s5 + $0xfa0] sm:$0xff]   ;;  %v25559_v37 = vld [vmem:[%s32241_s5 + $0xf68] sm:$0xff]  }
 0x8db   : > { %v22641_v22 = vpop.f32.mrb[116].mxu0  ;;  %22965 = vmatprep.subr.bf16.mxu1 %v25528_v48  ;;  %v25560_v48 = vld [vmem:[%s32241_s5 + $0xfe8] sm:$0xff]  }
 0x8dc   : > { %v22663_v33 = vpop.f32.mrb[116].mxu1  ;;  %v22642_v47 = vpop.f32.mrb[117].mxu0 }
 0x8dd   : > { %v22643_v32 = vadd.f32 %v22642_v47, %v22641_v22  ;;  %v22664_v27 = vpop.f32.mrb[117].mxu1  ;;  %v22644_v17 = vpop.f32.mrb[118].mxu0  ;;  %22944 = vmatpush3.bf16.msra.mxu0 %v25529_v14  ;;  %v25561_v14 = vld [vmem:[%s32241_s5 + $0xf28] sm:$0xff]  }
 0x8de   : > { %v22665_v50 = vadd.f32 %v22664_v27, %v22663_v33  ;;  %v22666_v11 = vpop.f32.mrb[118].mxu1  ;;  %22966 = vmatpush3.bf16.msra.mxu1 %v25530_v31  ;;  %v22645_v4 = vpop.f32.mrb[119].mxu0  ;;  %22945 = vmatprep.subr.bf16.mxu0 %v25531_v1  ;;  %v25562_v31 = vld [vmem:[%s32241_s5 + $0xfa8] sm:$0xff]   ;;  %v25563_v1 = vld [vmem:[%s32241_s5 + $0xf70] sm:$0xff]  }
 0x8df   : > { %v22667_v28 = vpop.f32.mrb[119].mxu1  ;;  %22967 = vmatprep.subr.bf16.mxu1 %v25532_v61  ;;  %v25564_v61 = vld [vmem:[%s32241_s5 + $0xff0] sm:$0xff]  }
 0x8e0   : > { %v13817_v49 = vadd.f32 %v22665_v50, %v22643_v32 }
 0x8e1   : > { %22946 = vmatpush3.bf16.msra.mxu0 %v25533_v46  ;;  %v25565_v46 = vld [vmem:[%s32241_s5 + $0xf30] sm:$0xff]  }
 0x8e2   : > { %v13823_v10 = vrot.slane %v13817_v49, 1  ;;  %v13824_v52 = vrot.slane %v13817_v49, 2  ;;  %v13825_v18 = vrot.slane %v13817_v49, 3  ;;  %v31544_v0 = vadd.f32 %v13817_v49, %v31432_v35  ;;  %22968 = vmatpush3.bf16.msra.mxu1 %v25534_v8  ;;  %22947 = vmatprep.subr.bf16.mxu0 %v25535_v42  ;;  %v25566_v8 = vld [vmem:[%s32241_s5 + $0xfb0] sm:$0xff]   ;;  %v25567_v42 = vld [vmem:[%s32241_s5 + $0xf78] sm:$0xff]  }
 0x8e3   : > { %22969 = vmatprep.subr.bf16.mxu1 %v25536_v21  ;;  %v25568_v21 = vld [vmem:[%s32241_s5 + $0xff8] sm:$0xff]  }
 0x8e4   : > { %v31556_v54 = vadd.f32 %v13823_v10, %v31444_v60  ;;  %v31559_v35 = vadd.f32 %v13824_v52, %v31447_v51  ;;  %v31562_v40 = vadd.f32 %v13825_v18, %v31450_v3  ;;  %v25542_v60 = vld [vmem:[%s32241_s5 + $0xf80] sm:$0xff]   ;;  %v25543_v51 = vld [vmem:[%s32241_s5 + $0xf48] sm:$0xff]   ;;  %v16391_v3 = vrot.slane %v30245_v15, 6  ;;  %v25547_v15 = vld [vmem:[%s32241_s5 + $0xf50] sm:$0xff]  }
 0x8e5   : > { %22948 = vmatpush3.bf16.msra.mxu0 %v25537_v57  ;;  %v25569_v57 = vld [vmem:[%s32241_s5 + $0xf38] sm:$0xff]  }
 0x8e6   : > { %22970 = vmatpush3.bf16.msra.mxu1 %v25538_v34  ;;  %22977 = vmatprep.subr.bf16.mxu0 %v25539_v41  ;;  %v25570_v41 = vld [vmem:[%s32241_s5 + $0xfb8] sm:$0xff]  }
 0x8e7   : > { %22999 = vmatprep.subr.bf16.mxu1 %v25540_v24  ;;  %v25571_v24 = vld [vmem:[%s32241_s5 + $0x1040] sm:$0xff]  }
 0x8e8   : > { %16266 = vmatmul.mubr.bf16.vlgmr.msra.gmra.mrb[144].mxu0 %v16033_v9 }
 0x8e9   : > { %16306 = vmatmul.mubr.bf16.vlgmr.msra.gmra.mrb[144].mxu1 %v16035_v43  ;;  %22978 = vmatpush3.bf16.msra.mxu0 %v25541_v16  ;;  %v25572_v16 = vld [vmem:[%s32241_s5 + $0x10c0] sm:$0xff]  }
 0x8ea   : > { %16622 = vmatprep.mubr.bf16.mxu0 %v16391_v3  ;;  %23000 = vmatpush3.bf16.msra.mxu1 %v25542_v60  ;;  %v25573_v43 = vld [vmem:[%s32241_s5 + $0x1000] sm:$0xff]   ;;  %v16392_v3 = vrot.slane %v30239_v7, 6  ;;  %v25578_v7 = vld [vmem:[%s32241_s5 + $0x1088] sm:$0xff]  }
 0x8eb   : > { %16662 = vmatprep.mubr.bf16.mxu1 %v16393_v2  ;;  %22979 = vmatprep.subr.bf16.mxu0 %v25543_v51  ;;  %v16390_v51 = vrot.slane %v30237_v56, 6  ;;  %v25577_v56 = vld [vmem:[%s32241_s5 + $0x1008] sm:$0xff]   ;;  %v25580_v2 = vld [vmem:[%s32241_s5 + $0x10d0] sm:$0xff]  }
 0x8ec   : > { %23001 = vmatprep.subr.bf16.mxu1 %v25544_v53  ;;  %v25579_v53 = vld [vmem:[%s32241_s5 + $0x1050] sm:$0xff]  }
 0x8ed   : > { %22980 = vmatpush3.bf16.msra.mxu0 %v25545_v6  ;;  %v25581_v6 = vld [vmem:[%s32241_s5 + $0x1010] sm:$0xff]  }
 0x8ee   : > { %23002 = vmatpush3.bf16.msra.mxu1 %v25546_v59  ;;  %22981 = vmatprep.subr.bf16.mxu0 %v25547_v15  ;;  %v25582_v59 = vld [vmem:[%s32241_s5 + $0x1090] sm:$0xff]   ;;  %v25583_v15 = vld [vmem:[%s32241_s5 + $0x1058] sm:$0xff]  }
 0x8ef   : > { %23003 = vmatprep.subr.bf16.mxu1 %v25548_v12  ;;  %v25584_v12 = vld [vmem:[%s32241_s5 + $0x10d8] sm:$0xff]  }
 0x8f1   : > { %22982 = vmatpush3.bf16.msra.mxu0 %v25549_v20  ;;  %v25585_v20 = vld [vmem:[%s32241_s5 + $0x1018] sm:$0xff]  }
 0x8f2   : > { %23004 = vmatpush3.bf16.msra.mxu1 %v25550_v38  ;;  %22983 = vmatprep.subr.bf16.mxu0 %v25551_v39  ;;  %v25586_v38 = vld [vmem:[%s32241_s5 + $0x1098] sm:$0xff]   ;;  %v25587_v39 = vld [vmem:[%s32241_s5 + $0x1060] sm:$0xff]  }
 0x8f3   : > { %23005 = vmatprep.subr.bf16.mxu1 %v25552_v23  ;;  %v25588_v23 = vld [vmem:[%s32241_s5 + $0x10e0] sm:$0xff]  }
 0x8f5   : > { %22984 = vmatpush3.bf16.msra.mxu0 %v25553_v25  ;;  %v25589_v25 = vld [vmem:[%s32241_s5 + $0x1020] sm:$0xff]  }
 0x8f6   : > { %23006 = vmatpush3.bf16.msra.mxu1 %v25554_v19  ;;  %22985 = vmatprep.subr.bf16.mxu0 %v25555_v44  ;;  %v25590_v19 = vld [vmem:[%s32241_s5 + $0x10a0] sm:$0xff]   ;;  %v25591_v44 = vld [vmem:[%s32241_s5 + $0x1068] sm:$0xff]  }
 0x8f7   : > { %23007 = vmatprep.subr.bf16.mxu1 %v25556_v36  ;;  %v25592_v36 = vld [vmem:[%s32241_s5 + $0x10e8] sm:$0xff]  }
 0x8f9   : > { %22986 = vmatpush3.bf16.msra.mxu0 %v25557_v63  ;;  %v25593_v63 = vld [vmem:[%s32241_s5 + $0x1028] sm:$0xff]  }
 0x8fa   : > { %23008 = vmatpush3.bf16.msra.mxu1 %v25558_v30  ;;  %22987 = vmatprep.subr.bf16.mxu0 %v25559_v37  ;;  %v25594_v30 = vld [vmem:[%s32241_s5 + $0x10a8] sm:$0xff]   ;;  %v25595_v37 = vld [vmem:[%s32241_s5 + $0x1070] sm:$0xff]  }
 0x8fb   : > { %v22685_v22 = vpop.f32.mrb[120].mxu0  ;;  %23009 = vmatprep.subr.bf16.mxu1 %v25560_v48 }
 0x8fc   : > { %v22707_v33 = vpop.f32.mrb[120].mxu1  ;;  %v22686_v47 = vpop.f32.mrb[121].mxu0 }
 0x8fd   : > { %v22687_v32 = vadd.f32 %v22686_v47, %v22685_v22  ;;  %v22708_v27 = vpop.f32.mrb[121].mxu1  ;;  %v22688_v17 = vpop.f32.mrb[122].mxu0  ;;  %22988 = vmatpush3.bf16.msra.mxu0 %v25561_v14  ;;  %v25596_v14 = vld [vmem:[%s32241_s5 + $0x10f0] sm:$0xff]  }
 0x8fe   : > { %v22709_v50 = vadd.f32 %v22708_v27, %v22707_v33  ;;  %v22710_v11 = vpop.f32.mrb[122].mxu1  ;;  %23010 = vmatpush3.bf16.msra.mxu1 %v25562_v31  ;;  %v22689_v4 = vpop.f32.mrb[123].mxu0  ;;  %22989 = vmatprep.subr.bf16.mxu0 %v25563_v1  ;;  %v25597_v47 = vld [vmem:[%s32241_s5 + $0x1030] sm:$0xff]  }
 0x8ff   : > { %v22711_v28 = vpop.f32.mrb[123].mxu1  ;;  %23011 = vmatprep.subr.bf16.mxu1 %v25564_v61  ;;  %v25600_v4 = vld [vmem:[%s32241_s5 + $0x10f8] sm:$0xff]  }
 0x900   : > { %v14166_v49 = vadd.f32 %v22709_v50, %v22687_v32  ;;  %v25599_v50 = vld [vmem:[%s32241_s5 + $0x1078] sm:$0xff]  }
 0x901   : > { %22990 = vmatpush3.bf16.msra.mxu0 %v25565_v46  ;;  %v25598_v46 = vld [vmem:[%s32241_s5 + $0x10b0] sm:$0xff]  }
 0x902   : > { %v14172_v10 = vrot.slane %v14166_v49, 1  ;;  %v14173_v52 = vrot.slane %v14166_v49, 2  ;;  %v14174_v18 = vrot.slane %v14166_v49, 3  ;;  %v31656_v34 = vadd.f32 %v14166_v49, %v31544_v0  ;;  %23012 = vmatpush3.bf16.msra.mxu1 %v25566_v8  ;;  %22991 = vmatprep.subr.bf16.mxu0 %v25567_v42  ;;  %v25601_v42 = vld [vmem:[%s32241_s5 + $0x1038] sm:$0xff]  }
 0x903   : > { %23013 = vmatprep.subr.bf16.mxu1 %v25568_v21 }
 0x904   : > { %v31668_v9 = vadd.f32 %v14172_v10, %v31556_v54  ;;  %v31671_v0 = vadd.f32 %v14173_v52, %v31559_v35  ;;  %v31674_v60 = vadd.f32 %v14174_v18, %v31562_v40  ;;  %v25574_v54 = vld [vmem:[%s32241_s5 + $0x1080] sm:$0xff]   ;;  %v25575_v35 = vld [vmem:[%s32241_s5 + $0x1048] sm:$0xff]   ;;  %v25602_v10 = vld [vmem:[%s32241_s5 + $0x10b8] sm:$0xff]  }
 0x905   : > { %22992 = vmatpush3.bf16.msra.mxu0 %v25569_v57  ;;  %v25576_v40 = vld [vmem:[%s32241_s5 + $0x10c8] sm:$0xff]   ;;  %v25603_v52 = vld [vmem:[%s32241_s5 + $0x1140] sm:$0xff]  }
 0x906   : > { %23014 = vmatpush3.bf16.msra.mxu1 %v25570_v41  ;;  %23021 = vmatprep.subr.bf16.mxu0 %v25571_v24  ;;  %v25604_v18 = vld [vmem:[%s32241_s5 + $0x11c0] sm:$0xff]  }
 0x907   : > { %23043 = vmatprep.subr.bf16.mxu1 %v25572_v16  ;;  %v25605_v16 = vld [vmem:[%s32241_s5 + $0x1100] sm:$0xff]  }
 0x908   : > { %16623 = vmatmul.mubr.bf16.vlgmr.msra.gmra.mrb[148].mxu0 %v16390_v51  ;;  %v17103_v51 = vrot.slane %v30288_v58, 2 }
 0x909   : > { %16663 = vmatmul.mubr.bf16.vlgmr.msra.gmra.mrb[148].mxu1 %v16392_v3  ;;  %23022 = vmatpush3.bf16.msra.mxu0 %v25573_v43  ;;  %v25606_v43 = vld [vmem:[%s32241_s5 + $0x1180] sm:$0xff]   ;;  %v25610_v3 = vld [vmem:[%s32241_s5 + $0x1188] sm:$0xff]  }
 0x90a   : > { %16971 = vmatprep.mubr.bf16.mxu0 %v30286_v26  ;;  %23044 = vmatpush3.bf16.msra.mxu1 %v25574_v54  ;;  %v25609_v54 = vld [vmem:[%s32241_s5 + $0x1108] sm:$0xff]  }
 0x90b   : > { %17011 = vmatprep.mubr.bf16.mxu1 %v30288_v58  ;;  %23023 = vmatprep.subr.bf16.mxu0 %v25575_v35  ;;  %v25611_v35 = vld [vmem:[%s32241_s5 + $0x1150] sm:$0xff]  }
 0x90c   : > { %23045 = vmatprep.subr.bf16.mxu1 %v25576_v40  ;;  %v25612_v40 = vld [vmem:[%s32241_s5 + $0x11d0] sm:$0xff]  }
 0x90d   : > { %23024 = vmatpush3.bf16.msra.mxu0 %v25577_v56  ;;  %v25613_v56 = vld [vmem:[%s32241_s5 + $0x1110] sm:$0xff]  }
 0x90e   : > { %23046 = vmatpush3.bf16.msra.mxu1 %v25578_v7  ;;  %23025 = vmatprep.subr.bf16.mxu0 %v25579_v53  ;;  %v25614_v7 = vld [vmem:[%s32241_s5 + $0x1190] sm:$0xff]   ;;  %v25615_v53 = vld [vmem:[%s32241_s5 + $0x1158] sm:$0xff]  }
 0x90f   : > { %23047 = vmatprep.subr.bf16.mxu1 %v25580_v2  ;;  %v25616_v2 = vld [vmem:[%s32241_s5 + $0x11d8] sm:$0xff]  }
 0x911   : > { %23026 = vmatpush3.bf16.msra.mxu0 %v25581_v6  ;;  %v25617_v6 = vld [vmem:[%s32241_s5 + $0x1118] sm:$0xff]  }
 0x912   : > { %23048 = vmatpush3.bf16.msra.mxu1 %v25582_v59  ;;  %23027 = vmatprep.subr.bf16.mxu0 %v25583_v15  ;;  %v25618_v59 = vld [vmem:[%s32241_s5 + $0x1198] sm:$0xff]   ;;  %v25619_v15 = vld [vmem:[%s32241_s5 + $0x1160] sm:$0xff]  }
 0x913   : > { %23049 = vmatprep.subr.bf16.mxu1 %v25584_v12  ;;  %v25620_v12 = vld [vmem:[%s32241_s5 + $0x11e0] sm:$0xff]  }
 0x915   : > { %23028 = vmatpush3.bf16.msra.mxu0 %v25585_v20  ;;  %v25621_v20 = vld [vmem:[%s32241_s5 + $0x1120] sm:$0xff]  }
 0x916   : > { %23050 = vmatpush3.bf16.msra.mxu1 %v25586_v38  ;;  %23029 = vmatprep.subr.bf16.mxu0 %v25587_v39  ;;  %v25622_v38 = vld [vmem:[%s32241_s5 + $0x11a0] sm:$0xff]   ;;  %v25623_v39 = vld [vmem:[%s32241_s5 + $0x1168] sm:$0xff]  }
 0x917   : > { %23051 = vmatprep.subr.bf16.mxu1 %v25588_v23  ;;  %v25624_v23 = vld [vmem:[%s32241_s5 + $0x11e8] sm:$0xff]  }
 0x919   : > { %23030 = vmatpush3.bf16.msra.mxu0 %v25589_v25  ;;  %v25625_v25 = vld [vmem:[%s32241_s5 + $0x1128] sm:$0xff]  }
 0x91a   : > { %23052 = vmatpush3.bf16.msra.mxu1 %v25590_v19  ;;  %23031 = vmatprep.subr.bf16.mxu0 %v25591_v44  ;;  %v25626_v19 = vld [vmem:[%s32241_s5 + $0x11a8] sm:$0xff]   ;;  %v25627_v44 = vld [vmem:[%s32241_s5 + $0x1170] sm:$0xff]  }
 0x91b   : > { %v22729_v48 = vpop.f32.mrb[124].mxu0  ;;  %23053 = vmatprep.subr.bf16.mxu1 %v25592_v36 }
 0x91c   : > { %v22751_v31 = vpop.f32.mrb[124].mxu1  ;;  %v22730_v1 = vpop.f32.mrb[125].mxu0 }
 0x91d   : > { %v22731_v22 = vadd.f32 %v22730_v1, %v22729_v48  ;;  %v22752_v61 = vpop.f32.mrb[125].mxu1  ;;  %v22732_v33 = vpop.f32.mrb[126].mxu0  ;;  %23032 = vmatpush3.bf16.msra.mxu0 %v25593_v63  ;;  %v25628_v63 = vld [vmem:[%s32241_s5 + $0x11f0] sm:$0xff]  }
 0x91e   : > { %v22753_v32 = vadd.f32 %v22752_v61, %v22751_v31  ;;  %v22754_v27 = vpop.f32.mrb[126].mxu1  ;;  %23054 = vmatpush3.bf16.msra.mxu1 %v25594_v30  ;;  %v22733_v17 = vpop.f32.mrb[127].mxu0  ;;  %23033 = vmatprep.subr.bf16.mxu0 %v25595_v37  ;;  %v25629_v1 = vld [vmem:[%s32241_s5 + $0x1130] sm:$0xff]  }
 0x91f   : > { %v22755_v11 = vpop.f32.mrb[127].mxu1  ;;  %23055 = vmatprep.subr.bf16.mxu1 %v25596_v14  ;;  %v25632_v17 = vld [vmem:[%s32241_s5 + $0x11f8] sm:$0xff]  }
 0x920   : > { %v14527_v8 = vadd.f32 %v22753_v32, %v22731_v22  ;;  %v25631_v32 = vld [vmem:[%s32241_s5 + $0x1178] sm:$0xff]  }
 0x921   : > { %23034 = vmatpush3.bf16.msra.mxu0 %v25597_v47  ;;  %v25630_v47 = vld [vmem:[%s32241_s5 + $0x11b0] sm:$0xff]  }
 0x922   : > { %v14533_v28 = vrot.slane %v14527_v8, 1  ;;  %v14534_v21 = vrot.slane %v14527_v8, 2  ;;  %v14535_v49 = vrot.slane %v14527_v8, 3  ;;  %v31768_v57 = vadd.f32 %v14527_v8, %v31656_v34  ;;  %23056 = vmatpush3.bf16.msra.mxu1 %v25598_v46  ;;  %23035 = vmatprep.subr.bf16.mxu0 %v25599_v50  ;;  %v25633_v50 = vld [vmem:[%s32241_s5 + $0x1138] sm:$0xff]  }
 0x923   : > { %23057 = vmatprep.subr.bf16.mxu1 %v25600_v4 }
 0x924   : > { %v31780_v41 = vadd.f32 %v14533_v28, %v31668_v9  ;;  %v31783_v34 = vadd.f32 %v14534_v21, %v31671_v0  ;;  %v31786_v24 = vadd.f32 %v14535_v49, %v31674_v60  ;;  %v25607_v9 = vld [vmem:[%s32241_s5 + $0x1148] sm:$0xff]   ;;  %v17101_v0 = vrot.slane %v30286_v26, 2  ;;  %v25634_v28 = vld [vmem:[%s32241_s5 + $0x11b8] sm:$0xff]   ;;  %v25635_v21 = vld [vmem:[%s32241_s5 + $0x1240] sm:$0xff]  }
 0x925   : > { %23036 = vmatpush3.bf16.msra.mxu0 %v25601_v42  ;;  %v25608_v60 = vld [vmem:[%s32241_s5 + $0x11c8] sm:$0xff]   ;;  %v25636_v49 = vld [vmem:[%s32241_s5 + $0x12c0] sm:$0xff]  }
 0x926   : > { %23058 = vmatpush3.bf16.msra.mxu1 %v25602_v10  ;;  %23065 = vmatprep.subr.bf16.mxu0 %v25603_v52 }
 0x927   : > { %23087 = vmatprep.subr.bf16.mxu1 %v25604_v18  ;;  %v25637_v18 = vld [vmem:[%s32241_s5 + $0x1200] sm:$0xff]  }
 0x928   : > { %16972 = vmatmul.mubr.bf16.vlgmr.msra.gmra.mrb[152].mxu0 %v30279_v62 }
 0x929   : > { %17012 = vmatmul.mubr.bf16.vlgmr.msra.gmra.mrb[152].mxu1 %v30281_v45  ;;  %23066 = vmatpush3.bf16.msra.mxu0 %v25605_v16  ;;  %v17100_v16 = vrot.slane %v30279_v62, 2 }
 0x92a   : > { %17332 = vmatprep.mubr.bf16.mxu0 %v17101_v0  ;;  %23088 = vmatpush3.bf16.msra.mxu1 %v25606_v43  ;;  %v17102_v43 = vrot.slane %v30281_v45, 2  ;;  %v17460_v0 = vrot.slane %v30288_v58, 4 }
 0x92b   : > { %17372 = vmatprep.mubr.bf16.mxu1 %v17103_v51  ;;  %23067 = vmatprep.subr.bf16.mxu0 %v25607_v9  ;;  %v25640_v9 = vld [vmem:[%s32241_s5 + $0x12c8] sm:$0xff]  }
 0x92c   : > { %23089 = vmatprep.subr.bf16.mxu1 %v25608_v60  ;;  %v25641_v60 = vld [vmem:[%s32241_s5 + $0x1208] sm:$0xff]  }
 0x92d   : > { %23068 = vmatpush3.bf16.msra.mxu0 %v25609_v54  ;;  %v25642_v51 = vld [vmem:[%s32241_s5 + $0x1288] sm:$0xff]   ;;  %v25643_v54 = vld [vmem:[%s32241_s5 + $0x1250] sm:$0xff]  }
 0x92e   : > { %23090 = vmatpush3.bf16.msra.mxu1 %v25610_v3  ;;  %23069 = vmatprep.subr.bf16.mxu0 %v25611_v35  ;;  %v25644_v3 = vld [vmem:[%s32241_s5 + $0x12d0] sm:$0xff]  }
 0x92f   : > { %23091 = vmatprep.subr.bf16.mxu1 %v25612_v40  ;;  %v25645_v35 = vld [vmem:[%s32241_s5 + $0x1210] sm:$0xff]  }
 0x930   : > { %v25646_v40 = vld [vmem:[%s32241_s5 + $0x1290] sm:$0xff]  }
 0x931   : > { %23070 = vmatpush3.bf16.msra.mxu0 %v25613_v56  ;;  %v25647_v56 = vld [vmem:[%s32241_s5 + $0x1258] sm:$0xff]  }
 0x932   : > { %23092 = vmatpush3.bf16.msra.mxu1 %v25614_v7  ;;  %23071 = vmatprep.subr.bf16.mxu0 %v25615_v53  ;;  %v25648_v7 = vld [vmem:[%s32241_s5 + $0x12d8] sm:$0xff]  }
 0x933   : > { %23093 = vmatprep.subr.bf16.mxu1 %v25616_v2  ;;  %v25649_v53 = vld [vmem:[%s32241_s5 + $0x1218] sm:$0xff]  }
 0x934   : > { %v25650_v2 = vld [vmem:[%s32241_s5 + $0x1298] sm:$0xff]  }
 0x935   : > { %23072 = vmatpush3.bf16.msra.mxu0 %v25617_v6  ;;  %v25651_v6 = vld [vmem:[%s32241_s5 + $0x1260] sm:$0xff]  }
 0x936   : > { %23094 = vmatpush3.bf16.msra.mxu1 %v25618_v59  ;;  %23073 = vmatprep.subr.bf16.mxu0 %v25619_v15  ;;  %v25652_v59 = vld [vmem:[%s32241_s5 + $0x12e0] sm:$0xff]  }
 0x937   : > { %23095 = vmatprep.subr.bf16.mxu1 %v25620_v12  ;;  %v25653_v15 = vld [vmem:[%s32241_s5 + $0x1220] sm:$0xff]  }
 0x938   : > { %v25654_v12 = vld [vmem:[%s32241_s5 + $0x12a0] sm:$0xff]  }
 0x939   : > { %23074 = vmatpush3.bf16.msra.mxu0 %v25621_v20  ;;  %v25655_v20 = vld [vmem:[%s32241_s5 + $0x1268] sm:$0xff]  }
 0x93a   : > { %23096 = vmatpush3.bf16.msra.mxu1 %v25622_v38  ;;  %23075 = vmatprep.subr.bf16.mxu0 %v25623_v39  ;;  %v25656_v38 = vld [vmem:[%s32241_s5 + $0x12e8] sm:$0xff]  }
 0x93b   : > { %v22773_v36 = vpop.f32.mrb[128].mxu0  ;;  %23097 = vmatprep.subr.bf16.mxu1 %v25624_v23  ;;  %v25657_v39 = vld [vmem:[%s32241_s5 + $0x1228] sm:$0xff]  }
 0x93c   : > { %v22795_v30 = vpop.f32.mrb[128].mxu1  ;;  %v22774_v37 = vpop.f32.mrb[129].mxu0  ;;  %v25658_v23 = vld [vmem:[%s32241_s5 + $0x12a8] sm:$0xff]  }
 0x93d   : > { %v22775_v48 = vadd.f32 %v22774_v37, %v22773_v36  ;;  %v22796_v14 = vpop.f32.mrb[129].mxu1  ;;  %v22776_v31 = vpop.f32.mrb[130].mxu0  ;;  %23076 = vmatpush3.bf16.msra.mxu0 %v25625_v25  ;;  %v25659_v25 = vld [vmem:[%s32241_s5 + $0x1270] sm:$0xff]  }
 0x93e   : > { %v22797_v22 = vadd.f32 %v22796_v14, %v22795_v30  ;;  %v22798_v61 = vpop.f32.mrb[130].mxu1  ;;  %23098 = vmatpush3.bf16.msra.mxu1 %v25626_v19  ;;  %v22777_v33 = vpop.f32.mrb[131].mxu0  ;;  %23077 = vmatprep.subr.bf16.mxu0 %v25627_v44  ;;  %v25660_v44 = vld [vmem:[%s32241_s5 + $0x12f0] sm:$0xff]  }
 0x93f   : > { %v22799_v27 = vpop.f32.mrb[131].mxu1  ;;  %23099 = vmatprep.subr.bf16.mxu1 %v25628_v63  ;;  %v25661_v14 = vld [vmem:[%s32241_s5 + $0x1230] sm:$0xff]   ;;  %v25663_v33 = vld [vmem:[%s32241_s5 + $0x1278] sm:$0xff]  }
 0x940   : > { %v14884_v46 = vadd.f32 %v22797_v22, %v22775_v48  ;;  %v25662_v61 = vld [vmem:[%s32241_s5 + $0x12b0] sm:$0xff]  }
 0x941   : > { %23078 = vmatpush3.bf16.msra.mxu0 %v25629_v1 }
 0x942   : > { %v14890_v11 = vrot.slane %v14884_v46, 1  ;;  %v14891_v4 = vrot.slane %v14884_v46, 2  ;;  %v14892_v8 = vrot.slane %v14884_v46, 3  ;;  %v31880_v42 = vadd.f32 %v14884_v46, %v31768_v57  ;;  %23100 = vmatpush3.bf16.msra.mxu1 %v25630_v47  ;;  %23079 = vmatprep.subr.bf16.mxu0 %v25631_v32  ;;  %v25664_v32 = vld [vmem:[%s32241_s5 + $0x12f8] sm:$0xff]  }
 0x943   : > { %23101 = vmatprep.subr.bf16.mxu1 %v25632_v17  ;;  %v25665_v17 = vld [vmem:[%s32241_s5 + $0x1238] sm:$0xff]  }
 0x944   : > { %v31892_v10 = vadd.f32 %v14890_v11, %v31780_v41  ;;  %v31895_v57 = vadd.f32 %v14891_v4, %v31783_v34  ;;  %v31898_v52 = vadd.f32 %v14892_v8, %v31786_v24  ;;  %v25638_v41 = vld [vmem:[%s32241_s5 + $0x1280] sm:$0xff]   ;;  %v25639_v34 = vld [vmem:[%s32241_s5 + $0x1248] sm:$0xff]   ;;  %v17458_v24 = vrot.slane %v30286_v26, 4  ;;  %v25666_v8 = vld [vmem:[%s32241_s5 + $0x12b8] sm:$0xff]  }
 0x945   : > { %23080 = vmatpush3.bf16.msra.mxu0 %v25633_v50 }
 0x946   : > { %23102 = vmatpush3.bf16.msra.mxu1 %v25634_v28  ;;  %23109 = vmatprep.subr.bf16.mxu0 %v25635_v21  ;;  %v25667_v28 = vld [vmem:[%s32241_s5 + $0x1340] sm:$0xff]  }
 0x947   : > { %23131 = vmatprep.subr.bf16.mxu1 %v25636_v49  ;;  %v25668_v21 = vld [vmem:[%s32241_s5 + $0x13c0] sm:$0xff]  }
 0x948   : > { %17333 = vmatmul.mubr.bf16.vlgmr.msra.gmra.mrb[156].mxu0 %v17100_v16  ;;  %v25669_v16 = vld [vmem:[%s32241_s5 + $0x1300] sm:$0xff]  }
 0x949   : > { %17373 = vmatmul.mubr.bf16.vlgmr.msra.gmra.mrb[156].mxu1 %v17102_v43  ;;  %23110 = vmatpush3.bf16.msra.mxu0 %v25637_v18  ;;  %v17459_v43 = vrot.slane %v30281_v45, 4 }
 0x94a   : > { %17689 = vmatprep.mubr.bf16.mxu0 %v17458_v24  ;;  %23132 = vmatpush3.bf16.msra.mxu1 %v25638_v41  ;;  %v17457_v41 = vrot.slane %v30279_v62, 4  ;;  %v17817_v24 = vrot.slane %v30288_v58, 6  ;;  %v25676_v58 = vld [vmem:[%s32241_s5 + $0x13d0] sm:$0xff]  }
 0x94b   : > { %17729 = vmatprep.mubr.bf16.mxu1 %v17460_v0  ;;  %23111 = vmatprep.subr.bf16.mxu0 %v25639_v34  ;;  %v25672_v34 = vld [vmem:[%s32241_s5 + $0x13c8] sm:$0xff]  }
 0x94c   : > { %23133 = vmatprep.subr.bf16.mxu1 %v25640_v9  ;;  %v25673_v9 = vld [vmem:[%s32241_s5 + $0x1308] sm:$0xff]  }
 0x94d   : > { %23112 = vmatpush3.bf16.msra.mxu0 %v25641_v60  ;;  %v25674_v0 = vld [vmem:[%s32241_s5 + $0x1388] sm:$0xff]   ;;  %v25677_v60 = vld [vmem:[%s32241_s5 + $0x1310] sm:$0xff]  }
 0x94e   : > { %23134 = vmatpush3.bf16.msra.mxu1 %v25642_v51  ;;  %23113 = vmatprep.subr.bf16.mxu0 %v25643_v54  ;;  %v25678_v51 = vld [vmem:[%s32241_s5 + $0x1390] sm:$0xff]   ;;  %v25679_v54 = vld [vmem:[%s32241_s5 + $0x1358] sm:$0xff]  }
 0x94f   : > { %23135 = vmatprep.subr.bf16.mxu1 %v25644_v3  ;;  %v25680_v3 = vld [vmem:[%s32241_s5 + $0x13d8] sm:$0xff]  }
 0x951   : > { %23114 = vmatpush3.bf16.msra.mxu0 %v25645_v35  ;;  %v25681_v35 = vld [vmem:[%s32241_s5 + $0x1318] sm:$0xff]  }
 0x952   : > { %23136 = vmatpush3.bf16.msra.mxu1 %v25646_v40  ;;  %23115 = vmatprep.subr.bf16.mxu0 %v25647_v56  ;;  %v25682_v40 = vld [vmem:[%s32241_s5 + $0x1398] sm:$0xff]   ;;  %v25683_v56 = vld [vmem:[%s32241_s5 + $0x1360] sm:$0xff]  }
 0x953   : > { %23137 = vmatprep.subr.bf16.mxu1 %v25648_v7  ;;  %v25684_v7 = vld [vmem:[%s32241_s5 + $0x13e0] sm:$0xff]  }
 0x955   : > { %23116 = vmatpush3.bf16.msra.mxu0 %v25649_v53  ;;  %v25685_v53 = vld [vmem:[%s32241_s5 + $0x1320] sm:$0xff]  }
 0x956   : > { %23138 = vmatpush3.bf16.msra.mxu1 %v25650_v2  ;;  %23117 = vmatprep.subr.bf16.mxu0 %v25651_v6  ;;  %v25686_v2 = vld [vmem:[%s32241_s5 + $0x13a0] sm:$0xff]   ;;  %v25687_v6 = vld [vmem:[%s32241_s5 + $0x1368] sm:$0xff]  }
 0x957   : > { %23139 = vmatprep.subr.bf16.mxu1 %v25652_v59  ;;  %v25688_v59 = vld [vmem:[%s32241_s5 + $0x13e8] sm:$0xff]  }
 0x959   : > { %23118 = vmatpush3.bf16.msra.mxu0 %v25653_v15  ;;  %v25689_v15 = vld [vmem:[%s32241_s5 + $0x1328] sm:$0xff]  }
 0x95a   : > { %23140 = vmatpush3.bf16.msra.mxu1 %v25654_v12  ;;  %23119 = vmatprep.subr.bf16.mxu0 %v25655_v20  ;;  %v25690_v12 = vld [vmem:[%s32241_s5 + $0x13a8] sm:$0xff]   ;;  %v25691_v20 = vld [vmem:[%s32241_s5 + $0x1370] sm:$0xff]  }
 0x95b   : > { %v22817_v19 = vpop.f32.mrb[132].mxu0  ;;  %23141 = vmatprep.subr.bf16.mxu1 %v25656_v38 }
 0x95c   : > { %v22839_v36 = vpop.f32.mrb[132].mxu1  ;;  %v22818_v63 = vpop.f32.mrb[133].mxu0 }
 0x95d   : > { %v22819_v30 = vadd.f32 %v22818_v63, %v22817_v19  ;;  %v22840_v37 = vpop.f32.mrb[133].mxu1  ;;  %v22820_v48 = vpop.f32.mrb[134].mxu0  ;;  %23120 = vmatpush3.bf16.msra.mxu0 %v25657_v39  ;;  %v25692_v39 = vld [vmem:[%s32241_s5 + $0x13f0] sm:$0xff]  }
 0x95e   : > { %v22841_v31 = vadd.f32 %v22840_v37, %v22839_v36  ;;  %v22842_v1 = vpop.f32.mrb[134].mxu1  ;;  %23142 = vmatpush3.bf16.msra.mxu1 %v25658_v23  ;;  %v22821_v22 = vpop.f32.mrb[135].mxu0  ;;  %23121 = vmatprep.subr.bf16.mxu0 %v25659_v25  ;;  %v25693_v63 = vld [vmem:[%s32241_s5 + $0x1330] sm:$0xff]  }
 0x95f   : > { %v22843_v47 = vpop.f32.mrb[135].mxu1  ;;  %23143 = vmatprep.subr.bf16.mxu1 %v25660_v44  ;;  %v25696_v22 = vld [vmem:[%s32241_s5 + $0x13f8] sm:$0xff]  }
 0x960   : > { %v15241_v27 = vadd.f32 %v22841_v31, %v22819_v30  ;;  %v25695_v31 = vld [vmem:[%s32241_s5 + $0x1378] sm:$0xff]  }
 0x961   : > { %23122 = vmatpush3.bf16.msra.mxu0 %v25661_v14  ;;  %v25694_v14 = vld [vmem:[%s32241_s5 + $0x13b0] sm:$0xff]  }
 0x962   : > { %v15247_v46 = vrot.slane %v15241_v27, 1  ;;  %v15248_v50 = vrot.slane %v15241_v27, 2  ;;  %v15249_v11 = vrot.slane %v15241_v27, 3  ;;  %v31992_v4 = vadd.f32 %v15241_v27, %v31880_v42  ;;  %23144 = vmatpush3.bf16.msra.mxu1 %v25662_v61  ;;  %23123 = vmatprep.subr.bf16.mxu0 %v25663_v33  ;;  %v25697_v33 = vld [vmem:[%s32241_s5 + $0x1338] sm:$0xff]  }
 0x963   : > { %23145 = vmatprep.subr.bf16.mxu1 %v25664_v32 }
 0x964   : > { %v32004_v49 = vadd.f32 %v15247_v46, %v31892_v10  ;;  %v32007_v42 = vadd.f32 %v15248_v50, %v31895_v57  ;;  %v32010_v18 = vadd.f32 %v15249_v11, %v31898_v52  ;;  %v25670_v10 = vld [vmem:[%s32241_s5 + $0x1380] sm:$0xff]   ;;  %v25671_v57 = vld [vmem:[%s32241_s5 + $0x1348] sm:$0xff]   ;;  %v17815_v52 = vrot.slane %v30286_v26, 6  ;;  %v25675_v26 = vld [vmem:[%s32241_s5 + $0x1350] sm:$0xff]  }
 0x965   : > { %23124 = vmatpush3.bf16.msra.mxu0 %v25665_v17  ;;  %v25698_v46 = vld [vmem:[%s32241_s5 + $0x13b8] sm:$0xff]   ;;  %v25699_v50 = vld [vmem:[%s32241_s5 + $0x1440] sm:$0xff]  }
 0x966   : > { %23146 = vmatpush3.bf16.msra.mxu1 %v25666_v8  ;;  %23153 = vmatprep.subr.bf16.mxu0 %v25667_v28  ;;  %v25700_v11 = vld [vmem:[%s32241_s5 + $0x14c0] sm:$0xff]  }
 0x967   : > { %23175 = vmatprep.subr.bf16.mxu1 %v25668_v21  ;;  %v25701_v21 = vld [vmem:[%s32241_s5 + $0x1400] sm:$0xff]  }
 0x968   : > { %17690 = vmatmul.mubr.bf16.vlgmr.msra.gmra.mrb[160].mxu0 %v17457_v41  ;;  %v17816_v41 = vrot.slane %v30281_v45, 6  ;;  %v25705_v45 = vld [vmem:[%s32241_s5 + $0x1408] sm:$0xff]  }
 0x969   : > { %17730 = vmatmul.mubr.bf16.vlgmr.msra.gmra.mrb[160].mxu1 %v17459_v43  ;;  %23154 = vmatpush3.bf16.msra.mxu0 %v25669_v16  ;;  %v17814_v16 = vrot.slane %v30279_v62, 6  ;;  %v25704_v62 = vld [vmem:[%s32241_s5 + $0x14c8] sm:$0xff]   ;;  %v25707_v43 = vld [vmem:[%s32241_s5 + $0x1450] sm:$0xff]  }
 0x96a   : > { %18046 = vmatprep.mubr.bf16.mxu0 %v17815_v52  ;;  %23176 = vmatpush3.bf16.msra.mxu1 %v25670_v10  ;;  %v10973_v10 = vpack.c.bf16 %v30317_v55, %v30317_v55  ;;  %v25708_v55 = vld [vmem:[%s32241_s5 + $0x14d0] sm:$0xff]  }
 0x96b   : > { %18086 = vmatprep.mubr.bf16.mxu1 %v17817_v24  ;;  %23155 = vmatprep.subr.bf16.mxu0 %v25671_v57  ;;  %v25709_v57 = vld [vmem:[%s32241_s5 + $0x1410] sm:$0xff]   ;;  %v25712_v24 = vld [vmem:[%s32241_s5 + $0x14d8] sm:$0xff]  }
 0x96c   : > { %23177 = vmatprep.subr.bf16.mxu1 %v25672_v34  ;;  %v25710_v52 = vld [vmem:[%s32241_s5 + $0x1490] sm:$0xff]   ;;  %v25711_v34 = vld [vmem:[%s32241_s5 + $0x1458] sm:$0xff]  }
 0x96d   : > { %23156 = vmatpush3.bf16.msra.mxu0 %v25673_v9  ;;  %v25713_v9 = vld [vmem:[%s32241_s5 + $0x1418] sm:$0xff]  }
 0x96e   : > { %23178 = vmatpush3.bf16.msra.mxu1 %v25674_v0  ;;  %23157 = vmatprep.subr.bf16.mxu0 %v25675_v26  ;;  %v25714_v0 = vld [vmem:[%s32241_s5 + $0x1498] sm:$0xff]   ;;  %v25715_v26 = vld [vmem:[%s32241_s5 + $0x1460] sm:$0xff]  }
 0x96f   : > { %23179 = vmatprep.subr.bf16.mxu1 %v25676_v58  ;;  %v25716_v58 = vld [vmem:[%s32241_s5 + $0x14e0] sm:$0xff]  }
 0x971   : > { %23158 = vmatpush3.bf16.msra.mxu0 %v25677_v60  ;;  %v25717_v60 = vld [vmem:[%s32241_s5 + $0x1420] sm:$0xff]  }
 0x972   : > { %23180 = vmatpush3.bf16.msra.mxu1 %v25678_v51  ;;  %23159 = vmatprep.subr.bf16.mxu0 %v25679_v54  ;;  %v25718_v51 = vld [vmem:[%s32241_s5 + $0x14a0] sm:$0xff]   ;;  %v25719_v54 = vld [vmem:[%s32241_s5 + $0x1468] sm:$0xff]  }
 0x973   : > { %23181 = vmatprep.subr.bf16.mxu1 %v25680_v3  ;;  %v25720_v3 = vld [vmem:[%s32241_s5 + $0x14e8] sm:$0xff]  }
 0x975   : > { %23160 = vmatpush3.bf16.msra.mxu0 %v25681_v35  ;;  %v25721_v35 = vld [vmem:[%s32241_s5 + $0x1428] sm:$0xff]  }
 0x976   : > { %23182 = vmatpush3.bf16.msra.mxu1 %v25682_v40  ;;  %23161 = vmatprep.subr.bf16.mxu0 %v25683_v56  ;;  %v25722_v40 = vld [vmem:[%s32241_s5 + $0x14a8] sm:$0xff]   ;;  %v25723_v56 = vld [vmem:[%s32241_s5 + $0x1470] sm:$0xff]  }
 0x977   : > { %23183 = vmatprep.subr.bf16.mxu1 %v25684_v7 }
 0x979   : > { %23162 = vmatpush3.bf16.msra.mxu0 %v25685_v53  ;;  %v25724_v53 = vld [vmem:[%s32241_s5 + $0x14f0] sm:$0xff]  }
 0x97a   : > { %23184 = vmatpush3.bf16.msra.mxu1 %v25686_v2  ;;  %23163 = vmatprep.subr.bf16.mxu0 %v25687_v6 }
 0x97b   : > { %v22861_v38 = vpop.f32.mrb[136].mxu0  ;;  %23185 = vmatprep.subr.bf16.mxu1 %v25688_v59 }
 0x97c   : > { %v22883_v23 = vpop.f32.mrb[136].mxu1  ;;  %v22862_v25 = vpop.f32.mrb[137].mxu0 }
 0x97d   : > { %v22863_v19 = vadd.f32 %v22862_v25, %v22861_v38  ;;  %v22884_v44 = vpop.f32.mrb[137].mxu1  ;;  %v22864_v36 = vpop.f32.mrb[138].mxu0  ;;  %23164 = vmatpush3.bf16.msra.mxu0 %v25689_v15  ;;  %v25726_v25 = vld [vmem:[%s32241_s5 + $0x14b0] sm:$0xff]  }
 0x97e   : > { %v22885_v30 = vadd.f32 %v22884_v44, %v22883_v23  ;;  %v22886_v37 = vpop.f32.mrb[138].mxu1  ;;  %23186 = vmatpush3.bf16.msra.mxu1 %v25690_v12  ;;  %v22865_v48 = vpop.f32.mrb[139].mxu0  ;;  %23165 = vmatprep.subr.bf16.mxu0 %v25691_v20  ;;  %v25725_v20 = vld [vmem:[%s32241_s5 + $0x1430] sm:$0xff]   ;;  %v25728_v36 = vld [vmem:[%s32241_s5 + $0x14f8] sm:$0xff]  }
 0x97f   : > { %v22887_v1 = vpop.f32.mrb[139].mxu1  ;;  %23187 = vmatprep.subr.bf16.mxu1 %v25692_v39 }
 0x980   : > { %v15590_v61 = vadd.f32 %v22885_v30, %v22863_v19  ;;  %v25727_v19 = vld [vmem:[%s32241_s5 + $0x1478] sm:$0xff]  }
 0x981   : > { %23166 = vmatpush3.bf16.msra.mxu0 %v25693_v63  ;;  %v25729_v30 = vld [vmem:[%s32241_s5 + $0x1438] sm:$0xff]  }
 0x982   : > { %v15596_v47 = vrot.slane %v15590_v61, 1  ;;  %v15597_v32 = vrot.slane %v15590_v61, 2  ;;  %v15598_v27 = vrot.slane %v15590_v61, 3  ;;  %v32104_v17 = vadd.f32 %v15590_v61, %v31992_v4  ;;  %23188 = vmatpush3.bf16.msra.mxu1 %v25694_v14  ;;  %23167 = vmatprep.subr.bf16.mxu0 %v25695_v31  ;;  %v25730_v1 = vld [vmem:[%s32241_s5 + $0x14b8] sm:$0xff]  }
 0x983   : > { %23189 = vmatprep.subr.bf16.mxu1 %v25696_v22 }
 0x984   : > { %v32116_v8 = vadd.f32 %v15596_v47, %v32004_v49  ;;  %v32119_v4 = vadd.f32 %v15597_v32, %v32007_v42  ;;  %v32122_v28 = vadd.f32 %v15598_v27, %v32010_v18  ;;  %v25702_v49 = vld [vmem:[%s32241_s5 + $0x1480] sm:$0xff]   ;;  %v25703_v42 = vld [vmem:[%s32241_s5 + $0x1448] sm:$0xff]   ;;  %v10971_v18 = vpack.c.bf16 %v30315_v13, %v30315_v13 }
 0x985   : > { %23168 = vmatpush3.bf16.msra.mxu0 %v25697_v33  ;;  %v25706_v13 = vld [vmem:[%s32241_s5 + $0x1488] sm:$0xff]   ;;  %v10970_v47 = vpack.c.bf16 %v30305_v29, %v30305_v29  ;;  %v10972_v32 = vpack.c.bf16 %v30307_v5, %v30307_v5 }
 0x986   : > { %23190 = vmatpush3.bf16.msra.mxu1 %v25698_v46  ;;  %23197 = vmatprep.subr.bf16.mxu0 %v25699_v50 }
 0x987   : > { %23219 = vmatprep.subr.bf16.mxu1 %v25700_v11 }
 0x988   : > { %18047 = vmatmul.mubr.bf16.vlgmr.msra.gmra.mrb[164].mxu0 %v17814_v16 }
 0x989   : > { %18087 = vmatmul.mubr.bf16.vlgmr.msra.gmra.mrb[164].mxu1 %v17816_v41  ;;  %23198 = vmatpush3.bf16.msra.mxu0 %v25701_v21 }
 0x98a   : > { %18395 = vmatprep.mubr.bf16.mxu0 %v10971_v18  ;;  %23220 = vmatpush3.bf16.msra.mxu1 %v25702_v49 }
 0x98b   : > { %18435 = vmatprep.mubr.bf16.mxu1 %v10973_v10  ;;  %23199 = vmatprep.subr.bf16.mxu0 %v25703_v42 }
 0x98c   : > { %23221 = vmatprep.subr.bf16.mxu1 %v25704_v62 }
 0x98d   : > { %23200 = vmatpush3.bf16.msra.mxu0 %v25705_v45 }
 0x98e   : > { %23222 = vmatpush3.bf16.msra.mxu1 %v25706_v13  ;;  %23201 = vmatprep.subr.bf16.mxu0 %v25707_v43 }
 0x98f   : > { %23223 = vmatprep.subr.bf16.mxu1 %v25708_v55 }
 0x991   : > { %23202 = vmatpush3.bf16.msra.mxu0 %v25709_v57 }
 0x992   : > { %23224 = vmatpush3.bf16.msra.mxu1 %v25710_v52  ;;  %23203 = vmatprep.subr.bf16.mxu0 %v25711_v34 }
 0x993   : > { %23225 = vmatprep.subr.bf16.mxu1 %v25712_v24 }
 0x995   : > { %23204 = vmatpush3.bf16.msra.mxu0 %v25713_v9 }
 0x996   : > { %23226 = vmatpush3.bf16.msra.mxu1 %v25714_v0  ;;  %23205 = vmatprep.subr.bf16.mxu0 %v25715_v26 }
 0x997   : > { %23227 = vmatprep.subr.bf16.mxu1 %v25716_v58 }
 0x999   : > { %23206 = vmatpush3.bf16.msra.mxu0 %v25717_v60 }
 0x99a   : > { %23228 = vmatpush3.bf16.msra.mxu1 %v25718_v51  ;;  %23207 = vmatprep.subr.bf16.mxu0 %v25719_v54 }
 0x99b   : > { %v22905_v7 = vpop.f32.mrb[140].mxu0  ;;  %23229 = vmatprep.subr.bf16.mxu1 %v25720_v3 }
 0x99c   : > { %v22927_v2 = vpop.f32.mrb[140].mxu1  ;;  %v22906_v6 = vpop.f32.mrb[141].mxu0 }
 0x99d   : > { %v22907_v59 = vadd.f32 %v22906_v6, %v22905_v7  ;;  %v22928_v15 = vpop.f32.mrb[141].mxu1  ;;  %v22908_v12 = vpop.f32.mrb[142].mxu0  ;;  %23208 = vmatpush3.bf16.msra.mxu0 %v25721_v35 }
 0x99e   : > { %v22929_v38 = vadd.f32 %v22928_v15, %v22927_v2  ;;  %v22930_v39 = vpop.f32.mrb[142].mxu1  ;;  %23230 = vmatpush3.bf16.msra.mxu1 %v25722_v40  ;;  %v22909_v23 = vpop.f32.mrb[143].mxu0  ;;  %23209 = vmatprep.subr.bf16.mxu0 %v25723_v56 }
 0x99f   : > { %v22931_v44 = vpop.f32.mrb[143].mxu1  ;;  %23231 = vmatprep.subr.bf16.mxu1 %v25724_v53 }
 0x9a0   : > { %v15951_v63 = vadd.f32 %v22929_v38, %v22907_v59 }
 0x9a1   : > { %23210 = vmatpush3.bf16.msra.mxu0 %v25725_v20 }
 0x9a2   : > { %v15957_v37 = vrot.slane %v15951_v63, 1  ;;  %v15958_v48 = vrot.slane %v15951_v63, 2  ;;  %v15959_v14 = vrot.slane %v15951_v63, 3  ;;  %v15964_v31 = vadd.f32 %v15951_v63, %v32104_v17  ;;  %23232 = vmatpush3.bf16.msra.mxu1 %v25726_v25  ;;  %23211 = vmatprep.subr.bf16.mxu0 %v25727_v19 }
 0x9a3   : > { %23233 = vmatprep.subr.bf16.mxu1 %v25728_v36 }
 0x9a4   : > { %v15965_v22 = vadd.f32 %v15957_v37, %v32116_v8  ;;  %v15966_v61 = vadd.f32 %v15958_v48, %v32119_v4  ;;  %v15967_v33 = vadd.f32 %v15959_v14, %v32122_v28 }
 0x9a5   : > { %23212 = vmatpush3.bf16.msra.mxu0 %v25729_v30 }
 0x9a6   : > { %23234 = vmatpush3.bf16.msra.mxu1 %v25730_v1 }
 0x9a8   : > { %18396 = vmatmul.mubr.bf16.vlgmr.msra.gmra.mrb[168].mxu0 %v10970_v47 }
 0x9a9   : > { %18436 = vmatmul.mubr.bf16.vlgmr.msra.gmra.mrb[168].mxu1 %v10972_v32 }
 0x9bb   : > { %v22949_v27 = vpop.f32.mrb[144].mxu0 }
 0x9bc   : > { %v22971_v17 = vpop.f32.mrb[144].mxu1  ;;  %v22950_v46 = vpop.f32.mrb[145].mxu0 }
 0x9bd   : > { %v22951_v50 = vadd.f32 %v22950_v46, %v22949_v27  ;;  %v22972_v11 = vpop.f32.mrb[145].mxu1  ;;  %v22952_v8 = vpop.f32.mrb[146].mxu0 }
 0x9be   : > { %v22973_v21 = vadd.f32 %v22972_v11, %v22971_v17  ;;  %v22974_v4 = vpop.f32.mrb[146].mxu1  ;;  %v22953_v16 = vpop.f32.mrb[147].mxu0 }
 0x9bf   : > { %v22975_v28 = vpop.f32.mrb[147].mxu1 }
 0x9c0   : > { %v16308_v49 = vadd.f32 %v22973_v21, %v22951_v50 }
 0x9c2   : > { %v16314_v41 = vrot.slane %v16308_v49, 1  ;;  %v16315_v42 = vrot.slane %v16308_v49, 2  ;;  %v16316_v29 = vrot.slane %v16308_v49, 3  ;;  %v16321_v18 = vadd.f32 %v16308_v49, %v15964_v31 }
 0x9c4   : > { %v16322_v62 = vadd.f32 %v16314_v41, %v15965_v22  ;;  %v16323_v10 = vadd.f32 %v16315_v42, %v15966_v61  ;;  %v16324_v5 = vadd.f32 %v16316_v29, %v15967_v33 }
 0x9db   : > { %v22993_v45 = vpop.f32.mrb[148].mxu0 }
 0x9dc   : > { %v23015_v13 = vpop.f32.mrb[148].mxu1  ;;  %v22994_v43 = vpop.f32.mrb[149].mxu0 }
 0x9dd   : > { %v22995_v55 = vadd.f32 %v22994_v43, %v22993_v45  ;;  %v23016_v57 = vpop.f32.mrb[149].mxu1  ;;  %v22996_v52 = vpop.f32.mrb[150].mxu0 }
 0x9de   : > { %v23017_v34 = vadd.f32 %v23016_v57, %v23015_v13  ;;  %v23018_v24 = vpop.f32.mrb[150].mxu1  ;;  %v22997_v9 = vpop.f32.mrb[151].mxu0 }
 0x9df   : > { %v23019_v0 = vpop.f32.mrb[151].mxu1 }
 0x9e0   : > { %v16665_v26 = vadd.f32 %v23017_v34, %v22995_v55 }
 0x9e2   : > { %v16671_v58 = vrot.slane %v16665_v26, 1  ;;  %v16672_v60 = vrot.slane %v16665_v26, 2  ;;  %v16673_v51 = vrot.slane %v16665_v26, 3  ;;  %v16678_v54 = vadd.f32 %v16665_v26, %v16321_v18 }
 0x9e4   : > { %v16679_v3 = vadd.f32 %v16671_v58, %v16322_v62  ;;  %v16680_v35 = vadd.f32 %v16672_v60, %v16323_v10  ;;  %v16681_v40 = vadd.f32 %v16673_v51, %v16324_v5 }
 0x9fb   : > { %v23037_v56 = vpop.f32.mrb[152].mxu0 }
 0x9fc   : > { %v23059_v7 = vpop.f32.mrb[152].mxu1  ;;  %v23038_v53 = vpop.f32.mrb[153].mxu0 }
 0x9fd   : > { %v23039_v2 = vadd.f32 %v23038_v53, %v23037_v56  ;;  %v23060_v6 = vpop.f32.mrb[153].mxu1  ;;  %v23040_v59 = vpop.f32.mrb[154].mxu0 }
 0x9fe   : > { %v23061_v15 = vadd.f32 %v23060_v6, %v23059_v7  ;;  %v23062_v12 = vpop.f32.mrb[154].mxu1  ;;  %v23041_v20 = vpop.f32.mrb[155].mxu0 }
 0x9ff   : > { %v23063_v38 = vpop.f32.mrb[155].mxu1 }
 0xa00   : > { %v17014_v39 = vadd.f32 %v23061_v15, %v23039_v2 }
 0xa02   : > { %v17020_v23 = vrot.slane %v17014_v39, 1  ;;  %v17021_v25 = vrot.slane %v17014_v39, 2  ;;  %v17022_v19 = vrot.slane %v17014_v39, 3  ;;  %v17027_v44 = vadd.f32 %v17014_v39, %v16678_v54 }
 0xa04   : > { %v17028_v36 = vadd.f32 %v17020_v23, %v16679_v3  ;;  %v17029_v63 = vadd.f32 %v17021_v25, %v16680_v35  ;;  %v17030_v30 = vadd.f32 %v17022_v19, %v16681_v40 }
 0xa1b   : > { %v23081_v37 = vpop.f32.mrb[156].mxu0 }
 0xa1c   : > { %v23103_v48 = vpop.f32.mrb[156].mxu1  ;;  %v23082_v14 = vpop.f32.mrb[157].mxu0 }
 0xa1d   : > { %v23083_v31 = vadd.f32 %v23082_v14, %v23081_v37  ;;  %v23104_v1 = vpop.f32.mrb[157].mxu1  ;;  %v23084_v22 = vpop.f32.mrb[158].mxu0 }
 0xa1e   : > { %v23105_v61 = vadd.f32 %v23104_v1, %v23103_v48  ;;  %v23106_v33 = vpop.f32.mrb[158].mxu1  ;;  %v23085_v47 = vpop.f32.mrb[159].mxu0 }
 0xa1f   : > { %v23107_v32 = vpop.f32.mrb[159].mxu1 }
 0xa20   : > { %v17375_v27 = vadd.f32 %v23105_v61, %v23083_v31 }
 0xa22   : > { %v17381_v17 = vrot.slane %v17375_v27, 1  ;;  %v17382_v46 = vrot.slane %v17375_v27, 2  ;;  %v17383_v50 = vrot.slane %v17375_v27, 3  ;;  %v17388_v11 = vadd.f32 %v17375_v27, %v17027_v44 }
 0xa24   : > { %v17389_v8 = vadd.f32 %v17381_v17, %v17028_v36  ;;  %v17390_v21 = vadd.f32 %v17382_v46, %v17029_v63  ;;  %v17391_v4 = vadd.f32 %v17383_v50, %v17030_v30 }
 0xa3b   : > { %v23125_v16 = vpop.f32.mrb[160].mxu0 }
 0xa3c   : > { %v23147_v28 = vpop.f32.mrb[160].mxu1  ;;  %v23126_v49 = vpop.f32.mrb[161].mxu0 }
 0xa3d   : > { %v23127_v41 = vadd.f32 %v23126_v49, %v23125_v16  ;;  %v23148_v42 = vpop.f32.mrb[161].mxu1  ;;  %v23128_v29 = vpop.f32.mrb[162].mxu0 }
 0xa3e   : > { %v23149_v18 = vadd.f32 %v23148_v42, %v23147_v28  ;;  %v23150_v62 = vpop.f32.mrb[162].mxu1  ;;  %v23129_v10 = vpop.f32.mrb[163].mxu0 }
 0xa3f   : > { %v23151_v5 = vpop.f32.mrb[163].mxu1 }
 0xa40   : > { %v17732_v45 = vadd.f32 %v23149_v18, %v23127_v41 }
 0xa42   : > { %v17738_v13 = vrot.slane %v17732_v45, 1  ;;  %v17739_v43 = vrot.slane %v17732_v45, 2  ;;  %v17740_v55 = vrot.slane %v17732_v45, 3  ;;  %v17745_v57 = vadd.f32 %v17732_v45, %v17388_v11 }
 0xa44   : > { %v17746_v52 = vadd.f32 %v17738_v13, %v17389_v8  ;;  %v17747_v34 = vadd.f32 %v17739_v43, %v17390_v21  ;;  %v17748_v24 = vadd.f32 %v17740_v55, %v17391_v4 }
 0xa5b   : > { %v23169_v9 = vpop.f32.mrb[164].mxu0 }
 0xa5c   : > { %v23191_v0 = vpop.f32.mrb[164].mxu1  ;;  %v23170_v26 = vpop.f32.mrb[165].mxu0 }
 0xa5d   : > { %v23171_v58 = vadd.f32 %v23170_v26, %v23169_v9  ;;  %v23192_v60 = vpop.f32.mrb[165].mxu1  ;;  %v23172_v51 = vpop.f32.mrb[166].mxu0 }
 0xa5e   : > { %v23193_v54 = vadd.f32 %v23192_v60, %v23191_v0  ;;  %v23194_v3 = vpop.f32.mrb[166].mxu1  ;;  %v23173_v35 = vpop.f32.mrb[167].mxu0 }
 0xa5f   : > { %v23195_v40 = vpop.f32.mrb[167].mxu1 }
 0xa60   : > { %v18089_v56 = vadd.f32 %v23193_v54, %v23171_v58 }
 0xa62   : > { %v18095_v7 = vrot.slane %v18089_v56, 1  ;;  %v18096_v53 = vrot.slane %v18089_v56, 2  ;;  %v18097_v2 = vrot.slane %v18089_v56, 3  ;;  %v18102_v6 = vadd.f32 %v18089_v56, %v17745_v57 }
 0xa64   : > { %v18103_v59 = vadd.f32 %v18095_v7, %v17746_v52  ;;  %v18104_v15 = vadd.f32 %v18096_v53, %v17747_v34  ;;  %v18105_v12 = vadd.f32 %v18097_v2, %v17748_v24 }
 0xa7b   : > { %v23213_v20 = vpop.f32.mrb[168].mxu0 }
 0xa7c   : > { %v23235_v38 = vpop.f32.mrb[168].mxu1  ;;  %v23214_v39 = vpop.f32.mrb[169].mxu0 }
 0xa7d   : > { %v23215_v23 = vadd.f32 %v23214_v39, %v23213_v20  ;;  %v23236_v25 = vpop.f32.mrb[169].mxu1  ;;  %v23216_v19 = vpop.f32.mrb[170].mxu0 }
 0xa7e   : > { %v23237_v44 = vadd.f32 %v23236_v25, %v23235_v38  ;;  %v23238_v36 = vpop.f32.mrb[170].mxu1  ;;  %v23217_v63 = vpop.f32.mrb[171].mxu0 }
 0xa7f   : > { %v23239_v30 = vpop.f32.mrb[171].mxu1 }
 0xa80   : > { %v18438_v37 = vadd.f32 %v23237_v44, %v23215_v23 }
 0xa82   : > { %v18444_v48 = vrot.slane %v18438_v37, 1  ;;  %v18445_v14 = vrot.slane %v18438_v37, 2  ;;  %v18446_v31 = vrot.slane %v18438_v37, 3  ;;  %v18451_v1 = vadd.f32 %v18438_v37, %v18102_v6 }
 0xa84   : > { %v18452_v22 = vadd.f32 %v18444_v48, %v18103_v59  ;;  %v18453_v61 = vadd.f32 %v18445_v14, %v18104_v15  ;;  %v18454_v33 = vadd.f32 %v18446_v31, %v18105_v12 }
 0xa86   : > { %v18459_v47 = vrot.slane %v18452_v22, 7  ;;  %v18462_v32 = vrot.slane %v18453_v61, 6  ;;  %v18465_v17 = vrot.slane %v18454_v33, 5 }
 0xa88   : > { %v18461_v27 = vsel %vm18460_vm0, %v18459_v47, %v18451_v1 }
 0xa89   : > { %v18464_v46 = vsel %vm18463_vm1, %v18462_v32, %v18461_v27 }
 0xa8a   : > { %v18467_v50 = vsel %vm18466_vm2, %v18465_v17, %v18464_v46 }
 0xa8b   : > { %18469 = vst [vmem:[%s291_s28] sm:$0xf] %v18467_v50 }
 0xa8c PF: > { %s16_s21 = sadd.s32 1, %s25737_s21  }
 0xa8d   : > { %p13_p5 = scmp.ge.s32.totalorder %s16_s21, 4  }
 0xa8f   :  { %15 = sbr.rel (!%p13_p5) target bundleno = 1 (0x1), region = 100 }

</bundles_post_ra>
